<compile_context>
chip_gen: v7x
topology: tpu7x:2x2x1
jax: 0.10.0
libtpu: 0.0.40
codegen_flags: <defaults>
</compile_context>

<pallas_src>
import functools

import jax
import jax.numpy as jnp
import numpy as np
from jax.experimental import pallas as pl
from jax.experimental.pallas import tpu as pltpu

# ------------------------- configuration (cfg.*) -------------------------
NUM_LABELS = 4             # cfg.num_labels -> cls_score out_features = 5
IN_FEATURES = 256 * 7 * 7  # 12544, fixed by the module definition
HIDDEN = 1024
OUT_PAD = 128              # lane-dense fused (cls + bbox) output width

_NEG_BIG = -1e30           # masked-softmax fill value


def _roi_head_kernel(num_cls, x_ref, w1_ref, b1_ref, w2_ref, b2_ref,
                     wh_ref, bh_ref, out_ref, acc_ref):
    """Fused MLP head: fc1 (K-tiled, f32 acc) + relu, fc2 + relu,
    fused cls/bbox matmul, masked softmax over the first num_cls lanes."""
    k = pl.program_id(1)

    @pl.when(k == 0)
    def _():
        acc_ref[...] = jnp.zeros_like(acc_ref)

    # fc1 partial product over the K (12544) reduction axis (bf16 x bf16 -> f32).
    acc_ref[...] += jnp.dot(x_ref[...], w1_ref[...],
                            preferred_element_type=jnp.float32)

    @pl.when(k == pl.num_programs(1) - 1)
    def _():
        # fc1 bias + ReLU (f32 epilogue).
        h1 = jnp.maximum(acc_ref[...] + b1_ref[...], 0.0)
        # fc2 + ReLU (bf16 MXU inputs, f32 accumulate).
        h2 = jnp.maximum(
            jnp.dot(h1.astype(w2_ref.dtype), w2_ref[...],
                    preferred_element_type=jnp.float32) + b2_ref[...], 0.0)
        # Fused cls_score + bbox_pred: one lane-dense (HIDDEN, 128) matmul.
        fused = jnp.dot(h2.astype(wh_ref.dtype), wh_ref[...],
                        preferred_element_type=jnp.float32) + bh_ref[...]
        # Softmax only over the first num_cls lanes; deltas (and zero padding)
        # pass through untouched -> single unmasked 128-wide store.
        col = jax.lax.broadcasted_iota(jnp.int32, fused.shape, 1)
        is_cls = col < num_cls
        logits = jnp.where(is_cls, fused, _NEG_BIG)
        m = jnp.max(logits, axis=-1, keepdims=True)
        e = jnp.where(is_cls, jnp.exp(logits - m), 0.0)
        probs = e / jnp.sum(e, axis=-1, keepdims=True)
        out_ref[...] = jnp.where(is_cls, probs, fused).astype(out_ref.dtype)


def pack_params(params):
    """One-time packing: fuse cls/bbox heads (zero-padded to 128 lanes) and
    cast the streamed weight matrices to bf16.  Do NOT call this per step —
    the point is to avoid an f32->bf16 HBM pass on every invocation."""
    w1, b1, w2, b2, wc, bc, wb, bb = params
    num_cls = wc.shape[1]
    num_out = num_cls + 4
    wh = jnp.zeros((HIDDEN, OUT_PAD), jnp.float32)
    wh = wh.at[:, :num_cls].set(wc).at[:, num_cls:num_out].set(wb)
    bh = jnp.zeros((1, OUT_PAD), jnp.float32)
    bh = bh.at[:, :num_cls].set(bc).at[:, num_cls:num_out].set(bb)
    packed = (w1.astype(jnp.bfloat16), b1,
              w2.astype(jnp.bfloat16), b2,
              wh.astype(jnp.bfloat16), bh)
    return packed, num_cls


@functools.partial(jax.jit, static_argnames=("num_cls", "tk", "row_block"))
def roi_head_predict(x_flat, packed, num_cls, *, tk=1792, row_block=128):
    """predict_scores_deltas: x_flat (N, 12544) -> (scores (N, num_cls), deltas (N, 4))."""
    assert tk % 128 == 0 and tk > 0
    assert row_block % 8 == 0 and row_block > 0
    w1b, b1, w2b, b2, whb, bh = packed
    n, k_total = x_flat.shape
    num_out = num_cls + 4

    xb = x_flat.astype(jnp.bfloat16)

    # Pad K so the reduction tiles evenly (zeros contribute nothing to the dot).
    k_pad = (-k_total) % tk
    if k_pad:
        xb = jnp.pad(xb, ((0, 0), (0, k_pad)))
        w1b = jnp.pad(w1b, ((0, k_pad), (0, 0)))
    kt = (k_total + k_pad) // tk

    # Pad N to the row block (min 8 sublanes); 128-row blocks keep all
    # generations (incl. v5e's 128-wide MXU) efficient.
    tn = min(row_block, max(8, -(-n // 8) * 8))
    n_pad = (-n) % tn
    if n_pad:
        xb = jnp.pad(xb, ((0, n_pad), (0, 0)))
    nt = (n + n_pad) // tn

    grid_spec = pltpu.PrefetchScalarGridSpec(
        num_scalar_prefetch=0,
        grid=(nt, kt),                                          # K last (reduction)
        in_specs=[
            pl.BlockSpec((tn, tk), lambda i, k: (i, k)),        # x      (bf16)
            pl.BlockSpec((tk, HIDDEN), lambda i, k: (k, 0)),    # W1     (bf16)
            pl.BlockSpec((1, HIDDEN), lambda i, k: (0, 0)),     # b1     (f32)
            pl.BlockSpec((HIDDEN, HIDDEN), lambda i, k: (0, 0)),# W2     (bf16)
            pl.BlockSpec((1, HIDDEN), lambda i, k: (0, 0)),     # b2     (f32)
            pl.BlockSpec((HIDDEN, OUT_PAD), lambda i, k: (0, 0)),# W_head (bf16, fused)
            pl.BlockSpec((1, OUT_PAD), lambda i, k: (0, 0)),    # b_head (f32, fused)
        ],
        out_specs=pl.BlockSpec((tn, OUT_PAD), lambda i, k: (i, 0)),
        scratch_shapes=[pltpu.VMEM((tn, HIDDEN), jnp.float32)],
    )

    out = pl.pallas_call(
        functools.partial(_roi_head_kernel, num_cls),
        out_shape=jax.ShapeDtypeStruct((n + n_pad, OUT_PAD), jnp.float32),
        grid_spec=grid_spec,
        compiler_params=pltpu.CompilerParams(
            dimension_semantics=("parallel", "arbitrary"),
            vmem_limit_bytes=40 * 1024 * 1024),   # ~13 MiB used; safe on v7x (64 MiB)
    )(xb, w1b, b1, w2b, b2, whb, bh)

    scores = out[:n, :num_cls]
    deltas = out[:n, num_cls:num_out]
    return scores, deltas


def init_params(key):
    """Deterministic synthetic parameters with nn.Linear-like shapes."""
    ks = jax.random.split(key, 8)

    def lin(kw, kb, fin, fout):
        scale = 1.0 / np.sqrt(fin)
        w = jax.random.uniform(kw, (fin, fout), jnp.float32, -scale, scale)
        b = jax.random.uniform(kb, (1, fout), jnp.float32, -scale, scale)
        return w, b

    w1, b1 = lin(ks[0], ks[1], IN_FEATURES, HIDDEN)
    w2, b2 = lin(ks[2], ks[3], HIDDEN, HIDDEN)
    wc, bc = lin(ks[4], ks[5], HIDDEN, NUM_LABELS + 1)
    wb, bb = lin(ks[6], ks[7], HIDDEN, 4)
    return (w1, b1, w2, b2, wc, bc, wb, bb)


def reference_predict(x_flat, params):
    w1, b1, w2, b2, wc, bc, wb, bb = params
    h1 = jnp.maximum(x_flat @ w1 + b1, 0.0)
    h2 = jnp.maximum(h1 @ w2 + b2, 0.0)
    scores = jax.nn.softmax(h2 @ wc + bc, axis=1)
    deltas = h2 @ wb + bb
    return scores, deltas


if __name__ == "__main__":
    key = jax.random.PRNGKey(0)
    k_feat, k_par = jax.random.split(key)

    # Synthetic ROI-aligned features: (num_rois, 256, 7, 7), NCHW like PyTorch.
    num_rois = 8
    align_features = jax.random.normal(
        k_feat, (num_rois, 256, 7, 7), jnp.float32) * 0.1

    params = init_params(k_par)
    packed, num_cls = pack_params(params)   # one-time bf16 packing

    # Glue: flatten exactly like nn.Flatten(start_dim=1) on NCHW.
    x_flat = align_features.reshape(num_rois, -1)

    scores, deltas = roi_head_predict(x_flat, packed, num_cls)
    jax.block_until_ready((scores, deltas))

    # Validate against the f32 reference (bf16 weight streaming is the
    # intentional approximation; errors are ~1e-3 absolute at these scales).
    ref_scores, ref_deltas = reference_predict(x_flat, params)
    np.testing.assert_allclose(np.asarray(scores), np.asarray(ref_scores),
                               rtol=2e-2, atol=1e-2)
    np.testing.assert_allclose(np.asarray(deltas), np.asarray(ref_deltas),
                               rtol=2e-2, atol=1e-2)

    print("KERNEL_OK")
</pallas_src>

<mosaic_0001>
module attributes {stable_mosaic.version = 11 : i64} {
  func.func @_roi_head_kernel(%arg0: i32, %arg1: i32, %arg2: memref<8x1792xbf16, #tpu.memory_space<vmem>>, %arg3: memref<1792x1024xbf16, #tpu.memory_space<vmem>>, %arg4: memref<1x1024xf32, #tpu.memory_space<vmem>>, %arg5: memref<1024x1024xbf16, #tpu.memory_space<vmem>>, %arg6: memref<1x1024xf32, #tpu.memory_space<vmem>>, %arg7: memref<1024x128xbf16, #tpu.memory_space<vmem>>, %arg8: memref<1x128xf32, #tpu.memory_space<vmem>>, %arg9: memref<8x128xf32, #tpu.memory_space<vmem>>, %arg10: memref<8x1024xf32, #tpu.memory_space<vmem>>) attributes {dimension_semantics = [#tpu.dimension_semantics<parallel>, #tpu.dimension_semantics<arbitrary>], iteration_bounds = array<i64: 1, 7>, scalar_prefetch = 0 : i64, scratch_operands = 1 : i64, tpu.core_type = #tpu.core_type<tc>, window_params = [{transform_indices = @transform_0, window_bounds = array<i64: 8, 1792>}, {transform_indices = @transform_1, window_bounds = array<i64: 1792, 1024>}, {pipeline_mode = #tpu.pipeline_mode<synchronous>, transform_indices = @transform_2, window_bounds = array<i64: 1, 1024>}, {pipeline_mode = #tpu.pipeline_mode<synchronous>, transform_indices = @transform_3, window_bounds = array<i64: 1024, 1024>}, {pipeline_mode = #tpu.pipeline_mode<synchronous>, transform_indices = @transform_4, window_bounds = array<i64: 1, 1024>}, {pipeline_mode = #tpu.pipeline_mode<synchronous>, transform_indices = @transform_5, window_bounds = array<i64: 1024, 128>}, {pipeline_mode = #tpu.pipeline_mode<synchronous>, transform_indices = @transform_6, window_bounds = array<i64: 1, 128>}, {transform_indices = @transform_7, window_bounds = array<i64: 8, 128>}]} {
    %c0_i32 = arith.constant 0 : i32
    %0 = arith.cmpi eq, %arg1, %c0_i32 : i32
    %1 = arith.extui %0 : i1 to i32
    %c0_i32_0 = arith.constant 0 : i32
    %2 = arith.cmpi ne, %1, %c0_i32_0 : i32
    scf.if %2 {
      %cst_9 = arith.constant 0.000000e+00 : f32
      %12 = vector.broadcast %cst_9 : f32 to vector<8x1024xf32>
      %c0_10 = arith.constant 0 : index
      %c0_11 = arith.constant 0 : index
      %13 = vector.load %arg10[%c0_10, %c0_11] : memref<8x1024xf32, #tpu.memory_space<vmem>>, vector<8x1024xf32>
      tpu.vector_store %arg10[%c0_10, %c0_11], %12 {strides = array<i32>} : memref<8x1024xf32, #tpu.memory_space<vmem>>, vector<8x1024xf32>,
    } else {
    }
    %c0 = arith.constant 0 : index
    %c0_1 = arith.constant 0 : index
    %3 = vector.load %arg10[%c0, %c0_1] : memref<8x1024xf32, #tpu.memory_space<vmem>>, vector<8x1024xf32>
    %c0_2 = arith.constant 0 : index
    %c0_3 = arith.constant 0 : index
    %4 = vector.load %arg2[%c0_2, %c0_3] : memref<8x1792xbf16, #tpu.memory_space<vmem>>, vector<8x1792xbf16>
    %c0_4 = arith.constant 0 : index
    %c0_5 = arith.constant 0 : index
    %5 = vector.load %arg3[%c0_4, %c0_5] : memref<1792x1024xbf16, #tpu.memory_space<vmem>>, vector<1792x1024xbf16>
    %cst = arith.constant dense<0.000000e+00> : vector<8x1024xf32>
    %6 = tpu.matmul %4, %5, %cst {dimension_numbers = #tpu.dot_dimension_numbers<[1], [0], [0], [1], [0, 0, 1, 1], [], []>} : vector<8x1792xbf16>, vector<1792x1024xbf16>, vector<8x1024xf32> -> vector<8x1024xf32>
    %7 = arith.addf %3, %6 : vector<8x1024xf32>
    %c0_6 = arith.constant 0 : index
    %c0_7 = arith.constant 0 : index
    %8 = vector.load %arg10[%c0_6, %c0_7] : memref<8x1024xf32, #tpu.memory_space<vmem>>, vector<8x1024xf32>
    tpu.vector_store %arg10[%c0_6, %c0_7], %7 {strides = array<i32>} : memref<8x1024xf32, #tpu.memory_space<vmem>>, vector<8x1024xf32>,
    %c6_i32 = arith.constant 6 : i32
    %9 = arith.cmpi eq, %arg1, %c6_i32 : i32
    %10 = arith.extui %9 : i1 to i32
    %c0_i32_8 = arith.constant 0 : i32
    %11 = arith.cmpi ne, %10, %c0_i32_8 : i32
    scf.if %11 {
      %c0_9 = arith.constant 0 : index
      %c0_10 = arith.constant 0 : index
      %12 = vector.load %arg10[%c0_9, %c0_10] : memref<8x1024xf32, #tpu.memory_space<vmem>>, vector<8x1024xf32>
      %c0_11 = arith.constant 0 : index
      %c0_12 = arith.constant 0 : index
      %13 = vector.load %arg4[%c0_11, %c0_12] : memref<1x1024xf32, #tpu.memory_space<vmem>>, vector<1x1024xf32>
      %14 = vector.broadcast %13 : vector<1x1024xf32> to vector<8x1024xf32>
      %15 = arith.addf %12, %14 : vector<8x1024xf32>
      %cst_13 = arith.constant 0.000000e+00 : f32
      %16 = vector.broadcast %cst_13 : f32 to vector<8x1024xf32>
      %17 = arith.maximumf %15, %16 : vector<8x1024xf32>
      %18 = arith.truncf %17 : vector<8x1024xf32> to vector<8x1024xbf16>
      %c0_14 = arith.constant 0 : index
      %c0_15 = arith.constant 0 : index
      %19 = vector.load %arg5[%c0_14, %c0_15] : memref<1024x1024xbf16, #tpu.memory_space<vmem>>, vector<1024x1024xbf16>
      %cst_16 = arith.constant dense<0.000000e+00> : vector<8x1024xf32>
      %20 = tpu.matmul %18, %19, %cst_16 {dimension_numbers = #tpu.dot_dimension_numbers<[1], [0], [0], [1], [0, 0, 1, 1], [], []>} : vector<8x1024xbf16>, vector<1024x1024xbf16>, vector<8x1024xf32> -> vector<8x1024xf32>
      %c0_17 = arith.constant 0 : index
      %c0_18 = arith.constant 0 : index
      %21 = vector.load %arg6[%c0_17, %c0_18] : memref<1x1024xf32, #tpu.memory_space<vmem>>, vector<1x1024xf32>
      %22 = vector.broadcast %21 : vector<1x1024xf32> to vector<8x1024xf32>
      %23 = arith.addf %20, %22 : vector<8x1024xf32>
      %cst_19 = arith.constant 0.000000e+00 : f32
      %24 = vector.broadcast %cst_19 : f32 to vector<8x1024xf32>
      %25 = arith.maximumf %23, %24 : vector<8x1024xf32>
      %26 = arith.truncf %25 : vector<8x1024xf32> to vector<8x1024xbf16>
      %c0_20 = arith.constant 0 : index
      %c0_21 = arith.constant 0 : index
      %27 = vector.load %arg7[%c0_20, %c0_21] : memref<1024x128xbf16, #tpu.memory_space<vmem>>, vector<1024x128xbf16>
      %cst_22 = arith.constant dense<0.000000e+00> : vector<8x128xf32>
      %28 = tpu.matmul %26, %27, %cst_22 {dimension_numbers = #tpu.dot_dimension_numbers<[1], [0], [0], [1], [0, 0, 1, 1], [], []>} : vector<8x1024xbf16>, vector<1024x128xbf16>, vector<8x128xf32> -> vector<8x128xf32>
      %c0_23 = arith.constant 0 : index
      %c0_24 = arith.constant 0 : index
      %29 = vector.load %arg8[%c0_23, %c0_24] : memref<1x128xf32, #tpu.memory_space<vmem>>, vector<1x128xf32>
      %30 = vector.broadcast %29 : vector<1x128xf32> to vector<8x128xf32>
      %31 = arith.addf %28, %30 : vector<8x128xf32>
      %32 = tpu.iota {dimensions = array<i32: 1>} : vector<8x128xi32>
      %c5_i32 = arith.constant 5 : i32
      %33 = vector.broadcast %c5_i32 : i32 to vector<8x128xi32>
      %34 = arith.cmpi slt, %32, %33 : vector<8x128xi32>
      %cst_25 = arith.constant -1.000000e+30 : f32
      %35 = vector.broadcast %cst_25 : f32 to vector<8x128xf32>
      %36 = arith.select %34, %31, %35 : vector<8x128xi1>, vector<8x128xf32>
      %cst_26 = arith.constant dense<0xFF800000> : vector<8xf32>
      %37 = vector.multi_reduction <maximumf>, %36, %cst_26 [1] : vector<8x128xf32> to vector<8xf32>
      %38 = vector.shape_cast %37 : vector<8xf32> to vector<8x1xf32>
      %39 = vector.broadcast %38 : vector<8x1xf32> to vector<8x128xf32>
      %40 = arith.subf %36, %39 : vector<8x128xf32>
      %41 = math.exp %40 : vector<8x128xf32>
      %cst_27 = arith.constant 0.000000e+00 : f32
      %42 = vector.broadcast %cst_27 : f32 to vector<8x128xf32>
      %43 = arith.select %34, %41, %42 : vector<8x128xi1>, vector<8x128xf32>
      %cst_28 = arith.constant dense<0.000000e+00> : vector<8xf32>
      %44 = vector.multi_reduction <add>, %43, %cst_28 [1] : vector<8x128xf32> to vector<8xf32>
      %45 = vector.shape_cast %44 : vector<8xf32> to vector<8x1xf32>
      %46 = vector.broadcast %45 : vector<8x1xf32> to vector<8x128xf32>
      %47 = arith.divf %43, %46 : vector<8x128xf32>
      %48 = arith.select %34, %47, %31 : vector<8x128xi1>, vector<8x128xf32>
      %c0_29 = arith.constant 0 : index
      %c0_30 = arith.constant 0 : index
      %49 = vector.load %arg9[%c0_29, %c0_30] : memref<8x128xf32, #tpu.memory_space<vmem>>, vector<8x128xf32>
      tpu.vector_store %arg9[%c0_29, %c0_30], %48 {strides = array<i32>} : memref<8x128xf32, #tpu.memory_space<vmem>>, vector<8x128xf32>,
    } else {
    }
    return
  }
  func.func @transform_0(%arg0: i32, %arg1: i32) -> (i32, i32) {
    %c0_i32 = arith.constant 0 : i32
    return %arg0, %arg1 : i32, i32
  }
  func.func @transform_1(%arg0: i32, %arg1: i32) -> (i32, i32) {
    %c0_i32 = arith.constant 0 : i32
    %c0_i32_0 = arith.constant 0 : i32
    return %arg1, %c0_i32 : i32, i32
  }
  func.func @transform_2(%arg0: i32, %arg1: i32) -> (i32, i32) {
    %c0_i32 = arith.constant 0 : i32
    %c0_i32_0 = arith.constant 0 : i32
    %c0_i32_1 = arith.constant 0 : i32
    return %c0_i32, %c0_i32_0 : i32, i32
  }
  func.func @transform_3(%arg0: i32, %arg1: i32) -> (i32, i32) {
    %c0_i32 = arith.constant 0 : i32
    %c0_i32_0 = arith.constant 0 : i32
    %c0_i32_1 = arith.constant 0 : i32
    return %c0_i32, %c0_i32_0 : i32, i32
  }
  func.func @transform_4(%arg0: i32, %arg1: i32) -> (i32, i32) {
    %c0_i32 = arith.constant 0 : i32
    %c0_i32_0 = arith.constant 0 : i32
    %c0_i32_1 = arith.constant 0 : i32
    return %c0_i32, %c0_i32_0 : i32, i32
  }
  func.func @transform_5(%arg0: i32, %arg1: i32) -> (i32, i32) {
    %c0_i32 = arith.constant 0 : i32
    %c0_i32_0 = arith.constant 0 : i32
    %c0_i32_1 = arith.constant 0 : i32
    return %c0_i32, %c0_i32_0 : i32, i32
  }
  func.func @transform_6(%arg0: i32, %arg1: i32) -> (i32, i32) {
    %c0_i32 = arith.constant 0 : i32
    %c0_i32_0 = arith.constant 0 : i32
    %c0_i32_1 = arith.constant 0 : i32
    return %c0_i32, %c0_i32_0 : i32, i32
  }
  func.func @transform_7(%arg0: i32, %arg1: i32) -> (i32, i32) {
    %c0_i32 = arith.constant 0 : i32
    %c0_i32_0 = arith.constant 0 : i32
    return %arg0, %c0_i32 : i32, i32
  }
}

</mosaic_0001>

<bundles_post_ra>
// kernel: roi_head_predict.1
= control target key start
LH: loop header
LB: loop body
LE: loop exit
PB: predicated region body
PF: predicated region fallthrough
CT: control target
= control target key end

     0   :  { %s15349_s0 = inlined_call_operand.vmem [shape: bf16[8,12544], index: 0, kind: input, shape index: {}]   ;;  %s15350_s1 = inlined_call_operand.hbm [shape: bf16[12544,1024], index: 1, kind: input, shape index: {}]   ;;  %s15351_s2 = inlined_call_operand.hbm [shape: f32[1,1024], index: 2, kind: input, shape index: {}]   ;;  %s15352_s3 = inlined_call_operand.hbm [shape: bf16[1024,1024], index: 3, kind: input, shape index: {}]   ;;  %s15353_s4 = inlined_call_operand.hbm [shape: f32[1,1024], index: 4, kind: input, shape index: {}]   ;;  %s15354_s5 = inlined_call_operand.hbm [shape: bf16[1024,128], index: 5, kind: input, shape index: {}]   ;;  %s15355_s6 = inlined_call_operand.hbm [shape: f32[1,128], index: 6, kind: input, shape index: {}]   ;;  %s15356_s7 = inlined_call_operand.vmem [shape: f32[8,128], index: 7, kind: output, shape index: {}]  }
   0x1   :  { %15362 = sst [smem:[#allocation17_spill]] %s15351_s2 }
   0x2   :  { %12 = vsyncpa [#allocation4], 0 }
   0x3   :  { %14 = vsyncpa [#allocation4 + $0x1], 0 }
   0x4   :  { %15 = vsyncpa [#allocation6], 0 }
   0x5   :  { %16 = vsyncpa [#allocation9], 0 }
   0x6   :  { %17 = vsyncpa [#allocation12], 0  ;;  %s13863_s24 = smov 0   ;;  %s13865_s25 = smov 0  }
   0x7   :  { %s13867_s26 = smov 0   ;;  %s13869_s27 = smov 0  }
   0x8   :  { %s13871_s28 = smov 0   ;;  %s13873_s29 = smov 0  }
   0x9 LB: > { %s11726_s30 = sadd.s32 4294967295, %s13810_s29   ;;  %p11727_p0 = scmp.ge.s32.totalorder %s13810_s29, 1  ;;  %s13810_s29 = sphi %s13873_s29, %s23_s29   ;;  %s13806_s28 = sphi %s13871_s28, %s15379_s28   ;;  %s13802_s27 = sphi %s13869_s27, %s15378_s27   ;;  %s13798_s26 = sphi %s13867_s26, %s15377_s26   ;;  %s13794_s25 = sphi %s13865_s25, %s15376_s25   ;;  %s13790_s24 = sphi %s13863_s24, %s15375_s24  }
   0xa   : > { %p13895_p1 = scmp.eq.s32.totalorder %s11726_s30, 0  ;;  %p225_p2 = scmp.lt.s32.totalorder %s13810_s29, 8 }
   0xb   : > { %s13812_s10 = smov [#allocation5]   ;;  %s13813_s12 = smov [#allocation8]  }
   0xc   : > { %s15363_s8 = scalar_select %p13895_p1, 1, 0 }
   0xd   : > { %p13900_p3 = pnand %p11727_p0, %p225_p2  ;;  %s238_s11 = sshll.u32 %s13812_s10, 4  ;;  %s239_s11 = int_to_ptr.vmem [resolvable:$true] %s238_s11 }
   0xe   : > { %s262_s13 = sshll.u32 %s13813_s12, 4  ;;  %s13814_s15 = smov [#allocation7]   ;;  %s13912_s13 = int_to_ptr.vmem [resolvable:$true] %s262_s13 }
   0xf   : > { %s15364_s9 = scalar_select %p13900_p3, 1, 0 }
  0x10   : > { %p13406_p4 = pneg %p13900_p3  ;;  %s248_s16 = sshll.u32 %s13814_s15, 4  ;;  %s13914_s16 = int_to_ptr.vmem [resolvable:$true] %s248_s16 }
  0x11   : > { %s15366_s2 = sld [smem:[#allocation17_spill]] }
  0x12   : > { %p13908_p5 = pnand %p13406_p4, %p13895_p1 }
  0x14   : > { %p13924_p7 = pneg %p13908_p5 }
  0x17   : > { %s13578_s19 = scalar_lea.hbm %s15366_s2, 128 }
  0x18   : > { %p13579_p6 = scmp.ne.s32.totalorder %s15366_s2, %s13578_s19  ;;  %p13585_p10 = scmp.lt.u32.totalorder %s13578_s19, %s15366_s2 }
  0x1a   : > { %p13581_p8 = pnand %p13924_p7, %p13579_p6 }
  0x1c   : > { %p13582_p9 = pneg %p13581_p8 }
  0x1e   : > { %p13587_p11 = pnand %p13585_p10, %p13582_p9 }
  0x20   : > { %13590 = shalt.err (!%p13587_p11)
}
  0x21   : > { %s13591_s10 = scalar_lea.vmem %s239_s11, 128  ;;  %p13599_p2 = scmp.lt.s32.totalorder %s239_s11, %s239_s11 }
  0x22   : > { %p13592_p12 = scmp.ne.s32.totalorder %s239_s11, %s13591_s10  ;;  %p13600_p4 = scmp.lt.s32.totalorder %s13591_s10, %s13591_s10 }
  0x24   : > { %p13594_p13 = pnand %p13592_p12, %p13924_p7  ;;  %p13601_p3 = por %p13600_p4, %p13599_p2 }
  0x26   : > { %p13595_p0 = pneg %p13594_p13 }
  0x28   : > { %p13602_p1 = pnand %p13601_p3, %p13595_p0 }
  0x2a   : > { %13605 = shalt.err (!%p13602_p1)
}
  0x2b   : > { %13409 = dma.hbm_to_vmem [thread:$0]  (!%p13908_p5), %s15366_s2, 128, %s239_s11, [#allocation6]  }
  0x2c   : > { %s13606_s19 = scalar_lea.hbm %s15353_s4, 128 }
  0x2d   : > { %p13607_p6 = scmp.ne.s32.totalorder %s15353_s4, %s13606_s19  ;;  %p13613_p1 = scmp.lt.u32.totalorder %s13606_s19, %s15353_s4 }
  0x2f   : > { %p13609_p8 = pnand %p13607_p6, %p13924_p7 }
  0x31   : > { %p13610_p9 = pneg %p13609_p8 }
  0x33   : > { %p13615_p3 = pnand %p13613_p1, %p13610_p9 }
  0x35   : > { %13618 = shalt.err (!%p13615_p3)
}
  0x36   : > { %s13619_s11 = scalar_lea.vmem %s13912_s13, 128  ;;  %p13627_p13 = scmp.lt.s32.totalorder %s13912_s13, %s13912_s13 }
  0x37   : > { %p13620_p10 = scmp.ne.s32.totalorder %s13912_s13, %s13619_s11  ;;  %p13628_p0 = scmp.lt.s32.totalorder %s13619_s11, %s13619_s11 }
  0x39   : > { %p13622_p11 = pnand %p13620_p10, %p13924_p7  ;;  %p13629_p2 = por %p13628_p0, %p13627_p13 }
  0x3b   : > { %p13623_p12 = pneg %p13622_p11 }
  0x3d   : > { %p13630_p4 = pnand %p13629_p2, %p13623_p12 }
  0x3f   : > { %13633 = shalt.err (!%p13630_p4)
}
  0x40   : > { %13415 = dma.hbm_to_vmem [thread:$0]  (!%p13908_p5), %s15353_s4, 128, %s13912_s13, [#allocation9]  }
  0x41   : > { %s13634_s18 = scalar_lea.hbm %s15352_s3, 65536 }
  0x42   : > { %p13635_p6 = scmp.ne.s32.totalorder %s15352_s3, %s13634_s18  ;;  %p13641_p1 = scmp.lt.u32.totalorder %s13634_s18, %s15352_s3 }
  0x44   : > { %p13637_p8 = pnand %p13635_p6, %p13924_p7 }
  0x46   : > { %p13638_p9 = pneg %p13637_p8 }
  0x48   : > { %p13643_p3 = pnand %p13641_p1, %p13638_p9 }
  0x4a   : > { %13646 = shalt.err (!%p13643_p3)
}
  0x4b   : > { %s13647_s13 = scalar_lea.vmem %s13914_s16, 65536  ;;  %p13655_p13 = scmp.lt.s32.totalorder %s13914_s16, %s13914_s16 }
  0x4c   : > { %p13648_p10 = scmp.ne.s32.totalorder %s13914_s16, %s13647_s13  ;;  %p13656_p0 = scmp.lt.s32.totalorder %s13647_s13, %s13647_s13 }
  0x4e   : > { %p13650_p11 = pnand %p13648_p10, %p13924_p7  ;;  %p13657_p2 = por %p13656_p0, %p13655_p13 }
  0x50   : > { %p13651_p12 = pneg %p13650_p11 }
  0x52   : > { %p13658_p4 = pnand %p13657_p2, %p13651_p12 }
  0x54   : > { %13661 = shalt.err (!%p13658_p4)
}
  0x55   : > { %s15360_s30 = smov 512   ;;  %s15361_s11 = smov 32  }
  0x56   : > { %13412 = dma.hbm_to_vmem [thread:$0]  (!%p13908_p5), %s15352_s3, 65536, %s13914_s16, [#allocation6], %s15360_s30, %s15360_s30, %s15361_s11  }
  0x57   : > { %s13817_s15 = smov [#allocation10]   ;;  %s13662_s20 = scalar_lea.hbm %s15354_s5, 8192 }
  0x58   : > { %s272_s17 = sshll.u32 %s13817_s15, 4  ;;  %p13663_p6 = scmp.ne.s32.totalorder %s15354_s5, %s13662_s20  ;;  %s273_s17 = int_to_ptr.vmem [resolvable:$true] %s272_s17 }
  0x59   : > { %p13669_p1 = scmp.lt.u32.totalorder %s13662_s20, %s15354_s5 }
  0x5a   : > { %p13665_p8 = pnand %p13663_p6, %p13924_p7 }
  0x5c   : > { %p13666_p9 = pneg %p13665_p8 }
  0x5e   : > { %p13671_p3 = pnand %p13669_p1, %p13666_p9 }
  0x60   : > { %13674 = shalt.err (!%p13671_p3)
}
  0x61   : > { %s13675_s16 = scalar_lea.vmem %s273_s17, 8192  ;;  %p13683_p13 = scmp.lt.s32.totalorder %s273_s17, %s273_s17 }
  0x62   : > { %p13676_p10 = scmp.ne.s32.totalorder %s273_s17, %s13675_s16  ;;  %p13684_p0 = scmp.lt.s32.totalorder %s13675_s16, %s13675_s16 }
  0x64   : > { %p13678_p11 = pnand %p13676_p10, %p13924_p7  ;;  %p13685_p2 = por %p13684_p0, %p13683_p13 }
  0x66   : > { %p13679_p12 = pneg %p13678_p11 }
  0x68   : > { %p13686_p4 = pnand %p13685_p2, %p13679_p12 }
  0x6a   : > { %13689 = shalt.err (!%p13686_p4)
}
  0x6b   : > { %s13818_s10 = smov 64   ;;  %s13819_s12 = smov 4  }
  0x6c   : > { %13418 = dma.hbm_to_vmem [thread:$0]  (!%p13908_p5), %s15354_s5, 8192, %s273_s17, [#allocation9], %s13818_s10, %s13818_s10, %s13819_s12  }
  0x6d   : > { %s13820_s18 = smov [#allocation11]   ;;  %s13690_s23 = scalar_lea.hbm %s15355_s6, 16 }
  0x6e   : > { %s286_s19 = sshll.u32 %s13820_s18, 4  ;;  %p13691_p6 = scmp.ne.s32.totalorder %s15355_s6, %s13690_s23  ;;  %s287_s19 = int_to_ptr.vmem [resolvable:$true] %s286_s19 }
  0x6f   : > { %p13697_p1 = scmp.lt.u32.totalorder %s13690_s23, %s15355_s6 }
  0x70   : > { %p13693_p8 = pnand %p13691_p6, %p13924_p7 }
  0x72   : > { %p13694_p9 = pneg %p13693_p8 }
  0x74   : > { %p13699_p3 = pnand %p13697_p1, %p13694_p9 }
  0x76   : > { %13702 = shalt.err (!%p13699_p3)
}
  0x77   : > { %s13703_s17 = scalar_lea.vmem %s287_s19, 16  ;;  %s13710_s10 = scalar_lea.vmem %s287_s19, 32 }
  0x78   : > { %p13704_p10 = scmp.ne.s32.totalorder %s287_s19, %s13703_s17  ;;  %p13711_p13 = scmp.lt.s32.totalorder %s287_s19, %s287_s19 }
  0x79   : > { %p13712_p0 = scmp.lt.s32.totalorder %s13710_s10, %s13703_s17 }
  0x7a   : > { %p13706_p11 = pnand %p13704_p10, %p13924_p7 }
  0x7b   : > { %p13713_p2 = por %p13712_p0, %p13711_p13 }
  0x7c   : > { %p13707_p12 = pneg %p13706_p11 }
  0x7e   : > { %p13714_p4 = pnand %p13713_p2, %p13707_p12 }
  0x80   : > { %13717 = shalt.err (!%p13714_p4)
}
  0x81   : > { %13421 = dma.hbm_to_vmem [thread:$0]  (!%p13908_p5), %s15355_s6, 16, %s287_s19, [#allocation12]  }
  0x82   : > { %s32_s22 = sadd.s32 1, %s13806_s28  ;;  %s70_s14 = sadd.s32 1, %s13798_s26 }
  0x83   : > { %p33_p7 = scmp.ge.s32.totalorder %s32_s22, 7  ;;  %p77_p6 = scmp.ne.s32.totalorder %s13798_s26, %s13794_s25 }
  0x84   : > { %p78_p8 = scmp.eq.s32.totalorder %s13810_s29, 0  ;;  %p83_p1 = scmp.ne.s32.totalorder %s13794_s25, %s13790_s24 }
  0x85   : > { %s15381_s22 = smov (%p33_p7, %s32_s22), 0  ;;  %p13431_p3 = scmp.lt.s32.totalorder %s13810_s29, 7 }
  0x86   : > { %p79_p9 = por %p78_p8, %p77_p6  ;;  %s67_s30 = ssub.s32 %s13806_s28, %s15381_s22 }
  0x87   : > { %p68_p10 = scmp.eq.s32.totalorder %s67_s30, 0  ;;  %p15368_p11 = scmp.ne.s32.totalorder %s15363_s8, 0 }
  0x88   : > { %s310_s15 = sand.u32 1, %s13798_s26   ;;  %s13237_s18 = smul.u32 114688, %s13806_s28 }
  0x89   : > { %p14039_p12 = por %p15368_p11, %p83_p1  ;;  %s13382_s20 = smul.u32 7168, %s310_s15 }
  0x8a   : > { %s14046_s19 = scalar_select %p68_p10, %s13798_s26, %s70_s14  }
  0x8b   : > { %p14048_p5 = pnand %p13431_p3, %p79_p9  ;;  %s14055_s24 = scalar_lea.hbm %s15350_s1, %s13237_s18 }
  0x8c   : > { %s314_s16 = scalar_lea.vmem [#allocation3], %s13382_s20  ;;  %s14059_s10 = scalar_lea.sflag [#allocation4], %s310_s15 }
  0x8d   : > { %s322_s17 = sshll.u32 %s314_s16, 4  ;;  %s13718_s12 = scalar_lea.hbm %s14055_s24, 114688  ;;  %s14057_s17 = int_to_ptr.vmem [resolvable:$true] %s322_s17 }
  0x8e   : > { %p13719_p13 = scmp.ne.s32.totalorder %s14055_s24, %s13718_s12  ;;  %p13720_p0 = pneg %p14048_p5 }
  0x8f   : > { %s13723_s30 = scalar_lea.hbm %s15350_s1, 802816  ;;  %p13724_p7 = scmp.lt.u32.totalorder %s14055_s24, %s15350_s1 }
  0x90   : > { %p13721_p2 = pnand %p13720_p0, %p13719_p13  ;;  %p13725_p6 = scmp.lt.u32.totalorder %s13723_s30, %s13718_s12 }
  0x91   : > { %p13727_p9 = scmp.lt.u32.totalorder %s13718_s12, %s14055_s24 }
  0x92   : > { %p13722_p4 = pneg %p13721_p2  ;;  %p13726_p8 = por %p13725_p6, %p13724_p7 }
  0x94   : > { %p13728_p1 = por %p13727_p9, %p13726_p8 }
  0x96   : > { %p13729_p3 = pnand %p13728_p1, %p13722_p4 }
  0x98   : > { %13732 = shalt.err (!%p13729_p3)
}
  0x99   : > { %s13733_s15 = scalar_lea.vmem %s14057_s17, 114688  ;;  %s13821_s20 = smov [#allocation3]  }
  0x9a   : > { %p13734_p10 = scmp.ne.s32.totalorder %s14057_s17, %s13733_s15  ;;  %s13738_s13 = sshll.u32 %s13821_s20, 4  ;;  %s13739_s13 = int_to_ptr.vmem [resolvable:$false] %s13738_s13 }
  0x9b   : > { %s13740_s16 = scalar_lea.vmem %s13739_s13, 229376  ;;  %p13741_p2 = scmp.lt.s32.totalorder %s14057_s17, %s13739_s13 }
  0x9c   : > { %p13736_p11 = pnand %p13734_p10, %p13720_p0  ;;  %p13742_p7 = scmp.lt.s32.totalorder %s13740_s16, %s13733_s15 }
  0x9e   : > { %p13737_p13 = pneg %p13736_p11  ;;  %p13743_p6 = por %p13742_p7, %p13741_p2 }
  0xa0   : > { %p13744_p8 = pnand %p13743_p6, %p13737_p13 }
  0xa2   : > { %13747 = shalt.err (!%p13744_p8)
}
  0xa3   : > { %s15371_s12 = smov 32   ;;  %s15372_s2 = smov 512  }
  0xa4   : > { %13425 = dma.hbm_to_vmem [thread:$0]  (!%p14048_p5), %s14055_s24, 114688, %s14057_s17, %s14059_s10, %s15372_s2, %s15372_s2, %s15371_s12  }
  0xa5   : > { %p15373_p0 = scmp.ne.s32.totalorder %s15364_s9, 0 }
  0xa6   : > { %s336_s14 = sand.u32 (!%p15373_p0), 1, %s13794_s25  }
  0xa7   : > { %334 = sbr.rel (%p15373_p0) target bundleno = 2557 (0x9fd), region = 48  ;;  %s337_s18 = scalar_lea.sflag (!%p15373_p0), [#allocation4], %s336_s14 }
  0xa8   : > { %s13383_s30 = smul.u32 (!%p15373_p0), 7168, %s336_s14 }
  0xaa   : > { %s14093_s23 = scalar_lea.vmem (!%p15373_p0), [#allocation3], %s13383_s30 }
  0xae   : > { %13773 = dma.done.wait (%p14039_p12), %s337_s18, 114688  }
  0xaf   : > { %13775 = vsyncadd (%p14039_p12), %s337_s18, 4294852608  ;;  %p15374_p4 = scmp.ne.s32.totalorder %s15363_s8, 0 }
  0xb1   : > { %13777 = dma.done.wait (%p15374_p4), [#allocation6], 65664  }
  0xb2   : > { %13779 = vsyncadd (%p15374_p4), [#allocation6], 4294901632 }
  0xb3   : > { %13781 = dma.done.wait (%p15374_p4), [#allocation9], 8320  }
  0xb4   : > { %13783 = vsyncadd (%p15374_p4), [#allocation9], 4294958976 }
  0xb5   : > { %13785 = dma.done.wait (%p15374_p4), [#allocation12], 16  }
  0xb6   : > { %13787 = vsyncadd (%p15374_p4), [#allocation12], 4294967280  ;;  %s399_s9 = smul.u32 14, %s13802_s27  ;;  %p11743_p5 = scmp.ne.s32.totalorder %s13802_s27, 0 }
  0xb7   : > { %v13822_v0 = vmov (!%p11743_p5), 0.0  }
  0xb8   : > { %p402_p12 = scmp.lt.s32.totalorder %s399_s9, 97  ;;  %418 = sbr.rel (%p11743_p5) target bundleno = 191 (0xbf), region = 76  ;;  %419 = vst [vmem:[#allocation2] sm:$0xff] (!%p11743_p5), %v13822_v0  ;;  %420 = vst [vmem:[#allocation2 + $0x8] sm:$0xff] (!%p11743_p5), %v13822_v0 }
  0xb9   : > { %421 = vst [vmem:[#allocation2 + $0x10] sm:$0xff] (!%p11743_p5), %v13822_v0  ;;  %422 = vst [vmem:[#allocation2 + $0x18] sm:$0xff] (!%p11743_p5), %v13822_v0 }
  0xba   : > { %s15383_s9 = smov (!%p402_p12, %s399_s9), 97  ;;  %423 = vst [vmem:[#allocation2 + $0x20] sm:$0xff] (!%p11743_p5), %v13822_v0  ;;  %424 = vst [vmem:[#allocation2 + $0x28] sm:$0xff] (!%p11743_p5), %v13822_v0 }
  0xbb   : > { %s11742_s11 = sshll.u32 %s15383_s9, 2  ;;  %425 = vst [vmem:[#allocation2 + $0x30] sm:$0xff] (!%p11743_p5), %v13822_v0  ;;  %426 = vst [vmem:[#allocation2 + $0x38] sm:$0xff] (!%p11743_p5), %v13822_v0 }
  0xbc   : > { %s14115_s17 = scalar_lea.vmem %s15349_s0, %s11742_s11 }
  0xbf PF: > { %v442_v1 = vld [vmem:[%s14093_s23] sm:$0xff]  ;;  %v14150_v55 = vld [vmem:[%s14115_s17 + $0x8] sm:$0xff]  ;;  %p12654_p9 = scmp.ne.s32.totalorder %s13802_s27, 6 }
  0xc0   : > { %v446_v2 = vld [vmem:[%s14093_s23 + $0x20] sm:$0xff]  ;;  %v14160_v60 = vcombine.high %v14150_v55, %v14150_v55 }
  0xc1   : > { %v570_v3 = vld [vmem:[%s14093_s23 + $0x400] sm:$0xff]  ;;  %v11759_v4 = vcombine.high %v442_v1, %v446_v2  ;;  %v11758_v6 = vcombine.low %v442_v1, %v446_v2 }
  0xc2   : > { %v574_v5 = vld [vmem:[%s14093_s23 + $0x420] sm:$0xff]  ;;  %5940 = vmatprep.mubr.bf16.mxu1 %v14160_v60 }
  0xc3   : > { %v450_v7 = vld [vmem:[%s14093_s23 + $0x40] sm:$0xff]  ;;  %v11887_v9 = vcombine.high %v570_v3, %v574_v5  ;;  %v11886_v10 = vcombine.low %v570_v3, %v574_v5  ;;  %5867 = vmatprep.subr.bf16.mxu0 %v11759_v4 }
  0xc4   : > { %v454_v8 = vld [vmem:[%s14093_s23 + $0x60] sm:$0xff]  ;;  %5868 = vmatpush1.bf16.msra.mxu0 %v11758_v6 }
  0xc5   : > { %v11767_v11 = vcombine.high %v450_v7, %v454_v8  ;;  %v578_v12 = vld [vmem:[%s14093_s23 + $0x440] sm:$0xff]  ;;  %5908 = vmatprep.subr.bf16.mxu1 %v11887_v9  ;;  %v11766_v19 = vcombine.low %v450_v7, %v454_v8 }
  0xc6   : > { %v582_v13 = vld [vmem:[%s14093_s23 + $0x460] sm:$0xff]  ;;  %5909 = vmatpush1.bf16.msra.mxu1 %v11886_v10 }
  0xc7   : > { %v458_v14 = vld [vmem:[%s14093_s23 + $0x80] sm:$0xff]  ;;  %v11895_v15 = vcombine.high %v578_v12, %v582_v13  ;;  %5869 = vmatprep.subr.bf16.mxu0 %v11767_v11  ;;  %v11894_v20 = vcombine.low %v578_v12, %v582_v13 }
  0xc8   : > { %v462_v16 = vld [vmem:[%s14093_s23 + $0xa0] sm:$0xff]  ;;  %5870 = vmatpush1.bf16.msra.mxu0 %v11766_v19 }
  0xc9   : > { %v586_v17 = vld [vmem:[%s14093_s23 + $0x480] sm:$0xff]  ;;  %v11775_v21 = vcombine.high %v458_v14, %v462_v16  ;;  %5910 = vmatprep.subr.bf16.mxu1 %v11895_v15  ;;  %v11774_v27 = vcombine.low %v458_v14, %v462_v16 }
  0xca   : > { %v590_v18 = vld [vmem:[%s14093_s23 + $0x4a0] sm:$0xff]  ;;  %5911 = vmatpush1.bf16.msra.mxu1 %v11894_v20 }
  0xcb   : > { %v11903_v22 = vcombine.high %v586_v17, %v590_v18  ;;  %v466_v23 = vld [vmem:[%s14093_s23 + $0xc0] sm:$0xff]  ;;  %5871 = vmatprep.subr.bf16.mxu0 %v11775_v21  ;;  %v11902_v28 = vcombine.low %v586_v17, %v590_v18 }
  0xcc   : > { %v470_v24 = vld [vmem:[%s14093_s23 + $0xe0] sm:$0xff]  ;;  %5872 = vmatpush1.bf16.msra.mxu0 %v11774_v27 }
  0xcd   : > { %v594_v25 = vld [vmem:[%s14093_s23 + $0x4c0] sm:$0xff]  ;;  %v11783_v29 = vcombine.high %v466_v23, %v470_v24  ;;  %5912 = vmatprep.subr.bf16.mxu1 %v11903_v22  ;;  %v11782_v35 = vcombine.low %v466_v23, %v470_v24 }
  0xce   : > { %v598_v26 = vld [vmem:[%s14093_s23 + $0x4e0] sm:$0xff]  ;;  %5913 = vmatpush1.bf16.msra.mxu1 %v11902_v28 }
  0xcf   : > { %v11911_v30 = vcombine.high %v594_v25, %v598_v26  ;;  %v474_v31 = vld [vmem:[%s14093_s23 + $0x100] sm:$0xff]  ;;  %5873 = vmatprep.subr.bf16.mxu0 %v11783_v29  ;;  %v11910_v36 = vcombine.low %v594_v25, %v598_v26 }
  0xd0   : > { %v478_v32 = vld [vmem:[%s14093_s23 + $0x120] sm:$0xff]  ;;  %5874 = vmatpush1.bf16.msra.mxu0 %v11782_v35 }
  0xd1   : > { %v602_v33 = vld [vmem:[%s14093_s23 + $0x500] sm:$0xff]  ;;  %v11791_v37 = vcombine.high %v474_v31, %v478_v32  ;;  %5914 = vmatprep.subr.bf16.mxu1 %v11911_v30  ;;  %v11790_v43 = vcombine.low %v474_v31, %v478_v32 }
  0xd2   : > { %v606_v34 = vld [vmem:[%s14093_s23 + $0x520] sm:$0xff]  ;;  %5915 = vmatpush1.bf16.msra.mxu1 %v11910_v36 }
  0xd3   : > { %v11919_v38 = vcombine.high %v602_v33, %v606_v34  ;;  %v482_v39 = vld [vmem:[%s14093_s23 + $0x140] sm:$0xff]  ;;  %5875 = vmatprep.subr.bf16.mxu0 %v11791_v37  ;;  %v11918_v44 = vcombine.low %v602_v33, %v606_v34 }
  0xd4   : > { %v486_v40 = vld [vmem:[%s14093_s23 + $0x160] sm:$0xff]  ;;  %5876 = vmatpush1.bf16.msra.mxu0 %v11790_v43 }
  0xd5   : > { %v610_v41 = vld [vmem:[%s14093_s23 + $0x540] sm:$0xff]  ;;  %v11799_v45 = vcombine.high %v482_v39, %v486_v40  ;;  %5916 = vmatprep.subr.bf16.mxu1 %v11919_v38  ;;  %v11798_v51 = vcombine.low %v482_v39, %v486_v40 }
  0xd6   : > { %v614_v42 = vld [vmem:[%s14093_s23 + $0x560] sm:$0xff]  ;;  %5917 = vmatpush1.bf16.msra.mxu1 %v11918_v44 }
  0xd7   : > { %v11927_v46 = vcombine.high %v610_v41, %v614_v42  ;;  %v490_v47 = vld [vmem:[%s14093_s23 + $0x180] sm:$0xff]  ;;  %5877 = vmatprep.subr.bf16.mxu0 %v11799_v45  ;;  %v11926_v52 = vcombine.low %v610_v41, %v614_v42 }
  0xd8   : > { %v494_v48 = vld [vmem:[%s14093_s23 + $0x1a0] sm:$0xff]  ;;  %5878 = vmatpush1.bf16.msra.mxu0 %v11798_v51 }
  0xd9   : > { %v618_v49 = vld [vmem:[%s14093_s23 + $0x580] sm:$0xff]  ;;  %v11807_v53 = vcombine.high %v490_v47, %v494_v48  ;;  %5918 = vmatprep.subr.bf16.mxu1 %v11927_v46  ;;  %v11806_v63 = vcombine.low %v490_v47, %v494_v48 }
  0xda   : > { %v622_v50 = vld [vmem:[%s14093_s23 + $0x5a0] sm:$0xff]  ;;  %5919 = vmatpush1.bf16.msra.mxu1 %v11926_v52 }
  0xdb   : > { %v14147_v54 = vld [vmem:[%s14115_s17] sm:$0xff]  ;;  %v11935_v56 = vcombine.high %v618_v49, %v622_v50  ;;  %5879 = vmatprep.subr.bf16.mxu0 %v11807_v53  ;;  %v11934_v0 = vcombine.low %v618_v49, %v622_v50 }
  0xdc   : > { %v498_v57 = vld [vmem:[%s14093_s23 + $0x1c0] sm:$0xff]  ;;  %v14156_v59 = vcombine.high %v14147_v54, %v14147_v54  ;;  %5880 = vmatpush1.bf16.msra.mxu0 %v11806_v63 }
  0xdd   : > { %v502_v58 = vld [vmem:[%s14093_s23 + $0x1e0] sm:$0xff]  ;;  %5920 = vmatprep.subr.bf16.mxu1 %v11935_v56 }
  0xde   : > { %v626_v61 = vld [vmem:[%s14093_s23 + $0x5c0] sm:$0xff]  ;;  %5899 = vmatprep.mubr.bf16.mxu0 %v14156_v59  ;;  %v11815_v1 = vcombine.high %v498_v57, %v502_v58  ;;  %v11814_v7 = vcombine.low %v498_v57, %v502_v58  ;;  %5921 = vmatpush1.bf16.msra.mxu1 %v11934_v0 }
  0xdf   : > { %v630_v62 = vld [vmem:[%s14093_s23 + $0x5e0] sm:$0xff] }
  0xe0   : > { %v11943_v2 = vcombine.high %v626_v61, %v630_v62  ;;  %v506_v3 = vld [vmem:[%s14093_s23 + $0x200] sm:$0xff]  ;;  %5881 = vmatprep.subr.bf16.mxu0 %v11815_v1  ;;  %v11942_v8 = vcombine.low %v626_v61, %v630_v62 }
  0xe1   : > { %v510_v4 = vld [vmem:[%s14093_s23 + $0x220] sm:$0xff]  ;;  %5882 = vmatpush1.bf16.msra.mxu0 %v11814_v7 }
  0xe2   : > { %v634_v5 = vld [vmem:[%s14093_s23 + $0x600] sm:$0xff]  ;;  %v11823_v9 = vcombine.high %v506_v3, %v510_v4  ;;  %5922 = vmatprep.subr.bf16.mxu1 %v11943_v2  ;;  %v11822_v15 = vcombine.low %v506_v3, %v510_v4 }
  0xe3   : > { %v638_v6 = vld [vmem:[%s14093_s23 + $0x620] sm:$0xff]  ;;  %5923 = vmatpush1.bf16.msra.mxu1 %v11942_v8 }
  0xe4   : > { %v11951_v10 = vcombine.high %v634_v5, %v638_v6  ;;  %v514_v11 = vld [vmem:[%s14093_s23 + $0x240] sm:$0xff]  ;;  %5883 = vmatprep.subr.bf16.mxu0 %v11823_v9  ;;  %v11950_v16 = vcombine.low %v634_v5, %v638_v6 }
  0xe5   : > { %v518_v12 = vld [vmem:[%s14093_s23 + $0x260] sm:$0xff]  ;;  %5884 = vmatpush1.bf16.msra.mxu0 %v11822_v15 }
  0xe6   : > { %v642_v13 = vld [vmem:[%s14093_s23 + $0x640] sm:$0xff]  ;;  %v11831_v17 = vcombine.high %v514_v11, %v518_v12  ;;  %5924 = vmatprep.subr.bf16.mxu1 %v11951_v10  ;;  %v11830_v23 = vcombine.low %v514_v11, %v518_v12 }
  0xe7   : > { %v646_v14 = vld [vmem:[%s14093_s23 + $0x660] sm:$0xff]  ;;  %5925 = vmatpush1.bf16.msra.mxu1 %v11950_v16 }
  0xe8   : > { %v11959_v18 = vcombine.high %v642_v13, %v646_v14  ;;  %v522_v19 = vld [vmem:[%s14093_s23 + $0x280] sm:$0xff]  ;;  %5885 = vmatprep.subr.bf16.mxu0 %v11831_v17  ;;  %v11958_v24 = vcombine.low %v642_v13, %v646_v14  ;;  %v14206_v17 = vcombine.low %v14147_v54, %v14147_v54 }
  0xe9   : > { %v526_v20 = vld [vmem:[%s14093_s23 + $0x2a0] sm:$0xff]  ;;  %5886 = vmatpush1.bf16.msra.mxu0 %v11830_v23  ;;  %v14218_v23 = vld [vmem:[%s14115_s17 + $0x18] sm:$0xff] }
  0xea   : > { %v650_v21 = vld [vmem:[%s14093_s23 + $0x680] sm:$0xff]  ;;  %v11839_v25 = vcombine.high %v522_v19, %v526_v20  ;;  %5926 = vmatprep.subr.bf16.mxu1 %v11959_v18  ;;  %v11838_v31 = vcombine.low %v522_v19, %v526_v20  ;;  %v14211_v20 = vld [vmem:[%s14115_s17 + $0x10] sm:$0xff] }
  0xeb   : > { %v654_v22 = vld [vmem:[%s14093_s23 + $0x6a0] sm:$0xff]  ;;  %5927 = vmatpush1.bf16.msra.mxu1 %v11958_v24 }
  0xec   : > { %v11967_v26 = vcombine.high %v650_v21, %v654_v22  ;;  %v530_v27 = vld [vmem:[%s14093_s23 + $0x2c0] sm:$0xff]  ;;  %5887 = vmatprep.subr.bf16.mxu0 %v11839_v25  ;;  %v11966_v32 = vcombine.low %v650_v21, %v654_v22  ;;  %v14215_v21 = vcombine.low %v14150_v55, %v14150_v55 }
  0xed   : > { %v534_v28 = vld [vmem:[%s14093_s23 + $0x2e0] sm:$0xff]  ;;  %5888 = vmatpush1.bf16.msra.mxu0 %v11838_v31 }
  0xee   : > { %v658_v29 = vld [vmem:[%s14093_s23 + $0x6c0] sm:$0xff]  ;;  %v11847_v33 = vcombine.high %v530_v27, %v534_v28  ;;  %5928 = vmatprep.subr.bf16.mxu1 %v11967_v26  ;;  %v11846_v39 = vcombine.low %v530_v27, %v534_v28  ;;  %v14224_v28 = vcombine.high %v14211_v20, %v14211_v20 }
  0xef   : > { %v662_v30 = vld [vmem:[%s14093_s23 + $0x6e0] sm:$0xff]  ;;  %5929 = vmatpush1.bf16.msra.mxu1 %v11966_v32 }
  0xf0   : > { %v11975_v34 = vcombine.high %v658_v29, %v662_v30  ;;  %v538_v35 = vld [vmem:[%s14093_s23 + $0x300] sm:$0xff]  ;;  %5889 = vmatprep.subr.bf16.mxu0 %v11847_v33  ;;  %v11974_v40 = vcombine.low %v658_v29, %v662_v30  ;;  %v14231_v30 = vcombine.high %v14218_v23, %v14218_v23 }
  0xf1   : > { %v542_v36 = vld [vmem:[%s14093_s23 + $0x320] sm:$0xff]  ;;  %5890 = vmatpush1.bf16.msra.mxu0 %v11846_v39 }
  0xf2   : > { %v666_v37 = vld [vmem:[%s14093_s23 + $0x700] sm:$0xff]  ;;  %v11855_v41 = vcombine.high %v538_v35, %v542_v36  ;;  %5930 = vmatprep.subr.bf16.mxu1 %v11975_v34  ;;  %v11854_v47 = vcombine.low %v538_v35, %v542_v36 }
  0xf3   : > { %v670_v38 = vld [vmem:[%s14093_s23 + $0x720] sm:$0xff]  ;;  %5931 = vmatpush1.bf16.msra.mxu1 %v11974_v40 }
  0xf4   : > { %v11983_v42 = vcombine.high %v666_v37, %v670_v38  ;;  %v546_v43 = vld [vmem:[%s14093_s23 + $0x340] sm:$0xff]  ;;  %5891 = vmatprep.subr.bf16.mxu0 %v11855_v41  ;;  %v11982_v48 = vcombine.low %v666_v37, %v670_v38 }
  0xf5   : > { %v550_v44 = vld [vmem:[%s14093_s23 + $0x360] sm:$0xff]  ;;  %5892 = vmatpush1.bf16.msra.mxu0 %v11854_v47 }
  0xf6   : > { %v674_v45 = vld [vmem:[%s14093_s23 + $0x740] sm:$0xff]  ;;  %v11863_v49 = vcombine.high %v546_v43, %v550_v44  ;;  %5932 = vmatprep.subr.bf16.mxu1 %v11983_v42  ;;  %v11862_v57 = vcombine.low %v546_v43, %v550_v44 }
  0xf7   : > { %v678_v46 = vld [vmem:[%s14093_s23 + $0x760] sm:$0xff]  ;;  %5933 = vmatpush1.bf16.msra.mxu1 %v11982_v48 }
  0xf8   : > { %v11991_v50 = vcombine.high %v674_v45, %v678_v46  ;;  %v554_v51 = vld [vmem:[%s14093_s23 + $0x380] sm:$0xff]  ;;  %5893 = vmatprep.subr.bf16.mxu0 %v11863_v49  ;;  %v11990_v58 = vcombine.low %v674_v45, %v678_v46 }
  0xf9   : > { %v558_v52 = vld [vmem:[%s14093_s23 + $0x3a0] sm:$0xff]  ;;  %5894 = vmatpush1.bf16.msra.mxu0 %v11862_v57 }
  0xfa   : > { %v682_v53 = vld [vmem:[%s14093_s23 + $0x780] sm:$0xff]  ;;  %v11871_v61 = vcombine.high %v554_v51, %v558_v52  ;;  %5934 = vmatprep.subr.bf16.mxu1 %v11991_v50  ;;  %v11870_v3 = vcombine.low %v554_v51, %v558_v52 }
  0xfb   : > { %v686_v56 = vld [vmem:[%s14093_s23 + $0x7a0] sm:$0xff]  ;;  %5935 = vmatpush1.bf16.msra.mxu1 %v11990_v58 }
  0xfc   : > { %v11999_v62 = vcombine.high %v682_v53, %v686_v56  ;;  %v562_v63 = vld [vmem:[%s14093_s23 + $0x3c0] sm:$0xff]  ;;  %5895 = vmatprep.subr.bf16.mxu0 %v11871_v61  ;;  %v11998_v4 = vcombine.low %v682_v53, %v686_v56 }
  0xfd   : > { %v566_v0 = vld [vmem:[%s14093_s23 + $0x3e0] sm:$0xff]  ;;  %5896 = vmatpush1.bf16.msra.mxu0 %v11870_v3 }
  0xfe   : > { %v690_v1 = vld [vmem:[%s14093_s23 + $0x7c0] sm:$0xff]  ;;  %v11879_v5 = vcombine.high %v562_v63, %v566_v0  ;;  %5936 = vmatprep.subr.bf16.mxu1 %v11999_v62  ;;  %v11878_v11 = vcombine.low %v562_v63, %v566_v0 }
  0xff   : > { %v694_v2 = vld [vmem:[%s14093_s23 + $0x7e0] sm:$0xff]  ;;  %5937 = vmatpush1.bf16.msra.mxu1 %v11998_v4 }
 0x100   : > { %v12007_v6 = vcombine.high %v690_v1, %v694_v2  ;;  %v698_v7 = vld [vmem:[%s14093_s23 + $0x800] sm:$0xff]  ;;  %5897 = vmatprep.subr.bf16.mxu0 %v11879_v5  ;;  %v12006_v12 = vcombine.low %v690_v1, %v694_v2 }
 0x101   : > { %v702_v8 = vld [vmem:[%s14093_s23 + $0x820] sm:$0xff]  ;;  %5898 = vmatpush1.bf16.msra.mxu0 %v11878_v11 }
 0x102   : > { %v826_v9 = vld [vmem:[%s14093_s23 + $0xc00] sm:$0xff]  ;;  %v12015_v13 = vcombine.high %v698_v7, %v702_v8  ;;  %5938 = vmatprep.subr.bf16.mxu1 %v12007_v6  ;;  %v12014_v22 = vcombine.low %v698_v7, %v702_v8 }
 0x103   : > { %v830_v10 = vld [vmem:[%s14093_s23 + $0xc20] sm:$0xff]  ;;  %5939 = vmatpush1.bf16.msra.mxu1 %v12006_v12 }
 0x104   : > { %v12143_v14 = vcombine.high %v826_v9, %v830_v10  ;;  %v706_v15 = vld [vmem:[%s14093_s23 + $0x840] sm:$0xff]  ;;  %5949 = vmatprep.subr.bf16.mxu0 %v12015_v13  ;;  %v12142_v24 = vcombine.low %v826_v9, %v830_v10  ;;  %5900 = vmatmul.mubr.bf16.vlgmr.msra.gmra.mrb[0].mxu0 %v14206_v17 }
 0x105   : > { %v710_v16 = vld [vmem:[%s14093_s23 + $0x860] sm:$0xff]  ;;  %5950 = vmatpush1.bf16.msra.mxu0 %v12014_v22  ;;  %5981 = vmatprep.mubr.bf16.mxu0 %v14224_v28 }
 0x106   : > { %v834_v18 = vld [vmem:[%s14093_s23 + $0xc40] sm:$0xff]  ;;  %v12023_v25 = vcombine.high %v706_v15, %v710_v16  ;;  %5990 = vmatprep.subr.bf16.mxu1 %v12143_v14  ;;  %5941 = vmatmul.mubr.bf16.vlgmr.msra.gmra.mrb[0].mxu1 %v14215_v21  ;;  %v12022_v31 = vcombine.low %v706_v15, %v710_v16 }
 0x107   : > { %v838_v19 = vld [vmem:[%s14093_s23 + $0xc60] sm:$0xff]  ;;  %5991 = vmatpush1.bf16.msra.mxu1 %v12142_v24  ;;  %6022 = vmatprep.mubr.bf16.mxu1 %v14231_v30 }
 0x108   : > { %v12151_v54 = vcombine.high %v834_v18, %v838_v19  ;;  %v714_v26 = vld [vmem:[%s14093_s23 + $0x880] sm:$0xff]  ;;  %5951 = vmatprep.subr.bf16.mxu0 %v12023_v25  ;;  %v12150_v32 = vcombine.low %v834_v18, %v838_v19 }
 0x109   : > { %v718_v27 = vld [vmem:[%s14093_s23 + $0x8a0] sm:$0xff]  ;;  %5952 = vmatpush1.bf16.msra.mxu0 %v12022_v31 }
 0x10a   : > { %v842_v55 = vld [vmem:[%s14093_s23 + $0xc80] sm:$0xff]  ;;  %v12031_v33 = vcombine.high %v714_v26, %v718_v27  ;;  %5992 = vmatprep.subr.bf16.mxu1 %v12151_v54  ;;  %v12030_v39 = vcombine.low %v714_v26, %v718_v27 }
 0x10b   : > { %v846_v29 = vld [vmem:[%s14093_s23 + $0xca0] sm:$0xff]  ;;  %5993 = vmatpush1.bf16.msra.mxu1 %v12150_v32 }
 0x10c   : > { %v12159_v34 = vcombine.high %v842_v55, %v846_v29  ;;  %v722_v35 = vld [vmem:[%s14093_s23 + $0x8c0] sm:$0xff]  ;;  %5953 = vmatprep.subr.bf16.mxu0 %v12031_v33  ;;  %v12158_v40 = vcombine.low %v842_v55, %v846_v29 }
 0x10d   : > { %v726_v36 = vld [vmem:[%s14093_s23 + $0x8e0] sm:$0xff]  ;;  %5954 = vmatpush1.bf16.msra.mxu0 %v12030_v39 }
 0x10e   : > { %v850_v37 = vld [vmem:[%s14093_s23 + $0xcc0] sm:$0xff]  ;;  %v12039_v41 = vcombine.high %v722_v35, %v726_v36  ;;  %5994 = vmatprep.subr.bf16.mxu1 %v12159_v34  ;;  %v12038_v47 = vcombine.low %v722_v35, %v726_v36 }
 0x10f   : > { %v854_v38 = vld [vmem:[%s14093_s23 + $0xce0] sm:$0xff]  ;;  %5995 = vmatpush1.bf16.msra.mxu1 %v12158_v40 }
 0x110   : > { %v12167_v42 = vcombine.high %v850_v37, %v854_v38  ;;  %v730_v43 = vld [vmem:[%s14093_s23 + $0x900] sm:$0xff]  ;;  %5955 = vmatprep.subr.bf16.mxu0 %v12039_v41  ;;  %v12166_v48 = vcombine.low %v850_v37, %v854_v38 }
 0x111   : > { %v734_v44 = vld [vmem:[%s14093_s23 + $0x920] sm:$0xff]  ;;  %5956 = vmatpush1.bf16.msra.mxu0 %v12038_v47 }
 0x112   : > { %v858_v45 = vld [vmem:[%s14093_s23 + $0xd00] sm:$0xff]  ;;  %v12047_v49 = vcombine.high %v730_v43, %v734_v44  ;;  %5996 = vmatprep.subr.bf16.mxu1 %v12167_v42  ;;  %v12046_v57 = vcombine.low %v730_v43, %v734_v44 }
 0x113   : > { %v862_v46 = vld [vmem:[%s14093_s23 + $0xd20] sm:$0xff]  ;;  %5997 = vmatpush1.bf16.msra.mxu1 %v12166_v48 }
 0x114   : > { %v12175_v50 = vcombine.high %v858_v45, %v862_v46  ;;  %v738_v51 = vld [vmem:[%s14093_s23 + $0x940] sm:$0xff]  ;;  %5957 = vmatprep.subr.bf16.mxu0 %v12047_v49  ;;  %v12174_v58 = vcombine.low %v858_v45, %v862_v46 }
 0x115   : > { %v742_v52 = vld [vmem:[%s14093_s23 + $0x960] sm:$0xff]  ;;  %5958 = vmatpush1.bf16.msra.mxu0 %v12046_v57 }
 0x116   : > { %v866_v53 = vld [vmem:[%s14093_s23 + $0xd40] sm:$0xff]  ;;  %v12055_v61 = vcombine.high %v738_v51, %v742_v52  ;;  %5998 = vmatprep.subr.bf16.mxu1 %v12175_v50  ;;  %v12054_v3 = vcombine.low %v738_v51, %v742_v52 }
 0x117   : > { %v870_v56 = vld [vmem:[%s14093_s23 + $0xd60] sm:$0xff]  ;;  %5999 = vmatpush1.bf16.msra.mxu1 %v12174_v58 }
 0x118   : > { %v12183_v62 = vcombine.high %v866_v53, %v870_v56  ;;  %v746_v63 = vld [vmem:[%s14093_s23 + $0x980] sm:$0xff]  ;;  %5959 = vmatprep.subr.bf16.mxu0 %v12055_v61  ;;  %v12182_v4 = vcombine.low %v866_v53, %v870_v56 }
 0x119   : > { %v750_v0 = vld [vmem:[%s14093_s23 + $0x9a0] sm:$0xff]  ;;  %5960 = vmatpush1.bf16.msra.mxu0 %v12054_v3 }
 0x11a   : > { %v874_v1 = vld [vmem:[%s14093_s23 + $0xd80] sm:$0xff]  ;;  %v12063_v5 = vcombine.high %v746_v63, %v750_v0  ;;  %6000 = vmatprep.subr.bf16.mxu1 %v12183_v62  ;;  %v12062_v11 = vcombine.low %v746_v63, %v750_v0 }
 0x11b   : > { %v878_v2 = vld [vmem:[%s14093_s23 + $0xda0] sm:$0xff]  ;;  %6001 = vmatpush1.bf16.msra.mxu1 %v12182_v4 }
 0x11c   : > { %v12191_v6 = vcombine.high %v874_v1, %v878_v2  ;;  %v754_v7 = vld [vmem:[%s14093_s23 + $0x9c0] sm:$0xff]  ;;  %5961 = vmatprep.subr.bf16.mxu0 %v12063_v5  ;;  %v12190_v12 = vcombine.low %v874_v1, %v878_v2 }
 0x11d   : > { %v758_v8 = vld [vmem:[%s14093_s23 + $0x9e0] sm:$0xff]  ;;  %5962 = vmatpush1.bf16.msra.mxu0 %v12062_v11 }
 0x11e   : > { %v882_v9 = vld [vmem:[%s14093_s23 + $0xdc0] sm:$0xff]  ;;  %v12071_v13 = vcombine.high %v754_v7, %v758_v8  ;;  %6002 = vmatprep.subr.bf16.mxu1 %v12191_v6  ;;  %v12070_v22 = vcombine.low %v754_v7, %v758_v8 }
 0x11f   : > { %v886_v10 = vld [vmem:[%s14093_s23 + $0xde0] sm:$0xff]  ;;  %6003 = vmatpush1.bf16.msra.mxu1 %v12190_v12 }
 0x120   : > { %v12199_v14 = vcombine.high %v882_v9, %v886_v10  ;;  %v762_v15 = vld [vmem:[%s14093_s23 + $0xa00] sm:$0xff]  ;;  %5963 = vmatprep.subr.bf16.mxu0 %v12071_v13  ;;  %v12198_v24 = vcombine.low %v882_v9, %v886_v10 }
 0x121   : > { %v766_v16 = vld [vmem:[%s14093_s23 + $0xa20] sm:$0xff]  ;;  %5964 = vmatpush1.bf16.msra.mxu0 %v12070_v22 }
 0x122   : > { %v890_v18 = vld [vmem:[%s14093_s23 + $0xe00] sm:$0xff]  ;;  %v12079_v25 = vcombine.high %v762_v15, %v766_v16  ;;  %6004 = vmatprep.subr.bf16.mxu1 %v12199_v14  ;;  %v12078_v31 = vcombine.low %v762_v15, %v766_v16 }
 0x123   : > { %v894_v19 = vld [vmem:[%s14093_s23 + $0xe20] sm:$0xff]  ;;  %6005 = vmatpush1.bf16.msra.mxu1 %v12198_v24 }
 0x124   : > { %v12207_v54 = vcombine.high %v890_v18, %v894_v19  ;;  %v770_v26 = vld [vmem:[%s14093_s23 + $0xa40] sm:$0xff]  ;;  %5965 = vmatprep.subr.bf16.mxu0 %v12079_v25  ;;  %v12206_v32 = vcombine.low %v890_v18, %v894_v19 }
 0x125   : > { %v774_v27 = vld [vmem:[%s14093_s23 + $0xa60] sm:$0xff]  ;;  %5966 = vmatpush1.bf16.msra.mxu0 %v12078_v31 }
 0x126   : > { %v898_v55 = vld [vmem:[%s14093_s23 + $0xe40] sm:$0xff]  ;;  %v12087_v33 = vcombine.high %v770_v26, %v774_v27  ;;  %6006 = vmatprep.subr.bf16.mxu1 %v12207_v54  ;;  %v12086_v39 = vcombine.low %v770_v26, %v774_v27 }
 0x127   : > { %v902_v29 = vld [vmem:[%s14093_s23 + $0xe60] sm:$0xff]  ;;  %6007 = vmatpush1.bf16.msra.mxu1 %v12206_v32 }
 0x128   : > { %v12215_v34 = vcombine.high %v898_v55, %v902_v29  ;;  %v778_v35 = vld [vmem:[%s14093_s23 + $0xa80] sm:$0xff]  ;;  %5967 = vmatprep.subr.bf16.mxu0 %v12087_v33  ;;  %v12214_v40 = vcombine.low %v898_v55, %v902_v29 }
 0x129   : > { %v782_v36 = vld [vmem:[%s14093_s23 + $0xaa0] sm:$0xff]  ;;  %5968 = vmatpush1.bf16.msra.mxu0 %v12086_v39 }
 0x12a   : > { %v906_v37 = vld [vmem:[%s14093_s23 + $0xe80] sm:$0xff]  ;;  %v12095_v41 = vcombine.high %v778_v35, %v782_v36  ;;  %6008 = vmatprep.subr.bf16.mxu1 %v12215_v34  ;;  %v12094_v47 = vcombine.low %v778_v35, %v782_v36 }
 0x12b   : > { %v910_v38 = vld [vmem:[%s14093_s23 + $0xea0] sm:$0xff]  ;;  %6009 = vmatpush1.bf16.msra.mxu1 %v12214_v40 }
 0x12c   : > { %v12223_v42 = vcombine.high %v906_v37, %v910_v38  ;;  %v786_v43 = vld [vmem:[%s14093_s23 + $0xac0] sm:$0xff]  ;;  %5969 = vmatprep.subr.bf16.mxu0 %v12095_v41  ;;  %v12222_v48 = vcombine.low %v906_v37, %v910_v38  ;;  %v14296_v37 = vcombine.low %v14211_v20, %v14211_v20  ;;  %v14305_v41 = vcombine.low %v14218_v23, %v14218_v23 }
 0x12d   : > { %v790_v44 = vld [vmem:[%s14093_s23 + $0xae0] sm:$0xff]  ;;  %5970 = vmatpush1.bf16.msra.mxu0 %v12094_v47 }
 0x12e   : > { %v914_v45 = vld [vmem:[%s14093_s23 + $0xec0] sm:$0xff]  ;;  %v12103_v49 = vcombine.high %v786_v43, %v790_v44  ;;  %6010 = vmatprep.subr.bf16.mxu1 %v12223_v42  ;;  %v12102_v57 = vcombine.low %v786_v43, %v790_v44  ;;  %v14308_v43 = vld [vmem:[%s14115_s17 + $0x28] sm:$0xff] }
 0x12f   : > { %v918_v46 = vld [vmem:[%s14093_s23 + $0xee0] sm:$0xff]  ;;  %6011 = vmatpush1.bf16.msra.mxu1 %v12222_v48 }
 0x130   : > { %v12231_v50 = vcombine.high %v914_v45, %v918_v46  ;;  %v794_v51 = vld [vmem:[%s14093_s23 + $0xb00] sm:$0xff]  ;;  %5971 = vmatprep.subr.bf16.mxu0 %v12103_v49  ;;  %v12230_v58 = vcombine.low %v914_v45, %v918_v46 }
 0x131   : > { %v798_v52 = vld [vmem:[%s14093_s23 + $0xb20] sm:$0xff]  ;;  %5972 = vmatpush1.bf16.msra.mxu0 %v12102_v57 }
 0x132   : > { %v922_v53 = vld [vmem:[%s14093_s23 + $0xf00] sm:$0xff]  ;;  %v12111_v61 = vcombine.high %v794_v51, %v798_v52  ;;  %6012 = vmatprep.subr.bf16.mxu1 %v12231_v50  ;;  %v12110_v3 = vcombine.low %v794_v51, %v798_v52  ;;  %v14321_v50 = vcombine.high %v14308_v43, %v14308_v43 }
 0x133   : > { %v926_v56 = vld [vmem:[%s14093_s23 + $0xf20] sm:$0xff]  ;;  %6013 = vmatpush1.bf16.msra.mxu1 %v12230_v58 }
 0x134   : > { %v12239_v62 = vcombine.high %v922_v53, %v926_v56  ;;  %v802_v63 = vld [vmem:[%s14093_s23 + $0xb40] sm:$0xff]  ;;  %5973 = vmatprep.subr.bf16.mxu0 %v12111_v61  ;;  %v12238_v4 = vcombine.low %v922_v53, %v926_v56 }
 0x135   : > { %v806_v0 = vld [vmem:[%s14093_s23 + $0xb60] sm:$0xff]  ;;  %5974 = vmatpush1.bf16.msra.mxu0 %v12110_v3 }
 0x136   : > { %v930_v1 = vld [vmem:[%s14093_s23 + $0xf40] sm:$0xff]  ;;  %v12119_v5 = vcombine.high %v802_v63, %v806_v0  ;;  %6014 = vmatprep.subr.bf16.mxu1 %v12239_v62  ;;  %v12118_v11 = vcombine.low %v802_v63, %v806_v0 }
 0x137   : > { %v934_v2 = vld [vmem:[%s14093_s23 + $0xf60] sm:$0xff]  ;;  %6015 = vmatpush1.bf16.msra.mxu1 %v12238_v4 }
 0x138   : > { %v12247_v6 = vcombine.high %v930_v1, %v934_v2  ;;  %v810_v7 = vld [vmem:[%s14093_s23 + $0xb80] sm:$0xff]  ;;  %5975 = vmatprep.subr.bf16.mxu0 %v12119_v5  ;;  %v12246_v12 = vcombine.low %v930_v1, %v934_v2 }
 0x139   : > { %v814_v8 = vld [vmem:[%s14093_s23 + $0xba0] sm:$0xff]  ;;  %5976 = vmatpush1.bf16.msra.mxu0 %v12118_v11 }
 0x13a   : > { %v938_v9 = vld [vmem:[%s14093_s23 + $0xf80] sm:$0xff]  ;;  %v12127_v13 = vcombine.high %v810_v7, %v814_v8  ;;  %6016 = vmatprep.subr.bf16.mxu1 %v12247_v6  ;;  %v12126_v22 = vcombine.low %v810_v7, %v814_v8 }
 0x13b   : > { %v942_v10 = vld [vmem:[%s14093_s23 + $0xfa0] sm:$0xff]  ;;  %6017 = vmatpush1.bf16.msra.mxu1 %v12246_v12 }
 0x13c   : > { %v12255_v14 = vcombine.high %v938_v9, %v942_v10  ;;  %v818_v15 = vld [vmem:[%s14093_s23 + $0xbc0] sm:$0xff]  ;;  %5977 = vmatprep.subr.bf16.mxu0 %v12127_v13  ;;  %v12254_v24 = vcombine.low %v938_v9, %v942_v10 }
 0x13d   : > { %v822_v16 = vld [vmem:[%s14093_s23 + $0xbe0] sm:$0xff]  ;;  %5978 = vmatpush1.bf16.msra.mxu0 %v12126_v22 }
 0x13e   : > { %v946_v18 = vld [vmem:[%s14093_s23 + $0xfc0] sm:$0xff]  ;;  %v12135_v25 = vcombine.high %v818_v15, %v822_v16  ;;  %6018 = vmatprep.subr.bf16.mxu1 %v12255_v14  ;;  %v12134_v31 = vcombine.low %v818_v15, %v822_v16 }
 0x13f   : > { %v950_v19 = vld [vmem:[%s14093_s23 + $0xfe0] sm:$0xff]  ;;  %6019 = vmatpush1.bf16.msra.mxu1 %v12254_v24 }
 0x140   : > { %v12263_v54 = vcombine.high %v946_v18, %v950_v19  ;;  %v954_v26 = vld [vmem:[%s14093_s23 + $0x1000] sm:$0xff]  ;;  %5979 = vmatprep.subr.bf16.mxu0 %v12135_v25  ;;  %v12262_v32 = vcombine.low %v946_v18, %v950_v19 }
 0x141   : > { %v958_v27 = vld [vmem:[%s14093_s23 + $0x1020] sm:$0xff]  ;;  %5980 = vmatpush1.bf16.msra.mxu0 %v12134_v31 }
 0x142   : > { %v1082_v55 = vld [vmem:[%s14093_s23 + $0x1400] sm:$0xff]  ;;  %v12271_v33 = vcombine.high %v954_v26, %v958_v27  ;;  %6020 = vmatprep.subr.bf16.mxu1 %v12263_v54  ;;  %v12270_v42 = vcombine.low %v954_v26, %v958_v27 }
 0x143   : > { %v1086_v29 = vld [vmem:[%s14093_s23 + $0x1420] sm:$0xff]  ;;  %6021 = vmatpush1.bf16.msra.mxu1 %v12262_v32 }
 0x144   : > { %v12399_v34 = vcombine.high %v1082_v55, %v1086_v29  ;;  %v962_v35 = vld [vmem:[%s14093_s23 + $0x1040] sm:$0xff]  ;;  %6031 = vmatprep.subr.bf16.mxu0 %v12271_v33  ;;  %v12398_v44 = vcombine.low %v1082_v55, %v1086_v29  ;;  %5982 = vmatmul.mubr.bf16.vlgmr.msra.gmra.mrb[4].mxu0 %v14296_v37 }
 0x145   : > { %v966_v36 = vld [vmem:[%s14093_s23 + $0x1060] sm:$0xff]  ;;  %6032 = vmatpush1.bf16.msra.mxu0 %v12270_v42 }
 0x146   : > { %v1090_v38 = vld [vmem:[%s14093_s23 + $0x1440] sm:$0xff]  ;;  %v12279_v45 = vcombine.high %v962_v35, %v966_v36  ;;  %6072 = vmatprep.subr.bf16.mxu1 %v12399_v34  ;;  %6023 = vmatmul.mubr.bf16.vlgmr.msra.gmra.mrb[4].mxu1 %v14305_v41  ;;  %v12278_v51 = vcombine.low %v962_v35, %v966_v36 }
 0x147   : > { %v1094_v39 = vld [vmem:[%s14093_s23 + $0x1460] sm:$0xff]  ;;  %6073 = vmatpush1.bf16.msra.mxu1 %v12398_v44  ;;  %6104 = vmatprep.mubr.bf16.mxu1 %v14321_v50 }
 0x148   : > { %v14301_v40 = vld [vmem:[%s14115_s17 + $0x20] sm:$0xff]  ;;  %v12407_v20 = vcombine.high %v1090_v38, %v1094_v39  ;;  %6033 = vmatprep.subr.bf16.mxu0 %v12279_v45  ;;  %v12406_v52 = vcombine.low %v1090_v38, %v1094_v39 }
 0x149   : > { %v970_v46 = vld [vmem:[%s14093_s23 + $0x1080] sm:$0xff]  ;;  %v14314_v48 = vcombine.high %v14301_v40, %v14301_v40  ;;  %6034 = vmatpush1.bf16.msra.mxu0 %v12278_v51 }
 0x14a   : > { %v974_v47 = vld [vmem:[%s14093_s23 + $0x10a0] sm:$0xff]  ;;  %6074 = vmatprep.subr.bf16.mxu1 %v12407_v20 }
 0x14b   : > { %v1098_v23 = vld [vmem:[%s14093_s23 + $0x1480] sm:$0xff]  ;;  %v12287_v53 = vcombine.high %v970_v46, %v974_v47  ;;  %6063 = vmatprep.mubr.bf16.mxu0 %v14314_v48  ;;  %v12286_v63 = vcombine.low %v970_v46, %v974_v47  ;;  %6075 = vmatpush1.bf16.msra.mxu1 %v12406_v52 }
 0x14c   : > { %v1102_v49 = vld [vmem:[%s14093_s23 + $0x14a0] sm:$0xff] }
 0x14d   : > { %v12415_v56 = vcombine.high %v1098_v23, %v1102_v49  ;;  %v978_v57 = vld [vmem:[%s14093_s23 + $0x10c0] sm:$0xff]  ;;  %6035 = vmatprep.subr.bf16.mxu0 %v12287_v53  ;;  %v12414_v0 = vcombine.low %v1098_v23, %v1102_v49 }
 0x14e   : > { %v982_v58 = vld [vmem:[%s14093_s23 + $0x10e0] sm:$0xff]  ;;  %6036 = vmatpush1.bf16.msra.mxu0 %v12286_v63 }
 0x14f   : > { %v1106_v61 = vld [vmem:[%s14093_s23 + $0x14c0] sm:$0xff]  ;;  %v12295_v1 = vcombine.high %v978_v57, %v982_v58  ;;  %6076 = vmatprep.subr.bf16.mxu1 %v12415_v56  ;;  %v12294_v7 = vcombine.low %v978_v57, %v982_v58 }
 0x150   : > { %v1110_v62 = vld [vmem:[%s14093_s23 + $0x14e0] sm:$0xff]  ;;  %6077 = vmatpush1.bf16.msra.mxu1 %v12414_v0 }
 0x151   : > { %v12423_v2 = vcombine.high %v1106_v61, %v1110_v62  ;;  %v986_v3 = vld [vmem:[%s14093_s23 + $0x1100] sm:$0xff]  ;;  %6037 = vmatprep.subr.bf16.mxu0 %v12295_v1  ;;  %v12422_v8 = vcombine.low %v1106_v61, %v1110_v62 }
 0x152   : > { %v990_v4 = vld [vmem:[%s14093_s23 + $0x1120] sm:$0xff]  ;;  %6038 = vmatpush1.bf16.msra.mxu0 %v12294_v7 }
 0x153   : > { %v1114_v5 = vld [vmem:[%s14093_s23 + $0x1500] sm:$0xff]  ;;  %v12303_v9 = vcombine.high %v986_v3, %v990_v4  ;;  %6078 = vmatprep.subr.bf16.mxu1 %v12423_v2  ;;  %v12302_v15 = vcombine.low %v986_v3, %v990_v4 }
 0x154   : > { %v1118_v6 = vld [vmem:[%s14093_s23 + $0x1520] sm:$0xff]  ;;  %6079 = vmatpush1.bf16.msra.mxu1 %v12422_v8 }
 0x155   : > { %v12431_v10 = vcombine.high %v1114_v5, %v1118_v6  ;;  %v994_v11 = vld [vmem:[%s14093_s23 + $0x1140] sm:$0xff]  ;;  %6039 = vmatprep.subr.bf16.mxu0 %v12303_v9  ;;  %v12430_v16 = vcombine.low %v1114_v5, %v1118_v6 }
 0x156   : > { %v998_v12 = vld [vmem:[%s14093_s23 + $0x1160] sm:$0xff]  ;;  %6040 = vmatpush1.bf16.msra.mxu0 %v12302_v15 }
 0x157   : > { %v1122_v13 = vld [vmem:[%s14093_s23 + $0x1540] sm:$0xff]  ;;  %v12311_v18 = vcombine.high %v994_v11, %v998_v12  ;;  %6080 = vmatprep.subr.bf16.mxu1 %v12431_v10  ;;  %v12310_v26 = vcombine.low %v994_v11, %v998_v12 }
 0x158   : > { %v1126_v14 = vld [vmem:[%s14093_s23 + $0x1560] sm:$0xff]  ;;  %6081 = vmatpush1.bf16.msra.mxu1 %v12430_v16 }
 0x159   : > { %v12439_v19 = vcombine.high %v1122_v13, %v1126_v14  ;;  %v1002_v22 = vld [vmem:[%s14093_s23 + $0x1180] sm:$0xff]  ;;  %6041 = vmatprep.subr.bf16.mxu0 %v12311_v18  ;;  %v12438_v27 = vcombine.low %v1122_v13, %v1126_v14 }
 0x15a   : > { %v1006_v24 = vld [vmem:[%s14093_s23 + $0x11a0] sm:$0xff]  ;;  %6042 = vmatpush1.bf16.msra.mxu0 %v12310_v26 }
 0x15b   : > { %v1130_v25 = vld [vmem:[%s14093_s23 + $0x1580] sm:$0xff]  ;;  %v12319_v55 = vcombine.high %v1002_v22, %v1006_v24  ;;  %6082 = vmatprep.subr.bf16.mxu1 %v12439_v19  ;;  %v12318_v35 = vcombine.low %v1002_v22, %v1006_v24 }
 0x15c   : > { %v1134_v54 = vld [vmem:[%s14093_s23 + $0x15a0] sm:$0xff]  ;;  %6083 = vmatpush1.bf16.msra.mxu1 %v12438_v27 }
 0x15d   : > { %v12447_v29 = vcombine.high %v1130_v25, %v1134_v54  ;;  %v1010_v31 = vld [vmem:[%s14093_s23 + $0x11c0] sm:$0xff]  ;;  %6043 = vmatprep.subr.bf16.mxu0 %v12319_v55  ;;  %v12446_v36 = vcombine.low %v1130_v25, %v1134_v54 }
 0x15e   : > { %v1014_v32 = vld [vmem:[%s14093_s23 + $0x11e0] sm:$0xff]  ;;  %6044 = vmatpush1.bf16.msra.mxu0 %v12318_v35 }
 0x15f   : > { %v1138_v33 = vld [vmem:[%s14093_s23 + $0x15c0] sm:$0xff]  ;;  %v12327_v38 = vcombine.high %v1010_v31, %v1014_v32  ;;  %6084 = vmatprep.subr.bf16.mxu1 %v12447_v29  ;;  %v12326_v46 = vcombine.low %v1010_v31, %v1014_v32 }
 0x160   : > { %v1142_v34 = vld [vmem:[%s14093_s23 + $0x15e0] sm:$0xff]  ;;  %6085 = vmatpush1.bf16.msra.mxu1 %v12446_v36 }
 0x161   : > { %v12455_v39 = vcombine.high %v1138_v33, %v1142_v34  ;;  %v1018_v42 = vld [vmem:[%s14093_s23 + $0x1200] sm:$0xff]  ;;  %6045 = vmatprep.subr.bf16.mxu0 %v12327_v38  ;;  %v12454_v47 = vcombine.low %v1138_v33, %v1142_v34 }
 0x162   : > { %v1022_v44 = vld [vmem:[%s14093_s23 + $0x1220] sm:$0xff]  ;;  %6046 = vmatpush1.bf16.msra.mxu0 %v12326_v46 }
 0x163   : > { %v1146_v45 = vld [vmem:[%s14093_s23 + $0x1600] sm:$0xff]  ;;  %v12335_v23 = vcombine.high %v1018_v42, %v1022_v44  ;;  %6086 = vmatprep.subr.bf16.mxu1 %v12455_v39  ;;  %v12334_v57 = vcombine.low %v1018_v42, %v1022_v44 }
 0x164   : > { %v1150_v20 = vld [vmem:[%s14093_s23 + $0x1620] sm:$0xff]  ;;  %6087 = vmatpush1.bf16.msra.mxu1 %v12454_v47 }
 0x165   : > { %v12463_v49 = vcombine.high %v1146_v45, %v1150_v20  ;;  %v1026_v51 = vld [vmem:[%s14093_s23 + $0x1240] sm:$0xff]  ;;  %6047 = vmatprep.subr.bf16.mxu0 %v12335_v23  ;;  %v12462_v58 = vcombine.low %v1146_v45, %v1150_v20 }
 0x166   : > { %v1030_v52 = vld [vmem:[%s14093_s23 + $0x1260] sm:$0xff]  ;;  %6048 = vmatpush1.bf16.msra.mxu0 %v12334_v57 }
 0x167   : > { %v1154_v53 = vld [vmem:[%s14093_s23 + $0x1640] sm:$0xff]  ;;  %v12343_v61 = vcombine.high %v1026_v51, %v1030_v52  ;;  %6088 = vmatprep.subr.bf16.mxu1 %v12463_v49  ;;  %v12342_v3 = vcombine.low %v1026_v51, %v1030_v52 }
 0x168   : > { %v1158_v56 = vld [vmem:[%s14093_s23 + $0x1660] sm:$0xff]  ;;  %6089 = vmatpush1.bf16.msra.mxu1 %v12462_v58 }
 0x169   : > { %v12471_v62 = vcombine.high %v1154_v53, %v1158_v56  ;;  %v1034_v63 = vld [vmem:[%s14093_s23 + $0x1280] sm:$0xff]  ;;  %6049 = vmatprep.subr.bf16.mxu0 %v12343_v61  ;;  %v12470_v4 = vcombine.low %v1154_v53, %v1158_v56  ;;  %v443_v61 = vld [vmem:[%s14093_s23 + $0x8] sm:$0xff] }
 0x16a   : > { %v1038_v0 = vld [vmem:[%s14093_s23 + $0x12a0] sm:$0xff]  ;;  %6050 = vmatpush1.bf16.msra.mxu0 %v12342_v3 }
 0x16b   : > { %v1162_v1 = vld [vmem:[%s14093_s23 + $0x1680] sm:$0xff]  ;;  %v12351_v5 = vcombine.high %v1034_v63, %v1038_v0  ;;  %6090 = vmatprep.subr.bf16.mxu1 %v12471_v62  ;;  %v12350_v11 = vcombine.low %v1034_v63, %v1038_v0  ;;  %v447_v62 = vld [vmem:[%s14093_s23 + $0x28] sm:$0xff] }
 0x16c   : > { %v1166_v2 = vld [vmem:[%s14093_s23 + $0x16a0] sm:$0xff]  ;;  %6091 = vmatpush1.bf16.msra.mxu1 %v12470_v4 }
 0x16d   : > { %v12479_v6 = vcombine.high %v1162_v1, %v1166_v2  ;;  %v1042_v7 = vld [vmem:[%s14093_s23 + $0x12c0] sm:$0xff]  ;;  %6051 = vmatprep.subr.bf16.mxu0 %v12351_v5  ;;  %v12478_v12 = vcombine.low %v1162_v1, %v1166_v2  ;;  %v11761_v2 = vcombine.high %v443_v61, %v447_v62  ;;  %v14386_v5 = vcombine.low %v14301_v40, %v14301_v40 }
 0x16e   : > { %v1046_v8 = vld [vmem:[%s14093_s23 + $0x12e0] sm:$0xff]  ;;  %6052 = vmatpush1.bf16.msra.mxu0 %v12350_v11  ;;  %v11760_v11 = vcombine.low %v443_v61, %v447_v62 }
 0x16f   : > { %v1170_v9 = vld [vmem:[%s14093_s23 + $0x16c0] sm:$0xff]  ;;  %v12359_v13 = vcombine.high %v1042_v7, %v1046_v8  ;;  %6092 = vmatprep.subr.bf16.mxu1 %v12479_v6  ;;  %v12358_v22 = vcombine.low %v1042_v7, %v1046_v8  ;;  %v451_v6 = vld [vmem:[%s14093_s23 + $0x48] sm:$0xff]  ;;  %v14391_v8 = vld [vmem:[%s14115_s17 + $0x30] sm:$0xff] }
 0x170   : > { %v1174_v10 = vld [vmem:[%s14093_s23 + $0x16e0] sm:$0xff]  ;;  %6093 = vmatpush1.bf16.msra.mxu1 %v12478_v12  ;;  %v455_v7 = vld [vmem:[%s14093_s23 + $0x68] sm:$0xff] }
 0x171   : > { %v12487_v14 = vcombine.high %v1170_v9, %v1174_v10  ;;  %v1050_v15 = vld [vmem:[%s14093_s23 + $0x1300] sm:$0xff]  ;;  %6053 = vmatprep.subr.bf16.mxu0 %v12359_v13  ;;  %v12486_v24 = vcombine.low %v1170_v9, %v1174_v10  ;;  %v14395_v9 = vcombine.low %v14308_v43, %v14308_v43  ;;  %v11769_v13 = vcombine.high %v451_v6, %v455_v7  ;;  %v459_v43 = vld [vmem:[%s14093_s23 + $0x88] sm:$0xff] }
 0x172   : > { %v1054_v16 = vld [vmem:[%s14093_s23 + $0x1320] sm:$0xff]  ;;  %6054 = vmatpush1.bf16.msra.mxu0 %v12358_v22 }
 0x173   : > { %v1178_v18 = vld [vmem:[%s14093_s23 + $0x1700] sm:$0xff]  ;;  %v12367_v25 = vcombine.high %v1050_v15, %v1054_v16  ;;  %6094 = vmatprep.subr.bf16.mxu1 %v12487_v14  ;;  %v12366_v31 = vcombine.low %v1050_v15, %v1054_v16  ;;  %v14401_v15 = vcombine.high %v14391_v8, %v14391_v8  ;;  %v463_v16 = vld [vmem:[%s14093_s23 + $0xa8] sm:$0xff] }
 0x174   : > { %v1182_v19 = vld [vmem:[%s14093_s23 + $0x1720] sm:$0xff]  ;;  %6095 = vmatpush1.bf16.msra.mxu1 %v12486_v24  ;;  %v11777_v24 = vcombine.high %v459_v43, %v463_v16 }
 0x175   : > { %v12495_v54 = vcombine.high %v1178_v18, %v1182_v19  ;;  %v1058_v26 = vld [vmem:[%s14093_s23 + $0x1340] sm:$0xff]  ;;  %6055 = vmatprep.subr.bf16.mxu0 %v12367_v25  ;;  %v12494_v32 = vcombine.low %v1178_v18, %v1182_v19  ;;  %v11768_v19 = vcombine.low %v451_v6, %v455_v7 }
 0x176   : > { %v1062_v27 = vld [vmem:[%s14093_s23 + $0x1360] sm:$0xff]  ;;  %6056 = vmatpush1.bf16.msra.mxu0 %v12366_v31 }
 0x177   : > { %v1186_v55 = vld [vmem:[%s14093_s23 + $0x1740] sm:$0xff]  ;;  %v12375_v33 = vcombine.high %v1058_v26, %v1062_v27  ;;  %6096 = vmatprep.subr.bf16.mxu1 %v12495_v54  ;;  %v12374_v42 = vcombine.low %v1058_v26, %v1062_v27  ;;  %v467_v26 = vld [vmem:[%s14093_s23 + $0xc8] sm:$0xff] }
 0x178   : > { %v1190_v29 = vld [vmem:[%s14093_s23 + $0x1760] sm:$0xff]  ;;  %6097 = vmatpush1.bf16.msra.mxu1 %v12494_v32  ;;  %v471_v27 = vld [vmem:[%s14093_s23 + $0xe8] sm:$0xff] }
 0x179   : > { %v12503_v34 = vcombine.high %v1186_v55, %v1190_v29  ;;  %v1066_v35 = vld [vmem:[%s14093_s23 + $0x1380] sm:$0xff]  ;;  %6057 = vmatprep.subr.bf16.mxu0 %v12375_v33  ;;  %v12502_v44 = vcombine.low %v1186_v55, %v1190_v29  ;;  %v11776_v29 = vcombine.low %v459_v43, %v463_v16  ;;  %v11785_v32 = vcombine.high %v467_v26, %v471_v27 }
 0x17a   : > { %v1070_v36 = vld [vmem:[%s14093_s23 + $0x13a0] sm:$0xff]  ;;  %6058 = vmatpush1.bf16.msra.mxu0 %v12374_v42 }
 0x17b   : > { %v1194_v38 = vld [vmem:[%s14093_s23 + $0x1780] sm:$0xff]  ;;  %v12383_v45 = vcombine.high %v1066_v35, %v1070_v36  ;;  %6098 = vmatprep.subr.bf16.mxu1 %v12503_v34  ;;  %v12382_v51 = vcombine.low %v1066_v35, %v1070_v36  ;;  %v475_v35 = vld [vmem:[%s14093_s23 + $0x108] sm:$0xff] }
 0x17c   : > { %v1198_v39 = vld [vmem:[%s14093_s23 + $0x17a0] sm:$0xff]  ;;  %6099 = vmatpush1.bf16.msra.mxu1 %v12502_v44  ;;  %v479_v36 = vld [vmem:[%s14093_s23 + $0x128] sm:$0xff] }
 0x17d   : > { %v12511_v20 = vcombine.high %v1194_v38, %v1198_v39  ;;  %v1074_v46 = vld [vmem:[%s14093_s23 + $0x13c0] sm:$0xff]  ;;  %6059 = vmatprep.subr.bf16.mxu0 %v12383_v45  ;;  %v12510_v52 = vcombine.low %v1194_v38, %v1198_v39  ;;  %v11784_v39 = vcombine.low %v467_v26, %v471_v27  ;;  %v11793_v44 = vcombine.high %v475_v35, %v479_v36 }
 0x17e   : > { %v1078_v47 = vld [vmem:[%s14093_s23 + $0x13e0] sm:$0xff]  ;;  %6060 = vmatpush1.bf16.msra.mxu0 %v12382_v51 }
 0x17f   : > { %v1202_v23 = vld [vmem:[%s14093_s23 + $0x17c0] sm:$0xff]  ;;  %v12391_v53 = vcombine.high %v1074_v46, %v1078_v47  ;;  %6100 = vmatprep.subr.bf16.mxu1 %v12511_v20  ;;  %v12390_v63 = vcombine.low %v1074_v46, %v1078_v47  ;;  %v483_v46 = vld [vmem:[%s14093_s23 + $0x148] sm:$0xff] }
 0x180   : > { %v1206_v49 = vld [vmem:[%s14093_s23 + $0x17e0] sm:$0xff]  ;;  %6101 = vmatpush1.bf16.msra.mxu1 %v12510_v52  ;;  %v487_v47 = vld [vmem:[%s14093_s23 + $0x168] sm:$0xff] }
 0x181   : > { %v12519_v56 = vcombine.high %v1202_v23, %v1206_v49  ;;  %v1210_v57 = vld [vmem:[%s14093_s23 + $0x1800] sm:$0xff]  ;;  %6061 = vmatprep.subr.bf16.mxu0 %v12391_v53  ;;  %v12518_v0 = vcombine.low %v1202_v23, %v1206_v49  ;;  %v11792_v49 = vcombine.low %v475_v35, %v479_v36  ;;  %v11801_v52 = vcombine.high %v483_v46, %v487_v47 }
 0x182   : > { %v1214_v58 = vld [vmem:[%s14093_s23 + $0x1820] sm:$0xff]  ;;  %6062 = vmatpush1.bf16.msra.mxu0 %v12390_v63  ;;  %v11800_v62 = vcombine.low %v483_v46, %v487_v47 }
 0x183   : > { %v12527_v1 = vcombine.high %v1210_v57, %v1214_v58  ;;  %6102 = vmatprep.subr.bf16.mxu1 %v12519_v56  ;;  %v1218_v3 = vld [vmem:[%s14093_s23 + $0x1840] sm:$0xff]  ;;  %v12526_v10 = vcombine.low %v1210_v57, %v1214_v58  ;;  %v491_v57 = vld [vmem:[%s14093_s23 + $0x188] sm:$0xff] }
 0x184   : > { %v1222_v4 = vld [vmem:[%s14093_s23 + $0x1860] sm:$0xff]  ;;  %6103 = vmatpush1.bf16.msra.mxu1 %v12518_v0  ;;  %v495_v58 = vld [vmem:[%s14093_s23 + $0x1a8] sm:$0xff] }
 0x185   : > { %6113 = vmatprep.subr.bf16.mxu0 %v12527_v1  ;;  %v12535_v12 = vcombine.high %v1218_v3, %v1222_v4  ;;  %6154 = vmatprep.subr.bf16.mxu1 %v11761_v2  ;;  %v1226_v40 = vld [vmem:[%s14093_s23 + $0x1880] sm:$0xff]  ;;  %v12534_v18 = vcombine.low %v1218_v3, %v1222_v4  ;;  %v11809_v0 = vcombine.high %v491_v57, %v495_v58  ;;  %v499_v3 = vld [vmem:[%s14093_s23 + $0x1c8] sm:$0xff] }
 0x186   : > { %v1230_v14 = vld [vmem:[%s14093_s23 + $0x18a0] sm:$0xff]  ;;  %6064 = vmatmul.mubr.bf16.vlgmr.msra.gmra.mrb[8].mxu0 %v14386_v5  ;;  %v503_v4 = vld [vmem:[%s14093_s23 + $0x1e8] sm:$0xff]  ;;  %v11808_v7 = vcombine.low %v491_v57, %v495_v58 }
 0x187   : > { %6105 = vmatmul.mubr.bf16.vlgmr.msra.gmra.mrb[8].mxu1 %v14395_v9  ;;  %6114 = vmatpush1.bf16.msra.mxu0 %v12526_v10  ;;  %v12543_v22 = vcombine.high %v1226_v40, %v1230_v14  ;;  %v1234_v25 = vld [vmem:[%s14093_s23 + $0x18c0] sm:$0xff]  ;;  %v12542_v55 = vcombine.low %v1226_v40, %v1230_v14  ;;  %v507_v40 = vld [vmem:[%s14093_s23 + $0x208] sm:$0xff]  ;;  %v11816_v16 = vcombine.low %v499_v3, %v503_v4 }
 0x188   : > { %6155 = vmatpush1.bf16.msra.mxu1 %v11760_v11  ;;  %6115 = vmatprep.subr.bf16.mxu0 %v12535_v12  ;;  %v1238_v54 = vld [vmem:[%s14093_s23 + $0x18e0] sm:$0xff]  ;;  %v11817_v11 = vcombine.high %v499_v3, %v503_v4  ;;  %v511_v14 = vld [vmem:[%s14093_s23 + $0x228] sm:$0xff] }
 0x189   : > { %6156 = vmatprep.subr.bf16.mxu1 %v11769_v13  ;;  %6145 = vmatprep.mubr.bf16.mxu0 %v14401_v15  ;;  %v12551_v31 = vcombine.high %v1234_v25, %v1238_v54  ;;  %v1242_v33 = vld [vmem:[%s14093_s23 + $0x1900] sm:$0xff]  ;;  %v12550_v38 = vcombine.low %v1234_v25, %v1238_v54  ;;  %v515_v25 = vld [vmem:[%s14093_s23 + $0x248] sm:$0xff]  ;;  %v11824_v27 = vcombine.low %v507_v40, %v511_v14 }
 0x18a   : > { %6186 = vmatprep.mubr.bf16.mxu1 %v14156_v59  ;;  %v1246_v34 = vld [vmem:[%s14093_s23 + $0x1920] sm:$0xff]  ;;  %v519_v54 = vld [vmem:[%s14093_s23 + $0x268] sm:$0xff] }
 0x18b   : > { %6116 = vmatpush1.bf16.msra.mxu0 %v12534_v18  ;;  %v12559_v42 = vcombine.high %v1242_v33, %v1246_v34  ;;  %v1250_v45 = vld [vmem:[%s14093_s23 + $0x1940] sm:$0xff]  ;;  %v12558_v23 = vcombine.low %v1242_v33, %v1246_v34  ;;  %v523_v33 = vld [vmem:[%s14093_s23 + $0x288] sm:$0xff]  ;;  %v11832_v36 = vcombine.low %v515_v25, %v519_v54 }
 0x18c   : > { %6157 = vmatpush1.bf16.msra.mxu1 %v11768_v19  ;;  %6117 = vmatprep.subr.bf16.mxu0 %v12543_v22  ;;  %v1254_v20 = vld [vmem:[%s14093_s23 + $0x1960] sm:$0xff]  ;;  %v11825_v19 = vcombine.high %v507_v40, %v511_v14  ;;  %v527_v34 = vld [vmem:[%s14093_s23 + $0x2a8] sm:$0xff] }
 0x18d   : > { %6158 = vmatprep.subr.bf16.mxu1 %v11777_v24  ;;  %v12567_v51 = vcombine.high %v1250_v45, %v1254_v20  ;;  %v1258_v53 = vld [vmem:[%s14093_s23 + $0x1980] sm:$0xff]  ;;  %v12566_v61 = vcombine.low %v1250_v45, %v1254_v20  ;;  %v531_v45 = vld [vmem:[%s14093_s23 + $0x2c8] sm:$0xff]  ;;  %v11840_v47 = vcombine.low %v523_v33, %v527_v34 }
 0x18e   : > { %v1262_v56 = vld [vmem:[%s14093_s23 + $0x19a0] sm:$0xff]  ;;  %v535_v20 = vld [vmem:[%s14093_s23 + $0x2e8] sm:$0xff] }
 0x18f   : > { %6118 = vmatpush1.bf16.msra.mxu0 %v12542_v55  ;;  %v12575_v63 = vcombine.high %v1258_v53, %v1262_v56  ;;  %v1266_v1 = vld [vmem:[%s14093_s23 + $0x19c0] sm:$0xff]  ;;  %v12574_v6 = vcombine.low %v1258_v53, %v1262_v56  ;;  %v539_v53 = vld [vmem:[%s14093_s23 + $0x308] sm:$0xff]  ;;  %v11848_v58 = vcombine.low %v531_v45, %v535_v20 }
 0x190   : > { %6159 = vmatpush1.bf16.msra.mxu1 %v11776_v29  ;;  %6119 = vmatprep.subr.bf16.mxu0 %v12551_v31  ;;  %v1270_v2 = vld [vmem:[%s14093_s23 + $0x19e0] sm:$0xff]  ;;  %v11833_v29 = vcombine.high %v515_v25, %v519_v54  ;;  %v543_v56 = vld [vmem:[%s14093_s23 + $0x328] sm:$0xff] }
 0x191   : > { %6160 = vmatprep.subr.bf16.mxu1 %v11785_v32  ;;  %v12583_v10 = vcombine.high %v1266_v1, %v1270_v2  ;;  %v1274_v12 = vld [vmem:[%s14093_s23 + $0x1a00] sm:$0xff]  ;;  %v12582_v43 = vcombine.low %v1266_v1, %v1270_v2  ;;  %v547_v1 = vld [vmem:[%s14093_s23 + $0x348] sm:$0xff]  ;;  %v11856_v4 = vcombine.low %v539_v53, %v543_v56 }
 0x192   : > { %v1278_v13 = vld [vmem:[%s14093_s23 + $0x1a20] sm:$0xff]  ;;  %v551_v2 = vld [vmem:[%s14093_s23 + $0x368] sm:$0xff] }
 0x193   : > { %6120 = vmatpush1.bf16.msra.mxu0 %v12550_v38  ;;  %v12591_v18 = vcombine.high %v1274_v12, %v1278_v13  ;;  %v1282_v22 = vld [vmem:[%s14093_s23 + $0x1a40] sm:$0xff]  ;;  %v12590_v26 = vcombine.low %v1274_v12, %v1278_v13  ;;  %v555_v12 = vld [vmem:[%s14093_s23 + $0x388] sm:$0xff]  ;;  %v11864_v14 = vcombine.low %v547_v1, %v551_v2 }
 0x194   : > { %6161 = vmatpush1.bf16.msra.mxu1 %v11784_v39  ;;  %6121 = vmatprep.subr.bf16.mxu0 %v12559_v42  ;;  %v1286_v24 = vld [vmem:[%s14093_s23 + $0x1a60] sm:$0xff]  ;;  %v11841_v39 = vcombine.high %v523_v33, %v527_v34  ;;  %v559_v13 = vld [vmem:[%s14093_s23 + $0x3a8] sm:$0xff] }
 0x195   : > { %6162 = vmatprep.subr.bf16.mxu1 %v11793_v44  ;;  %v12599_v55 = vcombine.high %v1282_v22, %v1286_v24  ;;  %v1290_v31 = vld [vmem:[%s14093_s23 + $0x1a80] sm:$0xff]  ;;  %v12598_v35 = vcombine.low %v1282_v22, %v1286_v24  ;;  %v563_v22 = vld [vmem:[%s14093_s23 + $0x3c8] sm:$0xff]  ;;  %v11872_v54 = vcombine.low %v555_v12, %v559_v13 }
 0x196   : > { %v1294_v32 = vld [vmem:[%s14093_s23 + $0x1aa0] sm:$0xff]  ;;  %v567_v24 = vld [vmem:[%s14093_s23 + $0x3e8] sm:$0xff] }
 0x197   : > { %6122 = vmatpush1.bf16.msra.mxu0 %v12558_v23  ;;  %v12607_v38 = vcombine.high %v1290_v31, %v1294_v32  ;;  %v1298_v42 = vld [vmem:[%s14093_s23 + $0x1ac0] sm:$0xff]  ;;  %v12606_v46 = vcombine.low %v1290_v31, %v1294_v32  ;;  %v699_v31 = vld [vmem:[%s14093_s23 + $0x808] sm:$0xff]  ;;  %v11880_v34 = vcombine.low %v563_v22, %v567_v24 }
 0x198   : > { %6163 = vmatpush1.bf16.msra.mxu1 %v11792_v49  ;;  %6123 = vmatprep.subr.bf16.mxu0 %v12567_v51  ;;  %v1302_v44 = vld [vmem:[%s14093_s23 + $0x1ae0] sm:$0xff]  ;;  %v11849_v49 = vcombine.high %v531_v45, %v535_v20  ;;  %v703_v32 = vld [vmem:[%s14093_s23 + $0x828] sm:$0xff] }
 0x199   : > { %6164 = vmatprep.subr.bf16.mxu1 %v11801_v52  ;;  %v12615_v23 = vcombine.high %v1298_v42, %v1302_v44  ;;  %v1306_v51 = vld [vmem:[%s14093_s23 + $0x1b00] sm:$0xff]  ;;  %v12614_v57 = vcombine.low %v1298_v42, %v1302_v44  ;;  %v14469_v42 = vcombine.low %v14391_v8, %v14391_v8  ;;  %v707_v44 = vld [vmem:[%s14093_s23 + $0x848] sm:$0xff] }
 0x19a   : > { %v1310_v52 = vld [vmem:[%s14093_s23 + $0x1b20] sm:$0xff]  ;;  %v711_v45 = vld [vmem:[%s14093_s23 + $0x868] sm:$0xff] }
 0x19b   : > { %6124 = vmatpush1.bf16.msra.mxu0 %v12566_v61  ;;  %v12623_v61 = vcombine.high %v1306_v51, %v1310_v52  ;;  %v12622_v3 = vcombine.low %v1306_v51, %v1310_v52  ;;  %v591_v51 = vld [vmem:[%s14093_s23 + $0x4a8] sm:$0xff] }
 0x19c   : > { %6165 = vmatpush1.bf16.msra.mxu1 %v11800_v62  ;;  %6125 = vmatprep.subr.bf16.mxu0 %v12575_v63  ;;  %v11857_v62 = vcombine.high %v539_v53, %v543_v56  ;;  %v1314_v63 = vld [vmem:[%s14093_s23 + $0x1b40] sm:$0xff]  ;;  %v715_v8 = vld [vmem:[%s14093_s23 + $0x888] sm:$0xff]  ;;  %v12024_v56 = vcombine.low %v707_v44, %v711_v45 }
 0x19d   : > { %6166 = vmatprep.subr.bf16.mxu1 %v11809_v0  ;;  %v1318_v0 = vld [vmem:[%s14093_s23 + $0x1b60] sm:$0xff]  ;;  %v719_v52 = vld [vmem:[%s14093_s23 + $0x8a8] sm:$0xff] }
 0x19e   : > { %v12630_v40 = vcombine.low %v1314_v63, %v1318_v0 }
 0x19f   : > { %6126 = vmatpush1.bf16.msra.mxu0 %v12574_v6  ;;  %v12631_v6 = vcombine.high %v1314_v63, %v1318_v0  ;;  %v723_v63 = vld [vmem:[%s14093_s23 + $0x8c8] sm:$0xff] }
 0x1a0   : > { %6167 = vmatpush1.bf16.msra.mxu1 %v11808_v7  ;;  %6127 = vmatprep.subr.bf16.mxu0 %v12583_v10  ;;  %v11865_v7 = vcombine.high %v547_v1, %v551_v2  ;;  %v1322_v10 = vld [vmem:[%s14093_s23 + $0x1b80] sm:$0xff]  ;;  %v727_v0 = vld [vmem:[%s14093_s23 + $0x8e8] sm:$0xff]  ;;  %v12032_v2 = vcombine.low %v715_v8, %v719_v52 }
 0x1a1   : > { %6168 = vmatprep.subr.bf16.mxu1 %v11817_v11  ;;  %v1326_v11 = vld [vmem:[%s14093_s23 + $0x1ba0] sm:$0xff] }
 0x1a2   : > { %v12638_v25 = vcombine.low %v1322_v10, %v1326_v11 }
 0x1a3   : > { %6128 = vmatpush1.bf16.msra.mxu0 %v12582_v43  ;;  %v12639_v43 = vcombine.high %v1322_v10, %v1326_v11  ;;  %v731_v10 = vld [vmem:[%s14093_s23 + $0x908] sm:$0xff] }
 0x1a4   : > { %6169 = vmatpush1.bf16.msra.mxu1 %v11816_v16  ;;  %6129 = vmatprep.subr.bf16.mxu0 %v12591_v18  ;;  %v11873_v16 = vcombine.high %v555_v12, %v559_v13  ;;  %v1330_v18 = vld [vmem:[%s14093_s23 + $0x1bc0] sm:$0xff]  ;;  %v735_v11 = vld [vmem:[%s14093_s23 + $0x928] sm:$0xff]  ;;  %v12040_v13 = vcombine.low %v723_v63, %v727_v0 }
 0x1a5   : > { %6170 = vmatprep.subr.bf16.mxu1 %v11825_v19  ;;  %v1334_v19 = vld [vmem:[%s14093_s23 + $0x1be0] sm:$0xff] }
 0x1a6   : > { %v12646_v33 = vcombine.low %v1330_v18, %v1334_v19 }
 0x1a7   : > { %6130 = vmatpush1.bf16.msra.mxu0 %v12590_v26  ;;  %v12647_v26 = vcombine.high %v1330_v18, %v1334_v19  ;;  %v739_v18 = vld [vmem:[%s14093_s23 + $0x948] sm:$0xff] }
 0x1a8   : > { %6171 = vmatpush1.bf16.msra.mxu1 %v11824_v27  ;;  %6131 = vmatprep.subr.bf16.mxu0 %v12599_v55  ;;  %v11881_v27 = vcombine.high %v563_v22, %v567_v24  ;;  %v571_v55 = vld [vmem:[%s14093_s23 + $0x408] sm:$0xff]  ;;  %v12048_v24 = vcombine.low %v731_v10, %v735_v11 }
 0x1a9   : > { %6172 = vmatprep.subr.bf16.mxu1 %v11833_v29  ;;  %v575_v29 = vld [vmem:[%s14093_s23 + $0x428] sm:$0xff] }
 0x1aa   : > { %v11888_v20 = vcombine.low %v571_v55, %v575_v29  ;;  %v743_v19 = vld [vmem:[%s14093_s23 + $0x968] sm:$0xff] }
 0x1ab   : > { %6132 = vmatpush1.bf16.msra.mxu0 %v12598_v35  ;;  %v11889_v35 = vcombine.high %v571_v55, %v575_v29  ;;  %v747_v55 = vld [vmem:[%s14093_s23 + $0x988] sm:$0xff] }
 0x1ac   : > { %6173 = vmatpush1.bf16.msra.mxu1 %v11832_v36  ;;  %6133 = vmatprep.subr.bf16.mxu0 %v12607_v38  ;;  %v12017_v36 = vcombine.high %v699_v31, %v703_v32  ;;  %v579_v38 = vld [vmem:[%s14093_s23 + $0x448] sm:$0xff] }
 0x1ad   : > { %6174 = vmatprep.subr.bf16.mxu1 %v11841_v39  ;;  %v583_v39 = vld [vmem:[%s14093_s23 + $0x468] sm:$0xff] }
 0x1ae   : > { %v11896_v53 = vcombine.low %v579_v38, %v583_v39  ;;  %v751_v29 = vld [vmem:[%s14093_s23 + $0x9a8] sm:$0xff] }
 0x1af   : > { %6134 = vmatpush1.bf16.msra.mxu0 %v12606_v46  ;;  %v12016_v46 = vcombine.low %v699_v31, %v703_v32  ;;  %v12056_v32 = vcombine.low %v739_v18, %v743_v19 }
 0x1b0   : > { %6175 = vmatpush1.bf16.msra.mxu1 %v11840_v47  ;;  %6135 = vmatprep.subr.bf16.mxu0 %v12615_v23  ;;  %v11897_v47 = vcombine.high %v579_v38, %v583_v39  ;;  %v12025_v23 = vcombine.high %v707_v44, %v711_v45  ;;  %v631_v38 = vld [vmem:[%s14093_s23 + $0x5e8] sm:$0xff] }
 0x1b1   : > { %6176 = vmatprep.subr.bf16.mxu1 %v11849_v49  ;;  %v587_v49 = vld [vmem:[%s14093_s23 + $0x488] sm:$0xff] }
 0x1b2   : > { %v11904_v1 = vcombine.low %v587_v49, %v591_v51  ;;  %v755_v45 = vld [vmem:[%s14093_s23 + $0x9c8] sm:$0xff] }
 0x1b3   : > { %6136 = vmatpush1.bf16.msra.mxu0 %v12614_v57  ;;  %v11905_v57 = vcombine.high %v587_v49, %v591_v51 }
 0x1b4   : > { %6177 = vmatpush1.bf16.msra.mxu1 %v11848_v58  ;;  %6137 = vmatprep.subr.bf16.mxu0 %v12623_v61  ;;  %v12033_v58 = vcombine.high %v715_v8, %v719_v52  ;;  %v595_v61 = vld [vmem:[%s14093_s23 + $0x4c8] sm:$0xff] }
 0x1b5   : > { %6178 = vmatprep.subr.bf16.mxu1 %v11857_v62  ;;  %v599_v62 = vld [vmem:[%s14093_s23 + $0x4e8] sm:$0xff] }
 0x1b6   : > { %v11912_v12 = vcombine.low %v595_v61, %v599_v62 }
 0x1b7   : > { %6138 = vmatpush1.bf16.msra.mxu0 %v12622_v3  ;;  %v11913_v3 = vcombine.high %v595_v61, %v599_v62  ;;  %v635_v61 = vld [vmem:[%s14093_s23 + $0x608] sm:$0xff] }
 0x1b8   : > { %6179 = vmatpush1.bf16.msra.mxu1 %v11856_v4  ;;  %6139 = vmatprep.subr.bf16.mxu0 %v12631_v6  ;;  %v12041_v4 = vcombine.high %v723_v63, %v727_v0  ;;  %v603_v6 = vld [vmem:[%s14093_s23 + $0x508] sm:$0xff] }
 0x1b9   : > { %6180 = vmatprep.subr.bf16.mxu1 %v11865_v7  ;;  %v607_v7 = vld [vmem:[%s14093_s23 + $0x528] sm:$0xff] }
 0x1ba   : > { %v11920_v22 = vcombine.low %v603_v6, %v607_v7  ;;  %v639_v62 = vld [vmem:[%s14093_s23 + $0x628] sm:$0xff] }
 0x1bb   : > { %6140 = vmatpush1.bf16.msra.mxu0 %v12630_v40  ;;  %v11921_v40 = vcombine.high %v603_v6, %v607_v7  ;;  %v763_v63 = vld [vmem:[%s14093_s23 + $0xa08] sm:$0xff] }
 0x1bc   : > { %6181 = vmatpush1.bf16.msra.mxu1 %v11864_v14  ;;  %6141 = vmatprep.subr.bf16.mxu0 %v12639_v43  ;;  %v12049_v14 = vcombine.high %v731_v10, %v735_v11  ;;  %v611_v43 = vld [vmem:[%s14093_s23 + $0x548] sm:$0xff] }
 0x1bd   : > { %6182 = vmatprep.subr.bf16.mxu1 %v11873_v16  ;;  %v615_v16 = vld [vmem:[%s14093_s23 + $0x568] sm:$0xff] }
 0x1be   : > { %v11928_v31 = vcombine.low %v611_v43, %v615_v16  ;;  %v767_v0 = vld [vmem:[%s14093_s23 + $0xa28] sm:$0xff] }
 0x1bf   : > { %6142 = vmatpush1.bf16.msra.mxu0 %v12638_v25  ;;  %v11929_v25 = vcombine.high %v611_v43, %v615_v16  ;;  %v643_v6 = vld [vmem:[%s14093_s23 + $0x648] sm:$0xff] }
 0x1c0   : > { %6183 = vmatpush1.bf16.msra.mxu1 %v11872_v54  ;;  %6143 = vmatprep.subr.bf16.mxu0 %v12647_v26  ;;  %v12057_v54 = vcombine.high %v739_v18, %v743_v19  ;;  %v619_v26 = vld [vmem:[%s14093_s23 + $0x588] sm:$0xff] }
 0x1c1   : > { %6184 = vmatprep.subr.bf16.mxu1 %v11881_v27  ;;  %v623_v27 = vld [vmem:[%s14093_s23 + $0x5a8] sm:$0xff] }
 0x1c2   : > { %v11936_v49 = vcombine.low %v619_v26, %v623_v27  ;;  %v647_v7 = vld [vmem:[%s14093_s23 + $0x668] sm:$0xff] }
 0x1c3   : > { %6144 = vmatpush1.bf16.msra.mxu0 %v12646_v33  ;;  %v11937_v33 = vcombine.high %v619_v26, %v623_v27  ;;  %v771_v10 = vld [vmem:[%s14093_s23 + $0xa48] sm:$0xff] }
 0x1c4   : > { %6185 = vmatpush1.bf16.msra.mxu1 %v11880_v34  ;;  %6195 = vmatprep.subr.bf16.mxu0 %v11889_v35  ;;  %v12065_v35 = vcombine.high %v747_v55, %v751_v29  ;;  %v775_v11 = vld [vmem:[%s14093_s23 + $0xa68] sm:$0xff] }
 0x1c5   : > { %6236 = vmatprep.subr.bf16.mxu1 %v12017_v36  ;;  %v627_v36 = vld [vmem:[%s14093_s23 + $0x5c8] sm:$0xff] }
 0x1c6   : > { %6146 = vmatmul.mubr.bf16.vlgmr.msra.gmra.mrb[12].mxu0 %v14469_v42  ;;  %v651_v43 = vld [vmem:[%s14093_s23 + $0x688] sm:$0xff] }
 0x1c7   : > { %6187 = vmatmul.mubr.bf16.vlgmr.msra.gmra.mrb[12].mxu1 %v14206_v17  ;;  %6196 = vmatpush1.bf16.msra.mxu0 %v11888_v20  ;;  %v759_v20 = vld [vmem:[%s14093_s23 + $0x9e8] sm:$0xff] }
 0x1c8   : > { %6237 = vmatpush1.bf16.msra.mxu1 %v12016_v46  ;;  %6197 = vmatprep.subr.bf16.mxu0 %v11897_v47  ;;  %v655_v16 = vld [vmem:[%s14093_s23 + $0x6a8] sm:$0xff] }
 0x1c9   : > { %6238 = vmatprep.subr.bf16.mxu1 %v12025_v23  ;;  %6227 = vmatprep.mubr.bf16.mxu0 %v14160_v60  ;;  %v779_v18 = vld [vmem:[%s14093_s23 + $0xa88] sm:$0xff] }
 0x1ca   : > { %6268 = vmatprep.mubr.bf16.mxu1 %v14224_v28  ;;  %v783_v19 = vld [vmem:[%s14093_s23 + $0xaa8] sm:$0xff] }
 0x1cb   : > { %6198 = vmatpush1.bf16.msra.mxu0 %v11896_v53  ;;  %v12064_v53 = vcombine.low %v747_v55, %v751_v29  ;;  %v659_v26 = vld [vmem:[%s14093_s23 + $0x6c8] sm:$0xff] }
 0x1cc   : > { %6239 = vmatpush1.bf16.msra.mxu1 %v12024_v56  ;;  %6199 = vmatprep.subr.bf16.mxu0 %v11905_v57  ;;  %v11945_v56 = vcombine.high %v627_v36, %v631_v38  ;;  %v663_v27 = vld [vmem:[%s14093_s23 + $0x6e8] sm:$0xff] }
 0x1cd   : > { %6240 = vmatprep.subr.bf16.mxu1 %v12033_v58  ;;  %v12073_v58 = vcombine.high %v755_v45, %v759_v20  ;;  %v787_v55 = vld [vmem:[%s14093_s23 + $0xac8] sm:$0xff] }
 0x1ce   : > { %v791_v29 = vld [vmem:[%s14093_s23 + $0xae8] sm:$0xff] }
 0x1cf   : > { %6200 = vmatpush1.bf16.msra.mxu0 %v11904_v1  ;;  %v11944_v1 = vcombine.low %v627_v36, %v631_v38  ;;  %v671_v36 = vld [vmem:[%s14093_s23 + $0x728] sm:$0xff] }
 0x1d0   : > { %6241 = vmatpush1.bf16.msra.mxu1 %v12032_v2  ;;  %6201 = vmatprep.subr.bf16.mxu0 %v11913_v3  ;;  %v12072_v2 = vcombine.low %v755_v45, %v759_v20  ;;  %v11953_v3 = vcombine.high %v635_v61, %v639_v62  ;;  %v795_v38 = vld [vmem:[%s14093_s23 + $0xb08] sm:$0xff]  ;;  %v12104_v45 = vcombine.low %v787_v55, %v791_v29 }
 0x1d1   : > { %6242 = vmatprep.subr.bf16.mxu1 %v12041_v4  ;;  %v12081_v4 = vcombine.high %v763_v63, %v767_v0 }
 0x1d3   : > { %6202 = vmatpush1.bf16.msra.mxu0 %v11912_v12  ;;  %v11952_v12 = vcombine.low %v635_v61, %v639_v62  ;;  %v683_v61 = vld [vmem:[%s14093_s23 + $0x788] sm:$0xff] }
 0x1d4   : > { %6243 = vmatpush1.bf16.msra.mxu1 %v12040_v13  ;;  %6203 = vmatprep.subr.bf16.mxu0 %v11921_v40  ;;  %v12080_v13 = vcombine.low %v763_v63, %v767_v0  ;;  %v11961_v40 = vcombine.high %v643_v6, %v647_v7  ;;  %v687_v62 = vld [vmem:[%s14093_s23 + $0x7a8] sm:$0xff] }
 0x1d5   : > { %6244 = vmatprep.subr.bf16.mxu1 %v12049_v14  ;;  %v12089_v14 = vcombine.high %v771_v10, %v775_v11  ;;  %v811_v63 = vld [vmem:[%s14093_s23 + $0xb88] sm:$0xff] }
 0x1d6   : > { %v815_v0 = vld [vmem:[%s14093_s23 + $0xba8] sm:$0xff] }
 0x1d7   : > { %6204 = vmatpush1.bf16.msra.mxu0 %v11920_v22  ;;  %v5901_v34 = vpop.f32.mrb[0].mxu0  ;;  %v11960_v22 = vcombine.low %v643_v6, %v647_v7  ;;  %v691_v6 = vld [vmem:[%s14093_s23 + $0x7c8] sm:$0xff] }
 0x1d8   : > { %6245 = vmatpush1.bf16.msra.mxu1 %v12048_v24  ;;  %6205 = vmatprep.subr.bf16.mxu0 %v11929_v25  ;;  %v5903_v44 = vpop.f32.mrb[1].mxu0  ;;  %v12088_v24 = vcombine.low %v771_v10, %v775_v11  ;;  %v11969_v25 = vcombine.high %v651_v43, %v655_v16  ;;  %v695_v7 = vld [vmem:[%s14093_s23 + $0x7e8] sm:$0xff] }
 0x1d9   : > { %6246 = vmatprep.subr.bf16.mxu1 %v12057_v54  ;;  %v5942_v39 = vpop.f32.mrb[0].mxu1  ;;  %v5905_v23 = vpop.f32.mrb[2].mxu0  ;;  %v12097_v54 = vcombine.high %v779_v18, %v783_v19  ;;  %v819_v10 = vld [vmem:[%s14093_s23 + $0xbc8] sm:$0xff] }
 0x1da   : > { %v14501_v46 = vadd.f32 %v5942_v39, %v5901_v34  ;;  %v5944_v47 = vpop.f32.mrb[1].mxu1  ;;  %v5906_v52 = vpop.f32.mrb[3].mxu0  ;;  %v12105_v34 = vcombine.high %v787_v55, %v791_v29  ;;  %v799_v39 = vld [vmem:[%s14093_s23 + $0xb28] sm:$0xff] }
 0x1db   : > { %6206 = vmatpush1.bf16.msra.mxu0 %v11928_v31  ;;  %v14503_v51 = vadd.f32 %v5944_v47, %v5903_v44  ;;  %v5946_v8 = vpop.f32.mrb[2].mxu1  ;;  %v11968_v31 = vcombine.low %v651_v43, %v655_v16  ;;  %v11976_v44 = vcombine.low %v659_v26, %v663_v27  ;;  %v12113_v47 = vcombine.high %v795_v38, %v799_v39  ;;  %v675_v23 = vld [vmem:[%s14093_s23 + $0x748] sm:$0xff] }
 0x1dc   : > { %6247 = vmatpush1.bf16.msra.mxu1 %v12056_v32  ;;  %6207 = vmatprep.subr.bf16.mxu0 %v11937_v33  ;;  %v5947_v57 = vpop.f32.mrb[3].mxu1  ;;  %v12096_v32 = vcombine.low %v779_v18, %v783_v19  ;;  %v11977_v33 = vcombine.high %v659_v26, %v663_v27  ;;  %v803_v8 = vld [vmem:[%s14093_s23 + $0xb48] sm:$0xff] }
 0x1dd   : > { %6248 = vmatprep.subr.bf16.mxu1 %v12065_v35  ;;  %v667_v35 = vld [vmem:[%s14093_s23 + $0x708] sm:$0xff] }
 0x1de   : > { %v11985_v20 = vcombine.high %v667_v35, %v671_v36  ;;  %v807_v52 = vld [vmem:[%s14093_s23 + $0xb68] sm:$0xff] }
 0x1df   : > { %6208 = vmatpush1.bf16.msra.mxu0 %v11936_v49  ;;  %v679_v49 = vld [vmem:[%s14093_s23 + $0x768] sm:$0xff] }
 0x1e0   : > { %6249 = vmatpush1.bf16.msra.mxu1 %v12064_v53  ;;  %6209 = vmatprep.subr.bf16.mxu0 %v11945_v56  ;;  %v11984_v53 = vcombine.low %v667_v35, %v671_v36  ;;  %v12112_v56 = vcombine.low %v795_v38, %v799_v39  ;;  %v11993_v57 = vcombine.high %v675_v23, %v679_v49  ;;  %v823_v11 = vld [vmem:[%s14093_s23 + $0xbe8] sm:$0xff] }
 0x1e1   : > { %6250 = vmatprep.subr.bf16.mxu1 %v12073_v58  ;;  %v12121_v58 = vcombine.high %v803_v8, %v807_v52  ;;  %v827_v43 = vld [vmem:[%s14093_s23 + $0xc08] sm:$0xff] }
 0x1e2   : > { %v831_v16 = vld [vmem:[%s14093_s23 + $0xc28] sm:$0xff] }
 0x1e3   : > { %6210 = vmatpush1.bf16.msra.mxu0 %v11944_v1  ;;  %v11992_v1 = vcombine.low %v675_v23, %v679_v49  ;;  %v955_v18 = vld [vmem:[%s14093_s23 + $0x1008] sm:$0xff] }
 0x1e4   : > { %6251 = vmatpush1.bf16.msra.mxu1 %v12072_v2  ;;  %6211 = vmatprep.subr.bf16.mxu0 %v11953_v3  ;;  %v12120_v2 = vcombine.low %v803_v8, %v807_v52  ;;  %v12001_v3 = vcombine.high %v683_v61, %v687_v62  ;;  %v959_v19 = vld [vmem:[%s14093_s23 + $0x1028] sm:$0xff] }
 0x1e5   : > { %6252 = vmatprep.subr.bf16.mxu1 %v12081_v4  ;;  %v12129_v4 = vcombine.high %v811_v63, %v815_v0  ;;  %v835_v26 = vld [vmem:[%s14093_s23 + $0xc48] sm:$0xff] }
 0x1e6   : > { %v839_v27 = vld [vmem:[%s14093_s23 + $0xc68] sm:$0xff] }
 0x1e7   : > { %6212 = vmatpush1.bf16.msra.mxu0 %v11952_v12  ;;  %v12000_v12 = vcombine.low %v683_v61, %v687_v62  ;;  %v963_v55 = vld [vmem:[%s14093_s23 + $0x1048] sm:$0xff] }
 0x1e8   : > { %6253 = vmatpush1.bf16.msra.mxu1 %v12080_v13  ;;  %6213 = vmatprep.subr.bf16.mxu0 %v11961_v40  ;;  %v12128_v13 = vcombine.low %v811_v63, %v815_v0  ;;  %v12009_v40 = vcombine.high %v691_v6, %v695_v7  ;;  %v967_v29 = vld [vmem:[%s14093_s23 + $0x1068] sm:$0xff] }
 0x1e9   : > { %6254 = vmatprep.subr.bf16.mxu1 %v12089_v14  ;;  %v12137_v14 = vcombine.high %v819_v10, %v823_v11  ;;  %v843_v35 = vld [vmem:[%s14093_s23 + $0xc88] sm:$0xff] }
 0x1ea   : > { %v847_v36 = vld [vmem:[%s14093_s23 + $0xca8] sm:$0xff] }
 0x1eb   : > { %6214 = vmatpush1.bf16.msra.mxu0 %v11960_v22  ;;  %v12008_v22 = vcombine.low %v691_v6, %v695_v7  ;;  %v971_v38 = vld [vmem:[%s14093_s23 + $0x1088] sm:$0xff] }
 0x1ec   : > { %6255 = vmatpush1.bf16.msra.mxu1 %v12088_v24  ;;  %6215 = vmatprep.subr.bf16.mxu0 %v11969_v25  ;;  %v12136_v24 = vcombine.low %v819_v10, %v823_v11  ;;  %v12145_v25 = vcombine.high %v827_v43, %v831_v16  ;;  %v975_v39 = vld [vmem:[%s14093_s23 + $0x10a8] sm:$0xff] }
 0x1ed   : > { %6256 = vmatprep.subr.bf16.mxu1 %v12097_v54  ;;  %v12273_v54 = vcombine.high %v955_v18, %v959_v19  ;;  %v851_v23 = vld [vmem:[%s14093_s23 + $0xcc8] sm:$0xff] }
 0x1ee   : > { %v855_v49 = vld [vmem:[%s14093_s23 + $0xce8] sm:$0xff] }
 0x1ef   : > { %6216 = vmatpush1.bf16.msra.mxu0 %v11968_v31  ;;  %v12144_v31 = vcombine.low %v827_v43, %v831_v16  ;;  %v979_v8 = vld [vmem:[%s14093_s23 + $0x10c8] sm:$0xff] }
 0x1f0   : > { %6257 = vmatpush1.bf16.msra.mxu1 %v12096_v32  ;;  %6217 = vmatprep.subr.bf16.mxu0 %v11977_v33  ;;  %v12272_v32 = vcombine.low %v955_v18, %v959_v19  ;;  %v12153_v33 = vcombine.high %v835_v26, %v839_v27  ;;  %v983_v52 = vld [vmem:[%s14093_s23 + $0x10e8] sm:$0xff] }
 0x1f1   : > { %6258 = vmatprep.subr.bf16.mxu1 %v12105_v34  ;;  %v12281_v34 = vcombine.high %v963_v55, %v967_v29  ;;  %v859_v61 = vld [vmem:[%s14093_s23 + $0xd08] sm:$0xff] }
 0x1f2   : > { %v863_v62 = vld [vmem:[%s14093_s23 + $0xd28] sm:$0xff] }
 0x1f3   : > { %6218 = vmatpush1.bf16.msra.mxu0 %v11976_v44  ;;  %v12152_v44 = vcombine.low %v835_v26, %v839_v27  ;;  %v987_v63 = vld [vmem:[%s14093_s23 + $0x1108] sm:$0xff] }
 0x1f4   : > { %6259 = vmatpush1.bf16.msra.mxu1 %v12104_v45  ;;  %6219 = vmatprep.subr.bf16.mxu0 %v11985_v20  ;;  %v12280_v45 = vcombine.low %v963_v55, %v967_v29  ;;  %v12161_v20 = vcombine.high %v843_v35, %v847_v36  ;;  %v991_v0 = vld [vmem:[%s14093_s23 + $0x1128] sm:$0xff] }
 0x1f5   : > { %6260 = vmatprep.subr.bf16.mxu1 %v12113_v47  ;;  %v12289_v47 = vcombine.high %v971_v38, %v975_v39  ;;  %v867_v6 = vld [vmem:[%s14093_s23 + $0xd48] sm:$0xff] }
 0x1f6   : > { %v871_v7 = vld [vmem:[%s14093_s23 + $0xd68] sm:$0xff] }
 0x1f7   : > { %6220 = vmatpush1.bf16.msra.mxu0 %v11984_v53  ;;  %v12160_v53 = vcombine.low %v843_v35, %v847_v36  ;;  %v995_v10 = vld [vmem:[%s14093_s23 + $0x1148] sm:$0xff] }
 0x1f8   : > { %6261 = vmatpush1.bf16.msra.mxu1 %v12112_v56  ;;  %6221 = vmatprep.subr.bf16.mxu0 %v11993_v57  ;;  %v12288_v56 = vcombine.low %v971_v38, %v975_v39  ;;  %v12169_v57 = vcombine.high %v851_v23, %v855_v49  ;;  %v999_v11 = vld [vmem:[%s14093_s23 + $0x1168] sm:$0xff] }
 0x1f9   : > { %6262 = vmatprep.subr.bf16.mxu1 %v12121_v58  ;;  %v12297_v58 = vcombine.high %v979_v8, %v983_v52  ;;  %v875_v43 = vld [vmem:[%s14093_s23 + $0xd88] sm:$0xff] }
 0x1fa   : > { %v879_v16 = vld [vmem:[%s14093_s23 + $0xda8] sm:$0xff] }
 0x1fb   : > { %6222 = vmatpush1.bf16.msra.mxu0 %v11992_v1  ;;  %v12168_v1 = vcombine.low %v851_v23, %v855_v49  ;;  %v1003_v18 = vld [vmem:[%s14093_s23 + $0x1188] sm:$0xff]  ;;  %v12192_v39 = vcombine.low %v875_v43, %v879_v16 }
 0x1fc   : > { %6263 = vmatpush1.bf16.msra.mxu1 %v12120_v2  ;;  %6223 = vmatprep.subr.bf16.mxu0 %v12001_v3  ;;  %v12296_v2 = vcombine.low %v979_v8, %v983_v52  ;;  %v12177_v3 = vcombine.high %v859_v61, %v863_v62  ;;  %v1007_v19 = vld [vmem:[%s14093_s23 + $0x11a8] sm:$0xff] }
 0x1fd   : > { %6264 = vmatprep.subr.bf16.mxu1 %v12129_v4  ;;  %v12305_v4 = vcombine.high %v987_v63, %v991_v0  ;;  %v12321_v26 = vcombine.high %v1003_v18, %v1007_v19  ;;  %v883_v27 = vld [vmem:[%s14093_s23 + $0xdc8] sm:$0xff] }
 0x1fe   : > { %v887_v55 = vld [vmem:[%s14093_s23 + $0xde8] sm:$0xff] }
 0x1ff   : > { %6224 = vmatpush1.bf16.msra.mxu0 %v12000_v12  ;;  %v12176_v12 = vcombine.low %v859_v61, %v863_v62  ;;  %v891_v8 = vld [vmem:[%s14093_s23 + $0xe08] sm:$0xff] }
 0x200   : > { %6265 = vmatpush1.bf16.msra.mxu1 %v12128_v13  ;;  %6225 = vmatprep.subr.bf16.mxu0 %v12009_v40  ;;  %v12304_v13 = vcombine.low %v987_v63, %v991_v0  ;;  %v12185_v40 = vcombine.high %v867_v6, %v871_v7  ;;  %v895_v52 = vld [vmem:[%s14093_s23 + $0xe28] sm:$0xff] }
 0x201   : > { %6266 = vmatprep.subr.bf16.mxu1 %v12137_v14  ;;  %v12313_v14 = vcombine.high %v995_v10, %v999_v11  ;;  %v12209_v61 = vcombine.high %v891_v8, %v895_v52  ;;  %v899_v63 = vld [vmem:[%s14093_s23 + $0xe48] sm:$0xff] }
 0x202   : > { %v903_v0 = vld [vmem:[%s14093_s23 + $0xe68] sm:$0xff] }
 0x203   : > { %6226 = vmatpush1.bf16.msra.mxu0 %v12008_v22  ;;  %v12184_v22 = vcombine.low %v867_v6, %v871_v7  ;;  %v12217_v6 = vcombine.high %v899_v63, %v903_v0 }
 0x204   : > { %6267 = vmatpush1.bf16.msra.mxu1 %v12136_v24  ;;  %6277 = vmatprep.subr.bf16.mxu0 %v12145_v25  ;;  %v12312_v24 = vcombine.low %v995_v10, %v999_v11  ;;  %v12193_v25 = vcombine.high %v875_v43, %v879_v16  ;;  %v907_v10 = vld [vmem:[%s14093_s23 + $0xe88] sm:$0xff] }
 0x205   : > { %6318 = vmatprep.subr.bf16.mxu1 %v12273_v54  ;;  %v911_v11 = vld [vmem:[%s14093_s23 + $0xea8] sm:$0xff] }
 0x206   : > { %6228 = vmatmul.mubr.bf16.vlgmr.msra.gmra.mrb[16].mxu0 %v14215_v21  ;;  %v12225_v43 = vcombine.high %v907_v10, %v911_v11 }
 0x207   : > { %6269 = vmatmul.mubr.bf16.vlgmr.msra.gmra.mrb[16].mxu1 %v14296_v37  ;;  %6278 = vmatpush1.bf16.msra.mxu0 %v12144_v31 }
 0x208   : > { %6319 = vmatpush1.bf16.msra.mxu1 %v12272_v32  ;;  %6279 = vmatprep.subr.bf16.mxu0 %v12153_v33  ;;  %v1011_v33 = vld [vmem:[%s14093_s23 + $0x11c8] sm:$0xff] }
 0x209   : > { %6320 = vmatprep.subr.bf16.mxu1 %v12281_v34  ;;  %6309 = vmatprep.mubr.bf16.mxu0 %v14231_v30  ;;  %v1015_v34 = vld [vmem:[%s14093_s23 + $0x11e8] sm:$0xff] }
 0x20a   : > { %6350 = vmatprep.mubr.bf16.mxu1 %v14314_v48  ;;  %v12329_v49 = vcombine.high %v1011_v33, %v1015_v34 }
 0x20b   : > { %6280 = vmatpush1.bf16.msra.mxu0 %v12152_v44 }
 0x20c   : > { %6321 = vmatpush1.bf16.msra.mxu1 %v12280_v45  ;;  %6281 = vmatprep.subr.bf16.mxu0 %v12161_v20 }
 0x20d   : > { %6322 = vmatprep.subr.bf16.mxu1 %v12289_v47  ;;  %v12201_v47 = vcombine.high %v883_v27, %v887_v55 }
 0x20f   : > { %6282 = vmatpush1.bf16.msra.mxu0 %v12160_v53  ;;  %v1019_v53 = vld [vmem:[%s14093_s23 + $0x1208] sm:$0xff] }
 0x210   : > { %6323 = vmatpush1.bf16.msra.mxu1 %v12288_v56  ;;  %6283 = vmatprep.subr.bf16.mxu0 %v12169_v57  ;;  %v1023_v56 = vld [vmem:[%s14093_s23 + $0x1228] sm:$0xff]  ;;  %v12200_v57 = vcombine.low %v883_v27, %v887_v55 }
 0x211   : > { %6324 = vmatprep.subr.bf16.mxu1 %v12297_v58  ;;  %v12328_v58 = vcombine.low %v1011_v33, %v1015_v34  ;;  %v12337_v62 = vcombine.high %v1019_v53, %v1023_v56  ;;  %v923_v55 = vld [vmem:[%s14093_s23 + $0xf08] sm:$0xff] }
 0x213   : > { %6284 = vmatpush1.bf16.msra.mxu0 %v12168_v1  ;;  %v1027_v1 = vld [vmem:[%s14093_s23 + $0x1248] sm:$0xff] }
 0x214   : > { %6325 = vmatpush1.bf16.msra.mxu1 %v12296_v2  ;;  %6285 = vmatprep.subr.bf16.mxu0 %v12177_v3  ;;  %v1031_v2 = vld [vmem:[%s14093_s23 + $0x1268] sm:$0xff]  ;;  %v12208_v3 = vcombine.low %v891_v8, %v895_v52 }
 0x215   : > { %6326 = vmatprep.subr.bf16.mxu1 %v12305_v4  ;;  %v12336_v4 = vcombine.low %v1019_v53, %v1023_v56  ;;  %v12345_v7 = vcombine.high %v1027_v1, %v1031_v2  ;;  %v939_v8 = vld [vmem:[%s14093_s23 + $0xf88] sm:$0xff] }
 0x216   : > { %v943_v52 = vld [vmem:[%s14093_s23 + $0xfa8] sm:$0xff] }
 0x217   : > { %6286 = vmatpush1.bf16.msra.mxu0 %v12176_v12  ;;  %v5983_v54 = vpop.f32.mrb[4].mxu0  ;;  %v1035_v12 = vld [vmem:[%s14093_s23 + $0x1288] sm:$0xff] }
 0x218   : > { %6327 = vmatpush1.bf16.msra.mxu1 %v12304_v13  ;;  %6287 = vmatprep.subr.bf16.mxu0 %v12185_v40  ;;  %v5984_v29 = vadd.f32 %v5983_v54, %v14501_v46  ;;  %v5985_v32 = vpop.f32.mrb[5].mxu0  ;;  %v12320_v46 = vcombine.low %v1003_v18, %v1007_v19  ;;  %v1039_v13 = vld [vmem:[%s14093_s23 + $0x12a8] sm:$0xff]  ;;  %v12216_v40 = vcombine.low %v899_v63, %v903_v0 }
 0x219   : > { %6328 = vmatprep.subr.bf16.mxu1 %v12313_v14  ;;  %v6024_v31 = vpop.f32.mrb[4].mxu1  ;;  %v5986_v35 = vadd.f32 %v5985_v32, %v14503_v51  ;;  %v5987_v38 = vpop.f32.mrb[6].mxu0  ;;  %v12344_v14 = vcombine.low %v1027_v1, %v1031_v2  ;;  %v12353_v16 = vcombine.high %v1035_v12, %v1039_v13  ;;  %v915_v18 = vld [vmem:[%s14093_s23 + $0xec8] sm:$0xff]  ;;  %v12352_v54 = vcombine.low %v1035_v12, %v1039_v13 }
 0x21a   : > { %v6026_v36 = vpop.f32.mrb[5].mxu1  ;;  %v14575_v44 = vadd.f32 %v6024_v31, %v5984_v29  ;;  %v5988_v20 = vpop.f32.mrb[7].mxu0  ;;  %v919_v19 = vld [vmem:[%s14093_s23 + $0xee8] sm:$0xff] }
 0x21b   : > { %6288 = vmatpush1.bf16.msra.mxu0 %v12184_v22  ;;  %v6028_v45 = vpop.f32.mrb[6].mxu1  ;;  %v14577_v23 = vadd.f32 %v6026_v36, %v5986_v35  ;;  %v1043_v22 = vld [vmem:[%s14093_s23 + $0x12c8] sm:$0xff]  ;;  %v12232_v33 = vcombine.low %v915_v18, %v919_v19 }
 0x21c   : > { %6329 = vmatpush1.bf16.msra.mxu1 %v12312_v24  ;;  %6289 = vmatprep.subr.bf16.mxu0 %v12193_v25  ;;  %v6029_v51 = vpop.f32.mrb[7].mxu1  ;;  %v1047_v24 = vld [vmem:[%s14093_s23 + $0x12e8] sm:$0xff]  ;;  %v12224_v25 = vcombine.low %v907_v10, %v911_v11 }
 0x21d   : > { %6330 = vmatprep.subr.bf16.mxu1 %v12321_v26  ;;  %v12233_v26 = vcombine.high %v915_v18, %v919_v19  ;;  %v12361_v27 = vcombine.high %v1043_v22, %v1047_v24  ;;  %v927_v29 = vld [vmem:[%s14093_s23 + $0xf28] sm:$0xff]  ;;  %v12360_v34 = vcombine.low %v1043_v22, %v1047_v24 }
 0x21e   : > { %v1051_v31 = vld [vmem:[%s14093_s23 + $0x1308] sm:$0xff]  ;;  %v12241_v35 = vcombine.high %v923_v55, %v927_v29 }
 0x21f   : > { %6290 = vmatpush1.bf16.msra.mxu0 %v12192_v39  ;;  %v1055_v32 = vld [vmem:[%s14093_s23 + $0x1328] sm:$0xff] }
 0x220   : > { %6331 = vmatpush1.bf16.msra.mxu1 %v12320_v46  ;;  %6291 = vmatprep.subr.bf16.mxu0 %v12201_v47  ;;  %v12369_v36 = vcombine.high %v1051_v31, %v1055_v32  ;;  %v931_v38 = vld [vmem:[%s14093_s23 + $0xf48] sm:$0xff]  ;;  %v12240_v46 = vcombine.low %v923_v55, %v927_v29  ;;  %v12368_v47 = vcombine.low %v1051_v31, %v1055_v32 }
 0x221   : > { %6332 = vmatprep.subr.bf16.mxu1 %v12329_v49  ;;  %v935_v39 = vld [vmem:[%s14093_s23 + $0xf68] sm:$0xff] }
 0x222   : > { %v1059_v45 = vld [vmem:[%s14093_s23 + $0x1348] sm:$0xff]  ;;  %v12249_v51 = vcombine.high %v931_v38, %v935_v39 }
 0x223   : > { %6292 = vmatpush1.bf16.msra.mxu0 %v12200_v57  ;;  %v1063_v20 = vld [vmem:[%s14093_s23 + $0x1368] sm:$0xff]  ;;  %v12248_v57 = vcombine.low %v931_v38, %v935_v39 }
 0x224   : > { %6333 = vmatpush1.bf16.msra.mxu1 %v12328_v58  ;;  %6293 = vmatprep.subr.bf16.mxu0 %v12209_v61  ;;  %v12377_v49 = vcombine.high %v1059_v45, %v1063_v20  ;;  %v1067_v53 = vld [vmem:[%s14093_s23 + $0x1388] sm:$0xff]  ;;  %v12376_v58 = vcombine.low %v1059_v45, %v1063_v20  ;;  %v12257_v61 = vcombine.high %v939_v8, %v943_v52 }
 0x225   : > { %6334 = vmatprep.subr.bf16.mxu1 %v12337_v62  ;;  %v1071_v56 = vld [vmem:[%s14093_s23 + $0x13a8] sm:$0xff] }
 0x226   : > { %v12385_v62 = vcombine.high %v1067_v53, %v1071_v56  ;;  %v947_v63 = vld [vmem:[%s14093_s23 + $0xfc8] sm:$0xff] }
 0x227   : > { %6294 = vmatpush1.bf16.msra.mxu0 %v12208_v3  ;;  %v951_v0 = vld [vmem:[%s14093_s23 + $0xfe8] sm:$0xff]  ;;  %v12256_v3 = vcombine.low %v939_v8, %v943_v52 }
 0x228   : > { %6335 = vmatpush1.bf16.msra.mxu1 %v12336_v4  ;;  %6295 = vmatprep.subr.bf16.mxu0 %v12217_v6  ;;  %v1075_v1 = vld [vmem:[%s14093_s23 + $0x13c8] sm:$0xff]  ;;  %v12384_v4 = vcombine.low %v1067_v53, %v1071_v56  ;;  %v12265_v6 = vcombine.high %v947_v63, %v951_v0 }
 0x229   : > { %6336 = vmatprep.subr.bf16.mxu1 %v12345_v7  ;;  %v1079_v2 = vld [vmem:[%s14093_s23 + $0x13e8] sm:$0xff] }
 0x22a   : > { %v12393_v7 = vcombine.high %v1075_v1, %v1079_v2  ;;  %v1083_v10 = vld [vmem:[%s14093_s23 + $0x1408] sm:$0xff] }
 0x22b   : > { %6296 = vmatpush1.bf16.msra.mxu0 %v12216_v40  ;;  %v1087_v11 = vld [vmem:[%s14093_s23 + $0x1428] sm:$0xff]  ;;  %v12264_v40 = vcombine.low %v947_v63, %v951_v0 }
 0x22c   : > { %6337 = vmatpush1.bf16.msra.mxu1 %v12344_v14  ;;  %6297 = vmatprep.subr.bf16.mxu0 %v12225_v43  ;;  %v1211_v12 = vld [vmem:[%s14093_s23 + $0x1808] sm:$0xff]  ;;  %v12392_v14 = vcombine.low %v1075_v1, %v1079_v2  ;;  %v12401_v43 = vcombine.high %v1083_v10, %v1087_v11 }
 0x22d   : > { %6338 = vmatprep.subr.bf16.mxu1 %v12353_v16  ;;  %v1215_v13 = vld [vmem:[%s14093_s23 + $0x1828] sm:$0xff] }
 0x22e   : > { %v12529_v16 = vcombine.high %v1211_v12, %v1215_v13  ;;  %v1091_v18 = vld [vmem:[%s14093_s23 + $0x1448] sm:$0xff] }
 0x22f   : > { %6298 = vmatpush1.bf16.msra.mxu0 %v12224_v25  ;;  %v1095_v19 = vld [vmem:[%s14093_s23 + $0x1468] sm:$0xff]  ;;  %v12400_v25 = vcombine.low %v1083_v10, %v1087_v11 }
 0x230   : > { %6339 = vmatpush1.bf16.msra.mxu1 %v12352_v54  ;;  %6299 = vmatprep.subr.bf16.mxu0 %v12233_v26  ;;  %v1219_v22 = vld [vmem:[%s14093_s23 + $0x1848] sm:$0xff]  ;;  %v12528_v54 = vcombine.low %v1211_v12, %v1215_v13  ;;  %v12409_v26 = vcombine.high %v1091_v18, %v1095_v19 }
 0x231   : > { %6340 = vmatprep.subr.bf16.mxu1 %v12361_v27  ;;  %v1223_v24 = vld [vmem:[%s14093_s23 + $0x1868] sm:$0xff] }
 0x232   : > { %v12537_v27 = vcombine.high %v1219_v22, %v1223_v24  ;;  %v1099_v55 = vld [vmem:[%s14093_s23 + $0x1488] sm:$0xff] }
 0x233   : > { %6300 = vmatpush1.bf16.msra.mxu0 %v12232_v33  ;;  %v1103_v29 = vld [vmem:[%s14093_s23 + $0x14a8] sm:$0xff]  ;;  %v12408_v33 = vcombine.low %v1091_v18, %v1095_v19 }
 0x234   : > { %6341 = vmatpush1.bf16.msra.mxu1 %v12360_v34  ;;  %6301 = vmatprep.subr.bf16.mxu0 %v12241_v35  ;;  %v1227_v31 = vld [vmem:[%s14093_s23 + $0x1888] sm:$0xff]  ;;  %v12536_v34 = vcombine.low %v1219_v22, %v1223_v24  ;;  %v12417_v35 = vcombine.high %v1099_v55, %v1103_v29 }
 0x235   : > { %6342 = vmatprep.subr.bf16.mxu1 %v12369_v36  ;;  %v1231_v32 = vld [vmem:[%s14093_s23 + $0x18a8] sm:$0xff] }
 0x236   : > { %v12545_v36 = vcombine.high %v1227_v31, %v1231_v32  ;;  %v1107_v38 = vld [vmem:[%s14093_s23 + $0x14c8] sm:$0xff] }
 0x237   : > { %6302 = vmatpush1.bf16.msra.mxu0 %v12240_v46  ;;  %v1111_v39 = vld [vmem:[%s14093_s23 + $0x14e8] sm:$0xff]  ;;  %v12416_v46 = vcombine.low %v1099_v55, %v1103_v29 }
 0x238   : > { %6343 = vmatpush1.bf16.msra.mxu1 %v12368_v47  ;;  %6303 = vmatprep.subr.bf16.mxu0 %v12249_v51  ;;  %v1235_v45 = vld [vmem:[%s14093_s23 + $0x18c8] sm:$0xff]  ;;  %v12544_v47 = vcombine.low %v1227_v31, %v1231_v32  ;;  %v12425_v51 = vcombine.high %v1107_v38, %v1111_v39 }
 0x239   : > { %6344 = vmatprep.subr.bf16.mxu1 %v12377_v49  ;;  %v1239_v20 = vld [vmem:[%s14093_s23 + $0x18e8] sm:$0xff] }
 0x23a   : > { %v12553_v49 = vcombine.high %v1235_v45, %v1239_v20  ;;  %v1115_v8 = vld [vmem:[%s14093_s23 + $0x1508] sm:$0xff] }
 0x23b   : > { %6304 = vmatpush1.bf16.msra.mxu0 %v12248_v57  ;;  %v1119_v52 = vld [vmem:[%s14093_s23 + $0x1528] sm:$0xff]  ;;  %v12424_v57 = vcombine.low %v1107_v38, %v1111_v39 }
 0x23c   : > { %6345 = vmatpush1.bf16.msra.mxu1 %v12376_v58  ;;  %6305 = vmatprep.subr.bf16.mxu0 %v12257_v61  ;;  %v1243_v53 = vld [vmem:[%s14093_s23 + $0x1908] sm:$0xff]  ;;  %v12552_v58 = vcombine.low %v1235_v45, %v1239_v20  ;;  %v12433_v61 = vcombine.high %v1115_v8, %v1119_v52 }
 0x23d   : > { %6346 = vmatprep.subr.bf16.mxu1 %v12385_v62  ;;  %v1247_v56 = vld [vmem:[%s14093_s23 + $0x1928] sm:$0xff] }
 0x23e   : > { %v12561_v62 = vcombine.high %v1243_v53, %v1247_v56  ;;  %v1123_v63 = vld [vmem:[%s14093_s23 + $0x1548] sm:$0xff] }
 0x23f   : > { %6306 = vmatpush1.bf16.msra.mxu0 %v12256_v3  ;;  %v1127_v0 = vld [vmem:[%s14093_s23 + $0x1568] sm:$0xff]  ;;  %v12432_v3 = vcombine.low %v1115_v8, %v1119_v52 }
 0x240   : > { %6347 = vmatpush1.bf16.msra.mxu1 %v12384_v4  ;;  %6307 = vmatprep.subr.bf16.mxu0 %v12265_v6  ;;  %v1251_v1 = vld [vmem:[%s14093_s23 + $0x1948] sm:$0xff]  ;;  %v12560_v4 = vcombine.low %v1243_v53, %v1247_v56  ;;  %v12441_v6 = vcombine.high %v1123_v63, %v1127_v0 }
 0x241   : > { %6348 = vmatprep.subr.bf16.mxu1 %v12393_v7  ;;  %v1255_v2 = vld [vmem:[%s14093_s23 + $0x1968] sm:$0xff] }
 0x242   : > { %v12569_v7 = vcombine.high %v1251_v1, %v1255_v2  ;;  %v1131_v10 = vld [vmem:[%s14093_s23 + $0x1588] sm:$0xff] }
 0x243   : > { %6308 = vmatpush1.bf16.msra.mxu0 %v12264_v40  ;;  %v1135_v11 = vld [vmem:[%s14093_s23 + $0x15a8] sm:$0xff]  ;;  %v12440_v40 = vcombine.low %v1123_v63, %v1127_v0 }
 0x244   : > { %6349 = vmatpush1.bf16.msra.mxu1 %v12392_v14  ;;  %6359 = vmatprep.subr.bf16.mxu0 %v12401_v43  ;;  %v1259_v12 = vld [vmem:[%s14093_s23 + $0x1988] sm:$0xff]  ;;  %v12568_v14 = vcombine.low %v1251_v1, %v1255_v2  ;;  %v12449_v43 = vcombine.high %v1131_v10, %v1135_v11  ;;  %v12448_v32 = vcombine.low %v1131_v10, %v1135_v11 }
 0x245   : > { %6400 = vmatprep.subr.bf16.mxu1 %v12529_v16  ;;  %v1263_v13 = vld [vmem:[%s14093_s23 + $0x19a8] sm:$0xff] }
 0x246   : > { %6310 = vmatmul.mubr.bf16.vlgmr.msra.gmra.mrb[20].mxu0 %v14305_v41  ;;  %v12577_v18 = vcombine.high %v1259_v12, %v1263_v13  ;;  %v1139_v19 = vld [vmem:[%s14093_s23 + $0x15c8] sm:$0xff] }
 0x247   : > { %6351 = vmatmul.mubr.bf16.vlgmr.msra.gmra.mrb[20].mxu1 %v14386_v5  ;;  %6360 = vmatpush1.bf16.msra.mxu0 %v12400_v25  ;;  %v1143_v22 = vld [vmem:[%s14093_s23 + $0x15e8] sm:$0xff] }
 0x248   : > { %6401 = vmatpush1.bf16.msra.mxu1 %v12528_v54  ;;  %6361 = vmatprep.subr.bf16.mxu0 %v12409_v26  ;;  %v1267_v26 = vld [vmem:[%s14093_s23 + $0x19c8] sm:$0xff] }
 0x249   : > { %6402 = vmatprep.subr.bf16.mxu1 %v12537_v27  ;;  %6391 = vmatprep.mubr.bf16.mxu0 %v14321_v50  ;;  %v1271_v27 = vld [vmem:[%s14093_s23 + $0x19e8] sm:$0xff] }
 0x24a   : > { %6432 = vmatprep.mubr.bf16.mxu1 %v14401_v15  ;;  %v12585_v39 = vcombine.high %v1267_v26, %v1271_v27  ;;  %v1147_v45 = vld [vmem:[%s14093_s23 + $0x1608] sm:$0xff] }
 0x24b   : > { %6362 = vmatpush1.bf16.msra.mxu0 %v12408_v33  ;;  %v1151_v20 = vld [vmem:[%s14093_s23 + $0x1628] sm:$0xff] }
 0x24c   : > { %6403 = vmatpush1.bf16.msra.mxu1 %v12536_v34  ;;  %6363 = vmatprep.subr.bf16.mxu0 %v12417_v35  ;;  %v12465_v8 = vcombine.high %v1147_v45, %v1151_v20  ;;  %v1155_v53 = vld [vmem:[%s14093_s23 + $0x1648] sm:$0xff] }
 0x24d   : > { %6404 = vmatprep.subr.bf16.mxu1 %v12545_v36  ;;  %v12457_v36 = vcombine.high %v1139_v19, %v1143_v22  ;;  %v1159_v56 = vld [vmem:[%s14093_s23 + $0x1668] sm:$0xff] }
 0x24e   : > { %v12473_v63 = vcombine.high %v1155_v53, %v1159_v56  ;;  %v1163_v1 = vld [vmem:[%s14093_s23 + $0x1688] sm:$0xff] }
 0x24f   : > { %6364 = vmatpush1.bf16.msra.mxu0 %v12416_v46  ;;  %v1275_v46 = vld [vmem:[%s14093_s23 + $0x1a08] sm:$0xff] }
 0x250   : > { %6405 = vmatpush1.bf16.msra.mxu1 %v12544_v47  ;;  %6365 = vmatprep.subr.bf16.mxu0 %v12425_v51  ;;  %v1279_v47 = vld [vmem:[%s14093_s23 + $0x1a28] sm:$0xff]  ;;  %v12456_v51 = vcombine.low %v1139_v19, %v1143_v22 }
 0x251   : > { %6406 = vmatprep.subr.bf16.mxu1 %v12553_v49  ;;  %v12584_v49 = vcombine.low %v1267_v26, %v1271_v27  ;;  %v12593_v52 = vcombine.high %v1275_v46, %v1279_v47  ;;  %v1167_v2 = vld [vmem:[%s14093_s23 + $0x16a8] sm:$0xff] }
 0x252   : > { %v12481_v10 = vcombine.high %v1163_v1, %v1167_v2  ;;  %v1179_v22 = vld [vmem:[%s14093_s23 + $0x1708] sm:$0xff] }
 0x253   : > { %6366 = vmatpush1.bf16.msra.mxu0 %v12424_v57  ;;  %v1283_v57 = vld [vmem:[%s14093_s23 + $0x1a48] sm:$0xff] }
 0x254   : > { %6407 = vmatpush1.bf16.msra.mxu1 %v12552_v58  ;;  %6367 = vmatprep.subr.bf16.mxu0 %v12433_v61  ;;  %v1287_v58 = vld [vmem:[%s14093_s23 + $0x1a68] sm:$0xff]  ;;  %v12464_v61 = vcombine.low %v1147_v45, %v1151_v20 }
 0x255   : > { %6408 = vmatprep.subr.bf16.mxu1 %v12561_v62  ;;  %v12592_v62 = vcombine.low %v1275_v46, %v1279_v47  ;;  %v12601_v0 = vcombine.high %v1283_v57, %v1287_v58  ;;  %v1195_v45 = vld [vmem:[%s14093_s23 + $0x1788] sm:$0xff] }
 0x256   : > { %v1199_v20 = vld [vmem:[%s14093_s23 + $0x17a8] sm:$0xff] }
 0x257   : > { %6368 = vmatpush1.bf16.msra.mxu0 %v12432_v3  ;;  %v1291_v3 = vld [vmem:[%s14093_s23 + $0x1a88] sm:$0xff] }
 0x258   : > { %6409 = vmatpush1.bf16.msra.mxu1 %v12560_v4  ;;  %6369 = vmatprep.subr.bf16.mxu0 %v12441_v6  ;;  %v1295_v4 = vld [vmem:[%s14093_s23 + $0x1aa8] sm:$0xff]  ;;  %v12472_v6 = vcombine.low %v1155_v53, %v1159_v56 }
 0x259   : > { %v6065_v16 = vpop.f32.mrb[8].mxu0  ;;  %6410 = vmatprep.subr.bf16.mxu1 %v12569_v7  ;;  %v12600_v7 = vcombine.low %v1283_v57, %v1287_v58  ;;  %v12609_v11 = vcombine.high %v1291_v3, %v1295_v4  ;;  %v1323_v46 = vld [vmem:[%s14093_s23 + $0x1b88] sm:$0xff] }
 0x25a   : > { %v6066_v24 = vadd.f32 %v6065_v16, %v14575_v44  ;;  %v6106_v25 = vpop.f32.mrb[8].mxu1  ;;  %v6067_v54 = vpop.f32.mrb[9].mxu0  ;;  %v12576_v44 = vcombine.low %v1259_v12, %v1263_v13  ;;  %v1171_v12 = vld [vmem:[%s14093_s23 + $0x16c8] sm:$0xff]  ;;  %v12608_v16 = vcombine.low %v1291_v3, %v1295_v4  ;;  %v572_v3 = vld [vmem:[%s14093_s23 + $0x410] sm:$0xff] }
 0x25b   : > { %v6068_v55 = vadd.f32 %v6067_v54, %v14577_v23  ;;  %v6108_v29 = vpop.f32.mrb[9].mxu1  ;;  %v6069_v31 = vpop.f32.mrb[10].mxu0  ;;  %6370 = vmatpush1.bf16.msra.mxu0 %v12440_v40  ;;  %v1175_v13 = vld [vmem:[%s14093_s23 + $0x16e8] sm:$0xff]  ;;  %v576_v4 = vld [vmem:[%s14093_s23 + $0x430] sm:$0xff] }
 0x25c   : > { %v14649_v33 = vadd.f32 %v6106_v25, %v6066_v24  ;;  %v6110_v34 = vpop.f32.mrb[10].mxu1  ;;  %6411 = vmatpush1.bf16.msra.mxu1 %v12568_v14  ;;  %v6070_v35 = vpop.f32.mrb[11].mxu0  ;;  %6371 = vmatprep.subr.bf16.mxu0 %v12449_v43  ;;  %v1299_v40 = vld [vmem:[%s14093_s23 + $0x1ac8] sm:$0xff]  ;;  %v12480_v43 = vcombine.low %v1163_v1, %v1167_v2  ;;  %v12488_v26 = vcombine.low %v1171_v12, %v1175_v13  ;;  %v444_v1 = vld [vmem:[%s14093_s23 + $0x10] sm:$0xff] }
 0x25d   : > { %v14651_v38 = vadd.f32 %v6108_v29, %v6068_v55  ;;  %v6111_v23 = vpop.f32.mrb[11].mxu1  ;;  %6412 = vmatprep.subr.bf16.mxu1 %v12577_v18  ;;  %v1303_v14 = vld [vmem:[%s14093_s23 + $0x1ae8] sm:$0xff]  ;;  %v12489_v18 = vcombine.high %v1171_v12, %v1175_v13  ;;  %v448_v2 = vld [vmem:[%s14093_s23 + $0x30] sm:$0xff] }
 0x25e   : > { %v12617_v19 = vcombine.high %v1299_v40, %v1303_v14  ;;  %v1183_v24 = vld [vmem:[%s14093_s23 + $0x1728] sm:$0xff]  ;;  %v12616_v27 = vcombine.low %v1299_v40, %v1303_v14  ;;  %v452_v12 = vld [vmem:[%s14093_s23 + $0x50] sm:$0xff] }
 0x25f   : > { %6372 = vmatpush1.bf16.msra.mxu0 %v12448_v32  ;;  %v1307_v25 = vld [vmem:[%s14093_s23 + $0x1b08] sm:$0xff]  ;;  %v12497_v55 = vcombine.high %v1179_v22, %v1183_v24  ;;  %v456_v13 = vld [vmem:[%s14093_s23 + $0x70] sm:$0xff] }
 0x260   : > { %6413 = vmatpush1.bf16.msra.mxu1 %v12576_v44  ;;  %6373 = vmatprep.subr.bf16.mxu0 %v12457_v36  ;;  %v1311_v54 = vld [vmem:[%s14093_s23 + $0x1b28] sm:$0xff]  ;;  %v12496_v44 = vcombine.low %v1179_v22, %v1183_v24  ;;  %v580_v40 = vld [vmem:[%s14093_s23 + $0x450] sm:$0xff] }
 0x261   : > { %6414 = vmatprep.subr.bf16.mxu1 %v12585_v39  ;;  %v12625_v29 = vcombine.high %v1307_v25, %v1311_v54  ;;  %v1187_v31 = vld [vmem:[%s14093_s23 + $0x1748] sm:$0xff]  ;;  %v12624_v36 = vcombine.low %v1307_v25, %v1311_v54  ;;  %v584_v14 = vld [vmem:[%s14093_s23 + $0x470] sm:$0xff] }
 0x262   : > { %v1191_v32 = vld [vmem:[%s14093_s23 + $0x1768] sm:$0xff]  ;;  %v460_v22 = vld [vmem:[%s14093_s23 + $0x90] sm:$0xff] }
 0x263   : > { %6374 = vmatpush1.bf16.msra.mxu0 %v12456_v51  ;;  %v1315_v34 = vld [vmem:[%s14093_s23 + $0x1b48] sm:$0xff]  ;;  %v12505_v23 = vcombine.high %v1187_v31, %v1191_v32  ;;  %v12504_v51 = vcombine.low %v1187_v31, %v1191_v32  ;;  %v464_v24 = vld [vmem:[%s14093_s23 + $0xb0] sm:$0xff] }
 0x264   : > { %6415 = vmatpush1.bf16.msra.mxu1 %v12584_v49  ;;  %6375 = vmatprep.subr.bf16.mxu0 %v12465_v8  ;;  %v1319_v35 = vld [vmem:[%s14093_s23 + $0x1b68] sm:$0xff]  ;;  %v12513_v8 = vcombine.high %v1195_v45, %v1199_v20  ;;  %v588_v25 = vld [vmem:[%s14093_s23 + $0x490] sm:$0xff] }
 0x265   : > { %6416 = vmatprep.subr.bf16.mxu1 %v12593_v52  ;;  %v12633_v39 = vcombine.high %v1315_v34, %v1319_v35  ;;  %v1327_v47 = vld [vmem:[%s14093_s23 + $0x1ba8] sm:$0xff]  ;;  %v12632_v49 = vcombine.low %v1315_v34, %v1319_v35  ;;  %v592_v54 = vld [vmem:[%s14093_s23 + $0x4b0] sm:$0xff] }
 0x266   : > { %v12641_v52 = vcombine.high %v1323_v46, %v1327_v47  ;;  %v1203_v53 = vld [vmem:[%s14093_s23 + $0x17c8] sm:$0xff]  ;;  %v468_v31 = vld [vmem:[%s14093_s23 + $0xd0] sm:$0xff] }
 0x267   : > { %6376 = vmatpush1.bf16.msra.mxu0 %v12464_v61  ;;  %v1207_v56 = vld [vmem:[%s14093_s23 + $0x17e8] sm:$0xff]  ;;  %v12512_v61 = vcombine.low %v1195_v45, %v1199_v20  ;;  %v472_v32 = vld [vmem:[%s14093_s23 + $0xf0] sm:$0xff] }
 0x268   : > { %6417 = vmatpush1.bf16.msra.mxu1 %v12592_v62  ;;  %6377 = vmatprep.subr.bf16.mxu0 %v12473_v63  ;;  %v1331_v57 = vld [vmem:[%s14093_s23 + $0x1bc8] sm:$0xff]  ;;  %v12640_v62 = vcombine.low %v1323_v46, %v1327_v47  ;;  %v12521_v63 = vcombine.high %v1203_v53, %v1207_v56  ;;  %v596_v34 = vld [vmem:[%s14093_s23 + $0x4d0] sm:$0xff] }
 0x269   : > { %6418 = vmatprep.subr.bf16.mxu1 %v12601_v0  ;;  %v1335_v58 = vld [vmem:[%s14093_s23 + $0x1be8] sm:$0xff]  ;;  %v600_v35 = vld [vmem:[%s14093_s23 + $0x4f0] sm:$0xff] }
 0x26a   : > { %v12649_v0 = vcombine.high %v1331_v57, %v1335_v58  ;;  %v476_v45 = vld [vmem:[%s14093_s23 + $0x110] sm:$0xff] }
 0x26b   : > { %6378 = vmatpush1.bf16.msra.mxu0 %v12472_v6  ;;  %v12520_v6 = vcombine.low %v1203_v53, %v1207_v56  ;;  %v480_v20 = vld [vmem:[%s14093_s23 + $0x130] sm:$0xff] }
 0x26c   : > { %6419 = vmatpush1.bf16.msra.mxu1 %v12600_v7  ;;  %6379 = vmatprep.subr.bf16.mxu0 %v12481_v10  ;;  %v12648_v7 = vcombine.low %v1331_v57, %v1335_v58  ;;  %v11763_v10 = vcombine.high %v444_v1, %v448_v2  ;;  %v604_v46 = vld [vmem:[%s14093_s23 + $0x510] sm:$0xff] }
 0x26d   : > { %6420 = vmatprep.subr.bf16.mxu1 %v12609_v11  ;;  %v11891_v11 = vcombine.high %v572_v3, %v576_v4  ;;  %v608_v47 = vld [vmem:[%s14093_s23 + $0x530] sm:$0xff] }
 0x26e   : > { %v484_v53 = vld [vmem:[%s14093_s23 + $0x150] sm:$0xff] }
 0x26f   : > { %6380 = vmatpush1.bf16.msra.mxu0 %v12480_v43  ;;  %v11762_v43 = vcombine.low %v444_v1, %v448_v2  ;;  %v488_v56 = vld [vmem:[%s14093_s23 + $0x170] sm:$0xff] }
 0x270   : > { %6421 = vmatpush1.bf16.msra.mxu1 %v12608_v16  ;;  %6381 = vmatprep.subr.bf16.mxu0 %v12489_v18  ;;  %v11890_v16 = vcombine.low %v572_v3, %v576_v4  ;;  %v11771_v18 = vcombine.high %v452_v12, %v456_v13  ;;  %v612_v57 = vld [vmem:[%s14093_s23 + $0x550] sm:$0xff] }
 0x271   : > { %6422 = vmatprep.subr.bf16.mxu1 %v12617_v19  ;;  %v11899_v19 = vcombine.high %v580_v40, %v584_v14  ;;  %v616_v58 = vld [vmem:[%s14093_s23 + $0x570] sm:$0xff] }
 0x272   : > { %v492_v1 = vld [vmem:[%s14093_s23 + $0x190] sm:$0xff] }
 0x273   : > { %6382 = vmatpush1.bf16.msra.mxu0 %v12488_v26  ;;  %v11770_v26 = vcombine.low %v452_v12, %v456_v13  ;;  %v496_v2 = vld [vmem:[%s14093_s23 + $0x1b0] sm:$0xff] }
 0x274   : > { %6423 = vmatpush1.bf16.msra.mxu1 %v12616_v27  ;;  %6383 = vmatprep.subr.bf16.mxu0 %v12497_v55  ;;  %v11898_v27 = vcombine.low %v580_v40, %v584_v14  ;;  %v11779_v55 = vcombine.high %v460_v22, %v464_v24  ;;  %v620_v3 = vld [vmem:[%s14093_s23 + $0x590] sm:$0xff] }
 0x275   : > { %6424 = vmatprep.subr.bf16.mxu1 %v12625_v29  ;;  %v11907_v29 = vcombine.high %v588_v25, %v592_v54  ;;  %v624_v4 = vld [vmem:[%s14093_s23 + $0x5b0] sm:$0xff] }
 0x276   : > { %v11939_v13 = vcombine.high %v620_v3, %v624_v4  ;;  %v500_v40 = vld [vmem:[%s14093_s23 + $0x1d0] sm:$0xff] }
 0x277   : > { %6384 = vmatpush1.bf16.msra.mxu0 %v12496_v44  ;;  %v11778_v44 = vcombine.low %v460_v22, %v464_v24  ;;  %v504_v14 = vld [vmem:[%s14093_s23 + $0x1f0] sm:$0xff] }
 0x278   : > { %6425 = vmatpush1.bf16.msra.mxu1 %v12624_v36  ;;  %6385 = vmatprep.subr.bf16.mxu0 %v12505_v23  ;;  %v11906_v36 = vcombine.low %v588_v25, %v592_v54  ;;  %v11787_v23 = vcombine.high %v468_v31, %v472_v32  ;;  %v628_v22 = vld [vmem:[%s14093_s23 + $0x5d0] sm:$0xff] }
 0x279   : > { %6426 = vmatprep.subr.bf16.mxu1 %v12633_v39  ;;  %v11915_v39 = vcombine.high %v596_v34, %v600_v35  ;;  %v632_v24 = vld [vmem:[%s14093_s23 + $0x5f0] sm:$0xff] }
 0x27b   : > { %6386 = vmatpush1.bf16.msra.mxu0 %v12504_v51  ;;  %v11786_v51 = vcombine.low %v468_v31, %v472_v32  ;;  %v11938_v31 = vcombine.low %v620_v3, %v624_v4  ;;  %v11819_v32 = vcombine.high %v500_v40, %v504_v14 }
 0x27c   : > { %6427 = vmatpush1.bf16.msra.mxu1 %v12632_v49  ;;  %6387 = vmatprep.subr.bf16.mxu0 %v12513_v8  ;;  %v11914_v49 = vcombine.low %v596_v34, %v600_v35  ;;  %v11795_v8 = vcombine.high %v476_v45, %v480_v20 }
 0x27d   : > { %6428 = vmatprep.subr.bf16.mxu1 %v12641_v52  ;;  %v11923_v52 = vcombine.high %v604_v46, %v608_v47 }
 0x27f   : > { %6388 = vmatpush1.bf16.msra.mxu0 %v12512_v61  ;;  %v11794_v61 = vcombine.low %v476_v45, %v480_v20  ;;  %v11818_v45 = vcombine.low %v500_v40, %v504_v14  ;;  %v11946_v20 = vcombine.low %v628_v22, %v632_v24 }
 0x280   : > { %6429 = vmatpush1.bf16.msra.mxu1 %v12640_v62  ;;  %6389 = vmatprep.subr.bf16.mxu0 %v12521_v63  ;;  %v11922_v62 = vcombine.low %v604_v46, %v608_v47  ;;  %v11803_v63 = vcombine.high %v484_v53, %v488_v56 }
 0x281   : > { %6430 = vmatprep.subr.bf16.mxu1 %v12649_v0  ;;  %v11931_v0 = vcombine.high %v612_v57, %v616_v58 }
 0x283   : > { %6390 = vmatpush1.bf16.msra.mxu0 %v12520_v6  ;;  %v11802_v6 = vcombine.low %v484_v53, %v488_v56 }
 0x284   : > { %6431 = vmatpush1.bf16.msra.mxu1 %v12648_v7  ;;  %6441 = vmatprep.subr.bf16.mxu0 %v11763_v10  ;;  %v11930_v7 = vcombine.low %v612_v57, %v616_v58  ;;  %v11811_v10 = vcombine.high %v492_v1, %v496_v2 }
 0x285   : > { %6482 = vmatprep.subr.bf16.mxu1 %v11891_v11  ;;  %v427_v11 = vld [vmem:[#allocation2] sm:$0xff] }
 0x286   : > { %6392 = vmatmul.mubr.bf16.vlgmr.msra.gmra.mrb[24].mxu0 %v14395_v9 }
 0x287   : > { %6433 = vmatmul.mubr.bf16.vlgmr.msra.gmra.mrb[24].mxu1 %v14469_v42  ;;  %6442 = vmatpush1.bf16.msra.mxu0 %v11762_v43 }
 0x288   : > { %6483 = vmatpush1.bf16.msra.mxu1 %v11890_v16  ;;  %6443 = vmatprep.subr.bf16.mxu0 %v11771_v18  ;;  %v428_v18 = vld [vmem:[#allocation2 + $0x8] sm:$0xff] }
 0x289   : > { %6484 = vmatprep.subr.bf16.mxu1 %v11899_v19  ;;  %6473 = vmatprep.mubr.bf16.mxu0 %v14156_v59 }
 0x28a   : > { %6514 = vmatprep.mubr.bf16.mxu1 %v14160_v60 }
 0x28b   : > { %6444 = vmatpush1.bf16.msra.mxu0 %v11770_v26 }
 0x28c   : > { %6485 = vmatpush1.bf16.msra.mxu1 %v11898_v27  ;;  %6445 = vmatprep.subr.bf16.mxu0 %v11779_v55  ;;  %v11810_v27 = vcombine.low %v492_v1, %v496_v2 }
 0x28d   : > { %6486 = vmatprep.subr.bf16.mxu1 %v11907_v29 }
 0x28f   : > { %6446 = vmatpush1.bf16.msra.mxu0 %v11778_v44  ;;  %v508_v44 = vld [vmem:[%s14093_s23 + $0x210] sm:$0xff] }
 0x290   : > { %6487 = vmatpush1.bf16.msra.mxu1 %v11906_v36  ;;  %6447 = vmatprep.subr.bf16.mxu0 %v11787_v23  ;;  %v512_v36 = vld [vmem:[%s14093_s23 + $0x230] sm:$0xff] }
 0x291   : > { %6488 = vmatprep.subr.bf16.mxu1 %v11915_v39  ;;  %v636_v23 = vld [vmem:[%s14093_s23 + $0x610] sm:$0xff]  ;;  %v11827_v46 = vcombine.high %v508_v44, %v512_v36  ;;  %v11826_v53 = vcombine.low %v508_v44, %v512_v36 }
 0x292   : > { %v640_v39 = vld [vmem:[%s14093_s23 + $0x630] sm:$0xff] }
 0x293   : > { %6448 = vmatpush1.bf16.msra.mxu0 %v11786_v51  ;;  %v11955_v47 = vcombine.high %v636_v23, %v640_v39  ;;  %v516_v51 = vld [vmem:[%s14093_s23 + $0x250] sm:$0xff]  ;;  %v11954_v56 = vcombine.low %v636_v23, %v640_v39 }
 0x294   : > { %6489 = vmatpush1.bf16.msra.mxu1 %v11914_v49  ;;  %6449 = vmatprep.subr.bf16.mxu0 %v11795_v8  ;;  %v520_v49 = vld [vmem:[%s14093_s23 + $0x270] sm:$0xff] }
 0x295   : > { %6490 = vmatprep.subr.bf16.mxu1 %v11923_v52  ;;  %v644_v8 = vld [vmem:[%s14093_s23 + $0x650] sm:$0xff]  ;;  %v11835_v57 = vcombine.high %v516_v51, %v520_v49  ;;  %v11834_v1 = vcombine.low %v516_v51, %v520_v49 }
 0x296   : > { %v648_v52 = vld [vmem:[%s14093_s23 + $0x670] sm:$0xff] }
 0x297   : > { %6450 = vmatpush1.bf16.msra.mxu0 %v11794_v61  ;;  %v11963_v58 = vcombine.high %v644_v8, %v648_v52  ;;  %v524_v61 = vld [vmem:[%s14093_s23 + $0x290] sm:$0xff]  ;;  %v11962_v2 = vcombine.low %v644_v8, %v648_v52 }
 0x298   : > { %6491 = vmatpush1.bf16.msra.mxu1 %v11922_v62  ;;  %6451 = vmatprep.subr.bf16.mxu0 %v11803_v63  ;;  %v528_v62 = vld [vmem:[%s14093_s23 + $0x2b0] sm:$0xff] }
 0x299   : > { %v6147_v12 = vpop.f32.mrb[12].mxu0  ;;  %6492 = vmatprep.subr.bf16.mxu1 %v11931_v0  ;;  %v652_v63 = vld [vmem:[%s14093_s23 + $0x690] sm:$0xff]  ;;  %v11843_v3 = vcombine.high %v524_v61, %v528_v62 }
 0x29a   : > { %v6148_v43 = vadd.f32 %v6147_v12, %v14649_v33  ;;  %v14720_v16 = vpop.f32.mrb[12].mxu1  ;;  %v6149_v19 = vpop.f32.mrb[13].mxu0  ;;  %v656_v0 = vld [vmem:[%s14093_s23 + $0x6b0] sm:$0xff]  ;;  %v11842_v12 = vcombine.low %v524_v61, %v528_v62 }
 0x29b   : > { %v6150_v25 = vadd.f32 %v6149_v19, %v14651_v38  ;;  %v14725_v54 = vpop.f32.mrb[13].mxu1  ;;  %v6151_v26 = vpop.f32.mrb[14].mxu0  ;;  %6452 = vmatpush1.bf16.msra.mxu0 %v11802_v6  ;;  %v11947_v38 = vcombine.high %v628_v22, %v632_v24  ;;  %v11971_v4 = vcombine.high %v652_v63, %v656_v0  ;;  %v532_v6 = vld [vmem:[%s14093_s23 + $0x2d0] sm:$0xff] }
 0x29c   : > { %v7015_v55 = vadd.f32 %v6148_v43, %v427_v11  ;;  %v6192_v29 = vpop.f32.mrb[14].mxu1  ;;  %6493 = vmatpush1.bf16.msra.mxu1 %v11930_v7  ;;  %v6152_v33 = vpop.f32.mrb[15].mxu0  ;;  %6453 = vmatprep.subr.bf16.mxu0 %v11811_v10  ;;  %v536_v7 = vld [vmem:[%s14093_s23 + $0x2f0] sm:$0xff] }
 0x29d   : > { %v7016_v34 = vadd.f32 %v6150_v25, %v428_v18  ;;  %v6193_v35 = vpop.f32.mrb[15].mxu1  ;;  %6494 = vmatprep.subr.bf16.mxu1 %v11939_v13  ;;  %v660_v10 = vld [vmem:[%s14093_s23 + $0x6d0] sm:$0xff]  ;;  %v11970_v13 = vcombine.low %v652_v63, %v656_v0  ;;  %v11851_v40 = vcombine.high %v532_v6, %v536_v7  ;;  %v11850_v24 = vcombine.low %v532_v6, %v536_v7 }
 0x29e   : > { %7023 = vst [vmem:[#allocation2] sm:$0xff] %v7015_v55  ;;  %v664_v11 = vld [vmem:[%s14093_s23 + $0x6f0] sm:$0xff] }
 0x29f   : > { %7024 = vst [vmem:[#allocation2 + $0x8] sm:$0xff] %v7016_v34  ;;  %6454 = vmatpush1.bf16.msra.mxu0 %v11810_v27  ;;  %v11979_v14 = vcombine.high %v660_v10, %v664_v11  ;;  %v540_v43 = vld [vmem:[%s14093_s23 + $0x310] sm:$0xff]  ;;  %v11978_v25 = vcombine.low %v660_v10, %v664_v11 }
 0x2a0   : > { %6495 = vmatpush1.bf16.msra.mxu1 %v11938_v31  ;;  %6455 = vmatprep.subr.bf16.mxu0 %v11819_v32  ;;  %v544_v18 = vld [vmem:[%s14093_s23 + $0x330] sm:$0xff] }
 0x2a1   : > { %6496 = vmatprep.subr.bf16.mxu1 %v11947_v38  ;;  %v668_v19 = vld [vmem:[%s14093_s23 + $0x710] sm:$0xff]  ;;  %v11859_v26 = vcombine.high %v540_v43, %v544_v18  ;;  %v11858_v32 = vcombine.low %v540_v43, %v544_v18 }
 0x2a2   : > { %v672_v22 = vld [vmem:[%s14093_s23 + $0x730] sm:$0xff] }
 0x2a3   : > { %6456 = vmatpush1.bf16.msra.mxu0 %v11818_v45  ;;  %v11987_v27 = vcombine.high %v668_v19, %v672_v22  ;;  %v548_v55 = vld [vmem:[%s14093_s23 + $0x350] sm:$0xff]  ;;  %v11986_v34 = vcombine.low %v668_v19, %v672_v22 }
 0x2a4   : > { %6497 = vmatpush1.bf16.msra.mxu1 %v11946_v20  ;;  %6457 = vmatprep.subr.bf16.mxu0 %v11827_v46  ;;  %v552_v29 = vld [vmem:[%s14093_s23 + $0x370] sm:$0xff] }
 0x2a5   : > { %6498 = vmatprep.subr.bf16.mxu1 %v11955_v47  ;;  %v676_v33 = vld [vmem:[%s14093_s23 + $0x750] sm:$0xff]  ;;  %v11867_v35 = vcombine.high %v548_v55, %v552_v29  ;;  %v11866_v45 = vcombine.low %v548_v55, %v552_v29 }
 0x2a6   : > { %v680_v31 = vld [vmem:[%s14093_s23 + $0x770] sm:$0xff] }
 0x2a7   : > { %6458 = vmatpush1.bf16.msra.mxu0 %v11826_v53  ;;  %v11995_v38 = vcombine.high %v676_v33, %v680_v31  ;;  %v556_v44 = vld [vmem:[%s14093_s23 + $0x390] sm:$0xff]  ;;  %v11994_v20 = vcombine.low %v676_v33, %v680_v31 }
 0x2a8   : > { %6499 = vmatpush1.bf16.msra.mxu1 %v11954_v56  ;;  %6459 = vmatprep.subr.bf16.mxu0 %v11835_v57  ;;  %v560_v36 = vld [vmem:[%s14093_s23 + $0x3b0] sm:$0xff] }
 0x2a9   : > { %6500 = vmatprep.subr.bf16.mxu1 %v11963_v58  ;;  %v684_v23 = vld [vmem:[%s14093_s23 + $0x790] sm:$0xff]  ;;  %v11875_v46 = vcombine.high %v556_v44, %v560_v36  ;;  %v11874_v53 = vcombine.low %v556_v44, %v560_v36 }
 0x2aa   : > { %v688_v39 = vld [vmem:[%s14093_s23 + $0x7b0] sm:$0xff] }
 0x2ab   : > { %6460 = vmatpush1.bf16.msra.mxu0 %v11834_v1  ;;  %v12003_v47 = vcombine.high %v684_v23, %v688_v39  ;;  %v564_v51 = vld [vmem:[%s14093_s23 + $0x3d0] sm:$0xff]  ;;  %v12002_v56 = vcombine.low %v684_v23, %v688_v39 }
 0x2ac   : > { %6501 = vmatpush1.bf16.msra.mxu1 %v11962_v2  ;;  %6461 = vmatprep.subr.bf16.mxu0 %v11843_v3  ;;  %v568_v49 = vld [vmem:[%s14093_s23 + $0x3f0] sm:$0xff] }
 0x2ad   : > { %6502 = vmatprep.subr.bf16.mxu1 %v11971_v4  ;;  %v692_v8 = vld [vmem:[%s14093_s23 + $0x7d0] sm:$0xff]  ;;  %v11883_v57 = vcombine.high %v564_v51, %v568_v49  ;;  %v11882_v1 = vcombine.low %v564_v51, %v568_v49 }
 0x2ae   : > { %v696_v52 = vld [vmem:[%s14093_s23 + $0x7f0] sm:$0xff] }
 0x2af   : > { %6462 = vmatpush1.bf16.msra.mxu0 %v11842_v12  ;;  %v12011_v58 = vcombine.high %v692_v8, %v696_v52  ;;  %v700_v61 = vld [vmem:[%s14093_s23 + $0x810] sm:$0xff]  ;;  %v12010_v2 = vcombine.low %v692_v8, %v696_v52 }
 0x2b0   : > { %6503 = vmatpush1.bf16.msra.mxu1 %v11970_v13  ;;  %6463 = vmatprep.subr.bf16.mxu0 %v11851_v40  ;;  %v704_v62 = vld [vmem:[%s14093_s23 + $0x830] sm:$0xff] }
 0x2b1   : > { %6504 = vmatprep.subr.bf16.mxu1 %v11979_v14  ;;  %v828_v63 = vld [vmem:[%s14093_s23 + $0xc10] sm:$0xff]  ;;  %v12019_v3 = vcombine.high %v700_v61, %v704_v62  ;;  %v12018_v12 = vcombine.low %v700_v61, %v704_v62 }
 0x2b2   : > { %v832_v0 = vld [vmem:[%s14093_s23 + $0xc30] sm:$0xff] }
 0x2b3   : > { %6464 = vmatpush1.bf16.msra.mxu0 %v11850_v24  ;;  %v12147_v4 = vcombine.high %v828_v63, %v832_v0  ;;  %v708_v6 = vld [vmem:[%s14093_s23 + $0x850] sm:$0xff]  ;;  %v12146_v13 = vcombine.low %v828_v63, %v832_v0 }
 0x2b4   : > { %6505 = vmatpush1.bf16.msra.mxu1 %v11978_v25  ;;  %6465 = vmatprep.subr.bf16.mxu0 %v11859_v26  ;;  %v712_v7 = vld [vmem:[%s14093_s23 + $0x870] sm:$0xff] }
 0x2b5   : > { %6506 = vmatprep.subr.bf16.mxu1 %v11987_v27  ;;  %v836_v10 = vld [vmem:[%s14093_s23 + $0xc50] sm:$0xff]  ;;  %v12027_v40 = vcombine.high %v708_v6, %v712_v7  ;;  %v12026_v24 = vcombine.low %v708_v6, %v712_v7 }
 0x2b6   : > { %v840_v11 = vld [vmem:[%s14093_s23 + $0xc70] sm:$0xff] }
 0x2b7   : > { %6466 = vmatpush1.bf16.msra.mxu0 %v11858_v32  ;;  %v12155_v14 = vcombine.high %v836_v10, %v840_v11  ;;  %v716_v43 = vld [vmem:[%s14093_s23 + $0x890] sm:$0xff]  ;;  %v12154_v25 = vcombine.low %v836_v10, %v840_v11 }
 0x2b8   : > { %6507 = vmatpush1.bf16.msra.mxu1 %v11986_v34  ;;  %6467 = vmatprep.subr.bf16.mxu0 %v11867_v35  ;;  %v720_v18 = vld [vmem:[%s14093_s23 + $0x8b0] sm:$0xff] }
 0x2b9   : > { %6508 = vmatprep.subr.bf16.mxu1 %v11995_v38  ;;  %v844_v19 = vld [vmem:[%s14093_s23 + $0xc90] sm:$0xff]  ;;  %v12035_v26 = vcombine.high %v716_v43, %v720_v18  ;;  %v12034_v32 = vcombine.low %v716_v43, %v720_v18 }
 0x2ba   : > { %v848_v22 = vld [vmem:[%s14093_s23 + $0xcb0] sm:$0xff] }
 0x2bb   : > { %6468 = vmatpush1.bf16.msra.mxu0 %v11866_v45  ;;  %v12163_v27 = vcombine.high %v844_v19, %v848_v22  ;;  %v724_v55 = vld [vmem:[%s14093_s23 + $0x8d0] sm:$0xff]  ;;  %v12162_v34 = vcombine.low %v844_v19, %v848_v22 }
 0x2bc   : > { %6509 = vmatpush1.bf16.msra.mxu1 %v11994_v20  ;;  %6469 = vmatprep.subr.bf16.mxu0 %v11875_v46  ;;  %v728_v29 = vld [vmem:[%s14093_s23 + $0x8f0] sm:$0xff] }
 0x2bd   : > { %6510 = vmatprep.subr.bf16.mxu1 %v12003_v47  ;;  %v852_v33 = vld [vmem:[%s14093_s23 + $0xcd0] sm:$0xff]  ;;  %v12043_v35 = vcombine.high %v724_v55, %v728_v29  ;;  %v12042_v45 = vcombine.low %v724_v55, %v728_v29 }
 0x2be   : > { %v856_v31 = vld [vmem:[%s14093_s23 + $0xcf0] sm:$0xff] }
 0x2bf   : > { %6470 = vmatpush1.bf16.msra.mxu0 %v11874_v53  ;;  %v12171_v38 = vcombine.high %v852_v33, %v856_v31  ;;  %v732_v44 = vld [vmem:[%s14093_s23 + $0x910] sm:$0xff]  ;;  %v12170_v20 = vcombine.low %v852_v33, %v856_v31 }
 0x2c0   : > { %6511 = vmatpush1.bf16.msra.mxu1 %v12002_v56  ;;  %6471 = vmatprep.subr.bf16.mxu0 %v11883_v57  ;;  %v736_v36 = vld [vmem:[%s14093_s23 + $0x930] sm:$0xff] }
 0x2c1   : > { %6512 = vmatprep.subr.bf16.mxu1 %v12011_v58  ;;  %v860_v23 = vld [vmem:[%s14093_s23 + $0xd10] sm:$0xff]  ;;  %v12051_v46 = vcombine.high %v732_v44, %v736_v36  ;;  %v12050_v53 = vcombine.low %v732_v44, %v736_v36 }
 0x2c2   : > { %v864_v39 = vld [vmem:[%s14093_s23 + $0xd30] sm:$0xff] }
 0x2c3   : > { %6472 = vmatpush1.bf16.msra.mxu0 %v11882_v1  ;;  %v12179_v47 = vcombine.high %v860_v23, %v864_v39  ;;  %v740_v51 = vld [vmem:[%s14093_s23 + $0x950] sm:$0xff]  ;;  %v12178_v56 = vcombine.low %v860_v23, %v864_v39 }
 0x2c4   : > { %6513 = vmatpush1.bf16.msra.mxu1 %v12010_v2  ;;  %6523 = vmatprep.subr.bf16.mxu0 %v12019_v3  ;;  %v744_v49 = vld [vmem:[%s14093_s23 + $0x970] sm:$0xff] }
 0x2c5   : > { %6564 = vmatprep.subr.bf16.mxu1 %v12147_v4  ;;  %v868_v8 = vld [vmem:[%s14093_s23 + $0xd50] sm:$0xff]  ;;  %v12059_v57 = vcombine.high %v740_v51, %v744_v49  ;;  %v12058_v1 = vcombine.low %v740_v51, %v744_v49 }
 0x2c6   : > { %6474 = vmatmul.mubr.bf16.vlgmr.msra.gmra.mrb[28].mxu0 %v14206_v17  ;;  %v872_v52 = vld [vmem:[%s14093_s23 + $0xd70] sm:$0xff] }
 0x2c7   : > { %6515 = vmatmul.mubr.bf16.vlgmr.msra.gmra.mrb[28].mxu1 %v14215_v21  ;;  %6524 = vmatpush1.bf16.msra.mxu0 %v12018_v12  ;;  %v12187_v58 = vcombine.high %v868_v8, %v872_v52  ;;  %v748_v61 = vld [vmem:[%s14093_s23 + $0x990] sm:$0xff]  ;;  %v12186_v2 = vcombine.low %v868_v8, %v872_v52 }
 0x2c8   : > { %6565 = vmatpush1.bf16.msra.mxu1 %v12146_v13  ;;  %6525 = vmatprep.subr.bf16.mxu0 %v12027_v40  ;;  %v752_v62 = vld [vmem:[%s14093_s23 + $0x9b0] sm:$0xff] }
 0x2c9   : > { %6566 = vmatprep.subr.bf16.mxu1 %v12155_v14  ;;  %6555 = vmatprep.mubr.bf16.mxu0 %v14224_v28  ;;  %v876_v63 = vld [vmem:[%s14093_s23 + $0xd90] sm:$0xff]  ;;  %v12067_v3 = vcombine.high %v748_v61, %v752_v62  ;;  %v12066_v22 = vcombine.low %v748_v61, %v752_v62 }
 0x2ca   : > { %6596 = vmatprep.mubr.bf16.mxu1 %v14231_v30  ;;  %v880_v0 = vld [vmem:[%s14093_s23 + $0xdb0] sm:$0xff] }
 0x2cb   : > { %6526 = vmatpush1.bf16.msra.mxu0 %v12026_v24  ;;  %v12195_v6 = vcombine.high %v876_v63, %v880_v0  ;;  %v756_v7 = vld [vmem:[%s14093_s23 + $0x9d0] sm:$0xff] }
 0x2cc   : > { %6567 = vmatpush1.bf16.msra.mxu1 %v12154_v25  ;;  %6527 = vmatprep.subr.bf16.mxu0 %v12035_v26  ;;  %v760_v10 = vld [vmem:[%s14093_s23 + $0x9f0] sm:$0xff] }
 0x2cd   : > { %6568 = vmatprep.subr.bf16.mxu1 %v12163_v27  ;;  %v884_v40 = vld [vmem:[%s14093_s23 + $0xdd0] sm:$0xff]  ;;  %v12075_v27 = vcombine.high %v756_v7, %v760_v10 }
 0x2ce   : > { %v888_v14 = vld [vmem:[%s14093_s23 + $0xdf0] sm:$0xff] }
 0x2cf   : > { %6528 = vmatpush1.bf16.msra.mxu0 %v12034_v32  ;;  %v12203_v29 = vcombine.high %v884_v40, %v888_v14  ;;  %v764_v33 = vld [vmem:[%s14093_s23 + $0xa10] sm:$0xff] }
 0x2d0   : > { %6569 = vmatpush1.bf16.msra.mxu1 %v12162_v34  ;;  %6529 = vmatprep.subr.bf16.mxu0 %v12043_v35  ;;  %v768_v31 = vld [vmem:[%s14093_s23 + $0xa30] sm:$0xff]  ;;  %v12074_v35 = vcombine.low %v756_v7, %v760_v10 }
 0x2d1   : > { %6570 = vmatprep.subr.bf16.mxu1 %v12171_v38  ;;  %v892_v32 = vld [vmem:[%s14093_s23 + $0xe10] sm:$0xff]  ;;  %v12202_v38 = vcombine.low %v884_v40, %v888_v14  ;;  %v12083_v44 = vcombine.high %v764_v33, %v768_v31 }
 0x2d2   : > { %v896_v34 = vld [vmem:[%s14093_s23 + $0xe30] sm:$0xff] }
 0x2d3   : > { %6530 = vmatpush1.bf16.msra.mxu0 %v12042_v45  ;;  %v12211_v36 = vcombine.high %v892_v32, %v896_v34  ;;  %v772_v23 = vld [vmem:[%s14093_s23 + $0xa50] sm:$0xff] }
 0x2d4   : > { %6571 = vmatpush1.bf16.msra.mxu1 %v12170_v20  ;;  %6531 = vmatprep.subr.bf16.mxu0 %v12051_v46  ;;  %v776_v39 = vld [vmem:[%s14093_s23 + $0xa70] sm:$0xff]  ;;  %v12082_v46 = vcombine.low %v764_v33, %v768_v31 }
 0x2d5   : > { %6572 = vmatprep.subr.bf16.mxu1 %v12179_v47  ;;  %v900_v45 = vld [vmem:[%s14093_s23 + $0xe50] sm:$0xff]  ;;  %v12210_v47 = vcombine.low %v892_v32, %v896_v34  ;;  %v12091_v51 = vcombine.high %v772_v23, %v776_v39 }
 0x2d6   : > { %v904_v20 = vld [vmem:[%s14093_s23 + $0xe70] sm:$0xff] }
 0x2d7   : > { %6532 = vmatpush1.bf16.msra.mxu0 %v12050_v53  ;;  %v12219_v49 = vcombine.high %v900_v45, %v904_v20  ;;  %v780_v8 = vld [vmem:[%s14093_s23 + $0xa90] sm:$0xff] }
 0x2d8   : > { %6573 = vmatpush1.bf16.msra.mxu1 %v12178_v56  ;;  %6533 = vmatprep.subr.bf16.mxu0 %v12059_v57  ;;  %v784_v52 = vld [vmem:[%s14093_s23 + $0xab0] sm:$0xff]  ;;  %v12090_v57 = vcombine.low %v772_v23, %v776_v39 }
 0x2d9   : > { %v6229_v4 = vpop.f32.mrb[16].mxu0  ;;  %6574 = vmatprep.subr.bf16.mxu1 %v12187_v58  ;;  %v908_v53 = vld [vmem:[%s14093_s23 + $0xe90] sm:$0xff]  ;;  %v12218_v58 = vcombine.low %v900_v45, %v904_v20  ;;  %v12099_v61 = vcombine.high %v780_v8, %v784_v52 }
 0x2da   : > { %v6230_v11 = vadd.f32 %v6229_v4, %v14720_v16  ;;  %v6270_v12 = vpop.f32.mrb[16].mxu1  ;;  %v6231_v13 = vpop.f32.mrb[17].mxu0  ;;  %v12194_v16 = vcombine.low %v876_v63, %v880_v0  ;;  %v912_v56 = vld [vmem:[%s14093_s23 + $0xeb0] sm:$0xff] }
 0x2db   : > { %v6232_v43 = vadd.f32 %v6231_v13, %v14725_v54  ;;  %v6272_v18 = vpop.f32.mrb[17].mxu1  ;;  %v6233_v19 = vpop.f32.mrb[18].mxu0  ;;  %6534 = vmatpush1.bf16.msra.mxu0 %v12058_v1  ;;  %v12227_v62 = vcombine.high %v908_v53, %v912_v56  ;;  %v788_v63 = vld [vmem:[%s14093_s23 + $0xad0] sm:$0xff]  ;;  %v12226_v4 = vcombine.low %v908_v53, %v912_v56 }
 0x2dc   : > { %v14797_v24 = vadd.f32 %v6270_v12, %v6230_v11  ;;  %v6274_v25 = vpop.f32.mrb[18].mxu1  ;;  %6575 = vmatpush1.bf16.msra.mxu1 %v12186_v2  ;;  %v6234_v26 = vpop.f32.mrb[19].mxu0  ;;  %6535 = vmatprep.subr.bf16.mxu0 %v12067_v3  ;;  %v792_v0 = vld [vmem:[%s14093_s23 + $0xaf0] sm:$0xff]  ;;  %v12098_v3 = vcombine.low %v780_v8, %v784_v52 }
 0x2dd   : > { %v14799_v55 = vadd.f32 %v6272_v18, %v6232_v43  ;;  %v6275_v54 = vpop.f32.mrb[19].mxu1  ;;  %6576 = vmatprep.subr.bf16.mxu1 %v12195_v6  ;;  %v916_v1 = vld [vmem:[%s14093_s23 + $0xed0] sm:$0xff]  ;;  %v12107_v6 = vcombine.high %v788_v63, %v792_v0  ;;  %v12106_v40 = vcombine.low %v788_v63, %v792_v0 }
 0x2de   : > { %v920_v2 = vld [vmem:[%s14093_s23 + $0xef0] sm:$0xff] }
 0x2df   : > { %6536 = vmatpush1.bf16.msra.mxu0 %v12066_v22  ;;  %v12235_v7 = vcombine.high %v916_v1, %v920_v2  ;;  %v796_v10 = vld [vmem:[%s14093_s23 + $0xb10] sm:$0xff]  ;;  %v12234_v14 = vcombine.low %v916_v1, %v920_v2 }
 0x2e0   : > { %6577 = vmatpush1.bf16.msra.mxu1 %v12194_v16  ;;  %6537 = vmatprep.subr.bf16.mxu0 %v12075_v27  ;;  %v800_v11 = vld [vmem:[%s14093_s23 + $0xb30] sm:$0xff] }
 0x2e1   : > { %6578 = vmatprep.subr.bf16.mxu1 %v12203_v29  ;;  %v924_v12 = vld [vmem:[%s14093_s23 + $0xf10] sm:$0xff]  ;;  %v12115_v43 = vcombine.high %v796_v10, %v800_v11  ;;  %v12114_v16 = vcombine.low %v796_v10, %v800_v11 }
 0x2e2   : > { %v928_v13 = vld [vmem:[%s14093_s23 + $0xf30] sm:$0xff] }
 0x2e3   : > { %6538 = vmatpush1.bf16.msra.mxu0 %v12074_v35  ;;  %v12243_v18 = vcombine.high %v924_v12, %v928_v13  ;;  %v804_v19 = vld [vmem:[%s14093_s23 + $0xb50] sm:$0xff]  ;;  %v12242_v27 = vcombine.low %v924_v12, %v928_v13 }
 0x2e4   : > { %6579 = vmatpush1.bf16.msra.mxu1 %v12202_v38  ;;  %6539 = vmatprep.subr.bf16.mxu0 %v12083_v44  ;;  %v808_v22 = vld [vmem:[%s14093_s23 + $0xb70] sm:$0xff] }
 0x2e5   : > { %6580 = vmatprep.subr.bf16.mxu1 %v12211_v36  ;;  %v932_v25 = vld [vmem:[%s14093_s23 + $0xf50] sm:$0xff]  ;;  %v12123_v54 = vcombine.high %v804_v19, %v808_v22  ;;  %v12122_v35 = vcombine.low %v804_v19, %v808_v22 }
 0x2e6   : > { %v936_v26 = vld [vmem:[%s14093_s23 + $0xf70] sm:$0xff] }
 0x2e7   : > { %6540 = vmatpush1.bf16.msra.mxu0 %v12082_v46  ;;  %v12251_v29 = vcombine.high %v932_v25, %v936_v26  ;;  %v812_v33 = vld [vmem:[%s14093_s23 + $0xb90] sm:$0xff]  ;;  %v12250_v38 = vcombine.low %v932_v25, %v936_v26 }
 0x2e8   : > { %6581 = vmatpush1.bf16.msra.mxu1 %v12210_v47  ;;  %6541 = vmatprep.subr.bf16.mxu0 %v12091_v51  ;;  %v816_v31 = vld [vmem:[%s14093_s23 + $0xbb0] sm:$0xff] }
 0x2e9   : > { %6582 = vmatprep.subr.bf16.mxu1 %v12219_v49  ;;  %v940_v32 = vld [vmem:[%s14093_s23 + $0xf90] sm:$0xff]  ;;  %v12131_v44 = vcombine.high %v812_v33, %v816_v31  ;;  %v12130_v46 = vcombine.low %v812_v33, %v816_v31 }
 0x2ea   : > { %v944_v34 = vld [vmem:[%s14093_s23 + $0xfb0] sm:$0xff] }
 0x2eb   : > { %6542 = vmatpush1.bf16.msra.mxu0 %v12090_v57  ;;  %v12259_v36 = vcombine.high %v940_v32, %v944_v34  ;;  %v820_v23 = vld [vmem:[%s14093_s23 + $0xbd0] sm:$0xff]  ;;  %v12258_v47 = vcombine.low %v940_v32, %v944_v34 }
 0x2ec   : > { %6583 = vmatpush1.bf16.msra.mxu1 %v12218_v58  ;;  %6543 = vmatprep.subr.bf16.mxu0 %v12099_v61  ;;  %v824_v39 = vld [vmem:[%s14093_s23 + $0xbf0] sm:$0xff] }
 0x2ed   : > { %6584 = vmatprep.subr.bf16.mxu1 %v12227_v62  ;;  %v948_v45 = vld [vmem:[%s14093_s23 + $0xfd0] sm:$0xff]  ;;  %v12139_v51 = vcombine.high %v820_v23, %v824_v39  ;;  %v12138_v57 = vcombine.low %v820_v23, %v824_v39 }
 0x2ee   : > { %v952_v20 = vld [vmem:[%s14093_s23 + $0xff0] sm:$0xff] }
 0x2ef   : > { %6544 = vmatpush1.bf16.msra.mxu0 %v12098_v3  ;;  %v12267_v49 = vcombine.high %v948_v45, %v952_v20  ;;  %v956_v8 = vld [vmem:[%s14093_s23 + $0x1010] sm:$0xff]  ;;  %v12266_v58 = vcombine.low %v948_v45, %v952_v20 }
 0x2f0   : > { %6585 = vmatpush1.bf16.msra.mxu1 %v12226_v4  ;;  %6545 = vmatprep.subr.bf16.mxu0 %v12107_v6  ;;  %v960_v52 = vld [vmem:[%s14093_s23 + $0x1030] sm:$0xff] }
 0x2f1   : > { %6586 = vmatprep.subr.bf16.mxu1 %v12235_v7  ;;  %v1084_v53 = vld [vmem:[%s14093_s23 + $0x1410] sm:$0xff]  ;;  %v12275_v61 = vcombine.high %v956_v8, %v960_v52  ;;  %v12274_v3 = vcombine.low %v956_v8, %v960_v52 }
 0x2f2   : > { %v1088_v56 = vld [vmem:[%s14093_s23 + $0x1430] sm:$0xff] }
 0x2f3   : > { %6546 = vmatpush1.bf16.msra.mxu0 %v12106_v40  ;;  %v12403_v62 = vcombine.high %v1084_v53, %v1088_v56  ;;  %v964_v63 = vld [vmem:[%s14093_s23 + $0x1050] sm:$0xff]  ;;  %v12402_v4 = vcombine.low %v1084_v53, %v1088_v56 }
 0x2f4   : > { %6587 = vmatpush1.bf16.msra.mxu1 %v12234_v14  ;;  %6547 = vmatprep.subr.bf16.mxu0 %v12115_v43  ;;  %v968_v0 = vld [vmem:[%s14093_s23 + $0x1070] sm:$0xff] }
 0x2f5   : > { %6588 = vmatprep.subr.bf16.mxu1 %v12243_v18  ;;  %v1092_v1 = vld [vmem:[%s14093_s23 + $0x1450] sm:$0xff]  ;;  %v12283_v6 = vcombine.high %v964_v63, %v968_v0  ;;  %v12282_v40 = vcombine.low %v964_v63, %v968_v0 }
 0x2f6   : > { %v1096_v2 = vld [vmem:[%s14093_s23 + $0x1470] sm:$0xff] }
 0x2f7   : > { %6548 = vmatpush1.bf16.msra.mxu0 %v12114_v16  ;;  %v12411_v7 = vcombine.high %v1092_v1, %v1096_v2  ;;  %v972_v10 = vld [vmem:[%s14093_s23 + $0x1090] sm:$0xff]  ;;  %v12410_v14 = vcombine.low %v1092_v1, %v1096_v2 }
 0x2f8   : > { %6589 = vmatpush1.bf16.msra.mxu1 %v12242_v27  ;;  %6549 = vmatprep.subr.bf16.mxu0 %v12123_v54  ;;  %v976_v11 = vld [vmem:[%s14093_s23 + $0x10b0] sm:$0xff] }
 0x2f9   : > { %6590 = vmatprep.subr.bf16.mxu1 %v12251_v29  ;;  %v1100_v12 = vld [vmem:[%s14093_s23 + $0x1490] sm:$0xff]  ;;  %v12291_v43 = vcombine.high %v972_v10, %v976_v11  ;;  %v12290_v16 = vcombine.low %v972_v10, %v976_v11 }
 0x2fa   : > { %v1104_v13 = vld [vmem:[%s14093_s23 + $0x14b0] sm:$0xff] }
 0x2fb   : > { %6550 = vmatpush1.bf16.msra.mxu0 %v12122_v35  ;;  %v12419_v18 = vcombine.high %v1100_v12, %v1104_v13  ;;  %v980_v19 = vld [vmem:[%s14093_s23 + $0x10d0] sm:$0xff]  ;;  %v12418_v27 = vcombine.low %v1100_v12, %v1104_v13 }
 0x2fc   : > { %6591 = vmatpush1.bf16.msra.mxu1 %v12250_v38  ;;  %6551 = vmatprep.subr.bf16.mxu0 %v12131_v44  ;;  %v984_v22 = vld [vmem:[%s14093_s23 + $0x10f0] sm:$0xff] }
 0x2fd   : > { %6592 = vmatprep.subr.bf16.mxu1 %v12259_v36  ;;  %v1108_v25 = vld [vmem:[%s14093_s23 + $0x14d0] sm:$0xff]  ;;  %v12299_v54 = vcombine.high %v980_v19, %v984_v22  ;;  %v12298_v35 = vcombine.low %v980_v19, %v984_v22 }
 0x2fe   : > { %v1112_v26 = vld [vmem:[%s14093_s23 + $0x14f0] sm:$0xff] }
 0x2ff   : > { %6552 = vmatpush1.bf16.msra.mxu0 %v12130_v46  ;;  %v12427_v29 = vcombine.high %v1108_v25, %v1112_v26  ;;  %v988_v33 = vld [vmem:[%s14093_s23 + $0x1110] sm:$0xff]  ;;  %v12426_v38 = vcombine.low %v1108_v25, %v1112_v26 }
 0x300   : > { %6593 = vmatpush1.bf16.msra.mxu1 %v12258_v47  ;;  %6553 = vmatprep.subr.bf16.mxu0 %v12139_v51  ;;  %v992_v31 = vld [vmem:[%s14093_s23 + $0x1130] sm:$0xff] }
 0x301   : > { %6594 = vmatprep.subr.bf16.mxu1 %v12267_v49  ;;  %v1116_v32 = vld [vmem:[%s14093_s23 + $0x1510] sm:$0xff]  ;;  %v12307_v44 = vcombine.high %v988_v33, %v992_v31  ;;  %v12306_v46 = vcombine.low %v988_v33, %v992_v31 }
 0x302   : > { %v1120_v34 = vld [vmem:[%s14093_s23 + $0x1530] sm:$0xff] }
 0x303   : > { %6554 = vmatpush1.bf16.msra.mxu0 %v12138_v57  ;;  %v12435_v36 = vcombine.high %v1116_v32, %v1120_v34  ;;  %v996_v23 = vld [vmem:[%s14093_s23 + $0x1150] sm:$0xff]  ;;  %v12434_v47 = vcombine.low %v1116_v32, %v1120_v34 }
 0x304   : > { %6595 = vmatpush1.bf16.msra.mxu1 %v12266_v58  ;;  %6605 = vmatprep.subr.bf16.mxu0 %v12275_v61  ;;  %v1000_v39 = vld [vmem:[%s14093_s23 + $0x1170] sm:$0xff] }
 0x305   : > { %6646 = vmatprep.subr.bf16.mxu1 %v12403_v62  ;;  %v1124_v45 = vld [vmem:[%s14093_s23 + $0x1550] sm:$0xff]  ;;  %v12315_v51 = vcombine.high %v996_v23, %v1000_v39  ;;  %v12314_v57 = vcombine.low %v996_v23, %v1000_v39 }
 0x306   : > { %6556 = vmatmul.mubr.bf16.vlgmr.msra.gmra.mrb[32].mxu0 %v14296_v37  ;;  %v1128_v20 = vld [vmem:[%s14093_s23 + $0x1570] sm:$0xff] }
 0x307   : > { %6597 = vmatmul.mubr.bf16.vlgmr.msra.gmra.mrb[32].mxu1 %v14305_v41  ;;  %6606 = vmatpush1.bf16.msra.mxu0 %v12274_v3  ;;  %v12443_v49 = vcombine.high %v1124_v45, %v1128_v20  ;;  %v1004_v8 = vld [vmem:[%s14093_s23 + $0x1190] sm:$0xff]  ;;  %v12442_v58 = vcombine.low %v1124_v45, %v1128_v20 }
 0x308   : > { %6647 = vmatpush1.bf16.msra.mxu1 %v12402_v4  ;;  %6607 = vmatprep.subr.bf16.mxu0 %v12283_v6  ;;  %v1008_v52 = vld [vmem:[%s14093_s23 + $0x11b0] sm:$0xff] }
 0x309   : > { %6648 = vmatprep.subr.bf16.mxu1 %v12411_v7  ;;  %6637 = vmatprep.mubr.bf16.mxu0 %v14314_v48  ;;  %v1132_v53 = vld [vmem:[%s14093_s23 + $0x1590] sm:$0xff]  ;;  %v12323_v61 = vcombine.high %v1004_v8, %v1008_v52  ;;  %v12322_v13 = vcombine.low %v1004_v8, %v1008_v52 }
 0x30a   : > { %6678 = vmatprep.mubr.bf16.mxu1 %v14321_v50  ;;  %v1136_v56 = vld [vmem:[%s14093_s23 + $0x15b0] sm:$0xff] }
 0x30b   : > { %6608 = vmatpush1.bf16.msra.mxu0 %v12282_v40  ;;  %v12451_v63 = vcombine.high %v1132_v53, %v1136_v56  ;;  %v1012_v0 = vld [vmem:[%s14093_s23 + $0x11d0] sm:$0xff] }
 0x30c   : > { %6649 = vmatpush1.bf16.msra.mxu1 %v12410_v14  ;;  %6609 = vmatprep.subr.bf16.mxu0 %v12291_v43  ;;  %v1016_v1 = vld [vmem:[%s14093_s23 + $0x11f0] sm:$0xff] }
 0x30d   : > { %6650 = vmatprep.subr.bf16.mxu1 %v12419_v18  ;;  %v1140_v6 = vld [vmem:[%s14093_s23 + $0x15d0] sm:$0xff]  ;;  %v12331_v18 = vcombine.high %v1012_v0, %v1016_v1 }
 0x30e   : > { %v1144_v7 = vld [vmem:[%s14093_s23 + $0x15f0] sm:$0xff] }
 0x30f   : > { %6610 = vmatpush1.bf16.msra.mxu0 %v12290_v16  ;;  %v12459_v22 = vcombine.high %v1140_v6, %v1144_v7  ;;  %v1020_v25 = vld [vmem:[%s14093_s23 + $0x1210] sm:$0xff] }
 0x310   : > { %6651 = vmatpush1.bf16.msra.mxu1 %v12418_v27  ;;  %6611 = vmatprep.subr.bf16.mxu0 %v12299_v54  ;;  %v1024_v26 = vld [vmem:[%s14093_s23 + $0x1230] sm:$0xff]  ;;  %v12330_v54 = vcombine.low %v1012_v0, %v1016_v1 }
 0x311   : > { %6652 = vmatprep.subr.bf16.mxu1 %v12427_v29  ;;  %v1148_v16 = vld [vmem:[%s14093_s23 + $0x1610] sm:$0xff]  ;;  %v12458_v29 = vcombine.low %v1140_v6, %v1144_v7  ;;  %v12339_v33 = vcombine.high %v1020_v25, %v1024_v26 }
 0x312   : > { %v1152_v27 = vld [vmem:[%s14093_s23 + $0x1630] sm:$0xff] }
 0x313   : > { %6612 = vmatpush1.bf16.msra.mxu0 %v12298_v35  ;;  %v12467_v31 = vcombine.high %v1148_v16, %v1152_v27  ;;  %v1028_v32 = vld [vmem:[%s14093_s23 + $0x1250] sm:$0xff] }
 0x314   : > { %6653 = vmatpush1.bf16.msra.mxu1 %v12426_v38  ;;  %6613 = vmatprep.subr.bf16.mxu0 %v12307_v44  ;;  %v1032_v34 = vld [vmem:[%s14093_s23 + $0x1270] sm:$0xff]  ;;  %v12338_v44 = vcombine.low %v1020_v25, %v1024_v26 }
 0x315   : > { %6654 = vmatprep.subr.bf16.mxu1 %v12435_v36  ;;  %v1156_v35 = vld [vmem:[%s14093_s23 + $0x1650] sm:$0xff]  ;;  %v12466_v36 = vcombine.low %v1148_v16, %v1152_v27  ;;  %v12347_v23 = vcombine.high %v1028_v32, %v1032_v34 }
 0x316   : > { %v1160_v38 = vld [vmem:[%s14093_s23 + $0x1670] sm:$0xff] }
 0x317   : > { %6614 = vmatpush1.bf16.msra.mxu0 %v12306_v46  ;;  %v12475_v39 = vcombine.high %v1156_v35, %v1160_v38  ;;  %v1036_v45 = vld [vmem:[%s14093_s23 + $0x1290] sm:$0xff] }
 0x318   : > { %6655 = vmatpush1.bf16.msra.mxu1 %v12434_v47  ;;  %6615 = vmatprep.subr.bf16.mxu0 %v12315_v51  ;;  %v1040_v20 = vld [vmem:[%s14093_s23 + $0x12b0] sm:$0xff]  ;;  %v12346_v51 = vcombine.low %v1028_v32, %v1032_v34 }
 0x319   : > { %v6311_v62 = vpop.f32.mrb[20].mxu0  ;;  %6656 = vmatprep.subr.bf16.mxu1 %v12443_v49  ;;  %v1164_v46 = vld [vmem:[%s14093_s23 + $0x1690] sm:$0xff]  ;;  %v12474_v49 = vcombine.low %v1156_v35, %v1160_v38  ;;  %v12355_v8 = vcombine.high %v1036_v45, %v1040_v20 }
 0x31a   : > { %v6312_v2 = vadd.f32 %v6311_v62, %v14797_v24  ;;  %v6352_v3 = vpop.f32.mrb[20].mxu1  ;;  %v6313_v4 = vpop.f32.mrb[21].mxu0  ;;  %v12450_v24 = vcombine.low %v1132_v53, %v1136_v56  ;;  %v1168_v47 = vld [vmem:[%s14093_s23 + $0x16b0] sm:$0xff] }
 0x31b   : > { %v6314_v10 = vadd.f32 %v6313_v4, %v14799_v55  ;;  %v6354_v11 = vpop.f32.mrb[21].mxu1  ;;  %v6315_v12 = vpop.f32.mrb[22].mxu0  ;;  %6616 = vmatpush1.bf16.msra.mxu0 %v12314_v57  ;;  %v12483_v52 = vcombine.high %v1164_v46, %v1168_v47  ;;  %v1044_v53 = vld [vmem:[%s14093_s23 + $0x12d0] sm:$0xff]  ;;  %v12482_v62 = vcombine.low %v1164_v46, %v1168_v47  ;;  %v445_v46 = vld [vmem:[%s14093_s23 + $0x18] sm:$0xff] }
 0x31c   : > { %v14871_v40 = vadd.f32 %v6352_v3, %v6312_v2  ;;  %v6356_v14 = vpop.f32.mrb[22].mxu1  ;;  %6657 = vmatpush1.bf16.msra.mxu1 %v12442_v58  ;;  %v6316_v43 = vpop.f32.mrb[23].mxu0  ;;  %6617 = vmatprep.subr.bf16.mxu0 %v12323_v61  ;;  %v1048_v56 = vld [vmem:[%s14093_s23 + $0x12f0] sm:$0xff]  ;;  %v12354_v61 = vcombine.low %v1036_v45, %v1040_v20  ;;  %v449_v47 = vld [vmem:[%s14093_s23 + $0x38] sm:$0xff] }
 0x31d   : > { %v14873_v19 = vadd.f32 %v6354_v11, %v6314_v10  ;;  %v6357_v55 = vpop.f32.mrb[23].mxu1  ;;  %6658 = vmatprep.subr.bf16.mxu1 %v12451_v63  ;;  %v1172_v57 = vld [vmem:[%s14093_s23 + $0x16d0] sm:$0xff]  ;;  %v12363_v63 = vcombine.high %v1044_v53, %v1048_v56  ;;  %v12362_v6 = vcombine.low %v1044_v53, %v1048_v56 }
 0x31e   : > { %v1176_v58 = vld [vmem:[%s14093_s23 + $0x16f0] sm:$0xff] }
 0x31f   : > { %6618 = vmatpush1.bf16.msra.mxu0 %v12322_v13  ;;  %v12491_v0 = vcombine.high %v1172_v57, %v1176_v58  ;;  %v1052_v1 = vld [vmem:[%s14093_s23 + $0x1310] sm:$0xff]  ;;  %v12490_v7 = vcombine.low %v1172_v57, %v1176_v58  ;;  %v453_v57 = vld [vmem:[%s14093_s23 + $0x58] sm:$0xff] }
 0x320   : > { %6659 = vmatpush1.bf16.msra.mxu1 %v12450_v24  ;;  %6619 = vmatprep.subr.bf16.mxu0 %v12331_v18  ;;  %v1056_v2 = vld [vmem:[%s14093_s23 + $0x1330] sm:$0xff]  ;;  %v457_v58 = vld [vmem:[%s14093_s23 + $0x78] sm:$0xff] }
 0x321   : > { %6660 = vmatprep.subr.bf16.mxu1 %v12459_v22  ;;  %v1180_v3 = vld [vmem:[%s14093_s23 + $0x1710] sm:$0xff]  ;;  %v12371_v10 = vcombine.high %v1052_v1, %v1056_v2  ;;  %v12370_v24 = vcombine.low %v1052_v1, %v1056_v2 }
 0x322   : > { %v1184_v4 = vld [vmem:[%s14093_s23 + $0x1730] sm:$0xff] }
 0x323   : > { %6620 = vmatpush1.bf16.msra.mxu0 %v12330_v54  ;;  %v12499_v11 = vcombine.high %v1180_v3, %v1184_v4  ;;  %v1060_v12 = vld [vmem:[%s14093_s23 + $0x1350] sm:$0xff]  ;;  %v12498_v18 = vcombine.low %v1180_v3, %v1184_v4  ;;  %v461_v3 = vld [vmem:[%s14093_s23 + $0x98] sm:$0xff] }
 0x324   : > { %6661 = vmatpush1.bf16.msra.mxu1 %v12458_v29  ;;  %6621 = vmatprep.subr.bf16.mxu0 %v12339_v33  ;;  %v1064_v13 = vld [vmem:[%s14093_s23 + $0x1370] sm:$0xff]  ;;  %v465_v4 = vld [vmem:[%s14093_s23 + $0xb8] sm:$0xff] }
 0x325   : > { %6662 = vmatprep.subr.bf16.mxu1 %v12467_v31  ;;  %v1188_v14 = vld [vmem:[%s14093_s23 + $0x1750] sm:$0xff]  ;;  %v12379_v55 = vcombine.high %v1060_v12, %v1064_v13  ;;  %v12378_v54 = vcombine.low %v1060_v12, %v1064_v13 }
 0x326   : > { %v1192_v43 = vld [vmem:[%s14093_s23 + $0x1770] sm:$0xff] }
 0x327   : > { %6622 = vmatpush1.bf16.msra.mxu0 %v12338_v44  ;;  %v12507_v22 = vcombine.high %v1188_v14, %v1192_v43  ;;  %v1068_v25 = vld [vmem:[%s14093_s23 + $0x1390] sm:$0xff]  ;;  %v12506_v29 = vcombine.low %v1188_v14, %v1192_v43  ;;  %v469_v14 = vld [vmem:[%s14093_s23 + $0xd8] sm:$0xff] }
 0x328   : > { %6663 = vmatpush1.bf16.msra.mxu1 %v12466_v36  ;;  %6623 = vmatprep.subr.bf16.mxu0 %v12347_v23  ;;  %v1072_v26 = vld [vmem:[%s14093_s23 + $0x13b0] sm:$0xff]  ;;  %v473_v43 = vld [vmem:[%s14093_s23 + $0xf8] sm:$0xff] }
 0x329   : > { %6664 = vmatprep.subr.bf16.mxu1 %v12475_v39  ;;  %v1196_v16 = vld [vmem:[%s14093_s23 + $0x1790] sm:$0xff]  ;;  %v12387_v33 = vcombine.high %v1068_v25, %v1072_v26  ;;  %v12386_v44 = vcombine.low %v1068_v25, %v1072_v26 }
 0x32a   : > { %v1200_v27 = vld [vmem:[%s14093_s23 + $0x17b0] sm:$0xff] }
 0x32b   : > { %6624 = vmatpush1.bf16.msra.mxu0 %v12346_v51  ;;  %v12515_v31 = vcombine.high %v1196_v16, %v1200_v27  ;;  %v1076_v32 = vld [vmem:[%s14093_s23 + $0x13d0] sm:$0xff]  ;;  %v12514_v36 = vcombine.low %v1196_v16, %v1200_v27  ;;  %v477_v16 = vld [vmem:[%s14093_s23 + $0x118] sm:$0xff] }
 0x32c   : > { %6665 = vmatpush1.bf16.msra.mxu1 %v12474_v49  ;;  %6625 = vmatprep.subr.bf16.mxu0 %v12355_v8  ;;  %v1080_v34 = vld [vmem:[%s14093_s23 + $0x13f0] sm:$0xff]  ;;  %v481_v27 = vld [vmem:[%s14093_s23 + $0x138] sm:$0xff] }
 0x32d   : > { %6666 = vmatprep.subr.bf16.mxu1 %v12483_v52  ;;  %v1204_v35 = vld [vmem:[%s14093_s23 + $0x17d0] sm:$0xff]  ;;  %v12395_v23 = vcombine.high %v1076_v32, %v1080_v34  ;;  %v12394_v51 = vcombine.low %v1076_v32, %v1080_v34  ;;  %v11765_v52 = vcombine.high %v445_v46, %v449_v47  ;;  %v485_v34 = vld [vmem:[%s14093_s23 + $0x158] sm:$0xff] }
 0x32e   : > { %v1208_v38 = vld [vmem:[%s14093_s23 + $0x17f0] sm:$0xff] }
 0x32f   : > { %6626 = vmatpush1.bf16.msra.mxu0 %v12354_v61  ;;  %v12523_v39 = vcombine.high %v1204_v35, %v1208_v38  ;;  %v1212_v45 = vld [vmem:[%s14093_s23 + $0x1810] sm:$0xff]  ;;  %v12522_v49 = vcombine.low %v1204_v35, %v1208_v38  ;;  %v489_v35 = vld [vmem:[%s14093_s23 + $0x178] sm:$0xff] }
 0x330   : > { %6667 = vmatpush1.bf16.msra.mxu1 %v12482_v62  ;;  %6627 = vmatprep.subr.bf16.mxu0 %v12363_v63  ;;  %v1216_v20 = vld [vmem:[%s14093_s23 + $0x1830] sm:$0xff]  ;;  %v11764_v62 = vcombine.low %v445_v46, %v449_v47  ;;  %v497_v46 = vld [vmem:[%s14093_s23 + $0x1b8] sm:$0xff] }
 0x331   : > { %6668 = vmatprep.subr.bf16.mxu1 %v12491_v0  ;;  %v12531_v8 = vcombine.high %v1212_v45, %v1216_v20  ;;  %v1220_v53 = vld [vmem:[%s14093_s23 + $0x1850] sm:$0xff]  ;;  %v12530_v61 = vcombine.low %v1212_v45, %v1216_v20  ;;  %v11773_v0 = vcombine.high %v453_v57, %v457_v58  ;;  %v493_v20 = vld [vmem:[%s14093_s23 + $0x198] sm:$0xff] }
 0x332   : > { %v1224_v56 = vld [vmem:[%s14093_s23 + $0x1870] sm:$0xff] }
 0x333   : > { %6628 = vmatpush1.bf16.msra.mxu0 %v12362_v6  ;;  %v12539_v63 = vcombine.high %v1220_v53, %v1224_v56  ;;  %v1228_v1 = vld [vmem:[%s14093_s23 + $0x1890] sm:$0xff]  ;;  %v12538_v6 = vcombine.low %v1220_v53, %v1224_v56 }
 0x334   : > { %6669 = vmatpush1.bf16.msra.mxu1 %v12490_v7  ;;  %6629 = vmatprep.subr.bf16.mxu0 %v12371_v10  ;;  %v1232_v2 = vld [vmem:[%s14093_s23 + $0x18b0] sm:$0xff]  ;;  %v11772_v7 = vcombine.low %v453_v57, %v457_v58 }
 0x335   : > { %6670 = vmatprep.subr.bf16.mxu1 %v12499_v11  ;;  %v12547_v10 = vcombine.high %v1228_v1, %v1232_v2  ;;  %v11781_v11 = vcombine.high %v461_v3, %v465_v4  ;;  %v1236_v12 = vld [vmem:[%s14093_s23 + $0x18d0] sm:$0xff] }
 0x336   : > { %v1240_v13 = vld [vmem:[%s14093_s23 + $0x18f0] sm:$0xff] }
 0x337   : > { %6630 = vmatpush1.bf16.msra.mxu0 %v12370_v24  ;;  %v12546_v24 = vcombine.low %v1228_v1, %v1232_v2  ;;  %v1244_v25 = vld [vmem:[%s14093_s23 + $0x1910] sm:$0xff] }
 0x338   : > { %6671 = vmatpush1.bf16.msra.mxu1 %v12498_v18  ;;  %6631 = vmatprep.subr.bf16.mxu0 %v12379_v55  ;;  %v11780_v18 = vcombine.low %v461_v3, %v465_v4  ;;  %v12555_v55 = vcombine.high %v1236_v12, %v1240_v13  ;;  %v1248_v26 = vld [vmem:[%s14093_s23 + $0x1930] sm:$0xff] }
 0x339   : > { %6672 = vmatprep.subr.bf16.mxu1 %v12507_v22  ;;  %v11789_v22 = vcombine.high %v469_v14, %v473_v43  ;;  %v1256_v32 = vld [vmem:[%s14093_s23 + $0x1970] sm:$0xff]  ;;  %v12562_v38 = vcombine.low %v1244_v25, %v1248_v26 }
 0x33a   : > { %v1264_v45 = vld [vmem:[%s14093_s23 + $0x19b0] sm:$0xff] }
 0x33b   : > { %6632 = vmatpush1.bf16.msra.mxu0 %v12378_v54  ;;  %v12554_v54 = vcombine.low %v1236_v12, %v1240_v13  ;;  %v1268_v53 = vld [vmem:[%s14093_s23 + $0x19d0] sm:$0xff] }
 0x33c   : > { %6673 = vmatpush1.bf16.msra.mxu1 %v12506_v29  ;;  %6633 = vmatprep.subr.bf16.mxu0 %v12387_v33  ;;  %v12563_v29 = vcombine.high %v1244_v25, %v1248_v26  ;;  %v11797_v33 = vcombine.high %v477_v16, %v481_v27  ;;  %v1272_v56 = vld [vmem:[%s14093_s23 + $0x19f0] sm:$0xff] }
 0x33d   : > { %6674 = vmatprep.subr.bf16.mxu1 %v12515_v31  ;;  %v1252_v31 = vld [vmem:[%s14093_s23 + $0x1950] sm:$0xff]  ;;  %v12587_v12 = vcombine.high %v1268_v53, %v1272_v56  ;;  %v12586_v26 = vcombine.low %v1268_v53, %v1272_v56 }
 0x33e   : > { %v12570_v47 = vcombine.low %v1252_v31, %v1256_v32 }
 0x33f   : > { %6634 = vmatpush1.bf16.msra.mxu0 %v12386_v44  ;;  %v11796_v44 = vcombine.low %v477_v16, %v481_v27 }
 0x340   : > { %6675 = vmatpush1.bf16.msra.mxu1 %v12514_v36  ;;  %6635 = vmatprep.subr.bf16.mxu0 %v12395_v23  ;;  %v12571_v36 = vcombine.high %v1252_v31, %v1256_v32  ;;  %v11805_v23 = vcombine.high %v485_v34, %v489_v35  ;;  %v521_v31 = vld [vmem:[%s14093_s23 + $0x278] sm:$0xff] }
 0x341   : > { %6676 = vmatprep.subr.bf16.mxu1 %v12523_v39  ;;  %v1260_v39 = vld [vmem:[%s14093_s23 + $0x1990] sm:$0xff] }
 0x342   : > { %v12578_v4 = vcombine.low %v1260_v39, %v1264_v45 }
 0x343   : > { %6636 = vmatpush1.bf16.msra.mxu0 %v12394_v51  ;;  %v11804_v51 = vcombine.low %v485_v34, %v489_v35 }
 0x344   : > { %6677 = vmatpush1.bf16.msra.mxu1 %v12522_v49  ;;  %6687 = vmatprep.subr.bf16.mxu0 %v12531_v8  ;;  %v12579_v49 = vcombine.high %v1260_v39, %v1264_v45  ;;  %v529_v39 = vld [vmem:[%s14093_s23 + $0x2b8] sm:$0xff] }
 0x345   : > { %6728 = vmatprep.subr.bf16.mxu1 %v11765_v52  ;;  %v11813_v52 = vcombine.high %v493_v20, %v497_v46 }
 0x346   : > { %6638 = vmatmul.mubr.bf16.vlgmr.msra.gmra.mrb[36].mxu0 %v14386_v5 }
 0x347   : > { %6679 = vmatmul.mubr.bf16.vlgmr.msra.gmra.mrb[36].mxu1 %v14395_v9  ;;  %6688 = vmatpush1.bf16.msra.mxu0 %v12530_v61 }
 0x348   : > { %6729 = vmatpush1.bf16.msra.mxu1 %v11764_v62  ;;  %6689 = vmatprep.subr.bf16.mxu0 %v12539_v63  ;;  %v501_v62 = vld [vmem:[%s14093_s23 + $0x1d8] sm:$0xff] }
 0x349   : > { %6730 = vmatprep.subr.bf16.mxu1 %v11773_v0  ;;  %6719 = vmatprep.mubr.bf16.mxu0 %v14401_v15  ;;  %v505_v63 = vld [vmem:[%s14093_s23 + $0x1f8] sm:$0xff]  ;;  %v429_v0 = vld [vmem:[#allocation2 + $0x10] sm:$0xff] }
 0x34a   : > { %6760 = vmatprep.mubr.bf16.mxu1 %v14156_v59  ;;  %v11788_v59 = vcombine.low %v469_v14, %v473_v43  ;;  %v1276_v43 = vld [vmem:[%s14093_s23 + $0x1a10] sm:$0xff]  ;;  %v11820_v16 = vcombine.low %v501_v62, %v505_v63 }
 0x34b   : > { %6690 = vmatpush1.bf16.msra.mxu0 %v12538_v6 }
 0x34c   : > { %6731 = vmatpush1.bf16.msra.mxu1 %v11772_v7  ;;  %6691 = vmatprep.subr.bf16.mxu0 %v12547_v10  ;;  %v430_v7 = vld [vmem:[#allocation2 + $0x18] sm:$0xff] }
 0x34d   : > { %6732 = vmatprep.subr.bf16.mxu1 %v11781_v11  ;;  %v11812_v11 = vcombine.low %v493_v20, %v497_v46 }
 0x34f   : > { %6692 = vmatpush1.bf16.msra.mxu0 %v12546_v24  ;;  %v1280_v24 = vld [vmem:[%s14093_s23 + $0x1a30] sm:$0xff] }
 0x350   : > { %6733 = vmatpush1.bf16.msra.mxu1 %v11780_v18  ;;  %6693 = vmatprep.subr.bf16.mxu0 %v12555_v55  ;;  %v509_v55 = vld [vmem:[%s14093_s23 + $0x218] sm:$0xff]  ;;  %v12595_v27 = vcombine.high %v1276_v43, %v1280_v24  ;;  %v12594_v32 = vcombine.low %v1276_v43, %v1280_v24  ;;  %v1328_v43 = vld [vmem:[%s14093_s23 + $0x1bb0] sm:$0xff] }
 0x351   : > { %6734 = vmatprep.subr.bf16.mxu1 %v11789_v22  ;;  %v513_v22 = vld [vmem:[%s14093_s23 + $0x238] sm:$0xff] }
 0x352   : > { %v11828_v34 = vcombine.low %v509_v55, %v513_v22  ;;  %v557_v24 = vld [vmem:[%s14093_s23 + $0x398] sm:$0xff] }
 0x353   : > { %6694 = vmatpush1.bf16.msra.mxu0 %v12554_v54  ;;  %v11829_v54 = vcombine.high %v509_v55, %v513_v22 }
 0x354   : > { %6735 = vmatpush1.bf16.msra.mxu1 %v11788_v59  ;;  %6695 = vmatprep.subr.bf16.mxu0 %v12563_v29  ;;  %v1284_v59 = vld [vmem:[%s14093_s23 + $0x1a50] sm:$0xff] }
 0x355   : > { %6736 = vmatprep.subr.bf16.mxu1 %v11797_v33  ;;  %v1288_v29 = vld [vmem:[%s14093_s23 + $0x1a70] sm:$0xff]  ;;  %v517_v33 = vld [vmem:[%s14093_s23 + $0x258] sm:$0xff] }
 0x356   : > { %v12603_v35 = vcombine.high %v1284_v59, %v1288_v29  ;;  %v12602_v45 = vcombine.low %v1284_v59, %v1288_v29  ;;  %v11836_v20 = vcombine.low %v517_v33, %v521_v31  ;;  %v569_v59 = vld [vmem:[%s14093_s23 + $0x3f8] sm:$0xff] }
 0x357   : > { %6696 = vmatpush1.bf16.msra.mxu0 %v12562_v38  ;;  %v11837_v38 = vcombine.high %v517_v33, %v521_v31 }
 0x358   : > { %6737 = vmatpush1.bf16.msra.mxu1 %v11796_v44  ;;  %6697 = vmatprep.subr.bf16.mxu0 %v12571_v36  ;;  %v1292_v44 = vld [vmem:[%s14093_s23 + $0x1a90] sm:$0xff] }
 0x359   : > { %v6393_v8 = vpop.f32.mrb[24].mxu0  ;;  %6738 = vmatprep.subr.bf16.mxu1 %v11805_v23  ;;  %v1296_v36 = vld [vmem:[%s14093_s23 + $0x1ab0] sm:$0xff]  ;;  %v525_v23 = vld [vmem:[%s14093_s23 + $0x298] sm:$0xff] }
 0x35a   : > { %v6394_v57 = vadd.f32 %v6393_v8, %v14871_v40  ;;  %v6434_v58 = vpop.f32.mrb[24].mxu1  ;;  %v6395_v61 = vpop.f32.mrb[25].mxu0  ;;  %v12611_v46 = vcombine.high %v1292_v44, %v1296_v36  ;;  %v533_v8 = vld [vmem:[%s14093_s23 + $0x2d8] sm:$0xff]  ;;  %v12610_v53 = vcombine.low %v1292_v44, %v1296_v36  ;;  %v11844_v56 = vcombine.low %v525_v23, %v529_v39 }
 0x35b   : > { %v6396_v1 = vadd.f32 %v6395_v61, %v14873_v19  ;;  %v6436_v2 = vpop.f32.mrb[25].mxu1  ;;  %v6397_v3 = vpop.f32.mrb[26].mxu0  ;;  %6698 = vmatpush1.bf16.msra.mxu0 %v12570_v47  ;;  %v11821_v19 = vcombine.high %v501_v62, %v505_v63  ;;  %v11845_v47 = vcombine.high %v525_v23, %v529_v39  ;;  %v1308_v61 = vld [vmem:[%s14093_s23 + $0x1b10] sm:$0xff]  ;;  %v541_v63 = vld [vmem:[%s14093_s23 + $0x318] sm:$0xff] }
 0x35c   : > { %v6435_v6 = vadd.f32 %v6434_v58, %v6394_v57  ;;  %v6438_v10 = vpop.f32.mrb[26].mxu1  ;;  %6739 = vmatpush1.bf16.msra.mxu1 %v11804_v51  ;;  %v6398_v40 = vpop.f32.mrb[27].mxu0  ;;  %6699 = vmatprep.subr.bf16.mxu0 %v12579_v49  ;;  %v1300_v51 = vld [vmem:[%s14093_s23 + $0x1ad0] sm:$0xff]  ;;  %v705_v44 = vld [vmem:[%s14093_s23 + $0x838] sm:$0xff] }
 0x35d   : > { %v6437_v13 = vadd.f32 %v6436_v2, %v6396_v1  ;;  %v6439_v14 = vpop.f32.mrb[27].mxu1  ;;  %6740 = vmatprep.subr.bf16.mxu1 %v11813_v52  ;;  %v1304_v49 = vld [vmem:[%s14093_s23 + $0x1af0] sm:$0xff]  ;;  %v537_v52 = vld [vmem:[%s14093_s23 + $0x2f8] sm:$0xff] }
 0x35e   : > { %v7017_v18 = vadd.f32 %v6435_v6, %v429_v0  ;;  %v12619_v57 = vcombine.high %v1300_v51, %v1304_v49  ;;  %v11853_v58 = vcombine.high %v533_v8, %v537_v52  ;;  %v1312_v62 = vld [vmem:[%s14093_s23 + $0x1b30] sm:$0xff]  ;;  %v545_v0 = vld [vmem:[%s14093_s23 + $0x338] sm:$0xff]  ;;  %v12618_v1 = vcombine.low %v1300_v51, %v1304_v49 }
 0x35f   : > { %v7018_v25 = vadd.f32 %v6437_v13, %v430_v7  ;;  %6700 = vmatpush1.bf16.msra.mxu0 %v12578_v4  ;;  %v11852_v2 = vcombine.low %v533_v8, %v537_v52  ;;  %v12627_v3 = vcombine.high %v1308_v61, %v1312_v62  ;;  %v11861_v4 = vcombine.high %v541_v63, %v545_v0  ;;  %v1316_v6 = vld [vmem:[%s14093_s23 + $0x1b50] sm:$0xff]  ;;  %v549_v10 = vld [vmem:[%s14093_s23 + $0x358] sm:$0xff] }
 0x360   : > { %7025 = vst [vmem:[#allocation2 + $0x10] sm:$0xff] %v7017_v18  ;;  %6741 = vmatpush1.bf16.msra.mxu1 %v11812_v11  ;;  %6701 = vmatprep.subr.bf16.mxu0 %v12587_v12  ;;  %v1320_v7 = vld [vmem:[%s14093_s23 + $0x1b70] sm:$0xff]  ;;  %v553_v40 = vld [vmem:[%s14093_s23 + $0x378] sm:$0xff]  ;;  %v12626_v11 = vcombine.low %v1308_v61, %v1312_v62  ;;  %v11860_v12 = vcombine.low %v541_v63, %v545_v0 }
 0x361   : > { %7026 = vst [vmem:[#allocation2 + $0x18] sm:$0xff] %v7018_v25  ;;  %6742 = vmatprep.subr.bf16.mxu1 %v11821_v19  ;;  %v12635_v13 = vcombine.high %v1316_v6, %v1320_v7  ;;  %v11869_v14 = vcombine.high %v549_v10, %v553_v40  ;;  %v1324_v19 = vld [vmem:[%s14093_s23 + $0x1b90] sm:$0xff]  ;;  %v561_v18 = vld [vmem:[%s14093_s23 + $0x3b8] sm:$0xff]  ;;  %v12634_v55 = vcombine.low %v1316_v6, %v1320_v7 }
 0x362   : > { %v11868_v22 = vcombine.low %v549_v10, %v553_v40  ;;  %v12643_v25 = vcombine.high %v1324_v19, %v1328_v43  ;;  %v12642_v29 = vcombine.low %v1324_v19, %v1328_v43  ;;  %v11876_v33 = vcombine.low %v557_v24, %v561_v18  ;;  %v713_v51 = vld [vmem:[%s14093_s23 + $0x878] sm:$0xff] }
 0x363   : > { %6702 = vmatpush1.bf16.msra.mxu0 %v12586_v26  ;;  %v11877_v26 = vcombine.high %v557_v24, %v561_v18  ;;  %v721_v61 = vld [vmem:[%s14093_s23 + $0x8b8] sm:$0xff] }
 0x364   : > { %6743 = vmatpush1.bf16.msra.mxu1 %v11820_v16  ;;  %6703 = vmatprep.subr.bf16.mxu0 %v12595_v27  ;;  %v1332_v16 = vld [vmem:[%s14093_s23 + $0x1bd0] sm:$0xff]  ;;  %v729_v6 = vld [vmem:[%s14093_s23 + $0x8f8] sm:$0xff] }
 0x365   : > { %6744 = vmatprep.subr.bf16.mxu1 %v11829_v54  ;;  %v1336_v27 = vld [vmem:[%s14093_s23 + $0x1bf0] sm:$0xff]  ;;  %v565_v54 = vld [vmem:[%s14093_s23 + $0x3d8] sm:$0xff] }
 0x366   : > { %v12651_v31 = vcombine.high %v1332_v16, %v1336_v27  ;;  %v12650_v36 = vcombine.low %v1332_v16, %v1336_v27  ;;  %v11884_v23 = vcombine.low %v565_v54, %v569_v59  ;;  %v613_v24 = vld [vmem:[%s14093_s23 + $0x558] sm:$0xff] }
 0x367   : > { %6704 = vmatpush1.bf16.msra.mxu0 %v12594_v32  ;;  %v11885_v32 = vcombine.high %v565_v54, %v569_v59  ;;  %v617_v18 = vld [vmem:[%s14093_s23 + $0x578] sm:$0xff] }
 0x368   : > { %6745 = vmatpush1.bf16.msra.mxu1 %v11828_v34  ;;  %6705 = vmatprep.subr.bf16.mxu0 %v12603_v35  ;;  %v573_v34 = vld [vmem:[%s14093_s23 + $0x418] sm:$0xff]  ;;  %v11933_v16 = vcombine.high %v613_v24, %v617_v18 }
 0x369   : > { %6746 = vmatprep.subr.bf16.mxu1 %v11837_v38  ;;  %v577_v35 = vld [vmem:[%s14093_s23 + $0x438] sm:$0xff] }
 0x36a   : > { %v701_v38 = vld [vmem:[%s14093_s23 + $0x818] sm:$0xff]  ;;  %v11893_v39 = vcombine.high %v573_v34, %v577_v35  ;;  %v11892_v49 = vcombine.low %v573_v34, %v577_v35 }
 0x36b   : > { %6706 = vmatpush1.bf16.msra.mxu0 %v12602_v45  ;;  %v12021_v45 = vcombine.high %v701_v38, %v705_v44  ;;  %v12020_v8 = vcombine.low %v701_v38, %v705_v44  ;;  %v621_v54 = vld [vmem:[%s14093_s23 + $0x598] sm:$0xff] }
 0x36c   : > { %6747 = vmatpush1.bf16.msra.mxu1 %v11836_v20  ;;  %6707 = vmatprep.subr.bf16.mxu0 %v12611_v46  ;;  %v581_v20 = vld [vmem:[%s14093_s23 + $0x458] sm:$0xff] }
 0x36d   : > { %6748 = vmatprep.subr.bf16.mxu1 %v11845_v47  ;;  %v585_v46 = vld [vmem:[%s14093_s23 + $0x478] sm:$0xff] }
 0x36e   : > { %v709_v47 = vld [vmem:[%s14093_s23 + $0x858] sm:$0xff]  ;;  %v11901_v52 = vcombine.high %v581_v20, %v585_v46  ;;  %v11900_v62 = vcombine.low %v581_v20, %v585_v46 }
 0x36f   : > { %6708 = vmatpush1.bf16.msra.mxu0 %v12610_v53  ;;  %v12029_v53 = vcombine.high %v709_v47, %v713_v51  ;;  %v12028_v63 = vcombine.low %v709_v47, %v713_v51  ;;  %v625_v59 = vld [vmem:[%s14093_s23 + $0x5b8] sm:$0xff] }
 0x370   : > { %6749 = vmatpush1.bf16.msra.mxu1 %v11844_v56  ;;  %6709 = vmatprep.subr.bf16.mxu0 %v12619_v57  ;;  %v589_v56 = vld [vmem:[%s14093_s23 + $0x498] sm:$0xff]  ;;  %v11941_v34 = vcombine.high %v621_v54, %v625_v59 }
 0x371   : > { %6750 = vmatprep.subr.bf16.mxu1 %v11853_v58  ;;  %v593_v57 = vld [vmem:[%s14093_s23 + $0x4b8] sm:$0xff] }
 0x372   : > { %v717_v58 = vld [vmem:[%s14093_s23 + $0x898] sm:$0xff]  ;;  %v11909_v0 = vcombine.high %v589_v56, %v593_v57 }
 0x373   : > { %6710 = vmatpush1.bf16.msra.mxu0 %v12618_v1  ;;  %v12037_v1 = vcombine.high %v717_v58, %v721_v61  ;;  %v12036_v7 = vcombine.low %v717_v58, %v721_v61  ;;  %v629_v44 = vld [vmem:[%s14093_s23 + $0x5d8] sm:$0xff] }
 0x374   : > { %6751 = vmatpush1.bf16.msra.mxu1 %v11852_v2  ;;  %6711 = vmatprep.subr.bf16.mxu0 %v12627_v3  ;;  %v597_v2 = vld [vmem:[%s14093_s23 + $0x4d8] sm:$0xff] }
 0x375   : > { %6752 = vmatprep.subr.bf16.mxu1 %v11861_v4  ;;  %v601_v3 = vld [vmem:[%s14093_s23 + $0x4f8] sm:$0xff] }
 0x376   : > { %v725_v4 = vld [vmem:[%s14093_s23 + $0x8d8] sm:$0xff]  ;;  %v11917_v10 = vcombine.high %v597_v2, %v601_v3 }
 0x377   : > { %6712 = vmatpush1.bf16.msra.mxu0 %v12626_v11  ;;  %v12045_v40 = vcombine.high %v725_v4, %v729_v6  ;;  %v605_v11 = vld [vmem:[%s14093_s23 + $0x518] sm:$0xff] }
 0x378   : > { %6753 = vmatpush1.bf16.msra.mxu1 %v11860_v12  ;;  %6713 = vmatprep.subr.bf16.mxu0 %v12635_v13  ;;  %v609_v12 = vld [vmem:[%s14093_s23 + $0x538] sm:$0xff] }
 0x379   : > { %6754 = vmatprep.subr.bf16.mxu1 %v11869_v14  ;;  %v733_v13 = vld [vmem:[%s14093_s23 + $0x918] sm:$0xff]  ;;  %v11916_v14 = vcombine.low %v597_v2, %v601_v3  ;;  %v11925_v19 = vcombine.high %v605_v11, %v609_v12 }
 0x37a   : > { %v761_v20 = vld [vmem:[%s14093_s23 + $0x9f8] sm:$0xff] }
 0x37b   : > { %6714 = vmatpush1.bf16.msra.mxu0 %v12634_v55  ;;  %v741_v55 = vld [vmem:[%s14093_s23 + $0x958] sm:$0xff] }
 0x37c   : > { %6755 = vmatpush1.bf16.msra.mxu1 %v11868_v22  ;;  %6715 = vmatprep.subr.bf16.mxu0 %v12643_v25  ;;  %v745_v22 = vld [vmem:[%s14093_s23 + $0x978] sm:$0xff]  ;;  %v11924_v25 = vcombine.low %v605_v11, %v609_v12 }
 0x37d   : > { %6756 = vmatprep.subr.bf16.mxu1 %v11877_v26  ;;  %v12061_v27 = vcombine.high %v741_v55, %v745_v22 }
 0x37f   : > { %6716 = vmatpush1.bf16.msra.mxu0 %v12642_v29  ;;  %v749_v29 = vld [vmem:[%s14093_s23 + $0x998] sm:$0xff] }
 0x380   : > { %6757 = vmatpush1.bf16.msra.mxu1 %v11876_v33  ;;  %6717 = vmatprep.subr.bf16.mxu0 %v12651_v31  ;;  %v753_v33 = vld [vmem:[%s14093_s23 + $0x9b8] sm:$0xff]  ;;  %v11932_v31 = vcombine.low %v613_v24, %v617_v18 }
 0x381   : > { %6758 = vmatprep.subr.bf16.mxu1 %v11885_v32  ;;  %v12060_v32 = vcombine.low %v741_v55, %v745_v22  ;;  %v12069_v38 = vcombine.high %v749_v29, %v753_v33 }
 0x383   : > { %6718 = vmatpush1.bf16.msra.mxu0 %v12650_v36  ;;  %v633_v36 = vld [vmem:[%s14093_s23 + $0x5f8] sm:$0xff] }
 0x384   : > { %6759 = vmatpush1.bf16.msra.mxu1 %v11884_v23  ;;  %6769 = vmatprep.subr.bf16.mxu0 %v11893_v39  ;;  %v11948_v2 = vcombine.low %v629_v44, %v633_v36 }
 0x385   : > { %6810 = vmatprep.subr.bf16.mxu1 %v12021_v45  ;;  %v757_v45 = vld [vmem:[%s14093_s23 + $0x9d8] sm:$0xff] }
 0x386   : > { %6720 = vmatmul.mubr.bf16.vlgmr.msra.gmra.mrb[40].mxu0 %v14469_v42  ;;  %v12077_v61 = vcombine.high %v757_v45, %v761_v20  ;;  %v12076_v3 = vcombine.low %v757_v45, %v761_v20  ;;  %v681_v45 = vld [vmem:[%s14093_s23 + $0x778] sm:$0xff] }
 0x387   : > { %6761 = vmatmul.mubr.bf16.vlgmr.msra.gmra.mrb[40].mxu1 %v14206_v17  ;;  %6770 = vmatpush1.bf16.msra.mxu0 %v11892_v49  ;;  %v11908_v17 = vcombine.low %v589_v56, %v593_v57  ;;  %v11940_v49 = vcombine.low %v621_v54, %v625_v59  ;;  %v12068_v56 = vcombine.low %v749_v29, %v753_v33  ;;  %v805_v20 = vld [vmem:[%s14093_s23 + $0xb58] sm:$0xff] }
 0x388   : > { %6811 = vmatpush1.bf16.msra.mxu1 %v12020_v8  ;;  %6771 = vmatprep.subr.bf16.mxu0 %v11901_v52  ;;  %v11949_v57 = vcombine.high %v629_v44, %v633_v36 }
 0x389   : > { %6812 = vmatprep.subr.bf16.mxu1 %v12029_v53  ;;  %6801 = vmatprep.mubr.bf16.mxu0 %v14160_v60  ;;  %v737_v60 = vld [vmem:[%s14093_s23 + $0x938] sm:$0xff] }
 0x38a   : > { %6842 = vmatprep.mubr.bf16.mxu1 %v14224_v28  ;;  %v12044_v28 = vcombine.low %v725_v4, %v729_v6  ;;  %v12053_v43 = vcombine.high %v733_v13, %v737_v60  ;;  %v12052_v26 = vcombine.low %v733_v13, %v737_v60 }
 0x38b   : > { %6772 = vmatpush1.bf16.msra.mxu0 %v11900_v62  ;;  %v637_v62 = vld [vmem:[%s14093_s23 + $0x618] sm:$0xff] }
 0x38c   : > { %6813 = vmatpush1.bf16.msra.mxu1 %v12028_v63  ;;  %6773 = vmatprep.subr.bf16.mxu0 %v11909_v0  ;;  %v641_v63 = vld [vmem:[%s14093_s23 + $0x638] sm:$0xff] }
 0x38d   : > { %6814 = vmatprep.subr.bf16.mxu1 %v12037_v1  ;;  %v765_v0 = vld [vmem:[%s14093_s23 + $0xa18] sm:$0xff]  ;;  %v11957_v4 = vcombine.high %v637_v62, %v641_v63  ;;  %v11956_v11 = vcombine.low %v637_v62, %v641_v63 }
 0x38e   : > { %v769_v1 = vld [vmem:[%s14093_s23 + $0xa38] sm:$0xff] }
 0x38f   : > { %6774 = vmatpush1.bf16.msra.mxu0 %v11908_v17  ;;  %v12085_v6 = vcombine.high %v765_v0, %v769_v1  ;;  %v645_v17 = vld [vmem:[%s14093_s23 + $0x658] sm:$0xff]  ;;  %v12084_v12 = vcombine.low %v765_v0, %v769_v1 }
 0x390   : > { %6815 = vmatpush1.bf16.msra.mxu1 %v12036_v7  ;;  %6775 = vmatprep.subr.bf16.mxu0 %v11917_v10  ;;  %v649_v7 = vld [vmem:[%s14093_s23 + $0x678] sm:$0xff] }
 0x391   : > { %6816 = vmatprep.subr.bf16.mxu1 %v12045_v40  ;;  %v773_v10 = vld [vmem:[%s14093_s23 + $0xa58] sm:$0xff]  ;;  %v11965_v13 = vcombine.high %v645_v17, %v649_v7  ;;  %v11964_v24 = vcombine.low %v645_v17, %v649_v7 }
 0x392   : > { %v777_v40 = vld [vmem:[%s14093_s23 + $0xa78] sm:$0xff] }
 0x393   : > { %6776 = vmatpush1.bf16.msra.mxu0 %v11916_v14  ;;  %v12093_v60 = vcombine.high %v773_v10, %v777_v40  ;;  %v653_v14 = vld [vmem:[%s14093_s23 + $0x698] sm:$0xff]  ;;  %v12092_v18 = vcombine.low %v773_v10, %v777_v40 }
 0x394   : > { %6817 = vmatpush1.bf16.msra.mxu1 %v12044_v28  ;;  %6777 = vmatprep.subr.bf16.mxu0 %v11925_v19  ;;  %v657_v28 = vld [vmem:[%s14093_s23 + $0x6b8] sm:$0xff] }
 0x395   : > { %6818 = vmatprep.subr.bf16.mxu1 %v12053_v43  ;;  %v781_v19 = vld [vmem:[%s14093_s23 + $0xa98] sm:$0xff]  ;;  %v11973_v55 = vcombine.high %v653_v14, %v657_v28  ;;  %v11972_v54 = vcombine.low %v653_v14, %v657_v28 }
 0x396   : > { %v785_v43 = vld [vmem:[%s14093_s23 + $0xab8] sm:$0xff] }
 0x397   : > { %6778 = vmatpush1.bf16.msra.mxu0 %v11924_v25  ;;  %v12101_v22 = vcombine.high %v781_v19, %v785_v43  ;;  %v661_v25 = vld [vmem:[%s14093_s23 + $0x6d8] sm:$0xff]  ;;  %v12100_v59 = vcombine.low %v781_v19, %v785_v43 }
 0x398   : > { %6819 = vmatpush1.bf16.msra.mxu1 %v12052_v26  ;;  %6779 = vmatprep.subr.bf16.mxu0 %v11933_v16  ;;  %v665_v26 = vld [vmem:[%s14093_s23 + $0x6f8] sm:$0xff] }
 0x399   : > { %v6475_v35 = vpop.f32.mrb[28].mxu0  ;;  %6820 = vmatprep.subr.bf16.mxu1 %v12061_v27  ;;  %v789_v16 = vld [vmem:[%s14093_s23 + $0xad8] sm:$0xff]  ;;  %v11981_v29 = vcombine.high %v661_v25, %v665_v26 }
 0x39a   : > { %v6516_v23 = vpop.f32.mrb[28].mxu1  ;;  %v6477_v39 = vpop.f32.mrb[29].mxu0  ;;  %v793_v27 = vld [vmem:[%s14093_s23 + $0xaf8] sm:$0xff] }
 0x39b   : > { %v15013_v46 = vadd.f32 %v6516_v23, %v6475_v35  ;;  %v6518_v47 = vpop.f32.mrb[29].mxu1  ;;  %v6479_v51 = vpop.f32.mrb[30].mxu0  ;;  %6780 = vmatpush1.bf16.msra.mxu0 %v11932_v31  ;;  %v12109_v33 = vcombine.high %v789_v16, %v793_v27  ;;  %v669_v31 = vld [vmem:[%s14093_s23 + $0x718] sm:$0xff]  ;;  %v12108_v44 = vcombine.low %v789_v16, %v793_v27 }
 0x39c   : > { %v15015_v8 = vadd.f32 %v6518_v47, %v6477_v39  ;;  %v6520_v52 = vpop.f32.mrb[30].mxu1  ;;  %6821 = vmatpush1.bf16.msra.mxu1 %v12060_v32  ;;  %v6480_v53 = vpop.f32.mrb[31].mxu0  ;;  %6781 = vmatprep.subr.bf16.mxu0 %v11941_v34  ;;  %v673_v32 = vld [vmem:[%s14093_s23 + $0x738] sm:$0xff] }
 0x39d   : > { %v6521_v58 = vpop.f32.mrb[31].mxu1  ;;  %6822 = vmatprep.subr.bf16.mxu1 %v12069_v38  ;;  %v797_v34 = vld [vmem:[%s14093_s23 + $0xb18] sm:$0xff]  ;;  %v11980_v38 = vcombine.low %v661_v25, %v665_v26  ;;  %v11989_v36 = vcombine.high %v669_v31, %v673_v32  ;;  %v11988_v51 = vcombine.low %v669_v31, %v673_v32 }
 0x39e   : > { %v801_v35 = vld [vmem:[%s14093_s23 + $0xb38] sm:$0xff] }
 0x39f   : > { %6782 = vmatpush1.bf16.msra.mxu0 %v11940_v49  ;;  %v12117_v23 = vcombine.high %v797_v34, %v801_v35  ;;  %v677_v39 = vld [vmem:[%s14093_s23 + $0x758] sm:$0xff]  ;;  %v12116_v49 = vcombine.low %v797_v34, %v801_v35 }
 0x3a0   : > { %6823 = vmatpush1.bf16.msra.mxu1 %v12068_v56  ;;  %6783 = vmatprep.subr.bf16.mxu0 %v11949_v57  ;;  %v809_v47 = vld [vmem:[%s14093_s23 + $0xb78] sm:$0xff]  ;;  %v11997_v52 = vcombine.high %v677_v39, %v681_v45  ;;  %v11996_v62 = vcombine.low %v677_v39, %v681_v45 }
 0x3a1   : > { %6824 = vmatprep.subr.bf16.mxu1 %v12077_v61  ;;  %v12125_v53 = vcombine.high %v805_v20, %v809_v47  ;;  %v685_v56 = vld [vmem:[%s14093_s23 + $0x798] sm:$0xff]  ;;  %v12124_v63 = vcombine.low %v805_v20, %v809_v47 }
 0x3a2   : > { %v689_v57 = vld [vmem:[%s14093_s23 + $0x7b8] sm:$0xff] }
 0x3a3   : > { %6784 = vmatpush1.bf16.msra.mxu0 %v11948_v2  ;;  %v813_v58 = vld [vmem:[%s14093_s23 + $0xb98] sm:$0xff]  ;;  %v12005_v0 = vcombine.high %v685_v56, %v689_v57  ;;  %v12004_v17 = vcombine.low %v685_v56, %v689_v57 }
 0x3a4   : > { %6825 = vmatpush1.bf16.msra.mxu1 %v12076_v3  ;;  %6785 = vmatprep.subr.bf16.mxu0 %v11957_v4  ;;  %v817_v61 = vld [vmem:[%s14093_s23 + $0xbb8] sm:$0xff] }
 0x3a5   : > { %6826 = vmatprep.subr.bf16.mxu1 %v12085_v6  ;;  %v12133_v1 = vcombine.high %v813_v58, %v817_v61  ;;  %v693_v2 = vld [vmem:[%s14093_s23 + $0x7d8] sm:$0xff]  ;;  %v12132_v7 = vcombine.low %v813_v58, %v817_v61 }
 0x3a6   : > { %v697_v3 = vld [vmem:[%s14093_s23 + $0x7f8] sm:$0xff] }
 0x3a7   : > { %6786 = vmatpush1.bf16.msra.mxu0 %v11956_v11  ;;  %v821_v4 = vld [vmem:[%s14093_s23 + $0xbd8] sm:$0xff]  ;;  %v12013_v10 = vcombine.high %v693_v2, %v697_v3  ;;  %v12012_v14 = vcombine.low %v693_v2, %v697_v3 }
 0x3a8   : > { %6827 = vmatpush1.bf16.msra.mxu1 %v12084_v12  ;;  %6787 = vmatprep.subr.bf16.mxu0 %v11965_v13  ;;  %v825_v6 = vld [vmem:[%s14093_s23 + $0xbf8] sm:$0xff] }
 0x3a9   : > { %6828 = vmatprep.subr.bf16.mxu1 %v12093_v60  ;;  %v12141_v40 = vcombine.high %v821_v4, %v825_v6  ;;  %v829_v11 = vld [vmem:[%s14093_s23 + $0xc18] sm:$0xff]  ;;  %v12140_v28 = vcombine.low %v821_v4, %v825_v6 }
 0x3aa   : > { %v833_v12 = vld [vmem:[%s14093_s23 + $0xc38] sm:$0xff] }
 0x3ab   : > { %6788 = vmatpush1.bf16.msra.mxu0 %v11964_v24  ;;  %v957_v13 = vld [vmem:[%s14093_s23 + $0x1018] sm:$0xff]  ;;  %v12149_v19 = vcombine.high %v829_v11, %v833_v12  ;;  %v12148_v25 = vcombine.low %v829_v11, %v833_v12 }
 0x3ac   : > { %6829 = vmatpush1.bf16.msra.mxu1 %v12092_v18  ;;  %6789 = vmatprep.subr.bf16.mxu0 %v11973_v55  ;;  %v961_v60 = vld [vmem:[%s14093_s23 + $0x1038] sm:$0xff] }
 0x3ad   : > { %6830 = vmatprep.subr.bf16.mxu1 %v12101_v22  ;;  %v12277_v43 = vcombine.high %v957_v13, %v961_v60  ;;  %v837_v24 = vld [vmem:[%s14093_s23 + $0xc58] sm:$0xff]  ;;  %v12276_v26 = vcombine.low %v957_v13, %v961_v60 }
 0x3ae   : > { %v841_v18 = vld [vmem:[%s14093_s23 + $0xc78] sm:$0xff] }
 0x3af   : > { %6790 = vmatpush1.bf16.msra.mxu0 %v11972_v54  ;;  %v965_v55 = vld [vmem:[%s14093_s23 + $0x1058] sm:$0xff]  ;;  %v12157_v16 = vcombine.high %v837_v24, %v841_v18  ;;  %v12156_v31 = vcombine.low %v837_v24, %v841_v18 }
 0x3b0   : > { %6831 = vmatpush1.bf16.msra.mxu1 %v12100_v59  ;;  %6791 = vmatprep.subr.bf16.mxu0 %v11981_v29  ;;  %v969_v22 = vld [vmem:[%s14093_s23 + $0x1078] sm:$0xff] }
 0x3b1   : > { %6832 = vmatprep.subr.bf16.mxu1 %v12109_v33  ;;  %v12285_v27 = vcombine.high %v965_v55, %v969_v22  ;;  %v845_v54 = vld [vmem:[%s14093_s23 + $0xc98] sm:$0xff]  ;;  %v12284_v32 = vcombine.low %v965_v55, %v969_v22 }
 0x3b2   : > { %v849_v59 = vld [vmem:[%s14093_s23 + $0xcb8] sm:$0xff] }
 0x3b3   : > { %6792 = vmatpush1.bf16.msra.mxu0 %v11980_v38  ;;  %v973_v29 = vld [vmem:[%s14093_s23 + $0x1098] sm:$0xff]  ;;  %v12165_v34 = vcombine.high %v845_v54, %v849_v59 }
 0x3b4   : > { %6833 = vmatpush1.bf16.msra.mxu1 %v12108_v44  ;;  %6793 = vmatprep.subr.bf16.mxu0 %v11989_v36  ;;  %v977_v33 = vld [vmem:[%s14093_s23 + $0x10b8] sm:$0xff] }
 0x3b5   : > { %6834 = vmatprep.subr.bf16.mxu1 %v12117_v23  ;;  %v12293_v35 = vcombine.high %v973_v29, %v977_v33  ;;  %v853_v38 = vld [vmem:[%s14093_s23 + $0xcd8] sm:$0xff]  ;;  %v12292_v23 = vcombine.low %v973_v29, %v977_v33 }
 0x3b6   : > { %v857_v44 = vld [vmem:[%s14093_s23 + $0xcf8] sm:$0xff] }
 0x3b7   : > { %6794 = vmatpush1.bf16.msra.mxu0 %v11988_v51  ;;  %v985_v36 = vld [vmem:[%s14093_s23 + $0x10f8] sm:$0xff]  ;;  %v12173_v39 = vcombine.high %v853_v38, %v857_v44 }
 0x3b8   : > { %6835 = vmatpush1.bf16.msra.mxu1 %v12116_v49  ;;  %6795 = vmatprep.subr.bf16.mxu0 %v11997_v52  ;;  %v861_v20 = vld [vmem:[%s14093_s23 + $0xd18] sm:$0xff]  ;;  %v12172_v49 = vcombine.low %v853_v38, %v857_v44 }
 0x3b9   : > { %6836 = vmatprep.subr.bf16.mxu1 %v12125_v53  ;;  %v865_v47 = vld [vmem:[%s14093_s23 + $0xd38] sm:$0xff] }
 0x3ba   : > { %v989_v51 = vld [vmem:[%s14093_s23 + $0x1118] sm:$0xff]  ;;  %v12181_v52 = vcombine.high %v861_v20, %v865_v47 }
 0x3bb   : > { %6796 = vmatpush1.bf16.msra.mxu0 %v11996_v62  ;;  %v869_v56 = vld [vmem:[%s14093_s23 + $0xd58] sm:$0xff]  ;;  %v12180_v62 = vcombine.low %v861_v20, %v865_v47 }
 0x3bc   : > { %6837 = vmatpush1.bf16.msra.mxu1 %v12124_v63  ;;  %6797 = vmatprep.subr.bf16.mxu0 %v12005_v0  ;;  %v873_v57 = vld [vmem:[%s14093_s23 + $0xd78] sm:$0xff] }
 0x3bd   : > { %6838 = vmatprep.subr.bf16.mxu1 %v12133_v1  ;;  %v997_v58 = vld [vmem:[%s14093_s23 + $0x1158] sm:$0xff]  ;;  %v12189_v0 = vcombine.high %v869_v56, %v873_v57 }
 0x3be   : > { %v1001_v61 = vld [vmem:[%s14093_s23 + $0x1178] sm:$0xff] }
 0x3bf   : > { %6798 = vmatpush1.bf16.msra.mxu0 %v12004_v17  ;;  %v12317_v1 = vcombine.high %v997_v58, %v1001_v61  ;;  %v877_v2 = vld [vmem:[%s14093_s23 + $0xd98] sm:$0xff]  ;;  %v12188_v17 = vcombine.low %v869_v56, %v873_v57 }
 0x3c0   : > { %6839 = vmatpush1.bf16.msra.mxu1 %v12132_v7  ;;  %6799 = vmatprep.subr.bf16.mxu0 %v12013_v10  ;;  %v881_v3 = vld [vmem:[%s14093_s23 + $0xdb8] sm:$0xff]  ;;  %v12316_v7 = vcombine.low %v997_v58, %v1001_v61 }
 0x3c1   : > { %6840 = vmatprep.subr.bf16.mxu1 %v12141_v40  ;;  %v1005_v4 = vld [vmem:[%s14093_s23 + $0x1198] sm:$0xff]  ;;  %v12197_v10 = vcombine.high %v877_v2, %v881_v3  ;;  %v12196_v22 = vcombine.low %v877_v2, %v881_v3 }
 0x3c2   : > { %v1009_v6 = vld [vmem:[%s14093_s23 + $0x11b8] sm:$0xff] }
 0x3c3   : > { %6800 = vmatpush1.bf16.msra.mxu0 %v12012_v14  ;;  %v12325_v11 = vcombine.high %v1005_v4, %v1009_v6  ;;  %v885_v12 = vld [vmem:[%s14093_s23 + $0xdd8] sm:$0xff] }
 0x3c4   : > { %6841 = vmatpush1.bf16.msra.mxu1 %v12140_v28  ;;  %6851 = vmatprep.subr.bf16.mxu0 %v12149_v19  ;;  %v889_v13 = vld [vmem:[%s14093_s23 + $0xdf8] sm:$0xff] }
 0x3c5   : > { %6892 = vmatprep.subr.bf16.mxu1 %v12277_v43  ;;  %v1013_v19 = vld [vmem:[%s14093_s23 + $0x11d8] sm:$0xff] }
 0x3c6   : > { %6802 = vmatmul.mubr.bf16.vlgmr.msra.gmra.mrb[44].mxu0 %v14215_v21  ;;  %v981_v21 = vld [vmem:[%s14093_s23 + $0x10d8] sm:$0xff] }
 0x3c7   : > { %6843 = vmatmul.mubr.bf16.vlgmr.msra.gmra.mrb[44].mxu1 %v14296_v37  ;;  %6852 = vmatpush1.bf16.msra.mxu0 %v12148_v25  ;;  %v12164_v37 = vcombine.low %v845_v54, %v849_v59  ;;  %v12301_v45 = vcombine.high %v981_v21, %v985_v36  ;;  %v1017_v43 = vld [vmem:[%s14093_s23 + $0x11f8] sm:$0xff] }
 0x3c8   : > { %6893 = vmatpush1.bf16.msra.mxu1 %v12276_v26  ;;  %6853 = vmatprep.subr.bf16.mxu0 %v12157_v16  ;;  %v12333_v59 = vcombine.high %v1013_v19, %v1017_v43  ;;  %v893_v29 = vld [vmem:[%s14093_s23 + $0xe18] sm:$0xff] }
 0x3c9   : > { %6894 = vmatprep.subr.bf16.mxu1 %v12285_v27  ;;  %6883 = vmatprep.mubr.bf16.mxu0 %v14231_v30  ;;  %v993_v30 = vld [vmem:[%s14093_s23 + $0x1138] sm:$0xff]  ;;  %v12205_v27 = vcombine.high %v885_v12, %v889_v13 }
 0x3ca   : > { %6924 = vmatprep.mubr.bf16.mxu1 %v14314_v48  ;;  %v12300_v48 = vcombine.low %v981_v21, %v985_v36  ;;  %v12309_v53 = vcombine.high %v989_v51, %v993_v30  ;;  %v12308_v63 = vcombine.low %v989_v51, %v993_v30  ;;  %v897_v33 = vld [vmem:[%s14093_s23 + $0xe38] sm:$0xff] }
 0x3cb   : > { %6854 = vmatpush1.bf16.msra.mxu0 %v12156_v31  ;;  %v1021_v31 = vld [vmem:[%s14093_s23 + $0x1218] sm:$0xff]  ;;  %v12213_v38 = vcombine.high %v893_v29, %v897_v33 }
 0x3cc   : > { %6895 = vmatpush1.bf16.msra.mxu1 %v12284_v32  ;;  %6855 = vmatprep.subr.bf16.mxu0 %v12165_v34  ;;  %v1025_v32 = vld [vmem:[%s14093_s23 + $0x1238] sm:$0xff]  ;;  %v12204_v34 = vcombine.low %v885_v12, %v889_v13 }
 0x3cd   : > { %6896 = vmatprep.subr.bf16.mxu1 %v12293_v35  ;;  %v12332_v35 = vcombine.low %v1013_v19, %v1017_v43  ;;  %v12341_v44 = vcombine.high %v1021_v31, %v1025_v32  ;;  %v901_v21 = vld [vmem:[%s14093_s23 + $0xe58] sm:$0xff] }
 0x3ce   : > { %v905_v36 = vld [vmem:[%s14093_s23 + $0xe78] sm:$0xff] }
 0x3cf   : > { %6856 = vmatpush1.bf16.msra.mxu0 %v12164_v37  ;;  %v1029_v37 = vld [vmem:[%s14093_s23 + $0x1258] sm:$0xff]  ;;  %v12221_v20 = vcombine.high %v901_v21, %v905_v36 }
 0x3d0   : > { %6897 = vmatpush1.bf16.msra.mxu1 %v12292_v23  ;;  %6857 = vmatprep.subr.bf16.mxu0 %v12173_v39  ;;  %v1033_v23 = vld [vmem:[%s14093_s23 + $0x1278] sm:$0xff]  ;;  %v12212_v39 = vcombine.low %v893_v29, %v897_v33 }
 0x3d1   : > { %6898 = vmatprep.subr.bf16.mxu1 %v12301_v45  ;;  %v12340_v45 = vcombine.low %v1021_v31, %v1025_v32  ;;  %v12349_v47 = vcombine.high %v1029_v37, %v1033_v23  ;;  %v909_v51 = vld [vmem:[%s14093_s23 + $0xe98] sm:$0xff] }
 0x3d2   : > { %v913_v30 = vld [vmem:[%s14093_s23 + $0xeb8] sm:$0xff] }
 0x3d3   : > { %6858 = vmatpush1.bf16.msra.mxu0 %v12172_v49  ;;  %v1037_v49 = vld [vmem:[%s14093_s23 + $0x1298] sm:$0xff]  ;;  %v12229_v56 = vcombine.high %v909_v51, %v913_v30 }
 0x3d4   : > { %6899 = vmatpush1.bf16.msra.mxu1 %v12300_v48  ;;  %6859 = vmatprep.subr.bf16.mxu0 %v12181_v52  ;;  %v1041_v48 = vld [vmem:[%s14093_s23 + $0x12b8] sm:$0xff]  ;;  %v12220_v52 = vcombine.low %v901_v21, %v905_v36 }
 0x3d5   : > { %6900 = vmatprep.subr.bf16.mxu1 %v12309_v53  ;;  %v12348_v53 = vcombine.low %v1029_v37, %v1033_v23  ;;  %v12357_v57 = vcombine.high %v1037_v49, %v1041_v48  ;;  %v917_v58 = vld [vmem:[%s14093_s23 + $0xed8] sm:$0xff] }
 0x3d6   : > { %v921_v61 = vld [vmem:[%s14093_s23 + $0xef8] sm:$0xff] }
 0x3d7   : > { %6860 = vmatpush1.bf16.msra.mxu0 %v12180_v62  ;;  %v1045_v62 = vld [vmem:[%s14093_s23 + $0x12d8] sm:$0xff]  ;;  %v12237_v2 = vcombine.high %v917_v58, %v921_v61 }
 0x3d8   : > { %6901 = vmatpush1.bf16.msra.mxu1 %v12308_v63  ;;  %6861 = vmatprep.subr.bf16.mxu0 %v12189_v0  ;;  %v1049_v63 = vld [vmem:[%s14093_s23 + $0x12f8] sm:$0xff]  ;;  %v12228_v0 = vcombine.low %v909_v51, %v913_v30 }
 0x3d9   : > { %v6557_v40 = vpop.f32.mrb[32].mxu0  ;;  %6902 = vmatprep.subr.bf16.mxu1 %v12317_v1  ;;  %v12356_v1 = vcombine.low %v1037_v49, %v1041_v48  ;;  %v12365_v3 = vcombine.high %v1045_v62, %v1049_v63  ;;  %v933_v13 = vld [vmem:[%s14093_s23 + $0xf58] sm:$0xff] }
 0x3da   : > { %v6558_v60 = vadd.f32 %v6557_v40, %v15013_v46  ;;  %v6598_v14 = vpop.f32.mrb[32].mxu1  ;;  %v6559_v28 = vpop.f32.mrb[33].mxu0  ;;  %v12324_v46 = vcombine.low %v1005_v4, %v1009_v6  ;;  %v925_v4 = vld [vmem:[%s14093_s23 + $0xf18] sm:$0xff]  ;;  %v12364_v40 = vcombine.low %v1045_v62, %v1049_v63 }
 0x3db   : > { %v6560_v24 = vadd.f32 %v6559_v28, %v15015_v8  ;;  %v6600_v18 = vpop.f32.mrb[33].mxu1  ;;  %v6561_v55 = vpop.f32.mrb[34].mxu0  ;;  %6862 = vmatpush1.bf16.msra.mxu0 %v12188_v17  ;;  %v929_v6 = vld [vmem:[%s14093_s23 + $0xf38] sm:$0xff] }
 0x3dc   : > { %v15087_v25 = vadd.f32 %v6598_v14, %v6558_v60  ;;  %v6602_v26 = vpop.f32.mrb[34].mxu1  ;;  %6903 = vmatpush1.bf16.msra.mxu1 %v12316_v7  ;;  %v6562_v16 = vpop.f32.mrb[35].mxu0  ;;  %6863 = vmatprep.subr.bf16.mxu0 %v12197_v10  ;;  %v1053_v17 = vld [vmem:[%s14093_s23 + $0x1318] sm:$0xff]  ;;  %v12236_v10 = vcombine.low %v917_v58, %v921_v61  ;;  %v12244_v19 = vcombine.low %v925_v4, %v929_v6 }
 0x3dd   : > { %v15089_v54 = vadd.f32 %v6600_v18, %v6560_v24  ;;  %v6603_v8 = vpop.f32.mrb[35].mxu1  ;;  %6904 = vmatprep.subr.bf16.mxu1 %v12325_v11  ;;  %v1057_v7 = vld [vmem:[%s14093_s23 + $0x1338] sm:$0xff]  ;;  %v12245_v11 = vcombine.high %v925_v4, %v929_v6 }
 0x3de   : > { %v12373_v12 = vcombine.high %v1053_v17, %v1057_v7  ;;  %v937_v60 = vld [vmem:[%s14093_s23 + $0xf78] sm:$0xff]  ;;  %v12372_v43 = vcombine.low %v1053_v17, %v1057_v7 }
 0x3df   : > { %6864 = vmatpush1.bf16.msra.mxu0 %v12196_v22  ;;  %v1061_v14 = vld [vmem:[%s14093_s23 + $0x1358] sm:$0xff]  ;;  %v12253_v24 = vcombine.high %v933_v13, %v937_v60 }
 0x3e0   : > { %6905 = vmatpush1.bf16.msra.mxu1 %v12324_v46  ;;  %6865 = vmatprep.subr.bf16.mxu0 %v12205_v27  ;;  %v1065_v28 = vld [vmem:[%s14093_s23 + $0x1378] sm:$0xff]  ;;  %v12252_v46 = vcombine.low %v933_v13, %v937_v60 }
 0x3e1   : > { %6906 = vmatprep.subr.bf16.mxu1 %v12333_v59  ;;  %v12381_v18 = vcombine.high %v1061_v14, %v1065_v28  ;;  %v941_v55 = vld [vmem:[%s14093_s23 + $0xf98] sm:$0xff]  ;;  %v12380_v27 = vcombine.low %v1061_v14, %v1065_v28 }
 0x3e2   : > { %v945_v22 = vld [vmem:[%s14093_s23 + $0xfb8] sm:$0xff] }
 0x3e3   : > { %6866 = vmatpush1.bf16.msra.mxu0 %v12204_v34  ;;  %v1069_v26 = vld [vmem:[%s14093_s23 + $0x1398] sm:$0xff]  ;;  %v12261_v8 = vcombine.high %v941_v55, %v945_v22  ;;  %v12260_v34 = vcombine.low %v941_v55, %v945_v22 }
 0x3e4   : > { %6907 = vmatpush1.bf16.msra.mxu1 %v12332_v35  ;;  %6867 = vmatprep.subr.bf16.mxu0 %v12213_v38  ;;  %v1073_v16 = vld [vmem:[%s14093_s23 + $0x13b8] sm:$0xff] }
 0x3e5   : > { %6908 = vmatprep.subr.bf16.mxu1 %v12341_v44  ;;  %v12389_v59 = vcombine.high %v1069_v26, %v1073_v16  ;;  %v949_v29 = vld [vmem:[%s14093_s23 + $0xfd8] sm:$0xff]  ;;  %v12388_v35 = vcombine.low %v1069_v26, %v1073_v16 }
 0x3e6   : > { %v953_v33 = vld [vmem:[%s14093_s23 + $0xff8] sm:$0xff] }
 0x3e7   : > { %6868 = vmatpush1.bf16.msra.mxu0 %v12212_v39  ;;  %v1077_v31 = vld [vmem:[%s14093_s23 + $0x13d8] sm:$0xff]  ;;  %v12269_v38 = vcombine.high %v949_v29, %v953_v33  ;;  %v12268_v39 = vcombine.low %v949_v29, %v953_v33 }
 0x3e8   : > { %6909 = vmatpush1.bf16.msra.mxu1 %v12340_v45  ;;  %6869 = vmatprep.subr.bf16.mxu0 %v12221_v20  ;;  %v1081_v32 = vld [vmem:[%s14093_s23 + $0x13f8] sm:$0xff] }
 0x3e9   : > { %6910 = vmatprep.subr.bf16.mxu1 %v12349_v47  ;;  %v12397_v44 = vcombine.high %v1077_v31, %v1081_v32  ;;  %v1085_v21 = vld [vmem:[%s14093_s23 + $0x1418] sm:$0xff]  ;;  %v12396_v45 = vcombine.low %v1077_v31, %v1081_v32 }
 0x3ea   : > { %v1089_v36 = vld [vmem:[%s14093_s23 + $0x1438] sm:$0xff] }
 0x3eb   : > { %6870 = vmatpush1.bf16.msra.mxu0 %v12220_v52  ;;  %v1213_v37 = vld [vmem:[%s14093_s23 + $0x1818] sm:$0xff]  ;;  %v12405_v20 = vcombine.high %v1085_v21, %v1089_v36  ;;  %v12404_v52 = vcombine.low %v1085_v21, %v1089_v36 }
 0x3ec   : > { %6911 = vmatpush1.bf16.msra.mxu1 %v12348_v53  ;;  %6871 = vmatprep.subr.bf16.mxu0 %v12229_v56  ;;  %v1217_v23 = vld [vmem:[%s14093_s23 + $0x1838] sm:$0xff] }
 0x3ed   : > { %6912 = vmatprep.subr.bf16.mxu1 %v12357_v57  ;;  %v12533_v47 = vcombine.high %v1213_v37, %v1217_v23  ;;  %v1093_v51 = vld [vmem:[%s14093_s23 + $0x1458] sm:$0xff]  ;;  %v12532_v53 = vcombine.low %v1213_v37, %v1217_v23 }
 0x3ee   : > { %v1097_v30 = vld [vmem:[%s14093_s23 + $0x1478] sm:$0xff] }
 0x3ef   : > { %6872 = vmatpush1.bf16.msra.mxu0 %v12228_v0  ;;  %v1221_v49 = vld [vmem:[%s14093_s23 + $0x1858] sm:$0xff]  ;;  %v12413_v56 = vcombine.high %v1093_v51, %v1097_v30  ;;  %v12412_v0 = vcombine.low %v1093_v51, %v1097_v30 }
 0x3f0   : > { %6913 = vmatpush1.bf16.msra.mxu1 %v12356_v1  ;;  %6873 = vmatprep.subr.bf16.mxu0 %v12237_v2  ;;  %v1225_v48 = vld [vmem:[%s14093_s23 + $0x1878] sm:$0xff] }
 0x3f1   : > { %6914 = vmatprep.subr.bf16.mxu1 %v12365_v3  ;;  %v12541_v57 = vcombine.high %v1221_v49, %v1225_v48  ;;  %v1101_v58 = vld [vmem:[%s14093_s23 + $0x1498] sm:$0xff]  ;;  %v12540_v1 = vcombine.low %v1221_v49, %v1225_v48 }
 0x3f2   : > { %v1105_v61 = vld [vmem:[%s14093_s23 + $0x14b8] sm:$0xff] }
 0x3f3   : > { %6874 = vmatpush1.bf16.msra.mxu0 %v12236_v10  ;;  %v1229_v62 = vld [vmem:[%s14093_s23 + $0x1898] sm:$0xff]  ;;  %v12421_v2 = vcombine.high %v1101_v58, %v1105_v61 }
 0x3f4   : > { %6915 = vmatpush1.bf16.msra.mxu1 %v12364_v40  ;;  %6875 = vmatprep.subr.bf16.mxu0 %v12245_v11  ;;  %v1233_v63 = vld [vmem:[%s14093_s23 + $0x18b8] sm:$0xff] }
 0x3f5   : > { %6916 = vmatprep.subr.bf16.mxu1 %v12373_v12  ;;  %v12549_v3 = vcombine.high %v1229_v62, %v1233_v63  ;;  %v1109_v4 = vld [vmem:[%s14093_s23 + $0x14d8] sm:$0xff]  ;;  %v12548_v7 = vcombine.low %v1229_v62, %v1233_v63 }
 0x3f6   : > { %v1113_v6 = vld [vmem:[%s14093_s23 + $0x14f8] sm:$0xff] }
 0x3f7   : > { %6876 = vmatpush1.bf16.msra.mxu0 %v12244_v19  ;;  %v1241_v17 = vld [vmem:[%s14093_s23 + $0x18f8] sm:$0xff]  ;;  %v12429_v10 = vcombine.high %v1109_v4, %v1113_v6  ;;  %v12428_v60 = vcombine.low %v1109_v4, %v1113_v6 }
 0x3f8   : > { %6917 = vmatpush1.bf16.msra.mxu1 %v12372_v43  ;;  %6877 = vmatprep.subr.bf16.mxu0 %v12253_v24  ;;  %v1117_v11 = vld [vmem:[%s14093_s23 + $0x1518] sm:$0xff] }
 0x3f9   : > { %6918 = vmatprep.subr.bf16.mxu1 %v12381_v18  ;;  %v1121_v12 = vld [vmem:[%s14093_s23 + $0x1538] sm:$0xff] }
 0x3fa   : > { %v1245_v13 = vld [vmem:[%s14093_s23 + $0x1918] sm:$0xff]  ;;  %v12437_v14 = vcombine.high %v1117_v11, %v1121_v12  ;;  %v12436_v55 = vcombine.low %v1117_v11, %v1121_v12 }
 0x3fb   : > { %6878 = vmatpush1.bf16.msra.mxu0 %v12252_v46  ;;  %v1125_v19 = vld [vmem:[%s14093_s23 + $0x1558] sm:$0xff] }
 0x3fc   : > { %6919 = vmatpush1.bf16.msra.mxu1 %v12380_v27  ;;  %6879 = vmatprep.subr.bf16.mxu0 %v12261_v8  ;;  %v1129_v43 = vld [vmem:[%s14093_s23 + $0x1578] sm:$0xff] }
 0x3fd   : > { %6920 = vmatprep.subr.bf16.mxu1 %v12389_v59  ;;  %v1253_v24 = vld [vmem:[%s14093_s23 + $0x1958] sm:$0xff]  ;;  %v12445_v26 = vcombine.high %v1125_v19, %v1129_v43  ;;  %v12444_v29 = vcombine.low %v1125_v19, %v1129_v43 }
 0x3fe   : > { %v1257_v18 = vld [vmem:[%s14093_s23 + $0x1978] sm:$0xff] }
 0x3ff   : > { %6880 = vmatpush1.bf16.msra.mxu0 %v12260_v34  ;;  %v12573_v16 = vcombine.high %v1253_v24, %v1257_v18  ;;  %v1133_v46 = vld [vmem:[%s14093_s23 + $0x1598] sm:$0xff]  ;;  %v12572_v33 = vcombine.low %v1253_v24, %v1257_v18 }
 0x400   : > { %6921 = vmatpush1.bf16.msra.mxu1 %v12388_v35  ;;  %6881 = vmatprep.subr.bf16.mxu0 %v12269_v38  ;;  %v1137_v27 = vld [vmem:[%s14093_s23 + $0x15b8] sm:$0xff] }
 0x401   : > { %6922 = vmatprep.subr.bf16.mxu1 %v12397_v44  ;;  %v1261_v8 = vld [vmem:[%s14093_s23 + $0x1998] sm:$0xff]  ;;  %v12453_v31 = vcombine.high %v1133_v46, %v1137_v27 }
 0x402   : > { %v1265_v59 = vld [vmem:[%s14093_s23 + $0x19b8] sm:$0xff] }
 0x403   : > { %6882 = vmatpush1.bf16.msra.mxu0 %v12268_v39  ;;  %v12581_v34 = vcombine.high %v1261_v8, %v1265_v59  ;;  %v1141_v35 = vld [vmem:[%s14093_s23 + $0x15d8] sm:$0xff] }
 0x404   : > { %6923 = vmatpush1.bf16.msra.mxu1 %v12396_v45  ;;  %6933 = vmatprep.subr.bf16.mxu0 %v12405_v20  ;;  %v1145_v38 = vld [vmem:[%s14093_s23 + $0x15f8] sm:$0xff] }
 0x405   : > { %6974 = vmatprep.subr.bf16.mxu1 %v12533_v47  ;;  %v1269_v37 = vld [vmem:[%s14093_s23 + $0x19d8] sm:$0xff]  ;;  %v12452_v47 = vcombine.low %v1133_v46, %v1137_v27  ;;  %v12461_v48 = vcombine.high %v1141_v35, %v1145_v38  ;;  %v12460_v62 = vcombine.low %v1141_v35, %v1145_v38 }
 0x406   : > { %6884 = vmatmul.mubr.bf16.vlgmr.msra.gmra.mrb[48].mxu0 %v14305_v41  ;;  %v1237_v41 = vld [vmem:[%s14093_s23 + $0x18d8] sm:$0xff] }
 0x407   : > { %6925 = vmatmul.mubr.bf16.vlgmr.msra.gmra.mrb[48].mxu1 %v14386_v5  ;;  %6934 = vmatpush1.bf16.msra.mxu0 %v12404_v52  ;;  %v12420_v5 = vcombine.low %v1101_v58, %v1105_v61  ;;  %v12557_v40 = vcombine.high %v1237_v41, %v1241_v17  ;;  %v1273_v23 = vld [vmem:[%s14093_s23 + $0x19f8] sm:$0xff] }
 0x408   : > { %6975 = vmatpush1.bf16.msra.mxu1 %v12532_v53  ;;  %6935 = vmatprep.subr.bf16.mxu0 %v12413_v56  ;;  %v12589_v53 = vcombine.high %v1269_v37, %v1273_v23  ;;  %v1149_v56 = vld [vmem:[%s14093_s23 + $0x1618] sm:$0xff]  ;;  %v12588_v63 = vcombine.low %v1269_v37, %v1273_v23 }
 0x409   : > { %6976 = vmatprep.subr.bf16.mxu1 %v12541_v57  ;;  %6965 = vmatprep.mubr.bf16.mxu0 %v14321_v50  ;;  %v1249_v50 = vld [vmem:[%s14093_s23 + $0x1938] sm:$0xff] }
 0x40a   : > { %7006 = vmatprep.mubr.bf16.mxu1 %v14401_v15  ;;  %v12556_v15 = vcombine.low %v1237_v41, %v1241_v17  ;;  %v12565_v28 = vcombine.high %v1245_v13, %v1249_v50  ;;  %v12564_v22 = vcombine.low %v1245_v13, %v1249_v50  ;;  %v1153_v57 = vld [vmem:[%s14093_s23 + $0x1638] sm:$0xff] }
 0x40b   : > { %6936 = vmatpush1.bf16.msra.mxu0 %v12412_v0  ;;  %v1277_v58 = vld [vmem:[%s14093_s23 + $0x1a18] sm:$0xff]  ;;  %v12469_v0 = vcombine.high %v1149_v56, %v1153_v57  ;;  %v12468_v41 = vcombine.low %v1149_v56, %v1153_v57 }
 0x40c   : > { %6977 = vmatpush1.bf16.msra.mxu1 %v12540_v1  ;;  %6937 = vmatprep.subr.bf16.mxu0 %v12421_v2  ;;  %v1281_v61 = vld [vmem:[%s14093_s23 + $0x1a38] sm:$0xff] }
 0x40d   : > { %6978 = vmatprep.subr.bf16.mxu1 %v12549_v3  ;;  %v12597_v1 = vcombine.high %v1277_v58, %v1281_v61  ;;  %v1157_v2 = vld [vmem:[%s14093_s23 + $0x1658] sm:$0xff]  ;;  %v12596_v17 = vcombine.low %v1277_v58, %v1281_v61 }
 0x40e   : > { %v1161_v3 = vld [vmem:[%s14093_s23 + $0x1678] sm:$0xff] }
 0x40f   : > { %6938 = vmatpush1.bf16.msra.mxu0 %v12420_v5  ;;  %v1285_v4 = vld [vmem:[%s14093_s23 + $0x1a58] sm:$0xff]  ;;  %v12477_v5 = vcombine.high %v1157_v2, %v1161_v3  ;;  %v12476_v13 = vcombine.low %v1157_v2, %v1161_v3 }
 0x410   : > { %6979 = vmatpush1.bf16.msra.mxu1 %v12548_v7  ;;  %6939 = vmatprep.subr.bf16.mxu0 %v12429_v10  ;;  %v1289_v6 = vld [vmem:[%s14093_s23 + $0x1a78] sm:$0xff] }
 0x411   : > { %6980 = vmatprep.subr.bf16.mxu1 %v12557_v40  ;;  %v12605_v7 = vcombine.high %v1285_v4, %v1289_v6  ;;  %v1165_v10 = vld [vmem:[%s14093_s23 + $0x1698] sm:$0xff]  ;;  %v12604_v50 = vcombine.low %v1285_v4, %v1289_v6  ;;  %v432_v4 = vld [vmem:[#allocation2 + $0x28] sm:$0xff] }
 0x412   : > { %v1169_v40 = vld [vmem:[%s14093_s23 + $0x16b8] sm:$0xff] }
 0x413   : > { %6940 = vmatpush1.bf16.msra.mxu0 %v12428_v60  ;;  %v1293_v11 = vld [vmem:[%s14093_s23 + $0x1a98] sm:$0xff]  ;;  %v12485_v60 = vcombine.high %v1165_v10, %v1169_v40  ;;  %v12484_v24 = vcombine.low %v1165_v10, %v1169_v40 }
 0x414   : > { %6981 = vmatpush1.bf16.msra.mxu1 %v12556_v15  ;;  %6941 = vmatprep.subr.bf16.mxu0 %v12437_v14  ;;  %v1297_v12 = vld [vmem:[%s14093_s23 + $0x1ab8] sm:$0xff] }
 0x415   : > { %6982 = vmatprep.subr.bf16.mxu1 %v12565_v28  ;;  %v12613_v15 = vcombine.high %v1293_v11, %v1297_v12  ;;  %v1173_v14 = vld [vmem:[%s14093_s23 + $0x16d8] sm:$0xff]  ;;  %v12612_v18 = vcombine.low %v1293_v11, %v1297_v12 }
 0x416   : > { %v1177_v28 = vld [vmem:[%s14093_s23 + $0x16f8] sm:$0xff] }
 0x417   : > { %6942 = vmatpush1.bf16.msra.mxu0 %v12436_v55  ;;  %v1301_v19 = vld [vmem:[%s14093_s23 + $0x1ad8] sm:$0xff]  ;;  %v12493_v55 = vcombine.high %v1173_v14, %v1177_v28 }
 0x418   : > { %6983 = vmatpush1.bf16.msra.mxu1 %v12564_v22  ;;  %6943 = vmatprep.subr.bf16.mxu0 %v12445_v26  ;;  %v1305_v43 = vld [vmem:[%s14093_s23 + $0x1af8] sm:$0xff] }
 0x419   : > { %v6639_v32 = vpop.f32.mrb[36].mxu0  ;;  %6984 = vmatprep.subr.bf16.mxu1 %v12573_v16  ;;  %v12621_v22 = vcombine.high %v1301_v19, %v1305_v43  ;;  %v1181_v26 = vld [vmem:[%s14093_s23 + $0x1718] sm:$0xff] }
 0x41a   : > { %v6640_v44 = vadd.f32 %v6639_v32, %v15087_v25  ;;  %v6680_v21 = vpop.f32.mrb[36].mxu1  ;;  %v6641_v36 = vpop.f32.mrb[37].mxu0  ;;  %v12580_v25 = vcombine.low %v1261_v8, %v1265_v59  ;;  %v1185_v16 = vld [vmem:[%s14093_s23 + $0x1738] sm:$0xff]  ;;  %v12492_v8 = vcombine.low %v1173_v14, %v1177_v28  ;;  %v12620_v59 = vcombine.low %v1301_v19, %v1305_v43 }
 0x41b   : > { %v6642_v39 = vadd.f32 %v6641_v36, %v15089_v54  ;;  %v6682_v45 = vpop.f32.mrb[37].mxu1  ;;  %v6643_v20 = vpop.f32.mrb[38].mxu0  ;;  %6944 = vmatpush1.bf16.msra.mxu0 %v12444_v29  ;;  %v1309_v46 = vld [vmem:[%s14093_s23 + $0x1b18] sm:$0xff]  ;;  %v12501_v29 = vcombine.high %v1181_v26, %v1185_v16  ;;  %v12500_v38 = vcombine.low %v1181_v26, %v1185_v16 }
 0x41c   : > { %v15161_v51 = vadd.f32 %v6680_v21, %v6640_v44  ;;  %v6684_v30 = vpop.f32.mrb[38].mxu1  ;;  %6985 = vmatpush1.bf16.msra.mxu1 %v12572_v33  ;;  %v6644_v49 = vpop.f32.mrb[39].mxu0  ;;  %6945 = vmatprep.subr.bf16.mxu0 %v12453_v31  ;;  %v1313_v27 = vld [vmem:[%s14093_s23 + $0x1b38] sm:$0xff] }
 0x41d   : > { %v15163_v52 = vadd.f32 %v6682_v45, %v6642_v39  ;;  %v6685_v54 = vpop.f32.mrb[39].mxu1  ;;  %6986 = vmatprep.subr.bf16.mxu1 %v12581_v34  ;;  %v12629_v33 = vcombine.high %v1309_v46, %v1313_v27  ;;  %v1189_v31 = vld [vmem:[%s14093_s23 + $0x1758] sm:$0xff]  ;;  %v12628_v44 = vcombine.low %v1309_v46, %v1313_v27 }
 0x41e   : > { %v1193_v32 = vld [vmem:[%s14093_s23 + $0x1778] sm:$0xff] }
 0x41f   : > { %6946 = vmatpush1.bf16.msra.mxu0 %v12452_v47  ;;  %v1317_v34 = vld [vmem:[%s14093_s23 + $0x1b58] sm:$0xff]  ;;  %v12509_v21 = vcombine.high %v1189_v31, %v1193_v32  ;;  %v12508_v20 = vcombine.low %v1189_v31, %v1193_v32 }
 0x420   : > { %6987 = vmatpush1.bf16.msra.mxu1 %v12580_v25  ;;  %6947 = vmatprep.subr.bf16.mxu0 %v12461_v48  ;;  %v1321_v35 = vld [vmem:[%s14093_s23 + $0x1b78] sm:$0xff] }
 0x421   : > { %6988 = vmatprep.subr.bf16.mxu1 %v12589_v53  ;;  %v12637_v36 = vcombine.high %v1317_v34, %v1321_v35  ;;  %v1197_v37 = vld [vmem:[%s14093_s23 + $0x1798] sm:$0xff]  ;;  %v12636_v47 = vcombine.low %v1317_v34, %v1321_v35 }
 0x422   : > { %v1201_v23 = vld [vmem:[%s14093_s23 + $0x17b8] sm:$0xff] }
 0x423   : > { %6948 = vmatpush1.bf16.msra.mxu0 %v12460_v62  ;;  %v1325_v39 = vld [vmem:[%s14093_s23 + $0x1b98] sm:$0xff]  ;;  %v12517_v30 = vcombine.high %v1197_v37, %v1201_v23  ;;  %v12516_v56 = vcombine.low %v1197_v37, %v1201_v23 }
 0x424   : > { %6989 = vmatpush1.bf16.msra.mxu1 %v12588_v63  ;;  %6949 = vmatprep.subr.bf16.mxu0 %v12469_v0  ;;  %v1329_v45 = vld [vmem:[%s14093_s23 + $0x1bb8] sm:$0xff]  ;;  %v431_v0 = vld [vmem:[#allocation2 + $0x20] sm:$0xff] }
 0x425   : > { %6990 = vmatprep.subr.bf16.mxu1 %v12597_v1  ;;  %v12645_v49 = vcombine.high %v1325_v39, %v1329_v45  ;;  %v1205_v25 = vld [vmem:[%s14093_s23 + $0x17d8] sm:$0xff]  ;;  %v12644_v57 = vcombine.low %v1325_v39, %v1329_v45 }
 0x426   : > { %v1209_v48 = vld [vmem:[%s14093_s23 + $0x17f8] sm:$0xff] }
 0x427   : > { %6950 = vmatpush1.bf16.msra.mxu0 %v12468_v41  ;;  %v1333_v54 = vld [vmem:[%s14093_s23 + $0x1bd8] sm:$0xff]  ;;  %v12525_v58 = vcombine.high %v1205_v25, %v1209_v48  ;;  %v12524_v62 = vcombine.low %v1205_v25, %v1209_v48  ;;  %v7109_v25 = vld [vmem:[#allocation7] sm:$0xff] (!%p12654_p9) }
 0x428   : > { %6991 = vmatpush1.bf16.msra.mxu1 %v12596_v17  ;;  %6951 = vmatprep.subr.bf16.mxu0 %v12477_v5  ;;  %v1337_v53 = vld [vmem:[%s14093_s23 + $0x1bf8] sm:$0xff]  ;;  %v7113_v48 = vld [vmem:[#allocation7 + $0x20] sm:$0xff] (!%p12654_p9) }
 0x429   : > { %6992 = vmatprep.subr.bf16.mxu1 %v12605_v7  ;;  %v12653_v61 = vcombine.high %v1333_v54, %v1337_v53  ;;  %v12652_v63 = vcombine.low %v1333_v54, %v1337_v53  ;;  %v434_v23 = vld [vmem:[#allocation2 + $0x38] sm:$0xff]  ;;  %v7110_v54 = vld [vmem:[#allocation7 + $0x8] sm:$0xff] (!%p12654_p9)  ;;  %v12656_v53 = vcombine.high (!%p12654_p9), %v7109_v25, %v7113_v48 }
 0x42b   : > { %6952 = vmatpush1.bf16.msra.mxu0 %v12476_v13 }
 0x42c   : > { %6993 = vmatpush1.bf16.msra.mxu1 %v12604_v50  ;;  %6953 = vmatprep.subr.bf16.mxu0 %v12485_v60 }
 0x42d   : > { %6994 = vmatprep.subr.bf16.mxu1 %v12613_v15 }
 0x42f   : > { %6954 = vmatpush1.bf16.msra.mxu0 %v12484_v24 }
 0x430   : > { %6995 = vmatpush1.bf16.msra.mxu1 %v12612_v18  ;;  %6955 = vmatprep.subr.bf16.mxu0 %v12493_v55 }
 0x431   : > { %6996 = vmatprep.subr.bf16.mxu1 %v12621_v22 }
 0x433   : > { %6956 = vmatpush1.bf16.msra.mxu0 %v12492_v8 }
 0x434   : > { %6997 = vmatpush1.bf16.msra.mxu1 %v12620_v59  ;;  %6957 = vmatprep.subr.bf16.mxu0 %v12501_v29 }
 0x435   : > { %6998 = vmatprep.subr.bf16.mxu1 %v12629_v33 }
 0x437   : > { %6958 = vmatpush1.bf16.msra.mxu0 %v12500_v38  ;;  %v433_v38 = vld [vmem:[#allocation2 + $0x30] sm:$0xff] }
 0x438   : > { %6999 = vmatpush1.bf16.msra.mxu1 %v12628_v44  ;;  %6959 = vmatprep.subr.bf16.mxu0 %v12509_v21 }
 0x439   : > { %7000 = vmatprep.subr.bf16.mxu1 %v12637_v36 }
 0x43b   : > { %6960 = vmatpush1.bf16.msra.mxu0 %v12508_v20 }
 0x43c   : > { %7001 = vmatpush1.bf16.msra.mxu1 %v12636_v47  ;;  %6961 = vmatprep.subr.bf16.mxu0 %v12517_v30 }
 0x43d   : > { %7002 = vmatprep.subr.bf16.mxu1 %v12645_v49 }
 0x43f   : > { %6962 = vmatpush1.bf16.msra.mxu0 %v12516_v56  ;;  %v7114_v56 = vld [vmem:[#allocation7 + $0x28] sm:$0xff] (!%p12654_p9) }
 0x440   : > { %7003 = vmatpush1.bf16.msra.mxu1 %v12644_v57  ;;  %6963 = vmatprep.subr.bf16.mxu0 %v12525_v58  ;;  %v12655_v57 = vcombine.low (!%p12654_p9), %v7109_v25, %v7113_v48  ;;  %v7117_v58 = vld [vmem:[#allocation7 + $0x40] sm:$0xff] (!%p12654_p9) }
 0x441   : > { %7004 = vmatprep.subr.bf16.mxu1 %v12653_v61  ;;  %v7121_v61 = vld [vmem:[#allocation7 + $0x60] sm:$0xff] (!%p12654_p9) }
 0x443   : > { %6964 = vmatpush1.bf16.msra.mxu0 %v12524_v62  ;;  %v12658_v62 = vcombine.high (!%p12654_p9), %v7110_v54, %v7114_v56 }
 0x444   : > { %7005 = vmatpush1.bf16.msra.mxu1 %v12652_v63  ;;  %v12657_v63 = vcombine.low (!%p12654_p9), %v7110_v54, %v7114_v56  ;;  %10223 = vmatprep.subr.bf16.mxu0 (!%p12654_p9), %v12656_v53 }
 0x445   : > { %10387 = vmatprep.subr.bf16.mxu1 (!%p12654_p9), %v12658_v62  ;;  %v7174_v62 = vld [vmem:[#allocation7 + $0x208] sm:$0xff] (!%p12654_p9) }
 0x446   : > { %6966 = vmatmul.mubr.bf16.vlgmr.msra.gmra.mrb[52].mxu0 %v14395_v9 }
 0x447   : > { %7007 = vmatmul.mubr.bf16.vlgmr.msra.gmra.mrb[52].mxu1 %v14469_v42  ;;  %10224 = vmatpush1.bf16.msra.mxu0 (!%p12654_p9), %v12655_v57  ;;  %v7173_v57 = vld [vmem:[#allocation7 + $0x200] sm:$0xff] (!%p12654_p9) }
 0x448   : > { %10388 = vmatpush1.bf16.msra.mxu1 (!%p12654_p9), %v12657_v63  ;;  %v7178_v63 = vld [vmem:[#allocation7 + $0x228] sm:$0xff] (!%p12654_p9) }
 0x459   : > { %v6721_v1 = vpop.f32.mrb[40].mxu0 }
 0x45a   : > { %v6722_v2 = vadd.f32 %v6721_v1, %v15161_v51  ;;  %v6762_v3 = vpop.f32.mrb[40].mxu1  ;;  %v6723_v6 = vpop.f32.mrb[41].mxu0  ;;  %v7118_v1 = vld [vmem:[#allocation7 + $0x48] sm:$0xff] (!%p12654_p9) }
 0x45b   : > { %v6724_v41 = vadd.f32 %v6723_v6, %v15163_v52  ;;  %v6764_v17 = vpop.f32.mrb[41].mxu1  ;;  %v6725_v5 = vpop.f32.mrb[42].mxu0  ;;  %v7129_v6 = vld [vmem:[#allocation7 + $0xa0] sm:$0xff] (!%p12654_p9) }
 0x45c   : > { %v7019_v7 = vadd.f32 %v6722_v2, %v431_v0  ;;  %v6766_v10 = vpop.f32.mrb[42].mxu1  ;;  %v6726_v40 = vpop.f32.mrb[43].mxu0  ;;  %v12664_v0 = vcombine.high (!%p12654_p9), %v7117_v58, %v7121_v61  ;;  %v7122_v2 = vld [vmem:[#allocation7 + $0x68] sm:$0xff] (!%p12654_p9)  ;;  %v12663_v5 = vcombine.low (!%p12654_p9), %v7117_v58, %v7121_v61  ;;  %v7177_v58 = vld [vmem:[#allocation7 + $0x220] sm:$0xff] (!%p12654_p9) }
 0x45d   : > { %v7020_v11 = vadd.f32 %v6724_v41, %v432_v4  ;;  %v6767_v12 = vpop.f32.mrb[43].mxu1  ;;  %v12666_v4 = vcombine.high (!%p12654_p9), %v7118_v1, %v7122_v2  ;;  %v7126_v41 = vld [vmem:[#allocation7 + $0x88] sm:$0xff] (!%p12654_p9) }
 0x45e   : > { %7027 = vst [vmem:[#allocation2 + $0x20] sm:$0xff] %v7019_v7  ;;  %10225 = vmatprep.subr.bf16.mxu0 (!%p12654_p9), %v12664_v0  ;;  %v12665_v7 = vcombine.low (!%p12654_p9), %v7118_v1, %v7122_v2  ;;  %v7137_v12 = vld [vmem:[#allocation7 + $0xe0] sm:$0xff] (!%p12654_p9) }
 0x45f   : > { %7028 = vst [vmem:[#allocation2 + $0x28] sm:$0xff] %v7020_v11  ;;  %10389 = vmatprep.subr.bf16.mxu1 (!%p12654_p9), %v12666_v4  ;;  %v7133_v11 = vld [vmem:[#allocation7 + $0xc0] sm:$0xff] (!%p12654_p9)  ;;  %10226 = vmatpush1.bf16.msra.mxu0 (!%p12654_p9), %v12663_v5  ;;  %v12722_v4 = vcombine.high (!%p12654_p9), %v7174_v62, %v7178_v63  ;;  %v7186_v5 = vld [vmem:[#allocation7 + $0x268] sm:$0xff] (!%p12654_p9) }
 0x460   : > { %10390 = vmatpush1.bf16.msra.mxu1 (!%p12654_p9), %v12665_v7  ;;  %v12719_v7 = vcombine.low (!%p12654_p9), %v7173_v57, %v7177_v58 }
 0x499   : > { %v6803_v9 = vpop.f32.mrb[44].mxu0 }
 0x49a   : > { %v6804_v42 = vadd.f32 %v6803_v9, %v6762_v3  ;;  %v6844_v13 = vpop.f32.mrb[44].mxu1  ;;  %v6805_v50 = vpop.f32.mrb[45].mxu0  ;;  %v7125_v3 = vld [vmem:[#allocation7 + $0x80] sm:$0xff] (!%p12654_p9)  ;;  %v7134_v9 = vld [vmem:[#allocation7 + $0xc8] sm:$0xff] (!%p12654_p9) }
 0x49b   : > { %v6806_v60 = vadd.f32 %v6805_v50, %v6764_v17  ;;  %v6846_v51 = vpop.f32.mrb[45].mxu1  ;;  %v6807_v15 = vpop.f32.mrb[46].mxu0  ;;  %v7130_v17 = vld [vmem:[#allocation7 + $0xa8] sm:$0xff] (!%p12654_p9)  ;;  %v12672_v10 = vcombine.high (!%p12654_p9), %v7125_v3, %v7129_v6 }
 0x49c   : > { %v6845_v14 = vadd.f32 %v6844_v13, %v6804_v42  ;;  %v6848_v28 = vpop.f32.mrb[46].mxu1  ;;  %v6808_v19 = vpop.f32.mrb[47].mxu0  ;;  %v12674_v40 = vcombine.high (!%p12654_p9), %v7126_v41, %v7130_v17  ;;  %v7138_v42 = vld [vmem:[#allocation7 + $0xe8] sm:$0xff] (!%p12654_p9)  ;;  %v12671_v13 = vcombine.low (!%p12654_p9), %v7125_v3, %v7129_v6  ;;  %v12673_v50 = vcombine.low (!%p12654_p9), %v7126_v41, %v7130_v17  ;;  %v7141_v15 = vld [vmem:[#allocation7 + $0x100] sm:$0xff] (!%p12654_p9) }
 0x49d   : > { %v6847_v52 = vadd.f32 %v6846_v51, %v6806_v60  ;;  %v6849_v43 = vpop.f32.mrb[47].mxu1  ;;  %10227 = vmatprep.subr.bf16.mxu0 (!%p12654_p9), %v12672_v10  ;;  %v12680_v60 = vcombine.high (!%p12654_p9), %v7133_v11, %v7137_v12  ;;  %v12682_v51 = vcombine.high (!%p12654_p9), %v7134_v9, %v7138_v42  ;;  %v7045_v28 = vlaneseq (!%p12654_p9)  ;;  %v7142_v19 = vld [vmem:[#allocation7 + $0x108] sm:$0xff] (!%p12654_p9)  ;;  %v7181_v6 = vld [vmem:[#allocation7 + $0x240] sm:$0xff] (!%p12654_p9) }
 0x49e   : > { %10391 = vmatprep.subr.bf16.mxu1 (!%p12654_p9), %v12674_v40  ;;  %10228 = vmatpush1.bf16.msra.mxu0 (!%p12654_p9), %v12671_v13  ;;  %v12679_v43 = vcombine.low (!%p12654_p9), %v7133_v11, %v7137_v12  ;;  %v12720_v3 = vcombine.high (!%p12654_p9), %v7173_v57, %v7177_v58  ;;  %v7185_v41 = vld [vmem:[#allocation7 + $0x260] sm:$0xff] (!%p12654_p9)  ;;  %v7182_v17 = vld [vmem:[#allocation7 + $0x248] sm:$0xff] (!%p12654_p9)  ;;  %v12721_v10 = vcombine.low (!%p12654_p9), %v7174_v62, %v7178_v63 }
 0x49f   : > { %10392 = vmatpush1.bf16.msra.mxu1 (!%p12654_p9), %v12673_v50  ;;  %10229 = vmatprep.subr.bf16.mxu0 (!%p12654_p9), %v12680_v60  ;;  %v12728_v40 = vcombine.high (!%p12654_p9), %v7181_v6, %v7185_v41  ;;  %v12730_v11 = vcombine.high (!%p12654_p9), %v7182_v17, %v7186_v5  ;;  %v7189_v12 = vld [vmem:[#allocation7 + $0x280] sm:$0xff] (!%p12654_p9)  ;;  %v7194_v13 = vld [vmem:[#allocation7 + $0x2a8] sm:$0xff] (!%p12654_p9)  ;;  %v12727_v50 = vcombine.low (!%p12654_p9), %v7181_v6, %v7185_v41 }
 0x4a0   : > { %10393 = vmatprep.subr.bf16.mxu1 (!%p12654_p9), %v12682_v51  ;;  %v12729_v60 = vcombine.low (!%p12654_p9), %v7182_v17, %v7186_v5  ;;  %v7233_v62 = vld [vmem:[#allocation7 + $0x3e0] sm:$0xff] (!%p12654_p9) }
 0x4a2   : > { %10230 = vmatpush1.bf16.msra.mxu0 (!%p12654_p9), %v12679_v43  ;;  %v7202_v43 = vld [vmem:[#allocation7 + $0x2e8] sm:$0xff] (!%p12654_p9) }
 0x4d9   : > { %v6885_v24 = vpop.f32.mrb[48].mxu0 }
 0x4da   : > { %v6886_v18 = vadd.f32 %v6885_v24, %v6845_v14  ;;  %v6926_v55 = vpop.f32.mrb[48].mxu1  ;;  %v6887_v22 = vpop.f32.mrb[49].mxu0  ;;  %v7145_v14 = vld [vmem:[#allocation7 + $0x120] sm:$0xff] (!%p12654_p9)  ;;  %v12681_v24 = vcombine.low (!%p12654_p9), %v7134_v9, %v7138_v42  ;;  %v7190_v42 = vld [vmem:[#allocation7 + $0x288] sm:$0xff] (!%p12654_p9) }
 0x4db   : > { %v6888_v26 = vadd.f32 %v6887_v22, %v6847_v52  ;;  %v6928_v16 = vpop.f32.mrb[49].mxu1  ;;  %v6889_v46 = vpop.f32.mrb[50].mxu0  ;;  %v7146_v52 = vld [vmem:[#allocation7 + $0x128] sm:$0xff] (!%p12654_p9)  ;;  %v7149_v22 = vld [vmem:[#allocation7 + $0x140] sm:$0xff] (!%p12654_p9) }
 0x4dc   : > { %v6927_v27 = vadd.f32 %v6926_v55, %v6886_v18  ;;  %v6930_v8 = vpop.f32.mrb[50].mxu1  ;;  %v6890_v59 = vpop.f32.mrb[51].mxu0  ;;  %v12688_v18 = vcombine.high (!%p12654_p9), %v7141_v15, %v7145_v14  ;;  %v12690_v55 = vcombine.high (!%p12654_p9), %v7142_v19, %v7146_v52  ;;  %v7150_v46 = vld [vmem:[#allocation7 + $0x148] sm:$0xff] (!%p12654_p9)  ;;  %10394 = vmatpush1.bf16.msra.mxu1 (!%p12654_p9), %v12681_v24  ;;  %v7193_v9 = vld [vmem:[#allocation7 + $0x2a0] sm:$0xff] (!%p12654_p9) }
 0x4dd   : > { %v6929_v29 = vadd.f32 %v6928_v16, %v6888_v26  ;;  %v6931_v33 = vpop.f32.mrb[51].mxu1  ;;  %v7153_v26 = vld [vmem:[#allocation7 + $0x160] sm:$0xff] (!%p12654_p9)  ;;  %v15203_v16 = vshrl.u32 (!%p12654_p9), %v7045_v28, 7  ;;  %v12687_v8 = vcombine.low (!%p12654_p9), %v7141_v15, %v7145_v14  ;;  %v12689_v59 = vcombine.low (!%p12654_p9), %v7142_v19, %v7146_v52  ;;  %v7198_v52 = vld [vmem:[#allocation7 + $0x2c8] sm:$0xff] (!%p12654_p9) }
 0x4de   : > { %10231 = vmatprep.subr.bf16.mxu0 (!%p12654_p9), %v12688_v18  ;;  %10395 = vmatprep.subr.bf16.mxu1 (!%p12654_p9), %v12690_v55  ;;  %v12736_v51 = vcombine.high (!%p12654_p9), %v7189_v12, %v7193_v9  ;;  %v12738_v15 = vcombine.high (!%p12654_p9), %v7190_v42, %v7194_v13  ;;  %v7197_v14 = vld [vmem:[#allocation7 + $0x2c0] sm:$0xff] (!%p12654_p9)  ;;  %v12735_v24 = vcombine.low (!%p12654_p9), %v7189_v12, %v7193_v9  ;;  %v7242_v12 = vld [vmem:[#allocation7 + $0x428] sm:$0xff] (!%p12654_p9) }
 0x4df   : > { %10232 = vmatpush1.bf16.msra.mxu0 (!%p12654_p9), %v12687_v8  ;;  %v7201_v19 = vld [vmem:[#allocation7 + $0x2e0] sm:$0xff] (!%p12654_p9)  ;;  %v12737_v18 = vcombine.low (!%p12654_p9), %v7190_v42, %v7194_v13  ;;  %v7210_v8 = vld [vmem:[#allocation7 + $0x328] sm:$0xff] (!%p12654_p9) }
 0x4e0   : > { %10396 = vmatpush1.bf16.msra.mxu1 (!%p12654_p9), %v12689_v59  ;;  %v12744_v55 = vcombine.high (!%p12654_p9), %v7197_v14, %v7201_v19  ;;  %v12743_v59 = vcombine.low (!%p12654_p9), %v7197_v14, %v7201_v19 }
 0x519   : > { %v6967_v31 = vpop.f32.mrb[52].mxu0 }
 0x51a   : > { %v6968_v32 = vadd.f32 %v6967_v31, %v6927_v27  ;;  %v7008_v34 = vpop.f32.mrb[52].mxu1  ;;  %v6969_v35 = vpop.f32.mrb[53].mxu0  ;;  %v7154_v27 = vld [vmem:[#allocation7 + $0x168] sm:$0xff] (!%p12654_p9)  ;;  %v7157_v31 = vld [vmem:[#allocation7 + $0x180] sm:$0xff] (!%p12654_p9) }
 0x51b   : > { %v6970_v44 = vadd.f32 %v6969_v35, %v6929_v29  ;;  %v7010_v21 = vpop.f32.mrb[53].mxu1  ;;  %v6971_v36 = vpop.f32.mrb[54].mxu0  ;;  %7034 = sbr.rel (%p12654_p9) target bundleno = 2557 (0x9fd), region = 80  ;;  %v12696_v29 = vcombine.high (!%p12654_p9), %v7149_v22, %v7153_v26  ;;  %v12698_v33 = vcombine.high (!%p12654_p9), %v7150_v46, %v7154_v27  ;;  %v7158_v35 = vld [vmem:[#allocation7 + $0x188] sm:$0xff] (!%p12654_p9) }
 0x51c   : > { %v7009_v37 = vadd.f32 %v7008_v34, %v6968_v32  ;;  %v7012_v39 = vpop.f32.mrb[54].mxu1  ;;  %v6972_v45 = vpop.f32.mrb[55].mxu0  ;;  %v7161_v32 = vld [vmem:[#allocation7 + $0x1a0] sm:$0xff] (!%p12654_p9)  ;;  %v7051_v34 = vsub.s32 (!%p12654_p9), 1, %v15203_v16 }
 0x51d   : > { %v7011_v20 = vadd.f32 %v7010_v21, %v6970_v44  ;;  %v7013_v47 = vpop.f32.mrb[55].mxu1  ;;  %v12695_v44 = vcombine.low (!%p12654_p9), %v7149_v22, %v7153_v26  ;;  %10233 = vmatprep.subr.bf16.mxu0 (!%p12654_p9), %v12696_v29  ;;  %v12697_v21 = vcombine.low (!%p12654_p9), %v7150_v46, %v7154_v27  ;;  %v12704_v36 = vcombine.high (!%p12654_p9), %v7157_v31, %v7161_v32  ;;  %v7165_v45 = vld [vmem:[#allocation7 + $0x1c0] sm:$0xff] (!%p12654_p9)  ;;  %v7206_v27 = vld [vmem:[#allocation7 + $0x308] sm:$0xff] (!%p12654_p9) }
 0x51e   : > { %v7021_v30 = vadd.f32 %v7009_v37, %v433_v38  ;;  %v7162_v38 = vld [vmem:[#allocation7 + $0x1a8] sm:$0xff] (!%p12654_p9)  ;;  %v7036_v37 = vld [vmem:[#allocation2 + $0x8] sm:$0xff] (!%p12654_p9)  ;;  %10397 = vmatprep.subr.bf16.mxu1 (!%p12654_p9), %v12698_v33  ;;  %v12703_v25 = vcombine.low (!%p12654_p9), %v7157_v31, %v7161_v32  ;;  %v12746_v22 = vcombine.high (!%p12654_p9), %v7198_v52, %v7202_v43  ;;  %v12745_v29 = vcombine.low (!%p12654_p9), %v7198_v52, %v7202_v43 }
 0x51f   : > { %v7022_v49 = vadd.f32 %v7011_v20, %v434_v23  ;;  %v15206_v23 = vld [vmem:[#allocation5] sm:$0xff] (!%p12654_p9)  ;;  %v12706_v39 = vcombine.high (!%p12654_p9), %v7158_v35, %v7162_v38  ;;  %v7169_v20 = vld [vmem:[#allocation7 + $0x1e0] sm:$0xff] (!%p12654_p9)  ;;  %10234 = vmatpush1.bf16.msra.mxu0 (!%p12654_p9), %v12695_v44  ;;  %10398 = vmatpush1.bf16.msra.mxu1 (!%p12654_p9), %v12697_v21  ;;  %v12705_v54 = vcombine.low (!%p12654_p9), %v7158_v35, %v7162_v38  ;;  %v7214_v38 = vld [vmem:[#allocation7 + $0x348] sm:$0xff] (!%p12654_p9)  ;;  %v7047_v21 = vsub.s32 (!%p12654_p9), 0, %v15203_v16 }
 0x520   : > { %7029 = vst [vmem:[#allocation2 + $0x30] sm:$0xff] %v7021_v30  ;;  %v7052_v47 = vrot.slane (!%p12654_p9), %v15206_v23, %v7051_v34  ;;  %v7166_v30 = vld [vmem:[#allocation7 + $0x1c8] sm:$0xff] (!%p12654_p9)  ;;  %10235 = vmatprep.subr.bf16.mxu0 (!%p12654_p9), %v12704_v36  ;;  %v12712_v53 = vcombine.high (!%p12654_p9), %v7165_v45, %v7169_v20  ;;  %v12711_v0 = vcombine.low (!%p12654_p9), %v7165_v45, %v7169_v20  ;;  %v7205_v26 = vld [vmem:[#allocation7 + $0x300] sm:$0xff] (!%p12654_p9) }
 0x521   : > { %7030 = vst [vmem:[#allocation2 + $0x38] sm:$0xff] %v7022_v49  ;;  %v7170_v49 = vld [vmem:[#allocation7 + $0x1e8] sm:$0xff] (!%p12654_p9)  ;;  %10399 = vmatprep.subr.bf16.mxu1 (!%p12654_p9), %v12706_v39  ;;  %v7209_v46 = vld [vmem:[#allocation7 + $0x320] sm:$0xff] (!%p12654_p9)  ;;  %v12754_v31 = vcombine.high (!%p12654_p9), %v7206_v27, %v7210_v8 }
 0x522   : > { %v7086_v48 = vadd.f32 %v7052_v47, %v7036_v37  ;;  %v12714_v56 = vcombine.high %v7166_v30, %v7170_v49  ;;  %v12713_v2 = vcombine.low %v7166_v30, %v7170_v49  ;;  %v12752_v33 = vcombine.high %v7205_v26, %v7209_v46  ;;  %v7213_v32 = vld [vmem:[#allocation7 + $0x340] sm:$0xff]  ;;  %v7218_v44 = vld [vmem:[#allocation7 + $0x368] sm:$0xff] }
 0x523   : > { %10236 = vmatpush1.bf16.msra.mxu0 %v12703_v25  ;;  %10400 = vmatpush1.bf16.msra.mxu1 %v12705_v54  ;;  %v7217_v35 = vld [vmem:[#allocation7 + $0x360] sm:$0xff]  ;;  %v12751_v36 = vcombine.low %v7205_v26, %v7209_v46  ;;  %v12753_v37 = vcombine.low %v7206_v27, %v7210_v8  ;;  %v12762_v45 = vcombine.high %v7214_v38, %v7218_v44  ;;  %v7059_v30 = vsub.s32 3, %v15203_v16  ;;  %v7222_v49 = vld [vmem:[#allocation7 + $0x388] sm:$0xff] }
 0x524   : > { %v7094_v61 = vmax.f32 %v7086_v48, 0.0  ;;  %10237 = vmatprep.subr.bf16.mxu0 %v12712_v53  ;;  %10401 = vmatprep.subr.bf16.mxu1 %v12714_v56  ;;  %v12760_v39 = vcombine.high %v7213_v32, %v7217_v35  ;;  %v7221_v20 = vld [vmem:[#allocation7 + $0x380] sm:$0xff]  ;;  %v7226_v25 = vld [vmem:[#allocation7 + $0x3a8] sm:$0xff]  ;;  %v7048_v48 = vrot.slane %v15206_v23, %v7047_v21  ;;  %v12759_v54 = vcombine.low %v7213_v32, %v7217_v35  ;;  %v7035_v53 = vld [vmem:[#allocation2] sm:$0xff] }
 0x525   : > { %v7225_v47 = vld [vmem:[#allocation7 + $0x3a0] sm:$0xff]  ;;  %v12761_v56 = vcombine.low %v7214_v38, %v7218_v44  ;;  %v12770_v58 = vcombine.high %v7222_v49, %v7226_v25  ;;  %v7060_v63 = vrot.slane %v15206_v23, %v7059_v30  ;;  %v12769_v41 = vcombine.low %v7222_v49, %v7226_v25  ;;  %v7246_v52 = vld [vmem:[#allocation7 + $0x448] sm:$0xff] }
 0x526   : > { %v15211_v1 = vpack.c.bf16 %v7094_v61, %v7094_v61  ;;  %v12768_v57 = vcombine.high %v7221_v20, %v7225_v47  ;;  %v7229_v61 = vld [vmem:[#allocation7 + $0x3c0] sm:$0xff]  ;;  %v12767_v6 = vcombine.low %v7221_v20, %v7225_v47  ;;  %v7250_v43 = vld [vmem:[#allocation7 + $0x468] sm:$0xff] }
 0x527   : > { %10238 = vmatpush1.bf16.msra.mxu0 %v12711_v0  ;;  %10402 = vmatpush1.bf16.msra.mxu1 %v12713_v2  ;;  %v7230_v0 = vld [vmem:[#allocation7 + $0x3c8] sm:$0xff]  ;;  %v12776_v17 = vcombine.high %v7229_v61, %v7233_v62  ;;  %v12775_v42 = vcombine.low %v7229_v61, %v7233_v62  ;;  %v7253_v26 = vld [vmem:[#allocation7 + $0x480] sm:$0xff] }
 0x528   : > { %10255 = vmatprep.mubr.bf16.mxu0 %v15211_v1  ;;  %10419 = vmatprep.mubr.bf16.mxu1 %v15211_v1  ;;  %v7234_v2 = vld [vmem:[#allocation7 + $0x3e8] sm:$0xff]  ;;  %v7257_v46 = vld [vmem:[#allocation7 + $0x4a0] sm:$0xff] }
 0x529   : > { %10239 = vmatprep.subr.bf16.mxu0 %v12720_v3  ;;  %10403 = vmatprep.subr.bf16.mxu1 %v12722_v4  ;;  %v7085_v3 = vadd.f32 %v7048_v48, %v7035_v53  ;;  %v7038_v4 = vld [vmem:[#allocation2 + $0x18] sm:$0xff]  ;;  %v12778_v5 = vcombine.high %v7230_v0, %v7234_v2  ;;  %v12777_v13 = vcombine.low %v7230_v0, %v7234_v2  ;;  %v7254_v8 = vld [vmem:[#allocation7 + $0x488] sm:$0xff]  ;;  %v7261_v32 = vld [vmem:[#allocation7 + $0x4c0] sm:$0xff] }
 0x52a   : > { %v7265_v35 = vld [vmem:[#allocation7 + $0x4e0] sm:$0xff]  ;;  %v7262_v38 = vld [vmem:[#allocation7 + $0x4c8] sm:$0xff] }
 0x52b   : > { %10240 = vmatpush1.bf16.msra.mxu0 %v12719_v7  ;;  %10404 = vmatpush1.bf16.msra.mxu1 %v12721_v10  ;;  %v7237_v7 = vld [vmem:[#allocation7 + $0x400] sm:$0xff]  ;;  %v7093_v9 = vmax.f32 %v7085_v3, 0.0  ;;  %v7270_v49 = vld [vmem:[#allocation7 + $0x508] sm:$0xff] }
 0x52c   : > { %10241 = vmatprep.subr.bf16.mxu0 %v12728_v40  ;;  %10405 = vmatprep.subr.bf16.mxu1 %v12730_v11  ;;  %v7241_v10 = vld [vmem:[#allocation7 + $0x420] sm:$0xff]  ;;  %v7088_v40 = vadd.f32 %v7060_v63, %v7038_v4  ;;  %v7238_v11 = vld [vmem:[#allocation7 + $0x408] sm:$0xff] }
 0x52d   : > { %v15223_v19 = vpack.c.bf16 %v7093_v9, %v7093_v9  ;;  %v7269_v20 = vld [vmem:[#allocation7 + $0x500] sm:$0xff]  ;;  %v7274_v48 = vld [vmem:[#allocation7 + $0x528] sm:$0xff] }
 0x52e   : > { %v7096_v14 = vmax.f32 %v7088_v40, 0.0  ;;  %v7273_v47 = vld [vmem:[#allocation7 + $0x520] sm:$0xff]  ;;  %v7278_v61 = vld [vmem:[#allocation7 + $0x548] sm:$0xff]  ;;  %v12818_v62 = vcombine.high %v7270_v49, %v7274_v48  ;;  %v12817_v2 = vcombine.low %v7270_v49, %v7274_v48 }
 0x52f   : > { %10242 = vmatpush1.bf16.msra.mxu0 %v12727_v50  ;;  %10406 = vmatpush1.bf16.msra.mxu1 %v12729_v60  ;;  %v12784_v50 = vcombine.high %v7237_v7, %v7241_v10  ;;  %v12786_v60 = vcombine.high %v7238_v11, %v7242_v12  ;;  %v7282_v63 = vld [vmem:[#allocation7 + $0x568] sm:$0xff]  ;;  %v12815_v0 = vcombine.low %v7269_v20, %v7273_v47  ;;  %v7285_v4 = vld [vmem:[#allocation7 + $0x580] sm:$0xff] }
 0x530   : > { %10243 = vmatprep.subr.bf16.mxu0 %v12736_v51  ;;  %10407 = vmatprep.subr.bf16.mxu1 %v12738_v15  ;;  %v7245_v51 = vld [vmem:[#allocation7 + $0x440] sm:$0xff]  ;;  %v15225_v27 = vpack.c.bf16 %v7096_v14, %v7096_v14  ;;  %v7294_v9 = vld [vmem:[#allocation7 + $0x5c8] sm:$0xff] }
 0x531   : > { %v7249_v15 = vld [vmem:[#allocation7 + $0x460] sm:$0xff] }
 0x532   : > { %v7305_v14 = vld [vmem:[#allocation7 + $0x620] sm:$0xff] }
 0x533   : > { %10244 = vmatpush1.bf16.msra.mxu0 %v12735_v24  ;;  %10408 = vmatpush1.bf16.msra.mxu1 %v12737_v18  ;;  %v12783_v24 = vcombine.low %v7237_v7, %v7241_v10  ;;  %v12785_v18 = vcombine.low %v7238_v11, %v7242_v12  ;;  %v12825_v10 = vcombine.low %v7278_v61, %v7282_v63  ;;  %v7293_v11 = vld [vmem:[#allocation7 + $0x5c0] sm:$0xff] }
 0x534   : > { %10245 = vmatprep.subr.bf16.mxu0 %v12744_v55  ;;  %10409 = vmatprep.subr.bf16.mxu1 %v12746_v22  ;;  %v12792_v55 = vcombine.high %v7245_v51, %v7249_v15  ;;  %v12794_v22 = vcombine.high %v7246_v52, %v7250_v43  ;;  %v7297_v12 = vld [vmem:[#allocation7 + $0x5e0] sm:$0xff] }
 0x535   : > { %v7329_v49 = vld [vmem:[#allocation7 + $0x6e0] sm:$0xff] }
 0x537   : > { %10246 = vmatpush1.bf16.msra.mxu0 %v12743_v59  ;;  %10410 = vmatpush1.bf16.msra.mxu1 %v12745_v29  ;;  %v7258_v59 = vld [vmem:[#allocation7 + $0x4a8] sm:$0xff]  ;;  %v12791_v29 = vcombine.low %v7245_v51, %v7249_v15  ;;  %v12840_v51 = vcombine.high %v7293_v11, %v7297_v12  ;;  %v7301_v15 = vld [vmem:[#allocation7 + $0x600] sm:$0xff] }
 0x538   : > { %10247 = vmatprep.subr.bf16.mxu0 %v12752_v33  ;;  %10411 = vmatprep.subr.bf16.mxu1 %v12754_v31  ;;  %v12793_v33 = vcombine.low %v7246_v52, %v7250_v43  ;;  %v12800_v31 = vcombine.high %v7253_v26, %v7257_v46  ;;  %v12802_v44 = vcombine.high %v7254_v8, %v7258_v59  ;;  %v7302_v52 = vld [vmem:[#allocation7 + $0x608] sm:$0xff] }
 0x53b   : > { %10248 = vmatpush1.bf16.msra.mxu0 %v12751_v36  ;;  %10412 = vmatpush1.bf16.msra.mxu1 %v12753_v37  ;;  %v7266_v36 = vld [vmem:[#allocation7 + $0x4e8] sm:$0xff]  ;;  %v12799_v37 = vcombine.low %v7253_v26, %v7257_v46  ;;  %v7309_v26 = vld [vmem:[#allocation7 + $0x640] sm:$0xff] }
 0x53c   : > { %10249 = vmatprep.subr.bf16.mxu0 %v12760_v39  ;;  %10413 = vmatprep.subr.bf16.mxu1 %v12762_v45  ;;  %v12801_v39 = vcombine.low %v7254_v8, %v7258_v59  ;;  %v12808_v45 = vcombine.high %v7261_v32, %v7265_v35  ;;  %v12810_v25 = vcombine.high %v7262_v38, %v7266_v36  ;;  %v7313_v46 = vld [vmem:[#allocation7 + $0x660] sm:$0xff]  ;;  %v7310_v8 = vld [vmem:[#allocation7 + $0x648] sm:$0xff] }
 0x53d   : > { %v12809_v53 = vcombine.low %v7262_v38, %v7266_v36  ;;  %v7321_v38 = vld [vmem:[#allocation7 + $0x6a0] sm:$0xff] }
 0x53f   : > { %10250 = vmatpush1.bf16.msra.mxu0 %v12759_v54  ;;  %10414 = vmatpush1.bf16.msra.mxu1 %v12761_v56  ;;  %v12807_v54 = vcombine.low %v7261_v32, %v7265_v35  ;;  %v12816_v56 = vcombine.high %v7269_v20, %v7273_v47  ;;  %v12856_v32 = vcombine.high %v7309_v26, %v7313_v46  ;;  %v7317_v35 = vld [vmem:[#allocation7 + $0x680] sm:$0xff] }
 0x540   : > { %10251 = vmatprep.subr.bf16.mxu0 %v12768_v57  ;;  %10415 = vmatprep.subr.bf16.mxu1 %v12770_v58  ;;  %v7277_v57 = vld [vmem:[#allocation7 + $0x540] sm:$0xff]  ;;  %v12864_v20 = vcombine.high %v7317_v35, %v7321_v38 }
 0x541   : > { %v7281_v58 = vld [vmem:[#allocation7 + $0x560] sm:$0xff] }
 0x542   : > { %v12824_v3 = vcombine.high %v7277_v57, %v7281_v58  ;;  %v12823_v7 = vcombine.low %v7277_v57, %v7281_v58  ;;  %v7325_v47 = vld [vmem:[#allocation7 + $0x6c0] sm:$0xff] }
 0x543   : > { %10252 = vmatpush1.bf16.msra.mxu0 %v12767_v6  ;;  %10416 = vmatpush1.bf16.msra.mxu1 %v12769_v41  ;;  %v7289_v6 = vld [vmem:[#allocation7 + $0x5a0] sm:$0xff]  ;;  %v7286_v41 = vld [vmem:[#allocation7 + $0x588] sm:$0xff]  ;;  %v12872_v57 = vcombine.high %v7325_v47, %v7329_v49 }
 0x544   : > { %10253 = vmatprep.subr.bf16.mxu0 %v12776_v17  ;;  %10417 = vmatprep.subr.bf16.mxu1 %v12778_v5  ;;  %v12826_v17 = vcombine.high %v7278_v61, %v7282_v63  ;;  %v7290_v5 = vld [vmem:[#allocation7 + $0x5a8] sm:$0xff]  ;;  %v12832_v40 = vcombine.high %v7285_v4, %v7289_v6  ;;  %v7333_v58 = vld [vmem:[#allocation7 + $0x700] sm:$0xff] }
 0x545   : > { %v7337_v61 = vld [vmem:[#allocation7 + $0x720] sm:$0xff] }
 0x547   : > { %10254 = vmatpush1.bf16.msra.mxu0 %v12775_v42  ;;  %10418 = vmatpush1.bf16.msra.mxu1 %v12777_v13  ;;  %v12834_v42 = vcombine.high %v7286_v41, %v7290_v5  ;;  %v7298_v13 = vld [vmem:[#allocation7 + $0x5e8] sm:$0xff] }
 0x548   : > { %10264 = vmatprep.subr.bf16.mxu0 %v12784_v50  ;;  %10428 = vmatprep.subr.bf16.mxu1 %v12786_v60  ;;  %v12831_v50 = vcombine.low %v7285_v4, %v7289_v6  ;;  %v12833_v60 = vcombine.low %v7286_v41, %v7290_v5  ;;  %v12842_v43 = vcombine.high %v7294_v9, %v7298_v13  ;;  %v7341_v6 = vld [vmem:[#allocation7 + $0x740] sm:$0xff] }
 0x549   : > { %v12880_v4 = vcombine.high %v7333_v58, %v7337_v61  ;;  %v7345_v41 = vld [vmem:[#allocation7 + $0x760] sm:$0xff] }
 0x54a   : > { %10256 = vmatmul.mubr.bf16.vlgmr.msra.gmra.mrb[0].mxu0 %v15223_v19  ;;  %10420 = vmatmul.mubr.bf16.vlgmr.msra.gmra.mrb[0].mxu1 %v15223_v19 }
 0x54b   : > { %10265 = vmatpush1.bf16.msra.mxu0 %v12783_v24  ;;  %10429 = vmatpush1.bf16.msra.mxu1 %v12785_v18  ;;  %v7306_v24 = vld [vmem:[#allocation7 + $0x628] sm:$0xff]  ;;  %v12839_v18 = vcombine.low %v7293_v11, %v7297_v12  ;;  %v7349_v11 = vld [vmem:[#allocation7 + $0x780] sm:$0xff] }
 0x54c   : > { %10266 = vmatprep.subr.bf16.mxu0 %v12792_v55  ;;  %10430 = vmatprep.subr.bf16.mxu1 %v12794_v22  ;;  %v12841_v55 = vcombine.low %v7294_v9, %v7298_v13  ;;  %v12848_v22 = vcombine.high %v7301_v15, %v7305_v14  ;;  %v12850_v59 = vcombine.high %v7302_v52, %v7306_v24  ;;  %v7350_v13 = vld [vmem:[#allocation7 + $0x788] sm:$0xff] }
 0x54d   : > { %10296 = vmatprep.mubr.bf16.mxu0 %v15225_v27  ;;  %10460 = vmatprep.mubr.bf16.mxu1 %v15225_v27  ;;  %v12888_v9 = vcombine.high %v7341_v6, %v7345_v41 }
 0x54f   : > { %10267 = vmatpush1.bf16.msra.mxu0 %v12791_v29  ;;  %10431 = vmatpush1.bf16.msra.mxu1 %v12793_v33  ;;  %v7314_v29 = vld [vmem:[#allocation7 + $0x668] sm:$0xff]  ;;  %v12847_v33 = vcombine.low %v7301_v15, %v7305_v14  ;;  %v7067_v14 = vsub.s32 5, %v15203_v16 }
 0x550   : > { %10268 = vmatprep.subr.bf16.mxu0 %v12800_v31  ;;  %10432 = vmatprep.subr.bf16.mxu1 %v12802_v44  ;;  %v12849_v31 = vcombine.low %v7302_v52, %v7306_v24  ;;  %v7318_v44 = vld [vmem:[#allocation7 + $0x688] sm:$0xff]  ;;  %v12858_v36 = vcombine.high %v7310_v8, %v7314_v29  ;;  %v12887_v52 = vcombine.low %v7341_v6, %v7345_v41 }
 0x553   : > { %10269 = vmatpush1.bf16.msra.mxu0 %v12799_v37  ;;  %10433 = vmatpush1.bf16.msra.mxu1 %v12801_v39  ;;  %v7322_v37 = vld [vmem:[#allocation7 + $0x6a8] sm:$0xff]  ;;  %v12855_v39 = vcombine.low %v7309_v26, %v7313_v46 }
 0x554   : > { %10270 = vmatprep.subr.bf16.mxu0 %v12808_v45  ;;  %10434 = vmatprep.subr.bf16.mxu1 %v12810_v25  ;;  %v12857_v45 = vcombine.low %v7310_v8, %v7314_v29  ;;  %v7326_v25 = vld [vmem:[#allocation7 + $0x6c8] sm:$0xff]  ;;  %v12866_v48 = vcombine.high %v7318_v44, %v7322_v37  ;;  %v7068_v29 = vrot.slane %v15206_v23, %v7067_v14 }
 0x555   : > { %v7362_v26 = vld [vmem:[#allocation7 + $0x7e8] sm:$0xff] }
 0x557   : > { %10271 = vmatpush1.bf16.msra.mxu0 %v12807_v54  ;;  %10435 = vmatpush1.bf16.msra.mxu1 %v12809_v53  ;;  %v7330_v54 = vld [vmem:[#allocation7 + $0x6e8] sm:$0xff]  ;;  %v12863_v53 = vcombine.low %v7317_v35, %v7321_v38  ;;  %v7365_v35 = vld [vmem:[#allocation7 + $0x800] sm:$0xff] }
 0x558   : > { %10272 = vmatprep.subr.bf16.mxu0 %v12816_v56  ;;  %10436 = vmatprep.subr.bf16.mxu1 %v12818_v62  ;;  %v12865_v56 = vcombine.low %v7318_v44, %v7322_v37  ;;  %v7334_v62 = vld [vmem:[#allocation7 + $0x708] sm:$0xff]  ;;  %v12874_v63 = vcombine.high %v7326_v25, %v7330_v54  ;;  %v7369_v38 = vld [vmem:[#allocation7 + $0x820] sm:$0xff] }
 0x559   : > { %v7366_v44 = vld [vmem:[#allocation7 + $0x808] sm:$0xff] }
 0x55a   : > { %v7370_v37 = vld [vmem:[#allocation7 + $0x828] sm:$0xff] }
 0x55b   : > { %10273 = vmatpush1.bf16.msra.mxu0 %v12815_v0  ;;  %10437 = vmatpush1.bf16.msra.mxu1 %v12817_v2  ;;  %v7338_v0 = vld [vmem:[#allocation7 + $0x728] sm:$0xff]  ;;  %v12871_v2 = vcombine.low %v7325_v47, %v7329_v49  ;;  %v7373_v49 = vld [vmem:[#allocation7 + $0x840] sm:$0xff] }
 0x55c   : > { %10274 = vmatprep.subr.bf16.mxu0 %v12824_v3  ;;  %10438 = vmatprep.subr.bf16.mxu1 %v12826_v17  ;;  %v12873_v3 = vcombine.low %v7326_v25, %v7330_v54  ;;  %v7342_v17 = vld [vmem:[#allocation7 + $0x748] sm:$0xff]  ;;  %v12882_v5 = vcombine.high %v7334_v62, %v7338_v0  ;;  %v12881_v12 = vcombine.low %v7334_v62, %v7338_v0  ;;  %v7385_v0 = vld [vmem:[#allocation7 + $0x8a0] sm:$0xff] }
 0x55d   : > { %v12914_v25 = vcombine.high %v7366_v44, %v7370_v37  ;;  %v7374_v54 = vld [vmem:[#allocation7 + $0x848] sm:$0xff] }
 0x55f   : > { %10275 = vmatpush1.bf16.msra.mxu0 %v12823_v7  ;;  %10439 = vmatpush1.bf16.msra.mxu1 %v12825_v10  ;;  %v7346_v7 = vld [vmem:[#allocation7 + $0x768] sm:$0xff]  ;;  %v7055_v10 = vsub.s32 2, %v15203_v16 }
 0x560   : > { %10276 = vmatprep.subr.bf16.mxu0 %v12832_v40  ;;  %10440 = vmatprep.subr.bf16.mxu1 %v12834_v42  ;;  %v12879_v40 = vcombine.low %v7333_v58, %v7337_v61  ;;  %v7353_v42 = vld [vmem:[#allocation7 + $0x7a0] sm:$0xff]  ;;  %v12889_v24 = vcombine.low %v7342_v17, %v7346_v7  ;;  %v12911_v58 = vcombine.low %v7365_v35, %v7369_v38 }
 0x561   : > { %v7056_v15 = vrot.slane %v15206_v23, %v7055_v10  ;;  %v12912_v23 = vcombine.high %v7365_v35, %v7369_v38  ;;  %v12913_v61 = vcombine.low %v7366_v44, %v7370_v37  ;;  %v7413_v35 = vld [vmem:[#allocation7 + $0x980] sm:$0xff]  ;;  %v7414_v44 = vld [vmem:[#allocation7 + $0x988] sm:$0xff] }
 0x562   : > { %v7417_v38 = vld [vmem:[#allocation7 + $0x9a0] sm:$0xff] }
 0x563   : > { %10277 = vmatpush1.bf16.msra.mxu0 %v12831_v50  ;;  %10441 = vmatpush1.bf16.msra.mxu1 %v12833_v60  ;;  %v7354_v50 = vld [vmem:[#allocation7 + $0x7a8] sm:$0xff]  ;;  %v12890_v60 = vcombine.high %v7342_v17, %v7346_v7 }
 0x564   : > { %10278 = vmatprep.subr.bf16.mxu0 %v12840_v51  ;;  %10442 = vmatprep.subr.bf16.mxu1 %v12842_v43  ;;  %v7037_v51 = vld [vmem:[#allocation2 + $0x10] sm:$0xff]  ;;  %v7357_v43 = vld [vmem:[#allocation7 + $0x7c0] sm:$0xff]  ;;  %v12898_v46 = vcombine.high %v7350_v13, %v7354_v50 }
 0x565   : > { %v7087_v8 = vadd.f32 %v7056_v15, %v7037_v51  ;;  %v7397_v51 = vld [vmem:[#allocation7 + $0x900] sm:$0xff] }
 0x566   : > { %v7401_v15 = vld [vmem:[#allocation7 + $0x920] sm:$0xff] }
 0x567   : > { %10279 = vmatpush1.bf16.msra.mxu0 %v12839_v18  ;;  %10443 = vmatpush1.bf16.msra.mxu1 %v12841_v55  ;;  %v12896_v18 = vcombine.high %v7349_v11, %v7353_v42  ;;  %v7361_v55 = vld [vmem:[#allocation7 + $0x7e0] sm:$0xff] }
 0x568   : > { %10280 = vmatprep.subr.bf16.mxu0 %v12848_v22  ;;  %10444 = vmatprep.subr.bf16.mxu1 %v12850_v59  ;;  %v7358_v22 = vld [vmem:[#allocation7 + $0x7c8] sm:$0xff]  ;;  %v7040_v59 = vld [vmem:[#allocation2 + $0x28] sm:$0xff] }
 0x569   : > { %v12905_v47 = vcombine.low %v7358_v22, %v7362_v26 }
 0x56b   : > { %10281 = vmatpush1.bf16.msra.mxu0 %v12847_v33  ;;  %10445 = vmatpush1.bf16.msra.mxu1 %v12849_v31  ;;  %v12895_v33 = vcombine.low %v7349_v11, %v7353_v42  ;;  %v12897_v31 = vcombine.low %v7350_v13, %v7354_v50  ;;  %v7393_v11 = vld [vmem:[#allocation7 + $0x8e0] sm:$0xff] }
 0x56c   : > { %10282 = vmatprep.subr.bf16.mxu0 %v12856_v32  ;;  %10446 = vmatprep.subr.bf16.mxu1 %v12858_v36  ;;  %v12904_v32 = vcombine.high %v7357_v43, %v7361_v55  ;;  %v12906_v36 = vcombine.high %v7358_v22, %v7362_v26  ;;  %v7405_v26 = vld [vmem:[#allocation7 + $0x940] sm:$0xff] }
 0x56f   : > { %10283 = vmatpush1.bf16.msra.mxu0 %v12855_v39  ;;  %10447 = vmatpush1.bf16.msra.mxu1 %v12857_v45  ;;  %v7095_v39 = vmax.f32 %v7087_v8, 0.0  ;;  %v7090_v45 = vadd.f32 %v7068_v29, %v7040_v59  ;;  %v7406_v8 = vld [vmem:[#allocation7 + $0x948] sm:$0xff]  ;;  %v12943_v29 = vcombine.low %v7397_v51, %v7401_v15 }
 0x570   : > { %10284 = vmatprep.subr.bf16.mxu0 %v12864_v20  ;;  %10448 = vmatprep.subr.bf16.mxu1 %v12866_v48  ;;  %v12903_v20 = vcombine.low %v7357_v43, %v7361_v55  ;;  %v7377_v48 = vld [vmem:[#allocation7 + $0x860] sm:$0xff]  ;;  %v7402_v43 = vld [vmem:[#allocation7 + $0x928] sm:$0xff]  ;;  %v12944_v55 = vcombine.high %v7397_v51, %v7401_v15 }
 0x571   : > { %v12920_v62 = vcombine.high %v7373_v49, %v7377_v48  ;;  %v12919_v41 = vcombine.low %v7373_v49, %v7377_v48  ;;  %v7410_v59 = vld [vmem:[#allocation7 + $0x968] sm:$0xff]  ;;  %v12959_v48 = vcombine.low %v7413_v35, %v7417_v38 }
 0x572   : > { %v7422_v49 = vld [vmem:[#allocation7 + $0x9c8] sm:$0xff] }
 0x573   : > { %10285 = vmatpush1.bf16.msra.mxu0 %v12863_v53  ;;  %10449 = vmatpush1.bf16.msra.mxu1 %v12865_v56  ;;  %v7098_v53 = vmax.f32 %v7090_v45, 0.0  ;;  %v15239_v56 = vpack.c.bf16 %v7095_v39, %v7095_v39  ;;  %v12953_v39 = vcombine.low %v7406_v8, %v7410_v59  ;;  %v12960_v45 = vcombine.high %v7413_v35, %v7417_v38 }
 0x574   : > { %10286 = vmatprep.subr.bf16.mxu0 %v12872_v57  ;;  %10450 = vmatprep.subr.bf16.mxu1 %v12874_v63  ;;  %v7378_v57 = vld [vmem:[#allocation7 + $0x868] sm:$0xff]  ;;  %v7381_v63 = vld [vmem:[#allocation7 + $0x880] sm:$0xff] }
 0x575   : > { %v15241_v6 = vpack.c.bf16 %v7098_v53, %v7098_v53  ;;  %v12921_v17 = vcombine.low %v7374_v54, %v7378_v57  ;;  %v12927_v42 = vcombine.low %v7381_v63, %v7385_v0 }
 0x577   : > { %10287 = vmatpush1.bf16.msra.mxu0 %v12871_v2  ;;  %10451 = vmatpush1.bf16.msra.mxu1 %v12873_v3  ;;  %v7382_v2 = vld [vmem:[#allocation7 + $0x888] sm:$0xff]  ;;  %v12922_v3 = vcombine.high %v7374_v54, %v7378_v57 }
 0x578   : > { %10288 = vmatprep.subr.bf16.mxu0 %v12880_v4  ;;  %10452 = vmatprep.subr.bf16.mxu1 %v12882_v5  ;;  %v7386_v4 = vld [vmem:[#allocation7 + $0x8a8] sm:$0xff]  ;;  %v12928_v5 = vcombine.high %v7381_v63, %v7385_v0 }
 0x579   : > { %v12930_v7 = vcombine.high %v7382_v2, %v7386_v4  ;;  %v12929_v13 = vcombine.low %v7382_v2, %v7386_v4  ;;  %v7434_v63 = vld [vmem:[#allocation7 + $0xa28] sm:$0xff] }
 0x57b   : > { %10289 = vmatpush1.bf16.msra.mxu0 %v12879_v40  ;;  %10453 = vmatpush1.bf16.msra.mxu1 %v12881_v12  ;;  %v7389_v40 = vld [vmem:[#allocation7 + $0x8c0] sm:$0xff]  ;;  %v7390_v12 = vld [vmem:[#allocation7 + $0x8c8] sm:$0xff] }
 0x57c   : > { %10290 = vmatprep.subr.bf16.mxu0 %v12888_v9  ;;  %10454 = vmatprep.subr.bf16.mxu1 %v12890_v60  ;;  %v7394_v9 = vld [vmem:[#allocation7 + $0x8e8] sm:$0xff]  ;;  %v12936_v50 = vcombine.high %v7389_v40, %v7393_v11 }
 0x57d   : > { %v12938_v60 = vcombine.high %v7390_v12, %v7394_v9 }
 0x57f   : > { %10291 = vmatpush1.bf16.msra.mxu0 %v12887_v52  ;;  %10455 = vmatpush1.bf16.msra.mxu1 %v12889_v24  ;;  %v7398_v52 = vld [vmem:[#allocation7 + $0x908] sm:$0xff]  ;;  %v12935_v24 = vcombine.low %v7389_v40, %v7393_v11 }
 0x580   : > { %10292 = vmatprep.subr.bf16.mxu0 %v12896_v18  ;;  %10456 = vmatprep.subr.bf16.mxu1 %v12898_v46  ;;  %v12937_v18 = vcombine.low %v7390_v12, %v7394_v9  ;;  %v12946_v22 = vcombine.high %v7398_v52, %v7402_v43  ;;  %v7409_v46 = vld [vmem:[#allocation7 + $0x960] sm:$0xff] }
 0x581   : > { %v12951_v37 = vcombine.low %v7405_v26, %v7409_v46 }
 0x583   : > { %10293 = vmatpush1.bf16.msra.mxu0 %v12895_v33  ;;  %10457 = vmatpush1.bf16.msra.mxu1 %v12897_v31  ;;  %v12945_v33 = vcombine.low %v7398_v52, %v7402_v43  ;;  %v12952_v31 = vcombine.high %v7405_v26, %v7409_v46 }
 0x584   : > { %10294 = vmatprep.subr.bf16.mxu0 %v12904_v32  ;;  %10458 = vmatprep.subr.bf16.mxu1 %v12906_v36  ;;  %v12954_v32 = vcombine.high %v7406_v8, %v7410_v59  ;;  %v7418_v36 = vld [vmem:[#allocation7 + $0x9a8] sm:$0xff] }
 0x585   : > { %v12961_v54 = vcombine.low %v7414_v44, %v7418_v36 }
 0x587   : > { %10295 = vmatpush1.bf16.msra.mxu0 %v12903_v20  ;;  %10459 = vmatpush1.bf16.msra.mxu1 %v12905_v47  ;;  %v12962_v20 = vcombine.high %v7414_v44, %v7418_v36  ;;  %v7421_v47 = vld [vmem:[#allocation7 + $0x9c0] sm:$0xff] }
 0x588   : > { %10305 = vmatprep.subr.bf16.mxu0 %v12912_v23  ;;  %10469 = vmatprep.subr.bf16.mxu1 %v12914_v25  ;;  %v7425_v23 = vld [vmem:[#allocation7 + $0x9e0] sm:$0xff]  ;;  %v7426_v25 = vld [vmem:[#allocation7 + $0x9e8] sm:$0xff] }
 0x589   : > { %v12968_v53 = vcombine.high %v7421_v47, %v7425_v23  ;;  %v12970_v57 = vcombine.high %v7422_v49, %v7426_v25  ;;  %v12967_v0 = vcombine.low %v7421_v47, %v7425_v23  ;;  %v12969_v2 = vcombine.low %v7422_v49, %v7426_v25 }
 0x58a   : > { %10297 = vmatmul.mubr.bf16.vlgmr.msra.gmra.mrb[0].mxu0 %v15239_v56  ;;  %10461 = vmatmul.mubr.bf16.vlgmr.msra.gmra.mrb[0].mxu1 %v15239_v56  ;;  %v7063_v47 = vsub.s32 4, %v15203_v16 }
 0x58b   : > { %10306 = vmatpush1.bf16.msra.mxu0 %v12911_v58  ;;  %10470 = vmatpush1.bf16.msra.mxu1 %v12913_v61  ;;  %v7429_v58 = vld [vmem:[#allocation7 + $0xa00] sm:$0xff] }
 0x58c   : > { %10307 = vmatprep.subr.bf16.mxu0 %v12920_v62  ;;  %10471 = vmatprep.subr.bf16.mxu1 %v12922_v3  ;;  %v7433_v61 = vld [vmem:[#allocation7 + $0xa20] sm:$0xff]  ;;  %v7430_v62 = vld [vmem:[#allocation7 + $0xa08] sm:$0xff] }
 0x58d   : > { %10337 = vmatprep.mubr.bf16.mxu0 %v15241_v6  ;;  %10501 = vmatprep.mubr.bf16.mxu1 %v15241_v6  ;;  %v12976_v3 = vcombine.high %v7429_v58, %v7433_v61  ;;  %v12978_v4 = vcombine.high %v7430_v62, %v7434_v63  ;;  %v12975_v40 = vcombine.low %v7429_v58, %v7433_v61  ;;  %v7478_v58 = vld [vmem:[#allocation7 + $0xb88] sm:$0xff] }
 0x58e   : > { %v12977_v11 = vcombine.low %v7430_v62, %v7434_v63  ;;  %v7482_v61 = vld [vmem:[#allocation7 + $0xba8] sm:$0xff]  ;;  %v15249_v62 = vld [vmem:[#allocation5] sm:$0xff] }
 0x58f   : > { %10308 = vmatpush1.bf16.msra.mxu0 %v12919_v41  ;;  %10472 = vmatpush1.bf16.msra.mxu1 %v12921_v17  ;;  %v7437_v41 = vld [vmem:[#allocation7 + $0xa40] sm:$0xff]  ;;  %v7064_v63 = vrot.slane %v15249_v62, %v7063_v47 }
 0x590   : > { %10309 = vmatprep.subr.bf16.mxu0 %v12928_v5  ;;  %10473 = vmatprep.subr.bf16.mxu1 %v12930_v7  ;;  %v7441_v17 = vld [vmem:[#allocation7 + $0xa60] sm:$0xff]  ;;  %v7438_v5 = vld [vmem:[#allocation7 + $0xa48] sm:$0xff] }
 0x591   : > { %v7442_v7 = vld [vmem:[#allocation7 + $0xa68] sm:$0xff]  ;;  %v12984_v12 = vcombine.high %v7437_v41, %v7441_v17  ;;  %v12983_v51 = vcombine.low %v7437_v41, %v7441_v17  ;;  %v13026_v41 = vcombine.high %v7478_v58, %v7482_v61  ;;  %v7485_v17 = vld [vmem:[#allocation7 + $0xbc0] sm:$0xff] }
 0x592   : > { %v12986_v9 = vcombine.high %v7438_v5, %v7442_v7  ;;  %v12985_v15 = vcombine.low %v7438_v5, %v7442_v7  ;;  %v7489_v5 = vld [vmem:[#allocation7 + $0xbe0] sm:$0xff] }
 0x593   : > { %10310 = vmatpush1.bf16.msra.mxu0 %v12927_v42  ;;  %10474 = vmatpush1.bf16.msra.mxu1 %v12929_v13  ;;  %v7445_v42 = vld [vmem:[#allocation7 + $0xa80] sm:$0xff] }
 0x594   : > { %10311 = vmatprep.subr.bf16.mxu0 %v12936_v50  ;;  %10475 = vmatprep.subr.bf16.mxu1 %v12938_v60  ;;  %v7449_v13 = vld [vmem:[#allocation7 + $0xaa0] sm:$0xff]  ;;  %v7446_v50 = vld [vmem:[#allocation7 + $0xa88] sm:$0xff] }
 0x595   : > { %v7450_v60 = vld [vmem:[#allocation7 + $0xaa8] sm:$0xff]  ;;  %v12992_v52 = vcombine.high %v7445_v42, %v7449_v13  ;;  %v12991_v26 = vcombine.low %v7445_v42, %v7449_v13  ;;  %v13025_v13 = vcombine.low %v7478_v58, %v7482_v61  ;;  %v7521_v58 = vld [vmem:[#allocation7 + $0xce0] sm:$0xff] }
 0x596   : > { %v12994_v43 = vcombine.high %v7446_v50, %v7450_v60  ;;  %v12993_v46 = vcombine.low %v7446_v50, %v7450_v60  ;;  %v13032_v50 = vcombine.high %v7485_v17, %v7489_v5  ;;  %v7518_v61 = vld [vmem:[#allocation7 + $0xcc8] sm:$0xff] }
 0x597   : > { %10312 = vmatpush1.bf16.msra.mxu0 %v12935_v24  ;;  %10476 = vmatpush1.bf16.msra.mxu1 %v12937_v18  ;;  %v7453_v24 = vld [vmem:[#allocation7 + $0xac0] sm:$0xff] }
 0x598   : > { %10313 = vmatprep.subr.bf16.mxu0 %v12944_v55  ;;  %10477 = vmatprep.subr.bf16.mxu1 %v12946_v22  ;;  %v7457_v18 = vld [vmem:[#allocation7 + $0xae0] sm:$0xff]  ;;  %v7454_v55 = vld [vmem:[#allocation7 + $0xac8] sm:$0xff] }
 0x599   : > { %v7458_v22 = vld [vmem:[#allocation7 + $0xae8] sm:$0xff]  ;;  %v13000_v8 = vcombine.high %v7453_v24, %v7457_v18  ;;  %v12999_v35 = vcombine.low %v7453_v24, %v7457_v18 }
 0x59a   : > { %v13002_v59 = vcombine.high %v7454_v55, %v7458_v22  ;;  %v13001_v38 = vcombine.low %v7454_v55, %v7458_v22  ;;  %v7498_v24 = vld [vmem:[#allocation7 + $0xc28] sm:$0xff]  ;;  %v13031_v55 = vcombine.low %v7485_v17, %v7489_v5  ;;  %v7529_v17 = vld [vmem:[#allocation7 + $0xd20] sm:$0xff] }
 0x59b   : > { %10314 = vmatpush1.bf16.msra.mxu0 %v12943_v29  ;;  %10478 = vmatpush1.bf16.msra.mxu1 %v12945_v33  ;;  %v7461_v29 = vld [vmem:[#allocation7 + $0xb00] sm:$0xff]  ;;  %v7526_v5 = vld [vmem:[#allocation7 + $0xd08] sm:$0xff] }
 0x59c   : > { %10315 = vmatprep.subr.bf16.mxu0 %v12952_v31  ;;  %10479 = vmatprep.subr.bf16.mxu1 %v12954_v32  ;;  %v7465_v33 = vld [vmem:[#allocation7 + $0xb20] sm:$0xff]  ;;  %v7462_v31 = vld [vmem:[#allocation7 + $0xb08] sm:$0xff] }
 0x59d   : > { %v7466_v32 = vld [vmem:[#allocation7 + $0xb28] sm:$0xff]  ;;  %v13008_v44 = vcombine.high %v7461_v29, %v7465_v33  ;;  %v13007_v23 = vcombine.low %v7461_v29, %v7465_v33 }
 0x59e   : > { %v13010_v36 = vcombine.high %v7462_v31, %v7466_v32  ;;  %v13009_v49 = vcombine.low %v7462_v31, %v7466_v32  ;;  %v7502_v31 = vld [vmem:[#allocation7 + $0xc48] sm:$0xff] }
 0x59f   : > { %10316 = vmatpush1.bf16.msra.mxu0 %v12951_v37  ;;  %10480 = vmatpush1.bf16.msra.mxu1 %v12953_v39  ;;  %v7469_v37 = vld [vmem:[#allocation7 + $0xb40] sm:$0xff]  ;;  %v7506_v32 = vld [vmem:[#allocation7 + $0xc68] sm:$0xff] }
 0x5a0   : > { %10317 = vmatprep.subr.bf16.mxu0 %v12960_v45  ;;  %10481 = vmatprep.subr.bf16.mxu1 %v12962_v20  ;;  %v7473_v39 = vld [vmem:[#allocation7 + $0xb60] sm:$0xff]  ;;  %v7470_v45 = vld [vmem:[#allocation7 + $0xb48] sm:$0xff] }
 0x5a1   : > { %v7474_v20 = vld [vmem:[#allocation7 + $0xb68] sm:$0xff]  ;;  %v13016_v25 = vcombine.high %v7469_v37, %v7473_v39 }
 0x5a3   : > { %10318 = vmatpush1.bf16.msra.mxu0 %v12959_v48  ;;  %10482 = vmatpush1.bf16.msra.mxu1 %v12961_v54  ;;  %v13018_v48 = vcombine.high %v7470_v45, %v7474_v20  ;;  %v7477_v54 = vld [vmem:[#allocation7 + $0xb80] sm:$0xff] }
 0x5a4   : > { %10319 = vmatprep.subr.bf16.mxu0 %v12968_v53  ;;  %10483 = vmatprep.subr.bf16.mxu1 %v12970_v57  ;;  %v7481_v53 = vld [vmem:[#allocation7 + $0xba0] sm:$0xff]  ;;  %v7075_v57 = vsub.s32 7, %v15203_v16 }
 0x5a5   : > { %v13023_v42 = vcombine.low %v7477_v54, %v7481_v53 }
 0x5a6   : > { %v7076_v7 = vrot.slane %v15249_v62, %v7075_v57 }
 0x5a7   : > { %10320 = vmatpush1.bf16.msra.mxu0 %v12967_v0  ;;  %10484 = vmatpush1.bf16.msra.mxu1 %v12969_v2  ;;  %v13015_v0 = vcombine.low %v7469_v37, %v7473_v39  ;;  %v7039_v2 = vld [vmem:[#allocation2 + $0x20] sm:$0xff]  ;;  %v7509_v37 = vld [vmem:[#allocation7 + $0xc80] sm:$0xff] }
 0x5a8   : > { %10321 = vmatprep.subr.bf16.mxu0 %v12976_v3  ;;  %10485 = vmatprep.subr.bf16.mxu1 %v12978_v4  ;;  %v13017_v3 = vcombine.low %v7470_v45, %v7474_v20  ;;  %v13024_v4 = vcombine.high %v7477_v54, %v7481_v53  ;;  %v7513_v39 = vld [vmem:[#allocation7 + $0xca0] sm:$0xff]  ;;  %v7510_v20 = vld [vmem:[#allocation7 + $0xc88] sm:$0xff] }
 0x5a9   : > { %v7517_v53 = vld [vmem:[#allocation7 + $0xcc0] sm:$0xff] }
 0x5ab   : > { %10322 = vmatpush1.bf16.msra.mxu0 %v12975_v40  ;;  %10486 = vmatpush1.bf16.msra.mxu1 %v12977_v11  ;;  %v7486_v40 = vld [vmem:[#allocation7 + $0xbc8] sm:$0xff] }
 0x5ac   : > { %10323 = vmatprep.subr.bf16.mxu0 %v12984_v12  ;;  %10487 = vmatprep.subr.bf16.mxu1 %v12986_v9  ;;  %v7490_v11 = vld [vmem:[#allocation7 + $0xbe8] sm:$0xff]  ;;  %v7089_v12 = vadd.f32 %v7064_v63, %v7039_v2  ;;  %v7042_v9 = vld [vmem:[#allocation2 + $0x38] sm:$0xff] }
 0x5ad   : > { %v13034_v60 = vcombine.high %v7486_v40, %v7490_v11  ;;  %v13033_v22 = vcombine.low %v7486_v40, %v7490_v11  ;;  %v7522_v63 = vld [vmem:[#allocation7 + $0xce8] sm:$0xff]  ;;  %v13063_v40 = vcombine.low %v7517_v53, %v7521_v58 }
 0x5ae   : > { %v7097_v18 = vmax.f32 %v7089_v12, 0.0  ;;  %v13065_v11 = vcombine.low %v7518_v61, %v7522_v63 }
 0x5af   : > { %10324 = vmatpush1.bf16.msra.mxu0 %v12983_v51  ;;  %10488 = vmatpush1.bf16.msra.mxu1 %v12985_v15  ;;  %v7493_v51 = vld [vmem:[#allocation7 + $0xc00] sm:$0xff] }
 0x5b0   : > { %10325 = vmatprep.subr.bf16.mxu0 %v12992_v52  ;;  %10489 = vmatprep.subr.bf16.mxu1 %v12994_v43  ;;  %v7497_v15 = vld [vmem:[#allocation7 + $0xc20] sm:$0xff]  ;;  %v7092_v52 = vadd.f32 %v7076_v7, %v7042_v9  ;;  %v7494_v43 = vld [vmem:[#allocation7 + $0xc08] sm:$0xff]  ;;  %v15257_v33 = vpack.c.bf16 %v7097_v18, %v7097_v18 }
 0x5b1   : > { %v7530_v7 = vld [vmem:[#allocation7 + $0xd28] sm:$0xff]  ;;  %v7545_v18 = vld [vmem:[#allocation7 + $0xda0] sm:$0xff] }
 0x5b2   : > { %v7100_v29 = vmax.f32 %v7092_v52, 0.0  ;;  %v13074_v9 = vcombine.high %v7526_v5, %v7530_v7 }
 0x5b3   : > { %10326 = vmatpush1.bf16.msra.mxu0 %v12991_v26  ;;  %10490 = vmatpush1.bf16.msra.mxu1 %v12993_v46  ;;  %v13040_v26 = vcombine.high %v7493_v51, %v7497_v15  ;;  %v13042_v46 = vcombine.high %v7494_v43, %v7498_v24 }
 0x5b4   : > { %10327 = vmatprep.subr.bf16.mxu0 %v13000_v8  ;;  %10491 = vmatprep.subr.bf16.mxu1 %v13002_v59  ;;  %v7501_v8 = vld [vmem:[#allocation7 + $0xc40] sm:$0xff]  ;;  %v15259_v45 = vpack.c.bf16 %v7100_v29, %v7100_v29 }
 0x5b5   : > { %v7505_v59 = vld [vmem:[#allocation7 + $0xc60] sm:$0xff] }
 0x5b6   : > { %v7549_v29 = vld [vmem:[#allocation7 + $0xdc0] sm:$0xff] }
 0x5b7   : > { %10328 = vmatpush1.bf16.msra.mxu0 %v12999_v35  ;;  %10492 = vmatpush1.bf16.msra.mxu1 %v13001_v38  ;;  %v13039_v35 = vcombine.low %v7493_v51, %v7497_v15  ;;  %v13041_v38 = vcombine.low %v7494_v43, %v7498_v24  ;;  %v13073_v15 = vcombine.low %v7526_v5, %v7530_v7  ;;  %v7541_v24 = vld [vmem:[#allocation7 + $0xd80] sm:$0xff]  ;;  %v7574_v7 = vld [vmem:[#allocation7 + $0xe88] sm:$0xff] }
 0x5b8   : > { %10329 = vmatprep.subr.bf16.mxu0 %v13008_v44  ;;  %10493 = vmatprep.subr.bf16.mxu1 %v13010_v36  ;;  %v13048_v44 = vcombine.high %v7501_v8, %v7505_v59  ;;  %v13050_v36 = vcombine.high %v7502_v31, %v7506_v32  ;;  %v7577_v5 = vld [vmem:[#allocation7 + $0xea0] sm:$0xff] }
 0x5bb   : > { %10330 = vmatpush1.bf16.msra.mxu0 %v13007_v23  ;;  %10494 = vmatpush1.bf16.msra.mxu1 %v13009_v49  ;;  %v7514_v23 = vld [vmem:[#allocation7 + $0xca8] sm:$0xff]  ;;  %v13047_v49 = vcombine.low %v7501_v8, %v7505_v59  ;;  %v13088_v8 = vcombine.high %v7541_v24, %v7545_v18 }
 0x5bc   : > { %10331 = vmatprep.subr.bf16.mxu0 %v13016_v25  ;;  %10495 = vmatprep.subr.bf16.mxu1 %v13018_v48  ;;  %v13049_v25 = vcombine.low %v7502_v31, %v7506_v32  ;;  %v13056_v48 = vcombine.high %v7509_v37, %v7513_v39  ;;  %v13058_v54 = vcombine.high %v7510_v20, %v7514_v23  ;;  %v7553_v31 = vld [vmem:[#allocation7 + $0xde0] sm:$0xff]  ;;  %v7550_v32 = vld [vmem:[#allocation7 + $0xdc8] sm:$0xff] }
 0x5bd   : > { %v13057_v2 = vcombine.low %v7510_v20, %v7514_v23  ;;  %v7561_v20 = vld [vmem:[#allocation7 + $0xe20] sm:$0xff]  ;;  %v7558_v23 = vld [vmem:[#allocation7 + $0xe08] sm:$0xff] }
 0x5bf   : > { %10332 = vmatpush1.bf16.msra.mxu0 %v13015_v0  ;;  %10496 = vmatpush1.bf16.msra.mxu1 %v13017_v3  ;;  %v13055_v0 = vcombine.low %v7509_v37, %v7513_v39  ;;  %v13064_v3 = vcombine.high %v7517_v53, %v7521_v58  ;;  %v7557_v39 = vld [vmem:[#allocation7 + $0xe00] sm:$0xff] }
 0x5c0   : > { %10333 = vmatprep.subr.bf16.mxu0 %v13024_v4  ;;  %10497 = vmatprep.subr.bf16.mxu1 %v13026_v41  ;;  %v13066_v4 = vcombine.high %v7518_v61, %v7522_v63  ;;  %v7525_v41 = vld [vmem:[#allocation7 + $0xd00] sm:$0xff]  ;;  %v7566_v63 = vld [vmem:[#allocation7 + $0xe48] sm:$0xff] }
 0x5c1   : > { %v13072_v12 = vcombine.high %v7525_v41, %v7529_v17  ;;  %v13071_v51 = vcombine.low %v7525_v41, %v7529_v17  ;;  %v7565_v58 = vld [vmem:[#allocation7 + $0xe40] sm:$0xff] }
 0x5c2   : > { %v7569_v61 = vld [vmem:[#allocation7 + $0xe60] sm:$0xff] }
 0x5c3   : > { %10334 = vmatpush1.bf16.msra.mxu0 %v13023_v42  ;;  %10498 = vmatpush1.bf16.msra.mxu1 %v13025_v13  ;;  %v7533_v42 = vld [vmem:[#allocation7 + $0xd40] sm:$0xff] }
 0x5c4   : > { %10335 = vmatprep.subr.bf16.mxu0 %v13032_v50  ;;  %10499 = vmatprep.subr.bf16.mxu1 %v13034_v60  ;;  %v7537_v13 = vld [vmem:[#allocation7 + $0xd60] sm:$0xff]  ;;  %v7534_v50 = vld [vmem:[#allocation7 + $0xd48] sm:$0xff] }
 0x5c5   : > { %v7538_v60 = vld [vmem:[#allocation7 + $0xd68] sm:$0xff]  ;;  %v13080_v52 = vcombine.high %v7533_v42, %v7537_v13  ;;  %v7573_v17 = vld [vmem:[#allocation7 + $0xe80] sm:$0xff] }
 0x5c6   : > { %v13082_v43 = vcombine.high %v7534_v50, %v7538_v60 }
 0x5c7   : > { %10336 = vmatpush1.bf16.msra.mxu0 %v13031_v55  ;;  %10500 = vmatpush1.bf16.msra.mxu1 %v13033_v22  ;;  %v7542_v55 = vld [vmem:[#allocation7 + $0xd88] sm:$0xff] }
 0x5c8   : > { %10346 = vmatprep.subr.bf16.mxu0 %v13040_v26  ;;  %10510 = vmatprep.subr.bf16.mxu1 %v13042_v46  ;;  %v7546_v22 = vld [vmem:[#allocation7 + $0xda8] sm:$0xff]  ;;  %v13079_v26 = vcombine.low %v7533_v42, %v7537_v13  ;;  %v13081_v46 = vcombine.low %v7534_v50, %v7538_v60  ;;  %v7581_v13 = vld [vmem:[#allocation7 + $0xec0] sm:$0xff] }
 0x5c9   : > { %v13090_v59 = vcombine.high %v7542_v55, %v7546_v22  ;;  %v7585_v50 = vld [vmem:[#allocation7 + $0xee0] sm:$0xff]  ;;  %v7582_v60 = vld [vmem:[#allocation7 + $0xec8] sm:$0xff] }
 0x5ca   : > { %10338 = vmatmul.mubr.bf16.vlgmr.msra.gmra.mrb[0].mxu0 %v15257_v33  ;;  %10502 = vmatmul.mubr.bf16.vlgmr.msra.gmra.mrb[0].mxu1 %v15257_v33 }
 0x5cb   : > { %10347 = vmatpush1.bf16.msra.mxu0 %v13039_v35  ;;  %10511 = vmatpush1.bf16.msra.mxu1 %v13041_v38  ;;  %v7554_v35 = vld [vmem:[#allocation7 + $0xde8] sm:$0xff]  ;;  %v13087_v38 = vcombine.low %v7541_v24, %v7545_v18  ;;  %v7589_v18 = vld [vmem:[#allocation7 + $0xf00] sm:$0xff] }
 0x5cc   : > { %10348 = vmatprep.subr.bf16.mxu0 %v13048_v44  ;;  %10512 = vmatprep.subr.bf16.mxu1 %v13050_v36  ;;  %v13089_v44 = vcombine.low %v7542_v55, %v7546_v22  ;;  %v13096_v36 = vcombine.high %v7549_v29, %v7553_v31  ;;  %v13098_v37 = vcombine.high %v7550_v32, %v7554_v35  ;;  %v7593_v55 = vld [vmem:[#allocation7 + $0xf20] sm:$0xff]  ;;  %v7590_v22 = vld [vmem:[#allocation7 + $0xf08] sm:$0xff] }
 0x5cd   : > { %10378 = vmatprep.mubr.bf16.mxu0 %v15259_v45  ;;  %10542 = vmatprep.mubr.bf16.mxu1 %v15259_v45 }
 0x5cf   : > { %10349 = vmatpush1.bf16.msra.mxu0 %v13047_v49  ;;  %10513 = vmatpush1.bf16.msra.mxu1 %v13049_v25  ;;  %v7562_v49 = vld [vmem:[#allocation7 + $0xe28] sm:$0xff]  ;;  %v13095_v25 = vcombine.low %v7549_v29, %v7553_v31  ;;  %v7597_v31 = vld [vmem:[#allocation7 + $0xf40] sm:$0xff] }
 0x5d0   : > { %10350 = vmatprep.subr.bf16.mxu0 %v13056_v48  ;;  %10514 = vmatprep.subr.bf16.mxu1 %v13058_v54  ;;  %v13097_v48 = vcombine.low %v7550_v32, %v7554_v35  ;;  %v13104_v54 = vcombine.high %v7557_v39, %v7561_v20  ;;  %v13106_v53 = vcombine.high %v7558_v23, %v7562_v49  ;;  %v7601_v32 = vld [vmem:[#allocation7 + $0xf60] sm:$0xff]  ;;  %v7598_v35 = vld [vmem:[#allocation7 + $0xf48] sm:$0xff] }
 0x5d3   : > { %10351 = vmatpush1.bf16.msra.mxu0 %v13055_v0  ;;  %10515 = vmatpush1.bf16.msra.mxu1 %v13057_v2  ;;  %v7570_v0 = vld [vmem:[#allocation7 + $0xe68] sm:$0xff]  ;;  %v13103_v2 = vcombine.low %v7557_v39, %v7561_v20  ;;  %v13144_v39 = vcombine.high %v7597_v31, %v7601_v32 }
 0x5d4   : > { %10352 = vmatprep.subr.bf16.mxu0 %v13064_v3  ;;  %10516 = vmatprep.subr.bf16.mxu1 %v13066_v4  ;;  %v13105_v3 = vcombine.low %v7558_v23, %v7562_v49  ;;  %v13112_v4 = vcombine.high %v7565_v58, %v7569_v61  ;;  %v13114_v41 = vcombine.high %v7566_v63, %v7570_v0  ;;  %v7605_v23 = vld [vmem:[#allocation7 + $0xf80] sm:$0xff] }
 0x5d5   : > { %v7609_v49 = vld [vmem:[#allocation7 + $0xfa0] sm:$0xff] }
 0x5d7   : > { %10353 = vmatpush1.bf16.msra.mxu0 %v13063_v40  ;;  %10517 = vmatpush1.bf16.msra.mxu1 %v13065_v11  ;;  %v7578_v40 = vld [vmem:[#allocation7 + $0xea8] sm:$0xff]  ;;  %v13111_v11 = vcombine.low %v7565_v58, %v7569_v61 }
 0x5d8   : > { %10354 = vmatprep.subr.bf16.mxu0 %v13072_v12  ;;  %10518 = vmatprep.subr.bf16.mxu1 %v13074_v9  ;;  %v13113_v12 = vcombine.low %v7566_v63, %v7570_v0  ;;  %v13120_v9 = vcombine.high %v7573_v17, %v7577_v5  ;;  %v13122_v42 = vcombine.high %v7574_v7, %v7578_v40  ;;  %v7041_v58 = vld [vmem:[#allocation2 + $0x30] sm:$0xff] }
 0x5d9   : > { %v13152_v63 = vcombine.high %v7605_v23, %v7609_v49 }
 0x5db   : > { %10355 = vmatpush1.bf16.msra.mxu0 %v13071_v51  ;;  %10519 = vmatpush1.bf16.msra.mxu1 %v13073_v15  ;;  %v7586_v51 = vld [vmem:[#allocation7 + $0xee8] sm:$0xff]  ;;  %v13119_v15 = vcombine.low %v7573_v17, %v7577_v5  ;;  %v13151_v5 = vcombine.low %v7605_v23, %v7609_v49  ;;  %v7136_v23 = vld [vmem:[#allocation7 + $0xd8] sm:$0xff] }
 0x5dc   : > { %10356 = vmatprep.subr.bf16.mxu0 %v13080_v52  ;;  %10520 = vmatprep.subr.bf16.mxu1 %v13082_v43  ;;  %v13121_v52 = vcombine.low %v7574_v7, %v7578_v40  ;;  %v13128_v43 = vcombine.high %v7581_v13, %v7585_v50  ;;  %v13130_v24 = vcombine.high %v7582_v60, %v7586_v51  ;;  %v7140_v49 = vld [vmem:[#allocation7 + $0xf8] sm:$0xff] }
 0x5df   : > { %10357 = vmatpush1.bf16.msra.mxu0 %v13079_v26  ;;  %10521 = vmatpush1.bf16.msra.mxu1 %v13081_v46  ;;  %v7594_v26 = vld [vmem:[#allocation7 + $0xf28] sm:$0xff]  ;;  %v13127_v46 = vcombine.low %v7581_v13, %v7585_v50  ;;  %v7116_v13 = vld [vmem:[#allocation7 + $0x38] sm:$0xff] }
 0x5e0   : > { %10358 = vmatprep.subr.bf16.mxu0 %v13088_v8  ;;  %10522 = vmatprep.subr.bf16.mxu1 %v13090_v59  ;;  %v13129_v8 = vcombine.low %v7582_v60, %v7586_v51  ;;  %v13136_v59 = vcombine.high %v7589_v18, %v7593_v55  ;;  %v13138_v29 = vcombine.high %v7590_v22, %v7594_v26 }
 0x5e3   : > { %10359 = vmatpush1.bf16.msra.mxu0 %v13087_v38  ;;  %10523 = vmatpush1.bf16.msra.mxu1 %v13089_v44  ;;  %v7602_v38 = vld [vmem:[#allocation7 + $0xf68] sm:$0xff]  ;;  %v7071_v44 = vsub.s32 6, %v15203_v16 }
 0x5e4   : > { %10360 = vmatprep.subr.bf16.mxu0 %v13096_v36  ;;  %10524 = vmatprep.subr.bf16.mxu1 %v13098_v37  ;;  %v13135_v36 = vcombine.low %v7589_v18, %v7593_v55  ;;  %v13137_v37 = vcombine.low %v7590_v22, %v7594_v26  ;;  %v13146_v20 = vcombine.high %v7598_v35, %v7602_v38  ;;  %v7120_v18 = vld [vmem:[#allocation7 + $0x58] sm:$0xff] }
 0x5e5   : > { %v13145_v61 = vcombine.low %v7598_v35, %v7602_v38  ;;  %v7124_v55 = vld [vmem:[#allocation7 + $0x78] sm:$0xff] }
 0x5e6   : > { %v12669_v38 = vcombine.low %v7120_v18, %v7124_v55 }
 0x5e7   : > { %10361 = vmatpush1.bf16.msra.mxu0 %v13095_v25  ;;  %10525 = vmatpush1.bf16.msra.mxu1 %v13097_v48  ;;  %v7606_v25 = vld [vmem:[#allocation7 + $0xf88] sm:$0xff] }
 0x5e8   : > { %10362 = vmatprep.subr.bf16.mxu0 %v13104_v54  ;;  %10526 = vmatprep.subr.bf16.mxu1 %v13106_v53  ;;  %v7610_v48 = vld [vmem:[#allocation7 + $0xfa8] sm:$0xff]  ;;  %v7072_v54 = vrot.slane %v15249_v62, %v7071_v44  ;;  %v13143_v53 = vcombine.low %v7597_v31, %v7601_v32  ;;  %v7128_v31 = vld [vmem:[#allocation7 + $0x98] sm:$0xff] }
 0x5e9   : > { %v13154_v0 = vcombine.high %v7606_v25, %v7610_v48  ;;  %v13153_v7 = vcombine.low %v7606_v25, %v7610_v48  ;;  %v7132_v32 = vld [vmem:[#allocation7 + $0xb8] sm:$0xff] }
 0x5ea   : > { %v7091_v17 = vadd.f32 %v7072_v54, %v7041_v58  ;;  %v12677_v48 = vcombine.low %v7128_v31, %v7132_v32  ;;  %v7143_v58 = vld [vmem:[#allocation7 + $0x110] sm:$0xff] }
 0x5eb   : > { %10363 = vmatpush1.bf16.msra.mxu0 %v13103_v2  ;;  %10527 = vmatpush1.bf16.msra.mxu1 %v13105_v3  ;;  %v7613_v2 = vld [vmem:[#allocation7 + $0xfc0] sm:$0xff] }
 0x5ec   : > { %10364 = vmatprep.subr.bf16.mxu0 %v13112_v4  ;;  %10528 = vmatprep.subr.bf16.mxu1 %v13114_v41  ;;  %v7617_v3 = vld [vmem:[#allocation7 + $0xfe0] sm:$0xff]  ;;  %v7614_v4 = vld [vmem:[#allocation7 + $0xfc8] sm:$0xff] }
 0x5ed   : > { %v7618_v41 = vld [vmem:[#allocation7 + $0xfe8] sm:$0xff]  ;;  %v13160_v62 = vcombine.high %v7613_v2, %v7617_v3  ;;  %v13159_v50 = vcombine.low %v7613_v2, %v7617_v3  ;;  %v12685_v3 = vcombine.low %v7136_v23, %v7140_v49 }
 0x5ee   : > { %v13162_v40 = vcombine.high %v7614_v4, %v7618_v41  ;;  %v13161_v60 = vcombine.low %v7614_v4, %v7618_v41  ;;  %v7151_v41 = vld [vmem:[#allocation7 + $0x150] sm:$0xff] }
 0x5ef   : > { %10365 = vmatpush1.bf16.msra.mxu0 %v13111_v11  ;;  %10529 = vmatpush1.bf16.msra.mxu1 %v13113_v12  ;;  %v7111_v11 = vld [vmem:[#allocation7 + $0x10] sm:$0xff] }
 0x5f0   : > { %10366 = vmatprep.subr.bf16.mxu0 %v13120_v9  ;;  %10530 = vmatprep.subr.bf16.mxu1 %v13122_v42  ;;  %v7115_v12 = vld [vmem:[#allocation7 + $0x30] sm:$0xff]  ;;  %v7099_v9 = vmax.f32 %v7091_v17, 0.0  ;;  %v7112_v42 = vld [vmem:[#allocation7 + $0x18] sm:$0xff] }
 0x5f1   : > { %v12660_v51 = vcombine.high %v7111_v11, %v7115_v12  ;;  %v12659_v22 = vcombine.low %v7111_v11, %v7115_v12  ;;  %v12661_v26 = vcombine.low %v7112_v42, %v7116_v13  ;;  %v7155_v17 = vld [vmem:[#allocation7 + $0x170] sm:$0xff] }
 0x5f2   : > { %v12700_v11 = vcombine.high %v7151_v41, %v7155_v17 }
 0x5f3   : > { %10367 = vmatpush1.bf16.msra.mxu0 %v13119_v15  ;;  %10531 = vmatpush1.bf16.msra.mxu1 %v13121_v52  ;;  %v12662_v15 = vcombine.high %v7112_v42, %v7116_v13  ;;  %v7119_v52 = vld [vmem:[#allocation7 + $0x50] sm:$0xff]  ;;  %v7160_v13 = vld [vmem:[#allocation7 + $0x198] sm:$0xff] }
 0x5f4   : > { %10368 = vmatprep.subr.bf16.mxu0 %v13128_v43  ;;  %10532 = vmatprep.subr.bf16.mxu1 %v13130_v24  ;;  %v7123_v43 = vld [vmem:[#allocation7 + $0x70] sm:$0xff]  ;;  %v15269_v24 = vpack.c.bf16 %v7099_v9, %v7099_v9 }
 0x5f5   : > { %v12667_v35 = vcombine.low %v7119_v52, %v7123_v43  ;;  %v7159_v9 = vld [vmem:[#allocation7 + $0x190] sm:$0xff] }
 0x5f6   : > { %v7163_v42 = vld [vmem:[#allocation7 + $0x1b0] sm:$0xff] }
 0x5f7   : > { %10369 = vmatpush1.bf16.msra.mxu0 %v13127_v46  ;;  %10533 = vmatpush1.bf16.msra.mxu1 %v13129_v8  ;;  %v12668_v46 = vcombine.high %v7119_v52, %v7123_v43  ;;  %v12670_v8 = vcombine.high %v7120_v18, %v7124_v55  ;;  %v7167_v43 = vld [vmem:[#allocation7 + $0x1d0] sm:$0xff]  ;;  %v7168_v55 = vld [vmem:[#allocation7 + $0x1d8] sm:$0xff] }
 0x5f8   : > { %10370 = vmatprep.subr.bf16.mxu0 %v13136_v59  ;;  %10534 = vmatprep.subr.bf16.mxu1 %v13138_v29  ;;  %v7127_v59 = vld [vmem:[#allocation7 + $0x90] sm:$0xff] }
 0x5f9   : > { %v7131_v29 = vld [vmem:[#allocation7 + $0xb0] sm:$0xff] }
 0x5fa   : > { %v12675_v25 = vcombine.low %v7127_v59, %v7131_v29  ;;  %v7171_v18 = vld [vmem:[#allocation7 + $0x1f0] sm:$0xff] }
 0x5fb   : > { %10371 = vmatpush1.bf16.msra.mxu0 %v13135_v36  ;;  %10535 = vmatpush1.bf16.msra.mxu1 %v13137_v37  ;;  %v12676_v36 = vcombine.high %v7127_v59, %v7131_v29  ;;  %v12678_v37 = vcombine.high %v7128_v31, %v7132_v32  ;;  %v7175_v29 = vld [vmem:[#allocation7 + $0x210] sm:$0xff]  ;;  %v7176_v32 = vld [vmem:[#allocation7 + $0x218] sm:$0xff] }
 0x5fc   : > { %10372 = vmatprep.subr.bf16.mxu0 %v13144_v39  ;;  %10536 = vmatprep.subr.bf16.mxu1 %v13146_v20  ;;  %v7135_v39 = vld [vmem:[#allocation7 + $0xd0] sm:$0xff] }
 0x5fd   : > { %v7139_v20 = vld [vmem:[#allocation7 + $0xf0] sm:$0xff] }
 0x5fe   : > { %v12684_v54 = vcombine.high %v7135_v39, %v7139_v20  ;;  %v12683_v2 = vcombine.low %v7135_v39, %v7139_v20  ;;  %v7179_v31 = vld [vmem:[#allocation7 + $0x230] sm:$0xff] }
 0x5ff   : > { %10373 = vmatpush1.bf16.msra.mxu0 %v13143_v53  ;;  %10537 = vmatpush1.bf16.msra.mxu1 %v13145_v61  ;;  %v12686_v53 = vcombine.high %v7136_v23, %v7140_v49  ;;  %v7147_v61 = vld [vmem:[#allocation7 + $0x130] sm:$0xff]  ;;  %v7184_v49 = vld [vmem:[#allocation7 + $0x258] sm:$0xff] }
 0x600   : > { %10374 = vmatprep.subr.bf16.mxu0 %v13152_v63  ;;  %10538 = vmatprep.subr.bf16.mxu1 %v13154_v0  ;;  %v7144_v63 = vld [vmem:[#allocation7 + $0x118] sm:$0xff]  ;;  %v12692_v4 = vcombine.high %v7143_v58, %v7147_v61  ;;  %v7183_v20 = vld [vmem:[#allocation7 + $0x250] sm:$0xff] }
 0x601   : > { %v7148_v0 = vld [vmem:[#allocation7 + $0x138] sm:$0xff]  ;;  %v7187_v23 = vld [vmem:[#allocation7 + $0x270] sm:$0xff] }
 0x603   : > { %10375 = vmatpush1.bf16.msra.mxu0 %v13151_v5  ;;  %10539 = vmatpush1.bf16.msra.mxu1 %v13153_v7  ;;  %v7152_v5 = vld [vmem:[#allocation7 + $0x158] sm:$0xff] }
 0x604   : > { %10376 = vmatprep.subr.bf16.mxu0 %v13160_v62  ;;  %10540 = vmatprep.subr.bf16.mxu1 %v13162_v40  ;;  %v7156_v7 = vld [vmem:[#allocation7 + $0x178] sm:$0xff]  ;;  %v12691_v62 = vcombine.low %v7143_v58, %v7147_v61  ;;  %v12693_v40 = vcombine.low %v7144_v63, %v7148_v0  ;;  %v7191_v61 = vld [vmem:[#allocation7 + $0x290] sm:$0xff] }
 0x605   : > { %v12702_v12 = vcombine.high %v7152_v5, %v7156_v7 }
 0x607   : > { %10377 = vmatpush1.bf16.msra.mxu0 %v13159_v50  ;;  %10541 = vmatpush1.bf16.msra.mxu1 %v13161_v60  ;;  %v7164_v50 = vld [vmem:[#allocation7 + $0x1b8] sm:$0xff]  ;;  %v12699_v60 = vcombine.low %v7151_v41, %v7155_v17  ;;  %v7199_v17 = vld [vmem:[#allocation7 + $0x2d0] sm:$0xff] }
 0x608   : > { %10551 = vmatprep.subr.bf16.mxu0 %v12660_v51  ;;  %10715 = vmatprep.subr.bf16.mxu1 %v12662_v15  ;;  %v12701_v51 = vcombine.low %v7152_v5, %v7156_v7  ;;  %v12708_v15 = vcombine.high %v7159_v9, %v7163_v42  ;;  %v12710_v52 = vcombine.high %v7160_v13, %v7164_v50  ;;  %v7203_v5 = vld [vmem:[#allocation7 + $0x2f0] sm:$0xff]  ;;  %v7200_v7 = vld [vmem:[#allocation7 + $0x2d8] sm:$0xff] }
 0x60a   : > { %10379 = vmatmul.mubr.bf16.vlgmr.msra.gmra.mrb[0].mxu0 %v15269_v24  ;;  %10543 = vmatmul.mubr.bf16.vlgmr.msra.gmra.mrb[0].mxu1 %v15269_v24 }
 0x60b   : > { %10552 = vmatpush1.bf16.msra.mxu0 %v12659_v22  ;;  %10716 = vmatpush1.bf16.msra.mxu1 %v12661_v26  ;;  %v7172_v22 = vld [vmem:[#allocation7 + $0x1f8] sm:$0xff]  ;;  %v12707_v26 = vcombine.low %v7159_v9, %v7163_v42  ;;  %v7207_v42 = vld [vmem:[#allocation7 + $0x310] sm:$0xff] }
 0x60c   : > { %10553 = vmatprep.subr.bf16.mxu0 %v12668_v46  ;;  %10717 = vmatprep.subr.bf16.mxu1 %v12670_v8  ;;  %v12709_v46 = vcombine.low %v7160_v13, %v7164_v50  ;;  %v12716_v8 = vcombine.high %v7167_v43, %v7171_v18  ;;  %v12718_v59 = vcombine.high %v7168_v55, %v7172_v22  ;;  %v7211_v13 = vld [vmem:[#allocation7 + $0x330] sm:$0xff]  ;;  %v7208_v50 = vld [vmem:[#allocation7 + $0x318] sm:$0xff] }
 0x60d   : > { %10583 = vmatprep.mubr.bf16.mxu0 %v15211_v1  ;;  %10747 = vmatprep.mubr.bf16.mxu1 %v15211_v1  ;;  %v12694_v1 = vcombine.high %v7144_v63, %v7148_v0  ;;  %v7195_v63 = vld [vmem:[#allocation7 + $0x2b0] sm:$0xff]  ;;  %v7192_v0 = vld [vmem:[#allocation7 + $0x298] sm:$0xff] }
 0x60f   : > { %10554 = vmatpush1.bf16.msra.mxu0 %v12667_v35  ;;  %10718 = vmatpush1.bf16.msra.mxu1 %v12669_v38  ;;  %v7180_v35 = vld [vmem:[#allocation7 + $0x238] sm:$0xff]  ;;  %v12715_v38 = vcombine.low %v7167_v43, %v7171_v18  ;;  %v7215_v18 = vld [vmem:[#allocation7 + $0x350] sm:$0xff] }
 0x610   : > { %10555 = vmatprep.subr.bf16.mxu0 %v12676_v36  ;;  %10719 = vmatprep.subr.bf16.mxu1 %v12678_v37  ;;  %v12717_v36 = vcombine.low %v7168_v55, %v7172_v22  ;;  %v12724_v37 = vcombine.high %v7175_v29, %v7179_v31  ;;  %v12726_v39 = vcombine.high %v7176_v32, %v7180_v35  ;;  %v7219_v55 = vld [vmem:[#allocation7 + $0x370] sm:$0xff]  ;;  %v7216_v22 = vld [vmem:[#allocation7 + $0x358] sm:$0xff] }
 0x613   : > { %10556 = vmatpush1.bf16.msra.mxu0 %v12675_v25  ;;  %10720 = vmatpush1.bf16.msra.mxu1 %v12677_v48  ;;  %v7188_v25 = vld [vmem:[#allocation7 + $0x278] sm:$0xff]  ;;  %v12723_v48 = vcombine.low %v7175_v29, %v7179_v31  ;;  %v7223_v31 = vld [vmem:[#allocation7 + $0x390] sm:$0xff] }
 0x614   : > { %10557 = vmatprep.subr.bf16.mxu0 %v12684_v54  ;;  %10721 = vmatprep.subr.bf16.mxu1 %v12686_v53  ;;  %v12725_v54 = vcombine.low %v7176_v32, %v7180_v35  ;;  %v12732_v53 = vcombine.high %v7183_v20, %v7187_v23  ;;  %v12734_v58 = vcombine.high %v7184_v49, %v7188_v25  ;;  %v7227_v32 = vld [vmem:[#allocation7 + $0x3b0] sm:$0xff]  ;;  %v7224_v35 = vld [vmem:[#allocation7 + $0x398] sm:$0xff] }
 0x617   : > { %10558 = vmatpush1.bf16.msra.mxu0 %v12683_v2  ;;  %10722 = vmatpush1.bf16.msra.mxu1 %v12685_v3  ;;  %v7196_v2 = vld [vmem:[#allocation7 + $0x2b8] sm:$0xff]  ;;  %v12731_v3 = vcombine.low %v7183_v20, %v7187_v23  ;;  %v7231_v23 = vld [vmem:[#allocation7 + $0x3d0] sm:$0xff] }
 0x618   : > { %10559 = vmatprep.subr.bf16.mxu0 %v12692_v4  ;;  %10723 = vmatprep.subr.bf16.mxu1 %v12694_v1  ;;  %v12733_v4 = vcombine.low %v7184_v49, %v7188_v25  ;;  %v12740_v1 = vcombine.high %v7191_v61, %v7195_v63  ;;  %v12742_v41 = vcombine.high %v7192_v0, %v7196_v2  ;;  %v7235_v49 = vld [vmem:[#allocation7 + $0x3f0] sm:$0xff]  ;;  %v7232_v25 = vld [vmem:[#allocation7 + $0x3d8] sm:$0xff] }
 0x61b   : > { %10560 = vmatpush1.bf16.msra.mxu0 %v12691_v62  ;;  %10724 = vmatpush1.bf16.msra.mxu1 %v12693_v40  ;;  %v7204_v62 = vld [vmem:[#allocation7 + $0x2f8] sm:$0xff]  ;;  %v12739_v40 = vcombine.low %v7191_v61, %v7195_v63  ;;  %v7239_v63 = vld [vmem:[#allocation7 + $0x410] sm:$0xff] }
 0x61c   : > { %10561 = vmatprep.subr.bf16.mxu0 %v12700_v11  ;;  %10725 = vmatprep.subr.bf16.mxu1 %v12702_v12  ;;  %v12741_v11 = vcombine.low %v7192_v0, %v7196_v2  ;;  %v12748_v12 = vcombine.high %v7199_v17, %v7203_v5  ;;  %v12750_v9 = vcombine.high %v7200_v7, %v7204_v62  ;;  %v7243_v0 = vld [vmem:[#allocation7 + $0x430] sm:$0xff]  ;;  %v7240_v2 = vld [vmem:[#allocation7 + $0x418] sm:$0xff] }
 0x61f   : > { %10562 = vmatpush1.bf16.msra.mxu0 %v12699_v60  ;;  %10726 = vmatpush1.bf16.msra.mxu1 %v12701_v51  ;;  %v7212_v60 = vld [vmem:[#allocation7 + $0x338] sm:$0xff]  ;;  %v12747_v51 = vcombine.low %v7199_v17, %v7203_v5  ;;  %v7247_v5 = vld [vmem:[#allocation7 + $0x450] sm:$0xff] }
 0x620   : > { %10563 = vmatprep.subr.bf16.mxu0 %v12708_v15  ;;  %10727 = vmatprep.subr.bf16.mxu1 %v12710_v52  ;;  %v12749_v15 = vcombine.low %v7200_v7, %v7204_v62  ;;  %v12756_v52 = vcombine.high %v7207_v42, %v7211_v13  ;;  %v12758_v43 = vcombine.high %v7208_v50, %v7212_v60  ;;  %v7251_v7 = vld [vmem:[#allocation7 + $0x470] sm:$0xff]  ;;  %v7248_v62 = vld [vmem:[#allocation7 + $0x458] sm:$0xff] }
 0x623   : > { %10564 = vmatpush1.bf16.msra.mxu0 %v12707_v26  ;;  %10728 = vmatpush1.bf16.msra.mxu1 %v12709_v46  ;;  %v7220_v26 = vld [vmem:[#allocation7 + $0x378] sm:$0xff]  ;;  %v12755_v46 = vcombine.low %v7207_v42, %v7211_v13  ;;  %v7255_v13 = vld [vmem:[#allocation7 + $0x490] sm:$0xff] }
 0x624   : > { %10565 = vmatprep.subr.bf16.mxu0 %v12716_v8  ;;  %10729 = vmatprep.subr.bf16.mxu1 %v12718_v59  ;;  %v12757_v8 = vcombine.low %v7208_v50, %v7212_v60  ;;  %v12764_v59 = vcombine.high %v7215_v18, %v7219_v55  ;;  %v12766_v29 = vcombine.high %v7216_v22, %v7220_v26  ;;  %v7259_v50 = vld [vmem:[#allocation7 + $0x4b0] sm:$0xff]  ;;  %v7256_v60 = vld [vmem:[#allocation7 + $0x498] sm:$0xff] }
 0x627   : > { %10566 = vmatpush1.bf16.msra.mxu0 %v12715_v38  ;;  %10730 = vmatpush1.bf16.msra.mxu1 %v12717_v36  ;;  %v7228_v38 = vld [vmem:[#allocation7 + $0x3b8] sm:$0xff]  ;;  %v12763_v36 = vcombine.low %v7215_v18, %v7219_v55  ;;  %v7263_v55 = vld [vmem:[#allocation7 + $0x4d0] sm:$0xff] }
 0x628   : > { %10567 = vmatprep.subr.bf16.mxu0 %v12724_v37  ;;  %10731 = vmatprep.subr.bf16.mxu1 %v12726_v39  ;;  %v12765_v37 = vcombine.low %v7216_v22, %v7220_v26  ;;  %v12772_v39 = vcombine.high %v7223_v31, %v7227_v32  ;;  %v12774_v20 = vcombine.high %v7224_v35, %v7228_v38  ;;  %v7267_v22 = vld [vmem:[#allocation7 + $0x4f0] sm:$0xff]  ;;  %v7264_v26 = vld [vmem:[#allocation7 + $0x4d8] sm:$0xff] }
 0x62b   : > { %10568 = vmatpush1.bf16.msra.mxu0 %v12723_v48  ;;  %10732 = vmatpush1.bf16.msra.mxu1 %v12725_v54  ;;  %v7236_v48 = vld [vmem:[#allocation7 + $0x3f8] sm:$0xff]  ;;  %v12771_v54 = vcombine.low %v7223_v31, %v7227_v32  ;;  %v7271_v31 = vld [vmem:[#allocation7 + $0x510] sm:$0xff] }
 0x62c   : > { %10569 = vmatprep.subr.bf16.mxu0 %v12732_v53  ;;  %10733 = vmatprep.subr.bf16.mxu1 %v12734_v58  ;;  %v12773_v53 = vcombine.low %v7224_v35, %v7228_v38  ;;  %v12780_v58 = vcombine.high %v7231_v23, %v7235_v49  ;;  %v12782_v61 = vcombine.high %v7232_v25, %v7236_v48  ;;  %v7275_v32 = vld [vmem:[#allocation7 + $0x530] sm:$0xff]  ;;  %v7272_v35 = vld [vmem:[#allocation7 + $0x518] sm:$0xff] }
 0x62d   : > { %v7276_v38 = vld [vmem:[#allocation7 + $0x538] sm:$0xff] }
 0x62f   : > { %10570 = vmatpush1.bf16.msra.mxu0 %v12731_v3  ;;  %10734 = vmatpush1.bf16.msra.mxu1 %v12733_v4  ;;  %v7244_v3 = vld [vmem:[#allocation7 + $0x438] sm:$0xff]  ;;  %v12779_v4 = vcombine.low %v7231_v23, %v7235_v49  ;;  %v7283_v23 = vld [vmem:[#allocation7 + $0x570] sm:$0xff] }
 0x630   : > { %10571 = vmatprep.subr.bf16.mxu0 %v12740_v1  ;;  %10735 = vmatprep.subr.bf16.mxu1 %v12742_v41  ;;  %v12781_v1 = vcombine.low %v7232_v25, %v7236_v48  ;;  %v12788_v41 = vcombine.high %v7239_v63, %v7243_v0  ;;  %v12790_v17 = vcombine.high %v7240_v2, %v7244_v3  ;;  %v7280_v49 = vld [vmem:[#allocation7 + $0x558] sm:$0xff] }
 0x631   : > { %v7284_v25 = vld [vmem:[#allocation7 + $0x578] sm:$0xff]  ;;  %v12819_v48 = vcombine.low %v7271_v31, %v7275_v32 }
 0x633   : > { %10572 = vmatpush1.bf16.msra.mxu0 %v12739_v40  ;;  %10736 = vmatpush1.bf16.msra.mxu1 %v12741_v11  ;;  %v7252_v40 = vld [vmem:[#allocation7 + $0x478] sm:$0xff]  ;;  %v12787_v11 = vcombine.low %v7239_v63, %v7243_v0  ;;  %v7291_v63 = vld [vmem:[#allocation7 + $0x5b0] sm:$0xff] }
 0x634   : > { %10573 = vmatprep.subr.bf16.mxu0 %v12748_v12  ;;  %10737 = vmatprep.subr.bf16.mxu1 %v12750_v9  ;;  %v12789_v12 = vcombine.low %v7240_v2, %v7244_v3  ;;  %v12796_v9 = vcombine.high %v7247_v5, %v7251_v7  ;;  %v12798_v42 = vcombine.high %v7248_v62, %v7252_v40  ;;  %v7288_v0 = vld [vmem:[#allocation7 + $0x598] sm:$0xff] }
 0x635   : > { %v7292_v2 = vld [vmem:[#allocation7 + $0x5b8] sm:$0xff] }
 0x637   : > { %10574 = vmatpush1.bf16.msra.mxu0 %v12747_v51  ;;  %10738 = vmatpush1.bf16.msra.mxu1 %v12749_v15  ;;  %v7260_v51 = vld [vmem:[#allocation7 + $0x4b8] sm:$0xff]  ;;  %v12795_v15 = vcombine.low %v7247_v5, %v7251_v7  ;;  %v7299_v5 = vld [vmem:[#allocation7 + $0x5f0] sm:$0xff] }
 0x638   : > { %10575 = vmatprep.subr.bf16.mxu0 %v12756_v52  ;;  %10739 = vmatprep.subr.bf16.mxu1 %v12758_v43  ;;  %v12797_v52 = vcombine.low %v7248_v62, %v7252_v40  ;;  %v12804_v43 = vcombine.high %v7255_v13, %v7259_v50  ;;  %v12806_v18 = vcombine.high %v7256_v60, %v7260_v51  ;;  %v7296_v7 = vld [vmem:[#allocation7 + $0x5d8] sm:$0xff] }
 0x639   : > { %v7300_v62 = vld [vmem:[#allocation7 + $0x5f8] sm:$0xff] }
 0x63b   : > { %10576 = vmatpush1.bf16.msra.mxu0 %v12755_v46  ;;  %10740 = vmatpush1.bf16.msra.mxu1 %v12757_v8  ;;  %v7268_v46 = vld [vmem:[#allocation7 + $0x4f8] sm:$0xff]  ;;  %v12803_v8 = vcombine.low %v7255_v13, %v7259_v50  ;;  %v7307_v13 = vld [vmem:[#allocation7 + $0x630] sm:$0xff] }
 0x63c   : > { %10577 = vmatprep.subr.bf16.mxu0 %v12764_v59  ;;  %10741 = vmatprep.subr.bf16.mxu1 %v12766_v29  ;;  %v12812_v59 = vcombine.high %v7263_v55, %v7267_v22  ;;  %v12814_v29 = vcombine.high %v7264_v26, %v7268_v46  ;;  %v7304_v50 = vld [vmem:[#allocation7 + $0x618] sm:$0xff] }
 0x63f   : > { %10578 = vmatpush1.bf16.msra.mxu0 %v12763_v36  ;;  %10742 = vmatpush1.bf16.msra.mxu1 %v12765_v37  ;;  %v12811_v36 = vcombine.low %v7263_v55, %v7267_v22  ;;  %v12813_v37 = vcombine.low %v7264_v26, %v7268_v46  ;;  %v7315_v55 = vld [vmem:[#allocation7 + $0x670] sm:$0xff]  ;;  %v7312_v22 = vld [vmem:[#allocation7 + $0x658] sm:$0xff] }
 0x640   : > { %10579 = vmatprep.subr.bf16.mxu0 %v12772_v39  ;;  %10743 = vmatprep.subr.bf16.mxu1 %v12774_v20  ;;  %v12820_v39 = vcombine.high %v7271_v31, %v7275_v32  ;;  %v7279_v20 = vld [vmem:[#allocation7 + $0x550] sm:$0xff]  ;;  %v7316_v26 = vld [vmem:[#allocation7 + $0x678] sm:$0xff] }
 0x641   : > { %v12827_v3 = vcombine.low %v7279_v20, %v7283_v23  ;;  %v7323_v31 = vld [vmem:[#allocation7 + $0x6b0] sm:$0xff]  ;;  %v7320_v32 = vld [vmem:[#allocation7 + $0x698] sm:$0xff] }
 0x643   : > { %10580 = vmatpush1.bf16.msra.mxu0 %v12771_v54  ;;  %10744 = vmatpush1.bf16.msra.mxu1 %v12773_v53  ;;  %v12821_v54 = vcombine.low %v7272_v35, %v7276_v38  ;;  %v12828_v53 = vcombine.high %v7279_v20, %v7283_v23  ;;  %v7331_v20 = vld [vmem:[#allocation7 + $0x6f0] sm:$0xff]  ;;  %v7328_v23 = vld [vmem:[#allocation7 + $0x6d8] sm:$0xff] }
 0x644   : > { %10581 = vmatprep.subr.bf16.mxu0 %v12780_v58  ;;  %10745 = vmatprep.subr.bf16.mxu1 %v12782_v61  ;;  %v12830_v58 = vcombine.high %v7280_v49, %v7284_v25  ;;  %v7287_v61 = vld [vmem:[#allocation7 + $0x590] sm:$0xff] }
 0x645   : > { %v12835_v40 = vcombine.low %v7287_v61, %v7291_v63 }
 0x647   : > { %10582 = vmatpush1.bf16.msra.mxu0 %v12779_v4  ;;  %10746 = vmatpush1.bf16.msra.mxu1 %v12781_v1  ;;  %v12829_v4 = vcombine.low %v7280_v49, %v7284_v25  ;;  %v12836_v1 = vcombine.high %v7287_v61, %v7291_v63  ;;  %v7332_v49 = vld [vmem:[#allocation7 + $0x6f8] sm:$0xff]  ;;  %v7339_v61 = vld [vmem:[#allocation7 + $0x730] sm:$0xff] }
 0x648   : > { %10592 = vmatprep.subr.bf16.mxu0 %v12788_v41  ;;  %10756 = vmatprep.subr.bf16.mxu1 %v12790_v17  ;;  %v12838_v41 = vcombine.high %v7288_v0, %v7292_v2  ;;  %v7295_v17 = vld [vmem:[#allocation7 + $0x5d0] sm:$0xff]  ;;  %v7336_v63 = vld [vmem:[#allocation7 + $0x718] sm:$0xff] }
 0x64a   : > { %10584 = vmatmul.mubr.bf16.vlgmr.msra.gmra.mrb[4].mxu0 %v15223_v19  ;;  %10748 = vmatmul.mubr.bf16.vlgmr.msra.gmra.mrb[4].mxu1 %v15223_v19  ;;  %v12805_v19 = vcombine.low %v7256_v60, %v7260_v51  ;;  %v7308_v60 = vld [vmem:[#allocation7 + $0x638] sm:$0xff]  ;;  %v12843_v51 = vcombine.low %v7295_v17, %v7299_v5 }
 0x64b   : > { %10593 = vmatpush1.bf16.msra.mxu0 %v12787_v11  ;;  %10757 = vmatpush1.bf16.msra.mxu1 %v12789_v12  ;;  %v12837_v11 = vcombine.low %v7288_v0, %v7292_v2  ;;  %v12844_v12 = vcombine.high %v7295_v17, %v7299_v5  ;;  %v7340_v0 = vld [vmem:[#allocation7 + $0x738] sm:$0xff]  ;;  %v7347_v17 = vld [vmem:[#allocation7 + $0x770] sm:$0xff] }
 0x64c   : > { %10594 = vmatprep.subr.bf16.mxu0 %v12796_v9  ;;  %10758 = vmatprep.subr.bf16.mxu1 %v12798_v42  ;;  %v12846_v9 = vcombine.high %v7296_v7, %v7300_v62  ;;  %v7303_v42 = vld [vmem:[#allocation7 + $0x610] sm:$0xff]  ;;  %v7344_v5 = vld [vmem:[#allocation7 + $0x758] sm:$0xff] }
 0x64d   : > { %10624 = vmatprep.mubr.bf16.mxu0 %v15225_v27  ;;  %10788 = vmatprep.mubr.bf16.mxu1 %v15225_v27  ;;  %v12822_v27 = vcombine.high %v7272_v35, %v7276_v38  ;;  %v12851_v46 = vcombine.low %v7303_v42, %v7307_v13  ;;  %v7324_v35 = vld [vmem:[#allocation7 + $0x6b8] sm:$0xff] }
 0x64f   : > { %10595 = vmatpush1.bf16.msra.mxu0 %v12795_v15  ;;  %10759 = vmatpush1.bf16.msra.mxu1 %v12797_v52  ;;  %v12845_v15 = vcombine.low %v7296_v7, %v7300_v62  ;;  %v12852_v52 = vcombine.high %v7303_v42, %v7307_v13  ;;  %v7348_v7 = vld [vmem:[#allocation7 + $0x778] sm:$0xff]  ;;  %v7355_v42 = vld [vmem:[#allocation7 + $0x7b0] sm:$0xff] }
 0x650   : > { %10596 = vmatprep.subr.bf16.mxu0 %v12804_v43  ;;  %10760 = vmatprep.subr.bf16.mxu1 %v12806_v18  ;;  %v12854_v43 = vcombine.high %v7304_v50, %v7308_v60  ;;  %v7311_v18 = vld [vmem:[#allocation7 + $0x650] sm:$0xff]  ;;  %v7352_v13 = vld [vmem:[#allocation7 + $0x798] sm:$0xff] }
 0x651   : > { %v12859_v38 = vcombine.low %v7311_v18, %v7315_v55 }
 0x653   : > { %10597 = vmatpush1.bf16.msra.mxu0 %v12803_v8  ;;  %10761 = vmatpush1.bf16.msra.mxu1 %v12805_v19  ;;  %v12853_v8 = vcombine.low %v7304_v50, %v7308_v60  ;;  %v12860_v19 = vcombine.high %v7311_v18, %v7315_v55  ;;  %v7356_v50 = vld [vmem:[#allocation7 + $0x7b8] sm:$0xff]  ;;  %v7363_v18 = vld [vmem:[#allocation7 + $0x7f0] sm:$0xff] }
 0x654   : > { %10598 = vmatprep.subr.bf16.mxu0 %v12812_v59  ;;  %10762 = vmatprep.subr.bf16.mxu1 %v12814_v29  ;;  %v12862_v59 = vcombine.high %v7312_v22, %v7316_v26  ;;  %v7319_v29 = vld [vmem:[#allocation7 + $0x690] sm:$0xff]  ;;  %v7360_v55 = vld [vmem:[#allocation7 + $0x7d8] sm:$0xff] }
 0x655   : > { %v12867_v25 = vcombine.low %v7319_v29, %v7323_v31 }
 0x657   : > { %10599 = vmatpush1.bf16.msra.mxu0 %v12811_v36  ;;  %10763 = vmatpush1.bf16.msra.mxu1 %v12813_v37  ;;  %v12861_v36 = vcombine.low %v7312_v22, %v7316_v26  ;;  %v12868_v37 = vcombine.high %v7319_v29, %v7323_v31  ;;  %v7364_v22 = vld [vmem:[#allocation7 + $0x7f8] sm:$0xff]  ;;  %v7371_v29 = vld [vmem:[#allocation7 + $0x830] sm:$0xff] }
 0x658   : > { %10600 = vmatprep.subr.bf16.mxu0 %v12820_v39  ;;  %10764 = vmatprep.subr.bf16.mxu1 %v12822_v27  ;;  %v12870_v39 = vcombine.high %v7320_v32, %v7324_v35  ;;  %v7327_v27 = vld [vmem:[#allocation7 + $0x6d0] sm:$0xff]  ;;  %v7368_v31 = vld [vmem:[#allocation7 + $0x818] sm:$0xff] }
 0x659   : > { %v12875_v2 = vcombine.low %v7327_v27, %v7331_v20 }
 0x65b   : > { %10601 = vmatpush1.bf16.msra.mxu0 %v12819_v48  ;;  %10765 = vmatpush1.bf16.msra.mxu1 %v12821_v54  ;;  %v12869_v48 = vcombine.low %v7320_v32, %v7324_v35  ;;  %v12876_v54 = vcombine.high %v7327_v27, %v7331_v20  ;;  %v7372_v32 = vld [vmem:[#allocation7 + $0x838] sm:$0xff]  ;;  %v7379_v27 = vld [vmem:[#allocation7 + $0x870] sm:$0xff] }
 0x65c   : > { %10602 = vmatprep.subr.bf16.mxu0 %v12828_v53  ;;  %10766 = vmatprep.subr.bf16.mxu1 %v12830_v58  ;;  %v12878_v53 = vcombine.high %v7328_v23, %v7332_v49  ;;  %v7335_v58 = vld [vmem:[#allocation7 + $0x710] sm:$0xff]  ;;  %v7376_v20 = vld [vmem:[#allocation7 + $0x858] sm:$0xff] }
 0x65d   : > { %v12883_v62 = vcombine.low %v7335_v58, %v7339_v61 }
 0x65f   : > { %10603 = vmatpush1.bf16.msra.mxu0 %v12827_v3  ;;  %10767 = vmatpush1.bf16.msra.mxu1 %v12829_v4  ;;  %v12877_v3 = vcombine.low %v7328_v23, %v7332_v49  ;;  %v12884_v4 = vcombine.high %v7335_v58, %v7339_v61  ;;  %v7380_v23 = vld [vmem:[#allocation7 + $0x878] sm:$0xff]  ;;  %v7387_v58 = vld [vmem:[#allocation7 + $0x8b0] sm:$0xff] }
 0x660   : > { %10604 = vmatprep.subr.bf16.mxu0 %v12836_v1  ;;  %10768 = vmatprep.subr.bf16.mxu1 %v12838_v41  ;;  %v12886_v1 = vcombine.high %v7336_v63, %v7340_v0  ;;  %v7343_v41 = vld [vmem:[#allocation7 + $0x750] sm:$0xff]  ;;  %v7384_v61 = vld [vmem:[#allocation7 + $0x898] sm:$0xff] }
 0x661   : > { %v12891_v60 = vcombine.low %v7343_v41, %v7347_v17 }
 0x663   : > { %10605 = vmatpush1.bf16.msra.mxu0 %v12835_v40  ;;  %10769 = vmatpush1.bf16.msra.mxu1 %v12837_v11  ;;  %v12885_v40 = vcombine.low %v7336_v63, %v7340_v0  ;;  %v12892_v11 = vcombine.high %v7343_v41, %v7347_v17  ;;  %v7388_v63 = vld [vmem:[#allocation7 + $0x8b8] sm:$0xff]  ;;  %v7395_v41 = vld [vmem:[#allocation7 + $0x8f0] sm:$0xff] }
 0x664   : > { %10606 = vmatprep.subr.bf16.mxu0 %v12844_v12  ;;  %10770 = vmatprep.subr.bf16.mxu1 %v12846_v9  ;;  %v12894_v12 = vcombine.high %v7344_v5, %v7348_v7  ;;  %v7351_v9 = vld [vmem:[#allocation7 + $0x790] sm:$0xff]  ;;  %v7392_v17 = vld [vmem:[#allocation7 + $0x8d8] sm:$0xff] }
 0x665   : > { %v12899_v26 = vcombine.low %v7351_v9, %v7355_v42 }
 0x667   : > { %10607 = vmatpush1.bf16.msra.mxu0 %v12843_v51  ;;  %10771 = vmatpush1.bf16.msra.mxu1 %v12845_v15  ;;  %v12893_v51 = vcombine.low %v7344_v5, %v7348_v7  ;;  %v12900_v15 = vcombine.high %v7351_v9, %v7355_v42  ;;  %v7396_v5 = vld [vmem:[#allocation7 + $0x8f8] sm:$0xff] }
 0x668   : > { %10608 = vmatprep.subr.bf16.mxu0 %v12852_v52  ;;  %10772 = vmatprep.subr.bf16.mxu1 %v12854_v43  ;;  %v12902_v52 = vcombine.high %v7352_v13, %v7356_v50  ;;  %v7359_v43 = vld [vmem:[#allocation7 + $0x7d0] sm:$0xff]  ;;  %v7400_v9 = vld [vmem:[#allocation7 + $0x918] sm:$0xff] }
 0x669   : > { %v12907_v35 = vcombine.low %v7359_v43, %v7363_v18  ;;  %v7404_v42 = vld [vmem:[#allocation7 + $0x938] sm:$0xff] }
 0x66b   : > { %10609 = vmatpush1.bf16.msra.mxu0 %v12851_v46  ;;  %10773 = vmatpush1.bf16.msra.mxu1 %v12853_v8  ;;  %v12901_v46 = vcombine.low %v7352_v13, %v7356_v50  ;;  %v12908_v8 = vcombine.high %v7359_v43, %v7363_v18  ;;  %v12941_v50 = vcombine.low %v7392_v17, %v7396_v5  ;;  %v7412_v43 = vld [vmem:[#allocation7 + $0x978] sm:$0xff] }
 0x66c   : > { %10610 = vmatprep.subr.bf16.mxu0 %v12860_v19  ;;  %10774 = vmatprep.subr.bf16.mxu1 %v12862_v59  ;;  %v12910_v19 = vcombine.high %v7360_v55, %v7364_v22  ;;  %v7367_v59 = vld [vmem:[#allocation7 + $0x810] sm:$0xff] }
 0x66d   : > { %v12915_v49 = vcombine.low %v7367_v59, %v7371_v29 }
 0x66f   : > { %10611 = vmatpush1.bf16.msra.mxu0 %v12859_v38  ;;  %10775 = vmatpush1.bf16.msra.mxu1 %v12861_v36  ;;  %v12909_v38 = vcombine.low %v7360_v55, %v7364_v22  ;;  %v12916_v36 = vcombine.high %v7367_v59, %v7371_v29  ;;  %v12949_v55 = vcombine.low %v7400_v9, %v7404_v42  ;;  %v7420_v59 = vld [vmem:[#allocation7 + $0x9b8] sm:$0xff] }
 0x670   : > { %10612 = vmatprep.subr.bf16.mxu0 %v12868_v37  ;;  %10776 = vmatprep.subr.bf16.mxu1 %v12870_v39  ;;  %v12918_v37 = vcombine.high %v7368_v31, %v7372_v32  ;;  %v7375_v39 = vld [vmem:[#allocation7 + $0x850] sm:$0xff] }
 0x671   : > { %v12923_v0 = vcombine.low %v7375_v39, %v7379_v27 }
 0x673   : > { %10613 = vmatpush1.bf16.msra.mxu0 %v12867_v25  ;;  %10777 = vmatpush1.bf16.msra.mxu1 %v12869_v48  ;;  %v12917_v25 = vcombine.low %v7368_v31, %v7372_v32  ;;  %v12924_v48 = vcombine.high %v7375_v39, %v7379_v27  ;;  %v7428_v39 = vld [vmem:[#allocation7 + $0x9f8] sm:$0xff] }
 0x674   : > { %10614 = vmatprep.subr.bf16.mxu0 %v12876_v54  ;;  %10778 = vmatprep.subr.bf16.mxu1 %v12878_v53  ;;  %v12926_v54 = vcombine.high %v7376_v20, %v7380_v23  ;;  %v7383_v53 = vld [vmem:[#allocation7 + $0x890] sm:$0xff] }
 0x675   : > { %v12931_v7 = vcombine.low %v7383_v53, %v7387_v58 }
 0x677   : > { %10615 = vmatpush1.bf16.msra.mxu0 %v12875_v2  ;;  %10779 = vmatpush1.bf16.msra.mxu1 %v12877_v3  ;;  %v12925_v2 = vcombine.low %v7376_v20, %v7380_v23  ;;  %v12932_v3 = vcombine.high %v7383_v53, %v7387_v58  ;;  %v7436_v53 = vld [vmem:[#allocation7 + $0xa38] sm:$0xff] }
 0x678   : > { %10616 = vmatprep.subr.bf16.mxu0 %v12884_v4  ;;  %10780 = vmatprep.subr.bf16.mxu1 %v12886_v1  ;;  %v12934_v4 = vcombine.high %v7384_v61, %v7388_v63  ;;  %v7391_v1 = vld [vmem:[#allocation7 + $0x8d0] sm:$0xff] }
 0x679   : > { %v12939_v13 = vcombine.low %v7391_v1, %v7395_v41 }
 0x67b   : > { %10617 = vmatpush1.bf16.msra.mxu0 %v12883_v62  ;;  %10781 = vmatpush1.bf16.msra.mxu1 %v12885_v40  ;;  %v12940_v62 = vcombine.high %v7391_v1, %v7395_v41  ;;  %v12942_v40 = vcombine.high %v7392_v17, %v7396_v5  ;;  %v7444_v1 = vld [vmem:[#allocation7 + $0xa78] sm:$0xff] }
 0x67c   : > { %10618 = vmatprep.subr.bf16.mxu0 %v12892_v11  ;;  %10782 = vmatprep.subr.bf16.mxu1 %v12894_v12  ;;  %v7399_v11 = vld [vmem:[#allocation7 + $0x910] sm:$0xff] }
 0x67d   : > { %v7403_v12 = vld [vmem:[#allocation7 + $0x930] sm:$0xff] }
 0x67e   : > { %v12947_v18 = vcombine.low %v7399_v11, %v7403_v12 }
 0x67f   : > { %10619 = vmatpush1.bf16.msra.mxu0 %v12891_v60  ;;  %10783 = vmatpush1.bf16.msra.mxu1 %v12893_v51  ;;  %v12948_v60 = vcombine.high %v7399_v11, %v7403_v12  ;;  %v7407_v51 = vld [vmem:[#allocation7 + $0x950] sm:$0xff]  ;;  %v7452_v11 = vld [vmem:[#allocation7 + $0xab8] sm:$0xff] }
 0x680   : > { %10620 = vmatprep.subr.bf16.mxu0 %v12900_v15  ;;  %10784 = vmatprep.subr.bf16.mxu1 %v12902_v52  ;;  %v7411_v15 = vld [vmem:[#allocation7 + $0x970] sm:$0xff]  ;;  %v7408_v52 = vld [vmem:[#allocation7 + $0x958] sm:$0xff] }
 0x681   : > { %v12956_v22 = vcombine.high %v7407_v51, %v7411_v15  ;;  %v12955_v29 = vcombine.low %v7407_v51, %v7411_v15  ;;  %v12957_v31 = vcombine.low %v7408_v52, %v7412_v43  ;;  %v7460_v51 = vld [vmem:[#allocation7 + $0xaf8] sm:$0xff] }
 0x683   : > { %10621 = vmatpush1.bf16.msra.mxu0 %v12899_v26  ;;  %10785 = vmatpush1.bf16.msra.mxu1 %v12901_v46  ;;  %v12958_v26 = vcombine.high %v7408_v52, %v7412_v43  ;;  %v7415_v46 = vld [vmem:[#allocation7 + $0x990] sm:$0xff] }
 0x684   : > { %10622 = vmatprep.subr.bf16.mxu0 %v12908_v8  ;;  %10786 = vmatprep.subr.bf16.mxu1 %v12910_v19  ;;  %v7419_v8 = vld [vmem:[#allocation7 + $0x9b0] sm:$0xff]  ;;  %v7416_v19 = vld [vmem:[#allocation7 + $0x998] sm:$0xff] }
 0x685   : > { %v12964_v32 = vcombine.high %v7415_v46, %v7419_v8  ;;  %v12963_v27 = vcombine.low %v7415_v46, %v7419_v8  ;;  %v12965_v20 = vcombine.low %v7416_v19, %v7420_v59  ;;  %v7468_v46 = vld [vmem:[#allocation7 + $0xb38] sm:$0xff] }
 0x687   : > { %10623 = vmatpush1.bf16.msra.mxu0 %v12907_v35  ;;  %10787 = vmatpush1.bf16.msra.mxu1 %v12909_v38  ;;  %v12966_v35 = vcombine.high %v7416_v19, %v7420_v59  ;;  %v7423_v38 = vld [vmem:[#allocation7 + $0x9d0] sm:$0xff] }
 0x688   : > { %10633 = vmatprep.subr.bf16.mxu0 %v12916_v36  ;;  %10797 = vmatprep.subr.bf16.mxu1 %v12918_v37  ;;  %v7427_v36 = vld [vmem:[#allocation7 + $0x9f0] sm:$0xff]  ;;  %v7424_v37 = vld [vmem:[#allocation7 + $0x9d8] sm:$0xff] }
 0x689   : > { %v12972_v23 = vcombine.high %v7423_v38, %v7427_v36  ;;  %v12971_v58 = vcombine.low %v7423_v38, %v7427_v36  ;;  %v7476_v38 = vld [vmem:[#allocation7 + $0xb78] sm:$0xff] }
 0x68a   : > { %10625 = vmatmul.mubr.bf16.vlgmr.msra.gmra.mrb[4].mxu0 %v15239_v56  ;;  %10789 = vmatmul.mubr.bf16.vlgmr.msra.gmra.mrb[4].mxu1 %v15239_v56  ;;  %v12933_v56 = vcombine.low %v7384_v61, %v7388_v63  ;;  %v12973_v61 = vcombine.low %v7424_v37, %v7428_v39 }
 0x68b   : > { %10634 = vmatpush1.bf16.msra.mxu0 %v12915_v49  ;;  %10798 = vmatpush1.bf16.msra.mxu1 %v12917_v25  ;;  %v12974_v49 = vcombine.high %v7424_v37, %v7428_v39  ;;  %v7431_v25 = vld [vmem:[#allocation7 + $0xa10] sm:$0xff] }
 0x68c   : > { %10635 = vmatprep.subr.bf16.mxu0 %v12924_v48  ;;  %10799 = vmatprep.subr.bf16.mxu1 %v12926_v54  ;;  %v7435_v48 = vld [vmem:[#allocation7 + $0xa30] sm:$0xff]  ;;  %v7432_v54 = vld [vmem:[#allocation7 + $0xa18] sm:$0xff] }
 0x68d   : > { %10665 = vmatprep.mubr.bf16.mxu0 %v15241_v6  ;;  %10829 = vmatprep.mubr.bf16.mxu1 %v15241_v6  ;;  %v12950_v6 = vcombine.high %v7400_v9, %v7404_v42  ;;  %v12980_v63 = vcombine.high %v7431_v25, %v7435_v48  ;;  %v12979_v41 = vcombine.low %v7431_v25, %v7435_v48  ;;  %v7484_v25 = vld [vmem:[#allocation7 + $0xbb8] sm:$0xff] }
 0x68e   : > { %v12981_v17 = vcombine.low %v7432_v54, %v7436_v53 }
 0x68f   : > { %10636 = vmatpush1.bf16.msra.mxu0 %v12923_v0  ;;  %10800 = vmatpush1.bf16.msra.mxu1 %v12925_v2  ;;  %v12982_v0 = vcombine.high %v7432_v54, %v7436_v53  ;;  %v7439_v2 = vld [vmem:[#allocation7 + $0xa50] sm:$0xff] }
 0x690   : > { %10637 = vmatprep.subr.bf16.mxu0 %v12932_v3  ;;  %10801 = vmatprep.subr.bf16.mxu1 %v12934_v4  ;;  %v7443_v3 = vld [vmem:[#allocation7 + $0xa70] sm:$0xff]  ;;  %v7440_v4 = vld [vmem:[#allocation7 + $0xa58] sm:$0xff] }
 0x691   : > { %v12988_v5 = vcombine.high %v7439_v2, %v7443_v3  ;;  %v12987_v12 = vcombine.low %v7439_v2, %v7443_v3  ;;  %v12989_v9 = vcombine.low %v7440_v4, %v7444_v1  ;;  %v7492_v2 = vld [vmem:[#allocation7 + $0xbf8] sm:$0xff] }
 0x693   : > { %10638 = vmatpush1.bf16.msra.mxu0 %v12931_v7  ;;  %10802 = vmatpush1.bf16.msra.mxu1 %v12933_v56  ;;  %v12990_v7 = vcombine.high %v7440_v4, %v7444_v1  ;;  %v7447_v56 = vld [vmem:[#allocation7 + $0xa90] sm:$0xff] }
 0x694   : > { %10639 = vmatprep.subr.bf16.mxu0 %v12940_v62  ;;  %10803 = vmatprep.subr.bf16.mxu1 %v12942_v40  ;;  %v7451_v62 = vld [vmem:[#allocation7 + $0xab0] sm:$0xff]  ;;  %v7448_v40 = vld [vmem:[#allocation7 + $0xa98] sm:$0xff] }
 0x695   : > { %v12996_v42 = vcombine.high %v7447_v56, %v7451_v62  ;;  %v12995_v15 = vcombine.low %v7447_v56, %v7451_v62  ;;  %v12997_v52 = vcombine.low %v7448_v40, %v7452_v11  ;;  %v7500_v56 = vld [vmem:[#allocation7 + $0xc38] sm:$0xff] }
 0x697   : > { %10640 = vmatpush1.bf16.msra.mxu0 %v12939_v13  ;;  %10804 = vmatpush1.bf16.msra.mxu1 %v12941_v50  ;;  %v12998_v13 = vcombine.high %v7448_v40, %v7452_v11  ;;  %v7455_v50 = vld [vmem:[#allocation7 + $0xad0] sm:$0xff] }
 0x698   : > { %10641 = vmatprep.subr.bf16.mxu0 %v12948_v60  ;;  %10805 = vmatprep.subr.bf16.mxu1 %v12950_v6  ;;  %v7459_v60 = vld [vmem:[#allocation7 + $0xaf0] sm:$0xff]  ;;  %v7456_v6 = vld [vmem:[#allocation7 + $0xad8] sm:$0xff] }
 0x699   : > { %v13004_v43 = vcombine.high %v7455_v50, %v7459_v60  ;;  %v13003_v8 = vcombine.low %v7455_v50, %v7459_v60  ;;  %v13005_v19 = vcombine.low %v7456_v6, %v7460_v51  ;;  %v7508_v50 = vld [vmem:[#allocation7 + $0xc78] sm:$0xff] }
 0x69b   : > { %10642 = vmatpush1.bf16.msra.mxu0 %v12947_v18  ;;  %10806 = vmatpush1.bf16.msra.mxu1 %v12949_v55  ;;  %v13006_v18 = vcombine.high %v7456_v6, %v7460_v51  ;;  %v7463_v55 = vld [vmem:[#allocation7 + $0xb10] sm:$0xff] }
 0x69c   : > { %10643 = vmatprep.subr.bf16.mxu0 %v12956_v22  ;;  %10807 = vmatprep.subr.bf16.mxu1 %v12958_v26  ;;  %v7467_v22 = vld [vmem:[#allocation7 + $0xb30] sm:$0xff]  ;;  %v7464_v26 = vld [vmem:[#allocation7 + $0xb18] sm:$0xff] }
 0x69d   : > { %v13012_v59 = vcombine.high %v7463_v55, %v7467_v22  ;;  %v13011_v36 = vcombine.low %v7463_v55, %v7467_v22  ;;  %v13013_v37 = vcombine.low %v7464_v26, %v7468_v46  ;;  %v7516_v55 = vld [vmem:[#allocation7 + $0xcb8] sm:$0xff] }
 0x69f   : > { %10644 = vmatpush1.bf16.msra.mxu0 %v12955_v29  ;;  %10808 = vmatpush1.bf16.msra.mxu1 %v12957_v31  ;;  %v13014_v29 = vcombine.high %v7464_v26, %v7468_v46  ;;  %v7471_v31 = vld [vmem:[#allocation7 + $0xb50] sm:$0xff] }
 0x6a0   : > { %10645 = vmatprep.subr.bf16.mxu0 %v12964_v32  ;;  %10809 = vmatprep.subr.bf16.mxu1 %v12966_v35  ;;  %v7475_v32 = vld [vmem:[#allocation7 + $0xb70] sm:$0xff]  ;;  %v7472_v35 = vld [vmem:[#allocation7 + $0xb58] sm:$0xff] }
 0x6a1   : > { %v13020_v39 = vcombine.high %v7471_v31, %v7475_v32  ;;  %v13019_v48 = vcombine.low %v7471_v31, %v7475_v32  ;;  %v13021_v54 = vcombine.low %v7472_v35, %v7476_v38  ;;  %v7524_v31 = vld [vmem:[#allocation7 + $0xcf8] sm:$0xff] }
 0x6a3   : > { %10646 = vmatpush1.bf16.msra.mxu0 %v12963_v27  ;;  %10810 = vmatpush1.bf16.msra.mxu1 %v12965_v20  ;;  %v13022_v27 = vcombine.high %v7472_v35, %v7476_v38  ;;  %v7479_v20 = vld [vmem:[#allocation7 + $0xb90] sm:$0xff] }
 0x6a4   : > { %10647 = vmatprep.subr.bf16.mxu0 %v12972_v23  ;;  %10811 = vmatprep.subr.bf16.mxu1 %v12974_v49  ;;  %v7483_v23 = vld [vmem:[#allocation7 + $0xbb0] sm:$0xff]  ;;  %v7480_v49 = vld [vmem:[#allocation7 + $0xb98] sm:$0xff] }
 0x6a5   : > { %v13028_v53 = vcombine.high %v7479_v20, %v7483_v23  ;;  %v13027_v3 = vcombine.low %v7479_v20, %v7483_v23  ;;  %v13029_v4 = vcombine.low %v7480_v49, %v7484_v25 }
 0x6a7   : > { %10648 = vmatpush1.bf16.msra.mxu0 %v12971_v58  ;;  %10812 = vmatpush1.bf16.msra.mxu1 %v12973_v61  ;;  %v13030_v58 = vcombine.high %v7480_v49, %v7484_v25  ;;  %v7487_v61 = vld [vmem:[#allocation7 + $0xbd0] sm:$0xff] }
 0x6a8   : > { %10649 = vmatprep.subr.bf16.mxu0 %v12980_v63  ;;  %10813 = vmatprep.subr.bf16.mxu1 %v12982_v0  ;;  %v7491_v63 = vld [vmem:[#allocation7 + $0xbf0] sm:$0xff]  ;;  %v7488_v0 = vld [vmem:[#allocation7 + $0xbd8] sm:$0xff] }
 0x6a9   : > { %v13036_v1 = vcombine.high %v7487_v61, %v7491_v63  ;;  %v13035_v62 = vcombine.low %v7487_v61, %v7491_v63  ;;  %v13037_v40 = vcombine.low %v7488_v0, %v7492_v2  ;;  %v7535_v25 = vld [vmem:[#allocation7 + $0xd50] sm:$0xff] }
 0x6ab   : > { %10650 = vmatpush1.bf16.msra.mxu0 %v12979_v41  ;;  %10814 = vmatpush1.bf16.msra.mxu1 %v12981_v17  ;;  %v13038_v41 = vcombine.high %v7488_v0, %v7492_v2  ;;  %v7495_v17 = vld [vmem:[#allocation7 + $0xc10] sm:$0xff] }
 0x6ac   : > { %10651 = vmatprep.subr.bf16.mxu0 %v12988_v5  ;;  %10815 = vmatprep.subr.bf16.mxu1 %v12990_v7  ;;  %v7499_v5 = vld [vmem:[#allocation7 + $0xc30] sm:$0xff]  ;;  %v7496_v7 = vld [vmem:[#allocation7 + $0xc18] sm:$0xff] }
 0x6ad   : > { %v13044_v11 = vcombine.high %v7495_v17, %v7499_v5  ;;  %v13043_v60 = vcombine.low %v7495_v17, %v7499_v5  ;;  %v13045_v6 = vcombine.low %v7496_v7, %v7500_v56  ;;  %v7543_v2 = vld [vmem:[#allocation7 + $0xd90] sm:$0xff] }
 0x6af   : > { %10652 = vmatpush1.bf16.msra.mxu0 %v12987_v12  ;;  %10816 = vmatpush1.bf16.msra.mxu1 %v12989_v9  ;;  %v13046_v12 = vcombine.high %v7496_v7, %v7500_v56  ;;  %v7503_v9 = vld [vmem:[#allocation7 + $0xc50] sm:$0xff] }
 0x6b0   : > { %10653 = vmatprep.subr.bf16.mxu0 %v12996_v42  ;;  %10817 = vmatprep.subr.bf16.mxu1 %v12998_v13  ;;  %v7507_v42 = vld [vmem:[#allocation7 + $0xc70] sm:$0xff]  ;;  %v7504_v13 = vld [vmem:[#allocation7 + $0xc58] sm:$0xff] }
 0x6b1   : > { %v13052_v51 = vcombine.high %v7503_v9, %v7507_v42  ;;  %v13051_v22 = vcombine.low %v7503_v9, %v7507_v42  ;;  %v13053_v26 = vcombine.low %v7504_v13, %v7508_v50  ;;  %v7552_v9 = vld [vmem:[#allocation7 + $0xdd8] sm:$0xff] }
 0x6b2   : > { %v7556_v42 = vld [vmem:[#allocation7 + $0xdf8] sm:$0xff] }
 0x6b3   : > { %10654 = vmatpush1.bf16.msra.mxu0 %v12995_v15  ;;  %10818 = vmatpush1.bf16.msra.mxu1 %v12997_v52  ;;  %v13054_v15 = vcombine.high %v7504_v13, %v7508_v50  ;;  %v7511_v52 = vld [vmem:[#allocation7 + $0xc90] sm:$0xff] }
 0x6b4   : > { %10655 = vmatprep.subr.bf16.mxu0 %v13004_v43  ;;  %10819 = vmatprep.subr.bf16.mxu1 %v13006_v18  ;;  %v7515_v43 = vld [vmem:[#allocation7 + $0xcb0] sm:$0xff]  ;;  %v7512_v18 = vld [vmem:[#allocation7 + $0xc98] sm:$0xff] }
 0x6b5   : > { %v13060_v46 = vcombine.high %v7511_v52, %v7515_v43  ;;  %v13059_v32 = vcombine.low %v7511_v52, %v7515_v43 }
 0x6b7   : > { %10656 = vmatpush1.bf16.msra.mxu0 %v13003_v8  ;;  %10820 = vmatpush1.bf16.msra.mxu1 %v13005_v19  ;;  %v13062_v8 = vcombine.high %v7512_v18, %v7516_v55  ;;  %v7519_v19 = vld [vmem:[#allocation7 + $0xcd0] sm:$0xff] }
 0x6b8   : > { %10657 = vmatprep.subr.bf16.mxu0 %v13012_v59  ;;  %10821 = vmatprep.subr.bf16.mxu1 %v13014_v29  ;;  %v7523_v59 = vld [vmem:[#allocation7 + $0xcf0] sm:$0xff]  ;;  %v7520_v29 = vld [vmem:[#allocation7 + $0xcd8] sm:$0xff] }
 0x6b9   : > { %v13068_v35 = vcombine.high %v7519_v19, %v7523_v59  ;;  %v13070_v38 = vcombine.high %v7520_v29, %v7524_v31  ;;  %v13067_v20 = vcombine.low %v7519_v19, %v7523_v59  ;;  %v13069_v23 = vcombine.low %v7520_v29, %v7524_v31  ;;  %v7567_v31 = vld [vmem:[#allocation7 + $0xe50] sm:$0xff] }
 0x6ba   : > { %v13101_v19 = vcombine.low %v7552_v9, %v7556_v42 }
 0x6bb   : > { %10658 = vmatpush1.bf16.msra.mxu0 %v13011_v36  ;;  %10822 = vmatpush1.bf16.msra.mxu1 %v13013_v37  ;;  %v7527_v36 = vld [vmem:[#allocation7 + $0xd10] sm:$0xff] }
 0x6bc   : > { %10659 = vmatprep.subr.bf16.mxu0 %v13020_v39  ;;  %10823 = vmatprep.subr.bf16.mxu1 %v13022_v27  ;;  %v7531_v37 = vld [vmem:[#allocation7 + $0xd30] sm:$0xff]  ;;  %v7528_v39 = vld [vmem:[#allocation7 + $0xd18] sm:$0xff] }
 0x6bd   : > { %v7532_v27 = vld [vmem:[#allocation7 + $0xd38] sm:$0xff]  ;;  %v13076_v49 = vcombine.high %v7527_v36, %v7531_v37 }
 0x6be   : > { %v13077_v61 = vcombine.low %v7528_v39, %v7532_v27 }
 0x6bf   : > { %10660 = vmatpush1.bf16.msra.mxu0 %v13019_v48  ;;  %10824 = vmatpush1.bf16.msra.mxu1 %v13021_v54  ;;  %v7539_v48 = vld [vmem:[#allocation7 + $0xd70] sm:$0xff]  ;;  %v7536_v54 = vld [vmem:[#allocation7 + $0xd58] sm:$0xff] }
 0x6c0   : > { %10661 = vmatprep.subr.bf16.mxu0 %v13028_v53  ;;  %10825 = vmatprep.subr.bf16.mxu1 %v13030_v58  ;;  %v7540_v53 = vld [vmem:[#allocation7 + $0xd78] sm:$0xff]  ;;  %v13075_v58 = vcombine.low %v7527_v36, %v7531_v37  ;;  %v13084_v63 = vcombine.high %v7535_v25, %v7539_v48 }
 0x6c1   : > { %v13086_v0 = vcombine.high %v7536_v54, %v7540_v53  ;;  %v13085_v17 = vcombine.low %v7536_v54, %v7540_v53  ;;  %v7583_v53 = vld [vmem:[#allocation7 + $0xed0] sm:$0xff] }
 0x6c3   : > { %10662 = vmatpush1.bf16.msra.mxu0 %v13027_v3  ;;  %10826 = vmatpush1.bf16.msra.mxu1 %v13029_v4  ;;  %v7547_v3 = vld [vmem:[#allocation7 + $0xdb0] sm:$0xff]  ;;  %v7544_v4 = vld [vmem:[#allocation7 + $0xd98] sm:$0xff] }
 0x6c4   : > { %10663 = vmatprep.subr.bf16.mxu0 %v13036_v1  ;;  %10827 = vmatprep.subr.bf16.mxu1 %v13038_v41  ;;  %v7548_v1 = vld [vmem:[#allocation7 + $0xdb8] sm:$0xff]  ;;  %v13083_v41 = vcombine.low %v7535_v25, %v7539_v48  ;;  %v13092_v5 = vcombine.high %v7543_v2, %v7547_v3 }
 0x6c5   : > { %v13094_v56 = vcombine.high %v7544_v4, %v7548_v1 }
 0x6c7   : > { %10664 = vmatpush1.bf16.msra.mxu0 %v13035_v62  ;;  %10828 = vmatpush1.bf16.msra.mxu1 %v13037_v40  ;;  %v7551_v62 = vld [vmem:[#allocation7 + $0xdd0] sm:$0xff] }
 0x6c8   : > { %10674 = vmatprep.subr.bf16.mxu0 %v13044_v11  ;;  %10838 = vmatprep.subr.bf16.mxu1 %v13046_v12  ;;  %v7555_v40 = vld [vmem:[#allocation7 + $0xdf0] sm:$0xff] }
 0x6c9   : > { %v13100_v52 = vcombine.high %v7551_v62, %v7555_v40 }
 0x6ca   : > { %10666 = vmatmul.mubr.bf16.vlgmr.msra.gmra.mrb[4].mxu0 %v15257_v33  ;;  %10830 = vmatmul.mubr.bf16.vlgmr.msra.gmra.mrb[4].mxu1 %v15257_v33  ;;  %v13061_v33 = vcombine.low %v7512_v18, %v7516_v55  ;;  %v13102_v18 = vcombine.high %v7552_v9, %v7556_v42  ;;  %v7559_v55 = vld [vmem:[#allocation7 + $0xe10] sm:$0xff] }
 0x6cb   : > { %10675 = vmatpush1.bf16.msra.mxu0 %v13043_v60  ;;  %10839 = vmatpush1.bf16.msra.mxu1 %v13045_v6  ;;  %v13091_v60 = vcombine.low %v7543_v2, %v7547_v3  ;;  %v7599_v42 = vld [vmem:[#allocation7 + $0xf50] sm:$0xff] }
 0x6cc   : > { %10676 = vmatprep.subr.bf16.mxu0 %v13052_v51  ;;  %10840 = vmatprep.subr.bf16.mxu1 %v13054_v15  ;;  %v13093_v15 = vcombine.low %v7544_v4, %v7548_v1  ;;  %v7591_v1 = vld [vmem:[#allocation7 + $0xf10] sm:$0xff] }
 0x6cd   : > { %10706 = vmatprep.mubr.bf16.mxu0 %v15259_v45  ;;  %10870 = vmatprep.mubr.bf16.mxu1 %v15259_v45  ;;  %v13078_v45 = vcombine.high %v7528_v39, %v7532_v27  ;;  %v7575_v27 = vld [vmem:[#allocation7 + $0xe90] sm:$0xff] }
 0x6cf   : > { %10677 = vmatpush1.bf16.msra.mxu0 %v13051_v22  ;;  %10841 = vmatpush1.bf16.msra.mxu1 %v13053_v26  ;;  %v7563_v22 = vld [vmem:[#allocation7 + $0xe30] sm:$0xff]  ;;  %v7560_v26 = vld [vmem:[#allocation7 + $0xe18] sm:$0xff] }
 0x6d0   : > { %10678 = vmatprep.subr.bf16.mxu0 %v13060_v46  ;;  %10842 = vmatprep.subr.bf16.mxu1 %v13062_v8  ;;  %v7564_v46 = vld [vmem:[#allocation7 + $0xe38] sm:$0xff]  ;;  %v13099_v8 = vcombine.low %v7551_v62, %v7555_v40  ;;  %v13108_v59 = vcombine.high %v7559_v55, %v7563_v22 }
 0x6d1   : > { %v13110_v29 = vcombine.high %v7560_v26, %v7564_v46  ;;  %v13109_v36 = vcombine.low %v7560_v26, %v7564_v46  ;;  %v7612_v26 = vld [vmem:[#allocation7 + $0xfb8] sm:$0xff]  ;;  %v15295_v46 = vld [vmem:[#allocation8] sm:$0xff] }
 0x6d3   : > { %10679 = vmatpush1.bf16.msra.mxu0 %v13059_v32  ;;  %10843 = vmatpush1.bf16.msra.mxu1 %v13061_v33  ;;  %v7571_v32 = vld [vmem:[#allocation7 + $0xe70] sm:$0xff]  ;;  %v7568_v33 = vld [vmem:[#allocation7 + $0xe58] sm:$0xff] }
 0x6d4   : > { %10680 = vmatprep.subr.bf16.mxu0 %v13068_v35  ;;  %10844 = vmatprep.subr.bf16.mxu1 %v13070_v38  ;;  %v7572_v35 = vld [vmem:[#allocation7 + $0xe78] sm:$0xff]  ;;  %v13107_v38 = vcombine.low %v7559_v55, %v7563_v22  ;;  %v13116_v37 = vcombine.high %v7567_v31, %v7571_v32  ;;  %v7611_v55 = vld [vmem:[#allocation7 + $0xfb0] sm:$0xff] }
 0x6d5   : > { %v13118_v39 = vcombine.high %v7568_v33, %v7572_v35  ;;  %v13117_v25 = vcombine.low %v7568_v33, %v7572_v35  ;;  %v7608_v22 = vld [vmem:[#allocation7 + $0xf98] sm:$0xff]  ;;  %v7630_v33 = vrot.slane %v15295_v46, %v7051_v34 }
 0x6d6   : > { %v7616_v35 = vld [vmem:[#allocation7 + $0xfd8] sm:$0xff] }
 0x6d7   : > { %10681 = vmatpush1.bf16.msra.mxu0 %v13067_v20  ;;  %10845 = vmatpush1.bf16.msra.mxu1 %v13069_v23  ;;  %v7579_v20 = vld [vmem:[#allocation7 + $0xeb0] sm:$0xff]  ;;  %v7576_v23 = vld [vmem:[#allocation7 + $0xe98] sm:$0xff] }
 0x6d8   : > { %10682 = vmatprep.subr.bf16.mxu0 %v13076_v49  ;;  %10846 = vmatprep.subr.bf16.mxu1 %v13078_v45  ;;  %v7580_v49 = vld [vmem:[#allocation7 + $0xeb8] sm:$0xff]  ;;  %v13115_v45 = vcombine.low %v7567_v31, %v7571_v32  ;;  %v13124_v48 = vcombine.high %v7575_v27, %v7579_v20  ;;  %v7615_v31 = vld [vmem:[#allocation7 + $0xfd0] sm:$0xff] }
 0x6d9   : > { %v13126_v54 = vcombine.high %v7576_v23, %v7580_v49  ;;  %v13125_v2 = vcombine.low %v7576_v23, %v7580_v49  ;;  %v7619_v32 = vld [vmem:[#allocation7 + $0xff0] sm:$0xff] }
 0x6da   : > { %v13163_v34 = vcombine.low %v7615_v31, %v7619_v32 }
 0x6db   : > { %10683 = vmatpush1.bf16.msra.mxu0 %v13075_v58  ;;  %10847 = vmatpush1.bf16.msra.mxu1 %v13077_v61  ;;  %v7587_v58 = vld [vmem:[#allocation7 + $0xef0] sm:$0xff]  ;;  %v7584_v61 = vld [vmem:[#allocation7 + $0xed8] sm:$0xff] }
 0x6dc   : > { %10684 = vmatprep.subr.bf16.mxu0 %v13084_v63  ;;  %10848 = vmatprep.subr.bf16.mxu1 %v13086_v0  ;;  %v7588_v63 = vld [vmem:[#allocation7 + $0xef8] sm:$0xff]  ;;  %v13123_v0 = vcombine.low %v7575_v27, %v7579_v20  ;;  %v13132_v3 = vcombine.high %v7583_v53, %v7587_v58  ;;  %v13164_v27 = vcombine.high %v7615_v31, %v7619_v32  ;;  %v13541_v31 = vld [vmem:[#allocation10 + $0x140] sm:$0xff]  }
 0x6dd   : > { %v15287_v7 = vpop.f32.mrb[0].mxu0  ;;  %v15289_v11 = vpop.f32.mrb[0].mxu1  ;;  %v13134_v4 = vcombine.high %v7584_v61, %v7588_v63  ;;  %v13133_v62 = vcombine.low %v7584_v61, %v7588_v63  ;;  %v13513_v61 = vld [vmem:[#allocation10 + $0x48] sm:$0xff]  }
 0x6de   : > { %v15291_v12 = vpop.f32.mrb[1].mxu0  ;;  %v15293_v13 = vpop.f32.mrb[1].mxu1 }
 0x6df   : > { %v10384_v50 = vpop.f32.mrb[2].mxu0  ;;  %10685 = vmatpush1.bf16.msra.mxu0 %v13083_v41  ;;  %v10548_v6 = vpop.f32.mrb[2].mxu1  ;;  %10849 = vmatpush1.bf16.msra.mxu1 %v13085_v17  ;;  %v7595_v41 = vld [vmem:[#allocation7 + $0xf30] sm:$0xff]  ;;  %v7592_v17 = vld [vmem:[#allocation7 + $0xf18] sm:$0xff]  ;;  %v13327_v23 = vadd.f32 %v15291_v12, %v7630_v33  ;;  %v13542_v33 = vld [vmem:[#allocation10 + $0x1c0] sm:$0xff]  }
 0x6e0   : > { %v10385_v51 = vpop.f32.mrb[3].mxu0  ;;  %10686 = vmatprep.subr.bf16.mxu0 %v13092_v5  ;;  %v10549_v43 = vpop.f32.mrb[3].mxu1  ;;  %10850 = vmatprep.subr.bf16.mxu1 %v13094_v56  ;;  %v7596_v5 = vld [vmem:[#allocation7 + $0xf38] sm:$0xff]  ;;  %v13131_v56 = vcombine.low %v7583_v53, %v7587_v58  ;;  %v13140_v40 = vcombine.high %v7591_v1, %v7595_v41  ;;  %v7603_v50 = vld [vmem:[#allocation7 + $0xf70] sm:$0xff]  ;;  %v13511_v53 = vld [vmem:[#allocation10] sm:$0xff]  }
 0x6e1   : > { %v13142_v9 = vcombine.high %v7592_v17, %v7596_v5  ;;  %v7604_v6 = vld [vmem:[#allocation7 + $0xf78] sm:$0xff]  ;;  %v13139_v51 = vcombine.low %v7591_v1, %v7595_v41  ;;  %v13512_v58 = vld [vmem:[#allocation10 + $0x80] sm:$0xff]  }
 0x6e2   : > { %v13519_v1 = vld [vmem:[#allocation10 + $0x10] sm:$0xff]  }
 0x6e3   : > { %10687 = vmatpush1.bf16.msra.mxu0 %v13091_v60  ;;  %10851 = vmatpush1.bf16.msra.mxu1 %v13093_v15  ;;  %v7600_v60 = vld [vmem:[#allocation7 + $0xf58] sm:$0xff]  ;;  %v13141_v15 = vcombine.low %v7592_v17, %v7596_v5  ;;  %v13521_v17 = vld [vmem:[#allocation10 + $0x58] sm:$0xff]  }
 0x6e4   : > { %10688 = vmatprep.subr.bf16.mxu0 %v13100_v52  ;;  %10852 = vmatprep.subr.bf16.mxu1 %v13102_v18  ;;  %v13148_v52 = vcombine.high %v7599_v42, %v7603_v50  ;;  %v13150_v43 = vcombine.high %v7600_v60, %v7604_v6  ;;  %v7607_v18 = vld [vmem:[#allocation7 + $0xf90] sm:$0xff]  ;;  %v13520_v41 = vld [vmem:[#allocation10 + $0x90] sm:$0xff]   ;;  %v13522_v5 = vld [vmem:[#allocation10 + $0xd8] sm:$0xff]  }
 0x6e7   : > { %10689 = vmatpush1.bf16.msra.mxu0 %v13099_v8  ;;  %10853 = vmatpush1.bf16.msra.mxu1 %v13101_v19  ;;  %v13147_v8 = vcombine.low %v7599_v42, %v7603_v50  ;;  %v13149_v19 = vcombine.low %v7600_v60, %v7604_v6  ;;  %v13528_v42 = vld [vmem:[#allocation10 + $0xa0] sm:$0xff]   ;;  %v13529_v50 = vld [vmem:[#allocation10 + $0x68] sm:$0xff]  }
 0x6e8   : > { %10690 = vmatprep.subr.bf16.mxu0 %v13108_v59  ;;  %10854 = vmatprep.subr.bf16.mxu1 %v13110_v29  ;;  %v13156_v59 = vcombine.high %v7607_v18, %v7611_v55  ;;  %v13158_v29 = vcombine.high %v7608_v22, %v7612_v26  ;;  %v13530_v60 = vld [vmem:[#allocation10 + $0xe8] sm:$0xff]  }
 0x6e9   : > { %v13531_v6 = vld [vmem:[#allocation10 + $0x28] sm:$0xff]  }
 0x6eb   : > { %10691 = vmatpush1.bf16.msra.mxu0 %v13107_v38  ;;  %10855 = vmatpush1.bf16.msra.mxu1 %v13109_v36  ;;  %v7620_v38 = vld [vmem:[#allocation7 + $0xff8] sm:$0xff]  ;;  %v7638_v36 = vrot.slane %v15295_v46, %v7059_v30  ;;  %v13510_v30 = vld [vmem:[#allocation10 + $0xc0] sm:$0xff]  }
 0x6ec   : > { %10692 = vmatprep.subr.bf16.mxu0 %v13116_v37  ;;  %10856 = vmatprep.subr.bf16.mxu1 %v13118_v39  ;;  %v13155_v37 = vcombine.low %v7607_v18, %v7611_v55  ;;  %v13157_v39 = vcombine.low %v7608_v22, %v7612_v26  ;;  %v13166_v20 = vcombine.high %v7616_v35, %v7620_v38  ;;  %v13534_v18 = vld [vmem:[#allocation10 + $0xf0] sm:$0xff]  }
 0x6ed   : > { %v13329_v49 = vadd.f32 %v15293_v13, %v7638_v36  ;;  %v13514_v13 = vld [vmem:[#allocation10 + $0xc8] sm:$0xff]   ;;  %v13535_v55 = vld [vmem:[#allocation10 + $0x30] sm:$0xff]  }
 0x6ee   : > { %v13536_v26 = vld [vmem:[#allocation10 + $0xb0] sm:$0xff]   ;;  %v13545_v36 = vld [vmem:[#allocation10 + $0x148] sm:$0xff]  }
 0x6ef   : > { %10693 = vmatpush1.bf16.msra.mxu0 %v13115_v45  ;;  %10857 = vmatpush1.bf16.msra.mxu1 %v13117_v25  ;;  %v13165_v45 = vcombine.low %v7616_v35, %v7620_v38  ;;  %v13509_v25 = vld [vmem:[#allocation10 + $0x40] sm:$0xff]  }
 0x6f0   : > { %10694 = vmatprep.subr.bf16.mxu0 %v13124_v48  ;;  %10858 = vmatprep.subr.bf16.mxu1 %v13126_v54  ;;  %v10880_v48 = vmax.f32 %v13327_v23, 0.0  ;;  %v10882_v54 = vmax.f32 %v13329_v49, 0.0  ;;  %v13544_v38 = vld [vmem:[#allocation10 + $0x180] sm:$0xff]   ;;  %v13550_v23 = vld [vmem:[#allocation10 + $0x1d0] sm:$0xff]  }
 0x6f1   : > { %v13551_v49 = vld [vmem:[#allocation10 + $0x110] sm:$0xff]  }
 0x6f2   : > { %v10888_v12 = vpack.c.bf16 %v10880_v48, %v10880_v48  ;;  %v10890_v63 = vpack.c.bf16 %v10882_v54, %v10882_v54  ;;  %v13556_v48 = vld [vmem:[#allocation10 + $0x198] sm:$0xff]   ;;  %v13557_v54 = vld [vmem:[#allocation10 + $0x160] sm:$0xff]  }
 0x6f3   : > { %10695 = vmatpush1.bf16.msra.mxu0 %v13123_v0  ;;  %10859 = vmatpush1.bf16.msra.mxu1 %v13125_v2  ;;  %v13515_v0 = vld [vmem:[#allocation10 + $0x8] sm:$0xff]  }
 0x6f4   : > { %10696 = vmatprep.subr.bf16.mxu0 %v13132_v3  ;;  %10860 = vmatprep.subr.bf16.mxu1 %v13134_v4  ;;  %v13516_v2 = vld [vmem:[#allocation10 + $0x88] sm:$0xff]   ;;  %v13517_v3 = vld [vmem:[#allocation10 + $0x50] sm:$0xff]  }
 0x6f5   : > { %v13518_v4 = vld [vmem:[#allocation10 + $0xd0] sm:$0xff]  }
 0x6f7   : > { %10697 = vmatpush1.bf16.msra.mxu0 %v13131_v56  ;;  %10861 = vmatpush1.bf16.msra.mxu1 %v13133_v62  ;;  %v13524_v56 = vld [vmem:[#allocation10 + $0x98] sm:$0xff]   ;;  %v13525_v62 = vld [vmem:[#allocation10 + $0x60] sm:$0xff]  }
 0x6f8   : > { %10698 = vmatprep.subr.bf16.mxu0 %v13140_v40  ;;  %10862 = vmatprep.subr.bf16.mxu1 %v13142_v9  ;;  %v13526_v40 = vld [vmem:[#allocation10 + $0xe0] sm:$0xff]  }
 0x6f9   : > { %v13527_v9 = vld [vmem:[#allocation10 + $0x20] sm:$0xff]  }
 0x6fb   : > { %10699 = vmatpush1.bf16.msra.mxu0 %v13139_v51  ;;  %10863 = vmatpush1.bf16.msra.mxu1 %v13141_v15  ;;  %v7626_v51 = vrot.slane %v15295_v46, %v7047_v21  ;;  %v13532_v15 = vld [vmem:[#allocation10 + $0xa8] sm:$0xff]  }
 0x6fc   : > { %10700 = vmatprep.subr.bf16.mxu0 %v13148_v52  ;;  %10864 = vmatprep.subr.bf16.mxu1 %v13150_v43  ;;  %v13533_v52 = vld [vmem:[#allocation10 + $0x70] sm:$0xff]   ;;  %v7634_v43 = vrot.slane %v15295_v46, %v7055_v10  ;;  %v13540_v10 = vld [vmem:[#allocation10 + $0xb8] sm:$0xff]  }
 0x6fd   : > { %v13326_v22 = vadd.f32 %v15287_v7, %v7626_v51  ;;  %v13543_v7 = vld [vmem:[#allocation10 + $0x100] sm:$0xff]  }
 0x6fe   : > { %v13328_v21 = vadd.f32 %v15289_v11, %v7634_v43 }
 0x6ff   : > { %10701 = vmatpush1.bf16.msra.mxu0 %v13147_v8  ;;  %10865 = vmatpush1.bf16.msra.mxu1 %v13149_v19  ;;  %v13537_v8 = vld [vmem:[#allocation10 + $0x78] sm:$0xff]  }
 0x700   : > { %10702 = vmatprep.subr.bf16.mxu0 %v13156_v59  ;;  %10866 = vmatprep.subr.bf16.mxu1 %v13158_v29  ;;  %v13538_v19 = vld [vmem:[#allocation10 + $0xf8] sm:$0xff]   ;;  %v10879_v29 = vmax.f32 %v13326_v22, 0.0  ;;  %v10881_v32 = vmax.f32 %v13328_v21, 0.0 }
 0x701   : > { %v13539_v59 = vld [vmem:[#allocation10 + $0x38] sm:$0xff]  }
 0x702   : > { %v10887_v35 = vpack.c.bf16 %v10879_v29, %v10879_v29  ;;  %v10889_v11 = vpack.c.bf16 %v10881_v32, %v10881_v32  ;;  %v13167_v29 = vld [vmem:[#allocation11] ss:$0 sm:$0xff] }
 0x703   : > { %10703 = vmatpush1.bf16.msra.mxu0 %v13155_v37  ;;  %10867 = vmatpush1.bf16.msra.mxu1 %v13157_v39  ;;  %v13546_v37 = vld [vmem:[#allocation10 + $0x1c8] sm:$0xff]  }
 0x704   : > { %10704 = vmatprep.subr.bf16.mxu0 %v13164_v27  ;;  %10868 = vmatprep.subr.bf16.mxu1 %v13166_v20  ;;  %v13547_v39 = vld [vmem:[#allocation10 + $0x108] sm:$0xff]   ;;  %v13549_v20 = vld [vmem:[#allocation10 + $0x150] sm:$0xff]  }
 0x705   : > { %v13548_v27 = vld [vmem:[#allocation10 + $0x188] sm:$0xff]  }
 0x707   : > { %10705 = vmatpush1.bf16.msra.mxu0 %v13163_v34  ;;  %10869 = vmatpush1.bf16.msra.mxu1 %v13165_v45  ;;  %v13552_v34 = vld [vmem:[#allocation10 + $0x190] sm:$0xff]   ;;  %v13553_v45 = vld [vmem:[#allocation10 + $0x158] sm:$0xff]  }
 0x708   : > { %13238 = vmatprep.subr.bf16.mxu0 %v13509_v25  ;;  %13260 = vmatprep.subr.bf16.mxu1 %v13510_v30  ;;  %v13554_v25 = vld [vmem:[#allocation10 + $0x1d8] sm:$0xff]  }
 0x709   : > { %v13555_v30 = vld [vmem:[#allocation10 + $0x118] sm:$0xff]  }
 0x70a   : > { %10707 = vmatmul.mubr.bf16.vlgmr.msra.gmra.mrb[4].mxu0 %v15269_v24  ;;  %10871 = vmatmul.mubr.bf16.vlgmr.msra.gmra.mrb[4].mxu1 %v15269_v24  ;;  %v13523_v24 = vld [vmem:[#allocation10 + $0x18] sm:$0xff]  }
 0x70b   : > { %13239 = vmatpush3.bf16.msra.mxu0 %v13511_v53  ;;  %11446 = vmatprep.mubr.bf16.mxu0 %v10888_v12  ;;  %v13558_v53 = vld [vmem:[#allocation10 + $0x1e0] sm:$0xff]   ;;  %v13561_v12 = vld [vmem:[#allocation10 + $0x168] sm:$0xff]  }
 0x70c   : > { %13261 = vmatpush3.bf16.msra.mxu1 %v13512_v58  ;;  %11486 = vmatprep.mubr.bf16.mxu1 %v10890_v63  ;;  %v13559_v58 = vld [vmem:[#allocation10 + $0x120] sm:$0xff]   ;;  %v13563_v63 = vld [vmem:[#allocation10 + $0x128] sm:$0xff]  }
 0x70d   : > { %13240 = vmatprep.subr.bf16.mxu0 %v13513_v61  ;;  %13262 = vmatprep.subr.bf16.mxu1 %v13514_v13  ;;  %v13560_v61 = vld [vmem:[#allocation10 + $0x1a0] sm:$0xff]   ;;  %v13562_v13 = vld [vmem:[#allocation10 + $0x1e8] sm:$0xff]  }
 0x70f   : > { %13241 = vmatpush3.bf16.msra.mxu0 %v13515_v0  ;;  %v13564_v0 = vld [vmem:[#allocation10 + $0x1a8] sm:$0xff]  }
 0x710   : > { %13263 = vmatpush3.bf16.msra.mxu1 %v13516_v2  ;;  %13242 = vmatprep.subr.bf16.mxu0 %v13517_v3  ;;  %v13565_v2 = vld [vmem:[#allocation10 + $0x170] sm:$0xff]  }
 0x711   : > { %13264 = vmatprep.subr.bf16.mxu1 %v13518_v4  ;;  %v13566_v3 = vld [vmem:[#allocation10 + $0x1f0] sm:$0xff]  }
 0x712   : > { %v13567_v4 = vld [vmem:[#allocation10 + $0x130] sm:$0xff]  }
 0x713   : > { %13243 = vmatpush3.bf16.msra.mxu0 %v13519_v1  ;;  %v13568_v1 = vld [vmem:[#allocation10 + $0x1b0] sm:$0xff]  }
 0x714   : > { %13265 = vmatpush3.bf16.msra.mxu1 %v13520_v41  ;;  %13244 = vmatprep.subr.bf16.mxu0 %v13521_v17  ;;  %v13569_v41 = vld [vmem:[#allocation10 + $0x178] sm:$0xff]  }
 0x715   : > { %13266 = vmatprep.subr.bf16.mxu1 %v13522_v5  ;;  %v13570_v17 = vld [vmem:[#allocation10 + $0x1f8] sm:$0xff]  }
 0x716   : > { %v13571_v5 = vld [vmem:[#allocation10 + $0x138] sm:$0xff]  }
 0x717   : > { %13245 = vmatpush3.bf16.msra.mxu0 %v13523_v24  ;;  %v13572_v24 = vld [vmem:[#allocation10 + $0x1b8] sm:$0xff]  }
 0x718   : > { %13267 = vmatpush3.bf16.msra.mxu1 %v13524_v56  ;;  %13246 = vmatprep.subr.bf16.mxu0 %v13525_v62  ;;  %v7642_v56 = vrot.slane %v15295_v46, %v7063_v47  ;;  %v7650_v62 = vrot.slane %v15295_v46, %v7071_v44 }
 0x719   : > { %13268 = vmatprep.subr.bf16.mxu1 %v13526_v40  ;;  %v7646_v40 = vrot.slane %v15295_v46, %v7067_v14 }
 0x71b   : > { %13247 = vmatpush3.bf16.msra.mxu0 %v13527_v9  ;;  %v7654_v9 = vrot.slane %v15295_v46, %v7075_v57 }
 0x71c   : > { %13269 = vmatpush3.bf16.msra.mxu1 %v13528_v42  ;;  %13248 = vmatprep.subr.bf16.mxu0 %v13529_v50 }
 0x71d   : > { %13270 = vmatprep.subr.bf16.mxu1 %v13530_v60 }
 0x71f   : > { %13249 = vmatpush3.bf16.msra.mxu0 %v13531_v6 }
 0x720   : > { %13271 = vmatpush3.bf16.msra.mxu1 %v13532_v15  ;;  %13250 = vmatprep.subr.bf16.mxu0 %v13533_v52 }
 0x721   : > { %13272 = vmatprep.subr.bf16.mxu1 %v13534_v18 }
 0x723   : > { %13251 = vmatpush3.bf16.msra.mxu0 %v13535_v55 }
 0x724   : > { %13273 = vmatpush3.bf16.msra.mxu1 %v13536_v26  ;;  %13252 = vmatprep.subr.bf16.mxu0 %v13537_v8 }
 0x725   : > { %13274 = vmatprep.subr.bf16.mxu1 %v13538_v19 }
 0x727   : > { %13253 = vmatpush3.bf16.msra.mxu0 %v13539_v59 }
 0x728   : > { %13275 = vmatpush3.bf16.msra.mxu1 %v13540_v10  ;;  %13282 = vmatprep.subr.bf16.mxu0 %v13541_v31 }
 0x729   : > { %13304 = vmatprep.subr.bf16.mxu1 %v13542_v33 }
 0x72a   : > { %11447 = vmatmul.mubr.bf16.vlgmr.msra.gmra.mrb[8].mxu0 %v10887_v35 }
 0x72b   : > { %11487 = vmatmul.mubr.bf16.vlgmr.msra.gmra.mrb[8].mxu1 %v10889_v11  ;;  %13283 = vmatpush3.bf16.msra.mxu0 %v13543_v7 }
 0x72c   : > { %13305 = vmatpush3.bf16.msra.mxu1 %v13544_v38  ;;  %13284 = vmatprep.subr.bf16.mxu0 %v13545_v36 }
 0x72d   : > { %13306 = vmatprep.subr.bf16.mxu1 %v13546_v37 }
 0x72f   : > { %13285 = vmatpush3.bf16.msra.mxu0 %v13547_v39 }
 0x730   : > { %13307 = vmatpush3.bf16.msra.mxu1 %v13548_v27  ;;  %13286 = vmatprep.subr.bf16.mxu0 %v13549_v20 }
 0x731   : > { %13308 = vmatprep.subr.bf16.mxu1 %v13550_v23  ;;  %v11575_v23 = vand.u32 127, %v7045_v28 }
 0x733   : > { %13287 = vmatpush3.bf16.msra.mxu0 %v13551_v49  ;;  %vm11576_vm0 = vcmp.lt.s32.totalorder %v11575_v23, 5 }
 0x734   : > { %13309 = vmatpush3.bf16.msra.mxu1 %v13552_v34  ;;  %13288 = vmatprep.subr.bf16.mxu0 %v13553_v45 }
 0x735   : > { %13310 = vmatprep.subr.bf16.mxu1 %v13554_v25 }
 0x737   : > { %13289 = vmatpush3.bf16.msra.mxu0 %v13555_v30 }
 0x738   : > { %13311 = vmatpush3.bf16.msra.mxu1 %v13556_v48  ;;  %13290 = vmatprep.subr.bf16.mxu0 %v13557_v54 }
 0x739   : > { %13312 = vmatprep.subr.bf16.mxu1 %v13558_v53 }
 0x73b   : > { %13291 = vmatpush3.bf16.msra.mxu0 %v13559_v58 }
 0x73c   : > { %13313 = vmatpush3.bf16.msra.mxu1 %v13560_v61  ;;  %13292 = vmatprep.subr.bf16.mxu0 %v13561_v12 }
 0x73d   : > { %13314 = vmatprep.subr.bf16.mxu1 %v13562_v13 }
 0x73f   : > { %13293 = vmatpush3.bf16.msra.mxu0 %v13563_v63 }
 0x740   : > { %13315 = vmatpush3.bf16.msra.mxu1 %v13564_v0  ;;  %13294 = vmatprep.subr.bf16.mxu0 %v13565_v2 }
 0x741   : > { %13316 = vmatprep.subr.bf16.mxu1 %v13566_v3 }
 0x743   : > { %13295 = vmatpush3.bf16.msra.mxu0 %v13567_v4 }
 0x744   : > { %13317 = vmatpush3.bf16.msra.mxu1 %v13568_v1  ;;  %13296 = vmatprep.subr.bf16.mxu0 %v13569_v41 }
 0x745   : > { %13318 = vmatprep.subr.bf16.mxu1 %v13570_v17 }
 0x747   : > { %13297 = vmatpush3.bf16.msra.mxu0 %v13571_v5 }
 0x748   : > { %13319 = vmatpush3.bf16.msra.mxu1 %v13572_v24 }
 0x7dd   : > { %v10708_v42 = vpop.f32.mrb[4].mxu0  ;;  %v10872_v60 = vpop.f32.mrb[4].mxu1 }
 0x7de   : > { %v13330_v50 = vadd.f32 %v10708_v42, %v7642_v56  ;;  %v10710_v6 = vpop.f32.mrb[5].mxu0  ;;  %v13332_v51 = vadd.f32 %v10872_v60, %v7650_v62  ;;  %v10874_v52 = vpop.f32.mrb[5].mxu1 }
 0x7df   : > { %v13331_v15 = vadd.f32 %v10710_v6, %v7646_v40  ;;  %v10712_v47 = vpop.f32.mrb[6].mxu0  ;;  %v13333_v18 = vadd.f32 %v10874_v52, %v7654_v9  ;;  %v10876_v55 = vpop.f32.mrb[6].mxu1 }
 0x7e0   : > { %v10883_v43 = vmax.f32 %v13330_v50, 0.0  ;;  %v10713_v44 = vpop.f32.mrb[7].mxu0  ;;  %v10885_v22 = vmax.f32 %v13332_v51, 0.0  ;;  %v10877_v8 = vpop.f32.mrb[7].mxu1 }
 0x7e1   : > { %v10884_v26 = vmax.f32 %v13331_v15, 0.0  ;;  %v10886_v14 = vmax.f32 %v13333_v18, 0.0 }
 0x7e2   : > { %v10891_v16 = vpack.c.bf16 %v10883_v43, %v10883_v43  ;;  %v10893_v57 = vpack.c.bf16 %v10885_v22, %v10885_v22 }
 0x7e3   : > { %v10892_v21 = vpack.c.bf16 %v10884_v26, %v10884_v26  ;;  %v10894_v19 = vpack.c.bf16 %v10886_v14, %v10886_v14 }
 0x7e5   : > { %11526 = vmatprep.mubr.bf16.mxu0 %v10892_v21  ;;  %11566 = vmatprep.mubr.bf16.mxu1 %v10894_v19 }
 0x7e6   : > { %11527 = vmatmul.mubr.bf16.vlgmr.msra.gmra.mrb[12].mxu0 %v10891_v16  ;;  %11567 = vmatmul.mubr.bf16.vlgmr.msra.gmra.mrb[12].mxu1 %v10893_v57 }
 0x7fd   : > { %v13254_v46 = vpop.f32.mrb[8].mxu0 }
 0x7fe   : > { %v13276_v59 = vpop.f32.mrb[8].mxu1  ;;  %v13255_v10 = vpop.f32.mrb[9].mxu0 }
 0x7ff   : > { %v13256_v31 = vadd.f32 %v13255_v10, %v13254_v46  ;;  %v13277_v32 = vpop.f32.mrb[9].mxu1  ;;  %v13257_v33 = vpop.f32.mrb[10].mxu0 }
 0x800   : > { %v13278_v7 = vadd.f32 %v13277_v32, %v13276_v59  ;;  %v13279_v35 = vpop.f32.mrb[10].mxu1  ;;  %v13258_v38 = vpop.f32.mrb[11].mxu0 }
 0x801   : > { %v11449_v36 = vadd.f32 %v13256_v31, %v13167_v29  ;;  %v13280_v11 = vpop.f32.mrb[11].mxu1 }
 0x803   : > { %v11489_v37 = vadd.f32 %v13278_v7, %v11449_v36 }
 0x8b9   : > { %v13298_v39 = vpop.f32.mrb[12].mxu0  ;;  %v13320_v27 = vpop.f32.mrb[12].mxu1 }
 0x8ba   : > { %v13299_v20 = vpop.f32.mrb[13].mxu0  ;;  %v13321_v34 = vpop.f32.mrb[13].mxu1 }
 0x8bb   : > { %v13300_v49 = vadd.f32 %v13299_v20, %v13298_v39  ;;  %v13301_v45 = vpop.f32.mrb[14].mxu0  ;;  %v13322_v25 = vadd.f32 %v13321_v34, %v13320_v27  ;;  %v13323_v30 = vpop.f32.mrb[14].mxu1 }
 0x8bc   : > { %v13302_v48 = vpop.f32.mrb[15].mxu0  ;;  %v13324_v53 = vpop.f32.mrb[15].mxu1 }
 0x8bd   : > { %v11529_v54 = vadd.f32 %v13300_v49, %v11489_v37 }
 0x8bf   : > { %v11569_v58 = vadd.f32 %v13322_v25, %v11529_v54 }
 0x8c1   : > { %v11577_v61 = vsel %vm11576_vm0, %v11569_v58, -1e+30 }
 0x8c2   : > { %11578 = vmax.xlane.f32.xlu0 %v11577_v61 }
 0x94f   : > { %v11579_v12 = vpop.xlane.xlu0 %11578 }
 0x950   : > { %v11580_v13 = vsub.f32 %v11577_v61, %v11579_v12 }
 0x952   : > { %v11581_v63 = vmul.f32 1.442695, %v11580_v13 }
 0x954   : > { %13573 = vpow2.f32 %v11581_v63 }
 0x95e   : > { %v13574_v0 = vpop.eup %13573 }
 0x95f   : > { %v11583_v2 = vsel %vm11576_vm0, %v13574_v0, 0.0 }
 0x960   : > { %11584 = vadd.xlane.f32.xlu0 %v11583_v2 }
 0x9ed   : > { %v11585_v28 = vpop.xlane.xlu0 %11584 }
 0x9ee   : > { %13575 = vrcp.f32 %v11585_v28 }
 0x9f8   : > { %v13576_v3 = vpop.eup %13575 }
 0x9f9   : > { %v11587_v4 = vmul.f32 %v13576_v3, %v11583_v2 }
 0x9fb   : > { %v11588_v1 = vsel %vm11576_vm0, %v11587_v4, %v11569_v58 }
 0x9fc   : > { %11589 = vst [vmem:[%s15356_s7] sm:$0xff] %v11588_v1 }
 0x9fd PF: > { %s23_s29 = sadd.s32 1, %s13810_s29   ;;  %s15375_s24 = smov %s13794_s25 }
 0x9fe   : > { %p20_p1 = scmp.ge.s32.totalorder %s23_s29, 9   ;;  %s15376_s25 = smov %s13798_s26 }
 0x9ff   : > { %s15377_s26 = smov %s14046_s19  ;;  %s15378_s27 = smov %s13806_s28 }
 0xa00   : > { %s15379_s28 = smov %s15381_s22  ;;  %22 = sbr.rel (!%p20_p1) target bundleno = 9 (0x9), region = 119 }
 0xa07   :  { %11609 = vsyncpa [#allocation4], 1 }
 0xa08   :  { %11611 = vsyncpa [#allocation4 + $0x1], 1 }
 0xa09   :  { %11612 = vsyncpa [#allocation6], 1 }
 0xa0a   :  { %11613 = vsyncpa [#allocation9], 1 }
 0xa0b   :  { %11614 = vsyncpa [#allocation12], 1 }

</bundles_post_ra>
